<compile_context>
chip_gen: v7x
topology: tpu7x:2x2x1
jax: 0.10.0
libtpu: 0.0.40
codegen_flags: <defaults>
</compile_context>

<pallas_src>
import jax
import jax.numpy as jnp
from jax.experimental import pallas as pl
from jax.experimental.pallas import tpu as pltpu

NETWORK_CHANNELS = 64
PERIODICITY = 65
BAND_SIZES = [512, 1024, 2048, 4096, 8192, 16384]
NB = len(BAND_SIZES)
ADJUST = {512: 0.05, 1024: 0.03, 2048: 0.05, 4096: 0.25, 8192: 1.0, 16384: 20.0}

# BranchEncoder.down Conv3d configs: (cin, cout, kernel) with stride == kernel, pad 0.
LAYER_CFG = [
    (1, 8, (2, 2, 2)),
    (8, 16, (2, 2, 2)),
    (16, 32, (2, 2, 2)),
    (32, NETWORK_CHANNELS, (2, 2, 2)),
    (NETWORK_CHANNELS, NETWORK_CHANNELS, (2, 2, 2)),
    (NETWORK_CHANNELS, NETWORK_CHANNELS, (2, 1, 2)),
]
# Wo-fold factor per layer (lane-density fix): makes N >= 128 for layers 1-4.
LAYER_FOLD = [32, 8, 4, 2, 1, 1]

TM_CAP = 4096  # rows per block; worst-case block + double buffering stays ~ a few MiB


# ----------------------------- Pallas kernels --------------------------------
def _make_conv_kernel(activate_input):
    """matmul + bias, optionally applying leaky_relu(0.2) to the loaded A tile
    (the previous layer's pre-activation).  Emits pre-activation only."""
    def kernel(a_ref, w_ref, b_ref, y_ref):
        a = a_ref[0]
        if activate_input:
            a = jnp.maximum(a, 0.2 * a)
        y_ref[0] = (jnp.dot(a, w_ref[0], preferred_element_type=jnp.float32)
                    + b_ref[0])
    return kernel


def _tail_kernel(a_ref, w6_ref, b6_ref, wf_ref, bf_ref, feat_ref, out_ref):
    """Fused layer 6 + final Linear.  Per band:
       y6      = lrelu(layer5_preact) @ W6 + b6     -> written as feature
       out    += lrelu(y6) @ Wfinal[band]            (init with final bias)"""
    band = pl.program_id(0)
    a = jnp.maximum(a_ref[0], 0.2 * a_ref[0])          # lrelu of layer-5 pre-act
    y6 = jnp.dot(a, w6_ref[0], preferred_element_type=jnp.float32) + b6_ref[0]
    feat_ref[0] = y6
    code = jnp.maximum(y6, 0.2 * y6)
    contrib = jnp.dot(code, wf_ref[0], preferred_element_type=jnp.float32)

    @pl.when(band == 0)
    def _():
        out_ref[...] = jnp.zeros_like(out_ref) + bf_ref[...]

    out_ref[...] = out_ref[...] + contrib


def _pick_tm(m, cap=TM_CAP):
    tm = m
    while tm > cap and tm % 2 == 0:
        tm //= 2
    return tm


def band_matmul_bias(a, w, b, *, activate_input):
    """Per-band batched matmul + bias, pre-activation output only.

    a: (NB, M, K)  w: (NB, K, N)  b: (NB, N)  ->  y (NB, M, N)."""
    nb, M, K = a.shape
    N = w.shape[-1]
    tm = _pick_tm(M)
    return pl.pallas_call(
        _make_conv_kernel(activate_input),
        out_shape=jax.ShapeDtypeStruct((nb, M, N), jnp.float32),
        grid=(nb, M // tm),
        in_specs=[
            pl.BlockSpec((1, tm, K), lambda i, j: (i, j, 0)),
            pl.BlockSpec((1, K, N), lambda i, j: (i, 0, 0)),
            pl.BlockSpec((1, 1, N), lambda i, j: (i, 0, 0)),
        ],
        out_specs=pl.BlockSpec((1, tm, N), lambda i, j: (i, j, 0)),
        compiler_params=pltpu.CompilerParams(
            dimension_semantics=("parallel", "parallel")),
    )(a, w, b.reshape(nb, 1, N))


def tail_layer(a, w6, b6, wf, bf):
    """Fused layer-6 + final Linear.

    a: (NB, B, 256) layer-6 im2col of layer-5 pre-activation
    w6: (NB, 256, 64), b6: (NB, 64), wf: (NB, 64, 64), bf: (64,)
    returns feat6 (NB, B, 64), code_out (B, 64)."""
    nb, B, K = a.shape
    N = NETWORK_CHANNELS
    feat6, code_out = pl.pallas_call(
        _tail_kernel,
        out_shape=(jax.ShapeDtypeStruct((nb, B, N), jnp.float32),
                   jax.ShapeDtypeStruct((B, N), jnp.float32)),
        grid=(nb,),
        in_specs=[
            pl.BlockSpec((1, B, K), lambda i: (i, 0, 0)),
            pl.BlockSpec((1, K, N), lambda i: (i, 0, 0)),
            pl.BlockSpec((1, 1, N), lambda i: (i, 0, 0)),
            pl.BlockSpec((1, N, N), lambda i: (i, 0, 0)),
            pl.BlockSpec((1, N), lambda i: (0, 0)),
        ],
        out_specs=(
            pl.BlockSpec((1, B, N), lambda i: (i, 0, 0)),
            pl.BlockSpec((B, N), lambda i: (0, 0)),   # resident accumulator
        ),
        compiler_params=pltpu.CompilerParams(
            dimension_semantics=("arbitrary",)),
    )(a, w6, b6.reshape(nb, 1, N), wf, bf.reshape(1, N))
    return feat6, code_out


# ------------------------------ JAX glue -------------------------------------
def _im2col_cl(x, k):
    """Non-overlapping 3D patches on a channels-last tensor (stride == kernel, no pad).

    x: (NB, B, D, H, W, C) -> (NB, B*Do*Ho*Wo, kd*kh*kw*C), plus (Do, Ho, Wo).
    K ordering is (kd, kh, kw, cin) to match the reordered weight matrix."""
    nb, B, D, H, W, C = x.shape
    kd, kh, kw = k
    Do, Ho, Wo = D // kd, H // kh, W // kw
    x = x[:, :, :Do * kd, :Ho * kh, :Wo * kw, :]
    x = x.reshape(nb, B, Do, kd, Ho, kh, Wo, kw, C)
    x = x.transpose(0, 1, 2, 4, 6, 3, 5, 7, 8)      # (NB,B,Do,Ho,Wo,kd,kh,kw,C)
    return x.reshape(nb, B * Do * Ho * Wo, kd * kh * kw * C), (Do, Ho, Wo)


def _fold_wo(a, wmat, bvec, f):
    """Fold `f` consecutive output rows into the lane dimension via a
    block-diagonal weight, making A/W/Y lane-dense for tiny-N layers.
    A-side fold and Y-side unfold are pure (free) reshapes."""
    if f == 1:
        return a, wmat, bvec
    nb, M, K = a.shape
    N = wmat.shape[-1]
    a = a.reshape(nb, M // f, f * K)
    eye = jnp.eye(f, dtype=wmat.dtype)
    wmat = jnp.einsum('ij,bkn->bikjn', eye, wmat).reshape(nb, f * K, f * N)
    bvec = jnp.tile(bvec, (1, f))
    return a, wmat, bvec


def _stacked_weight(enc_params, li, cin, cout, k):
    kd, kh, kw = k
    wmat = jnp.stack([
        jnp.transpose(enc_params[bs][li][0], (2, 3, 4, 1, 0)).reshape(
            kd * kh * kw * cin, cout)
        for bs in BAND_SIZES])
    bvec = jnp.stack([enc_params[bs][li][1] for bs in BAND_SIZES])
    return wmat, bvec


def encoder_forward(xdict, enc_params, final_w, final_b):
    """xdict[band]: (B, 64, 32, 65) f32.  Returns (code (B,64), features (B, 6*174400))."""
    B = xdict[BAND_SIZES[0]].shape[0]
    # Stack the 6 bands; keep channels-last (NDHWC) with C=1.
    x = jnp.stack([xdict[bs] for bs in BAND_SIZES], axis=0)
    x = x.reshape(NB, B, NETWORK_CHANNELS, 32, PERIODICITY, 1)
    adj = jnp.array([ADJUST[bs] for bs in BAND_SIZES], jnp.float32)

    feats = []
    # ---- layers 1..5: im2col glue + one pallas_call each --------------------
    for li in range(5):
        cin, cout, k = LAYER_CFG[li]
        wmat, bvec = _stacked_weight(enc_params, li, cin, cout, k)
        if li == 0:
            # Fold the per-band ADJUST scale into the layer-1 weights.
            wmat = wmat * adj.reshape(NB, 1, 1)

        a, (Do, Ho, Wo) = _im2col_cl(x, k)
        a, wmat, bvec = _fold_wo(a, wmat, bvec, LAYER_FOLD[li])
        # Pre-activation only; the previous layer's lrelu is applied in-kernel.
        y = band_matmul_bias(a, wmat, bvec, activate_input=(li > 0))

        # Unfold + back to channels-last (NB,B,Do,Ho,Wo,C) — pure reshape.
        y = y.reshape(NB, B, Do, Ho, Wo, cout)
        # features are PRE-activation, flattened in torch NCDHW order (C,Do,Ho,Wo).
        feats.append(jnp.transpose(y, (0, 1, 5, 2, 3, 4)).reshape(NB, B, -1))
        x = y  # next layer activates its input inside the kernel

    # ---- fused layer 6 + final Linear ---------------------------------------
    cin, cout, k = LAYER_CFG[5]                       # (64, 64, (2,1,2))
    kd, kh, kw = k
    # Layer-6 covers the whole remaining (2,1,2) spatial grid, so its im2col of
    # the channels-last layer-5 output is a pure reshape (K order = d,h,w,c).
    a6 = x.reshape(NB, B, kd * kh * kw * cin)
    w6, b6 = _stacked_weight(enc_params, 5, cin, cout, k)
    # final_w is torch Linear weight (out=64, in=384); split per band -> (NB, 64in, 64out)
    wf = jnp.transpose(final_w.reshape(NETWORK_CHANNELS, NB, NETWORK_CHANNELS),
                       (1, 2, 0))
    feat6, code_out = tail_layer(a6, w6, b6, wf, final_b)
    feats.append(feat6)

    features = jnp.transpose(jnp.concatenate(feats, axis=2),
                             (1, 0, 2)).reshape(B, -1)
    return code_out, features


# ------------------------- deterministic parameters ---------------------------
def init_params(key):
    # synthetic stand-in for make_initializer(0.1): uniform(-0.1, 0.1)
    enc_params = {}
    for bs in BAND_SIZES:
        layers = []
        for cin, cout, k in LAYER_CFG:
            key, k1, k2 = jax.random.split(key, 3)
            w = jax.random.uniform(k1, (cout, cin, *k), jnp.float32, -0.1, 0.1)
            b = jax.random.uniform(k2, (cout,), jnp.float32, -0.1, 0.1)
            layers.append((w, b))
        enc_params[bs] = layers
    key, k1, k2 = jax.random.split(key, 3)
    final_w = jax.random.uniform(k1, (NETWORK_CHANNELS, 6 * NETWORK_CHANNELS),
                                 jnp.float32, -0.1, 0.1)  # torch Linear weight (out, in)
    final_b = jax.random.uniform(k2, (NETWORK_CHANNELS,), jnp.float32, -0.1, 0.1)
    return enc_params, final_w, final_b


if __name__ == "__main__":
    key = jax.random.PRNGKey(0)
    pkey, dkey = jax.random.split(key)
    enc_params, final_w, final_b = init_params(pkey)

    B = 2
    xdict = {}
    for bs in BAND_SIZES:
        dkey, sk = jax.random.split(dkey)
        xdict[bs] = jax.random.normal(sk, (B, NETWORK_CHANNELS, 32, PERIODICITY),
                                      jnp.float32)

    fwd = jax.jit(encoder_forward)
    y, features = fwd(xdict, enc_params, final_w, final_b)
    jax.block_until_ready((y, features))

    per_branch_feat = 131072 + 32768 + 8192 + 2048 + 256 + 64  # 174400
    assert y.shape == (B, NETWORK_CHANNELS)
    assert features.shape == (B, NB * per_branch_feat)
    print("KERNEL_OK")
</pallas_src>

<mosaic_0001>
module attributes {stable_mosaic.version = 11 : i64} {
  func.func @kernel(%arg0: i32, %arg1: i32, %arg2: memref<1x1024x256xf32, #tpu.memory_space<vmem>>, %arg3: memref<1x256x256xf32, #tpu.memory_space<vmem>>, %arg4: memref<1x1x256xf32, #tpu.memory_space<vmem>>, %arg5: memref<1x1024x256xf32, #tpu.memory_space<vmem>>) attributes {dimension_semantics = [#tpu.dimension_semantics<parallel>, #tpu.dimension_semantics<parallel>], iteration_bounds = array<i64: 6, 1>, scalar_prefetch = 0 : i64, scratch_operands = 0 : i64, tpu.core_type = #tpu.core_type<tc>, window_params = [{transform_indices = @transform_0, window_bounds = array<i64: 1, 1024, 256>}, {transform_indices = @transform_1, window_bounds = array<i64: 1, 256, 256>}, {transform_indices = @transform_2, window_bounds = array<i64: 1, 1, 256>}, {transform_indices = @transform_3, window_bounds = array<i64: 1, 1024, 256>}]} {
    %c0 = arith.constant 0 : index
    %c0_0 = arith.constant 0 : index
    %c0_1 = arith.constant 0 : index
    %0 = vector.load %arg2[%c0, %c0_0, %c0_1] : memref<1x1024x256xf32, #tpu.memory_space<vmem>>, vector<1x1024x256xf32>
    %1 = vector.shape_cast %0 : vector<1x1024x256xf32> to vector<1024x256xf32>
    %c0_2 = arith.constant 0 : index
    %c0_3 = arith.constant 0 : index
    %c0_4 = arith.constant 0 : index
    %2 = vector.load %arg3[%c0_2, %c0_3, %c0_4] : memref<1x256x256xf32, #tpu.memory_space<vmem>>, vector<1x256x256xf32>
    %3 = vector.shape_cast %2 : vector<1x256x256xf32> to vector<256x256xf32>
    %cst = arith.constant dense<0.000000e+00> : vector<1024x256xf32>
    %4 = tpu.matmul %1, %3, %cst {dimension_numbers = #tpu.dot_dimension_numbers<[1], [0], [0], [1], [0, 0, 1, 1], [], []>} : vector<1024x256xf32>, vector<256x256xf32>, vector<1024x256xf32> -> vector<1024x256xf32>
    %c0_5 = arith.constant 0 : index
    %c0_6 = arith.constant 0 : index
    %c0_7 = arith.constant 0 : index
    %5 = vector.load %arg4[%c0_5, %c0_6, %c0_7] : memref<1x1x256xf32, #tpu.memory_space<vmem>>, vector<1x1x256xf32>
    %6 = vector.shape_cast %5 : vector<1x1x256xf32> to vector<1x256xf32>
    %7 = vector.broadcast %6 : vector<1x256xf32> to vector<1024x256xf32>
    %8 = arith.addf %4, %7 : vector<1024x256xf32>
    %c0_8 = arith.constant 0 : index
    %c0_9 = arith.constant 0 : index
    %c0_10 = arith.constant 0 : index
    %9 = vector.load %arg5[%c0_8, %c0_9, %c0_10] : memref<1x1024x256xf32, #tpu.memory_space<vmem>>, vector<1x1024x256xf32>
    %10 = vector.shape_cast %9 : vector<1x1024x256xf32> to vector<1024x256xf32>
    %11 = vector.shape_cast %8 : vector<1024x256xf32> to vector<1x1024x256xf32>
    tpu.vector_store %arg5[%c0_8, %c0_9, %c0_10], %11 {strides = array<i32>} : memref<1x1024x256xf32, #tpu.memory_space<vmem>>, vector<1x1024x256xf32>,
    return
  }
  func.func @transform_0(%arg0: i32, %arg1: i32) -> (i32, i32, i32) {
    %c0_i32 = arith.constant 0 : i32
    %c0_i32_0 = arith.constant 0 : i32
    return %arg0, %arg1, %c0_i32 : i32, i32, i32
  }
  func.func @transform_1(%arg0: i32, %arg1: i32) -> (i32, i32, i32) {
    %c0_i32 = arith.constant 0 : i32
    %c0_i32_0 = arith.constant 0 : i32
    %c0_i32_1 = arith.constant 0 : i32
    return %arg0, %c0_i32, %c0_i32_0 : i32, i32, i32
  }
  func.func @transform_2(%arg0: i32, %arg1: i32) -> (i32, i32, i32) {
    %c0_i32 = arith.constant 0 : i32
    %c0_i32_0 = arith.constant 0 : i32
    %c0_i32_1 = arith.constant 0 : i32
    return %arg0, %c0_i32, %c0_i32_0 : i32, i32, i32
  }
  func.func @transform_3(%arg0: i32, %arg1: i32) -> (i32, i32, i32) {
    %c0_i32 = arith.constant 0 : i32
    %c0_i32_0 = arith.constant 0 : i32
    return %arg0, %arg1, %c0_i32 : i32, i32, i32
  }
}

module attributes {stable_mosaic.version = 11 : i64} {
  func.func @kernel(%arg0: i32, %arg1: i32, %arg2: memref<1x512x512xf32, #tpu.memory_space<vmem>>, %arg3: memref<1x512x128xf32, #tpu.memory_space<vmem>>, %arg4: memref<1x1x128xf32, #tpu.memory_space<vmem>>, %arg5: memref<1x512x128xf32, #tpu.memory_space<vmem>>) attributes {dimension_semantics = [#tpu.dimension_semantics<parallel>, #tpu.dimension_semantics<parallel>], iteration_bounds = array<i64: 6, 1>, scalar_prefetch = 0 : i64, scratch_operands = 0 : i64, tpu.core_type = #tpu.core_type<tc>, window_params = [{transform_indices = @transform_0, window_bounds = array<i64: 1, 512, 512>}, {transform_indices = @transform_1, window_bounds = array<i64: 1, 512, 128>}, {transform_indices = @transform_2, window_bounds = array<i64: 1, 1, 128>}, {transform_indices = @transform_3, window_bounds = array<i64: 1, 512, 128>}]} {
    %c0 = arith.constant 0 : index
    %c0_0 = arith.constant 0 : index
    %c0_1 = arith.constant 0 : index
    %0 = vector.load %arg2[%c0, %c0_0, %c0_1] : memref<1x512x512xf32, #tpu.memory_space<vmem>>, vector<1x512x512xf32>
    %1 = vector.shape_cast %0 : vector<1x512x512xf32> to vector<512x512xf32>
    %cst = arith.constant 2.000000e-01 : f32
    %2 = vector.broadcast %cst : f32 to vector<512x512xf32>
    %3 = arith.mulf %2, %1 : vector<512x512xf32>
    %4 = arith.maximumf %1, %3 : vector<512x512xf32>
    %c0_2 = arith.constant 0 : index
    %c0_3 = arith.constant 0 : index
    %c0_4 = arith.constant 0 : index
    %5 = vector.load %arg3[%c0_2, %c0_3, %c0_4] : memref<1x512x128xf32, #tpu.memory_space<vmem>>, vector<1x512x128xf32>
    %6 = vector.shape_cast %5 : vector<1x512x128xf32> to vector<512x128xf32>
    %cst_5 = arith.constant dense<0.000000e+00> : vector<512x128xf32>
    %7 = tpu.matmul %4, %6, %cst_5 {dimension_numbers = #tpu.dot_dimension_numbers<[1], [0], [0], [1], [0, 0, 1, 1], [], []>} : vector<512x512xf32>, vector<512x128xf32>, vector<512x128xf32> -> vector<512x128xf32>
    %c0_6 = arith.constant 0 : index
    %c0_7 = arith.constant 0 : index
    %c0_8 = arith.constant 0 : index
    %8 = vector.load %arg4[%c0_6, %c0_7, %c0_8] : memref<1x1x128xf32, #tpu.memory_space<vmem>>, vector<1x1x128xf32>
    %9 = vector.shape_cast %8 : vector<1x1x128xf32> to vector<1x128xf32>
    %10 = vector.broadcast %9 : vector<1x128xf32> to vector<512x128xf32>
    %11 = arith.addf %7, %10 : vector<512x128xf32>
    %c0_9 = arith.constant 0 : index
    %c0_10 = arith.constant 0 : index
    %c0_11 = arith.constant 0 : index
    %12 = vector.load %arg5[%c0_9, %c0_10, %c0_11] : memref<1x512x128xf32, #tpu.memory_space<vmem>>, vector<1x512x128xf32>
    %13 = vector.shape_cast %12 : vector<1x512x128xf32> to vector<512x128xf32>
    %14 = vector.shape_cast %11 : vector<512x128xf32> to vector<1x512x128xf32>
    tpu.vector_store %arg5[%c0_9, %c0_10, %c0_11], %14 {strides = array<i32>} : memref<1x512x128xf32, #tpu.memory_space<vmem>>, vector<1x512x128xf32>,
    return
  }
  func.func @transform_0(%arg0: i32, %arg1: i32) -> (i32, i32, i32) {
    %c0_i32 = arith.constant 0 : i32
    %c0_i32_0 = arith.constant 0 : i32
    return %arg0, %arg1, %c0_i32 : i32, i32, i32
  }
  func.func @transform_1(%arg0: i32, %arg1: i32) -> (i32, i32, i32) {
    %c0_i32 = arith.constant 0 : i32
    %c0_i32_0 = arith.constant 0 : i32
    %c0_i32_1 = arith.constant 0 : i32
    return %arg0, %c0_i32, %c0_i32_0 : i32, i32, i32
  }
  func.func @transform_2(%arg0: i32, %arg1: i32) -> (i32, i32, i32) {
    %c0_i32 = arith.constant 0 : i32
    %c0_i32_0 = arith.constant 0 : i32
    %c0_i32_1 = arith.constant 0 : i32
    return %arg0, %c0_i32, %c0_i32_0 : i32, i32, i32
  }
  func.func @transform_3(%arg0: i32, %arg1: i32) -> (i32, i32, i32) {
    %c0_i32 = arith.constant 0 : i32
    %c0_i32_0 = arith.constant 0 : i32
    return %arg0, %arg1, %c0_i32 : i32, i32, i32
  }
}

module attributes {stable_mosaic.version = 11 : i64} {
  func.func @kernel(%arg0: i32, %arg1: i32, %arg2: memref<1x128x512xf32, #tpu.memory_space<vmem>>, %arg3: memref<1x512x128xf32, #tpu.memory_space<vmem>>, %arg4: memref<1x1x128xf32, #tpu.memory_space<vmem>>, %arg5: memref<1x128x128xf32, #tpu.memory_space<vmem>>) attributes {dimension_semantics = [#tpu.dimension_semantics<parallel>, #tpu.dimension_semantics<parallel>], iteration_bounds = array<i64: 6, 1>, scalar_prefetch = 0 : i64, scratch_operands = 0 : i64, tpu.core_type = #tpu.core_type<tc>, window_params = [{transform_indices = @transform_0, window_bounds = array<i64: 1, 128, 512>}, {transform_indices = @transform_1, window_bounds = array<i64: 1, 512, 128>}, {transform_indices = @transform_2, window_bounds = array<i64: 1, 1, 128>}, {transform_indices = @transform_3, window_bounds = array<i64: 1, 128, 128>}]} {
    %c0 = arith.constant 0 : index
    %c0_0 = arith.constant 0 : index
    %c0_1 = arith.constant 0 : index
    %0 = vector.load %arg2[%c0, %c0_0, %c0_1] : memref<1x128x512xf32, #tpu.memory_space<vmem>>, vector<1x128x512xf32>
    %1 = vector.shape_cast %0 : vector<1x128x512xf32> to vector<128x512xf32>
    %cst = arith.constant 2.000000e-01 : f32
    %2 = vector.broadcast %cst : f32 to vector<128x512xf32>
    %3 = arith.mulf %2, %1 : vector<128x512xf32>
    %4 = arith.maximumf %1, %3 : vector<128x512xf32>
    %c0_2 = arith.constant 0 : index
    %c0_3 = arith.constant 0 : index
    %c0_4 = arith.constant 0 : index
    %5 = vector.load %arg3[%c0_2, %c0_3, %c0_4] : memref<1x512x128xf32, #tpu.memory_space<vmem>>, vector<1x512x128xf32>
    %6 = vector.shape_cast %5 : vector<1x512x128xf32> to vector<512x128xf32>
    %cst_5 = arith.constant dense<0.000000e+00> : vector<128x128xf32>
    %7 = tpu.matmul %4, %6, %cst_5 {dimension_numbers = #tpu.dot_dimension_numbers<[1], [0], [0], [1], [0, 0, 1, 1], [], []>} : vector<128x512xf32>, vector<512x128xf32>, vector<128x128xf32> -> vector<128x128xf32>
    %c0_6 = arith.constant 0 : index
    %c0_7 = arith.constant 0 : index
    %c0_8 = arith.constant 0 : index
    %8 = vector.load %arg4[%c0_6, %c0_7, %c0_8] : memref<1x1x128xf32, #tpu.memory_space<vmem>>, vector<1x1x128xf32>
    %9 = vector.shape_cast %8 : vector<1x1x128xf32> to vector<1x128xf32>
    %10 = vector.broadcast %9 : vector<1x128xf32> to vector<128x128xf32>
    %11 = arith.addf %7, %10 : vector<128x128xf32>
    %c0_9 = arith.constant 0 : index
    %c0_10 = arith.constant 0 : index
    %c0_11 = arith.constant 0 : index
    %12 = vector.load %arg5[%c0_9, %c0_10, %c0_11] : memref<1x128x128xf32, #tpu.memory_space<vmem>>, vector<1x128x128xf32>
    %13 = vector.shape_cast %12 : vector<1x128x128xf32> to vector<128x128xf32>
    %14 = vector.shape_cast %11 : vector<128x128xf32> to vector<1x128x128xf32>
    tpu.vector_store %arg5[%c0_9, %c0_10, %c0_11], %14 {strides = array<i32>} : memref<1x128x128xf32, #tpu.memory_space<vmem>>, vector<1x128x128xf32>,
    return
  }
  func.func @transform_0(%arg0: i32, %arg1: i32) -> (i32, i32, i32) {
    %c0_i32 = arith.constant 0 : i32
    %c0_i32_0 = arith.constant 0 : i32
    return %arg0, %arg1, %c0_i32 : i32, i32, i32
  }
  func.func @transform_1(%arg0: i32, %arg1: i32) -> (i32, i32, i32) {
    %c0_i32 = arith.constant 0 : i32
    %c0_i32_0 = arith.constant 0 : i32
    %c0_i32_1 = arith.constant 0 : i32
    return %arg0, %c0_i32, %c0_i32_0 : i32, i32, i32
  }
  func.func @transform_2(%arg0: i32, %arg1: i32) -> (i32, i32, i32) {
    %c0_i32 = arith.constant 0 : i32
    %c0_i32_0 = arith.constant 0 : i32
    %c0_i32_1 = arith.constant 0 : i32
    return %arg0, %c0_i32, %c0_i32_0 : i32, i32, i32
  }
  func.func @transform_3(%arg0: i32, %arg1: i32) -> (i32, i32, i32) {
    %c0_i32 = arith.constant 0 : i32
    %c0_i32_0 = arith.constant 0 : i32
    return %arg0, %arg1, %c0_i32 : i32, i32, i32
  }
}

module attributes {stable_mosaic.version = 11 : i64} {
  func.func @kernel(%arg0: i32, %arg1: i32, %arg2: memref<1x32x512xf32, #tpu.memory_space<vmem>>, %arg3: memref<1x512x128xf32, #tpu.memory_space<vmem>>, %arg4: memref<1x1x128xf32, #tpu.memory_space<vmem>>, %arg5: memref<1x32x128xf32, #tpu.memory_space<vmem>>) attributes {dimension_semantics = [#tpu.dimension_semantics<parallel>, #tpu.dimension_semantics<parallel>], iteration_bounds = array<i64: 6, 1>, scalar_prefetch = 0 : i64, scratch_operands = 0 : i64, tpu.core_type = #tpu.core_type<tc>, window_params = [{transform_indices = @transform_0, window_bounds = array<i64: 1, 32, 512>}, {transform_indices = @transform_1, window_bounds = array<i64: 1, 512, 128>}, {transform_indices = @transform_2, window_bounds = array<i64: 1, 1, 128>}, {transform_indices = @transform_3, window_bounds = array<i64: 1, 32, 128>}]} {
    %c0 = arith.constant 0 : index
    %c0_0 = arith.constant 0 : index
    %c0_1 = arith.constant 0 : index
    %0 = vector.load %arg2[%c0, %c0_0, %c0_1] : memref<1x32x512xf32, #tpu.memory_space<vmem>>, vector<1x32x512xf32>
    %1 = vector.shape_cast %0 : vector<1x32x512xf32> to vector<32x512xf32>
    %cst = arith.constant 2.000000e-01 : f32
    %2 = vector.broadcast %cst : f32 to vector<32x512xf32>
    %3 = arith.mulf %2, %1 : vector<32x512xf32>
    %4 = arith.maximumf %1, %3 : vector<32x512xf32>
    %c0_2 = arith.constant 0 : index
    %c0_3 = arith.constant 0 : index
    %c0_4 = arith.constant 0 : index
    %5 = vector.load %arg3[%c0_2, %c0_3, %c0_4] : memref<1x512x128xf32, #tpu.memory_space<vmem>>, vector<1x512x128xf32>
    %6 = vector.shape_cast %5 : vector<1x512x128xf32> to vector<512x128xf32>
    %cst_5 = arith.constant dense<0.000000e+00> : vector<32x128xf32>
    %7 = tpu.matmul %4, %6, %cst_5 {dimension_numbers = #tpu.dot_dimension_numbers<[1], [0], [0], [1], [0, 0, 1, 1], [], []>} : vector<32x512xf32>, vector<512x128xf32>, vector<32x128xf32> -> vector<32x128xf32>
    %c0_6 = arith.constant 0 : index
    %c0_7 = arith.constant 0 : index
    %c0_8 = arith.constant 0 : index
    %8 = vector.load %arg4[%c0_6, %c0_7, %c0_8] : memref<1x1x128xf32, #tpu.memory_space<vmem>>, vector<1x1x128xf32>
    %9 = vector.shape_cast %8 : vector<1x1x128xf32> to vector<1x128xf32>
    %10 = vector.broadcast %9 : vector<1x128xf32> to vector<32x128xf32>
    %11 = arith.addf %7, %10 : vector<32x128xf32>
    %c0_9 = arith.constant 0 : index
    %c0_10 = arith.constant 0 : index
    %c0_11 = arith.constant 0 : index
    %12 = vector.load %arg5[%c0_9, %c0_10, %c0_11] : memref<1x32x128xf32, #tpu.memory_space<vmem>>, vector<1x32x128xf32>
    %13 = vector.shape_cast %12 : vector<1x32x128xf32> to vector<32x128xf32>
    %14 = vector.shape_cast %11 : vector<32x128xf32> to vector<1x32x128xf32>
    tpu.vector_store %arg5[%c0_9, %c0_10, %c0_11], %14 {strides = array<i32>} : memref<1x32x128xf32, #tpu.memory_space<vmem>>, vector<1x32x128xf32>,
    return
  }
  func.func @transform_0(%arg0: i32, %arg1: i32) -> (i32, i32, i32) {
    %c0_i32 = arith.constant 0 : i32
    %c0_i32_0 = arith.constant 0 : i32
    return %arg0, %arg1, %c0_i32 : i32, i32, i32
  }
  func.func @transform_1(%arg0: i32, %arg1: i32) -> (i32, i32, i32) {
    %c0_i32 = arith.constant 0 : i32
    %c0_i32_0 = arith.constant 0 : i32
    %c0_i32_1 = arith.constant 0 : i32
    return %arg0, %c0_i32, %c0_i32_0 : i32, i32, i32
  }
  func.func @transform_2(%arg0: i32, %arg1: i32) -> (i32, i32, i32) {
    %c0_i32 = arith.constant 0 : i32
    %c0_i32_0 = arith.constant 0 : i32
    %c0_i32_1 = arith.constant 0 : i32
    return %arg0, %c0_i32, %c0_i32_0 : i32, i32, i32
  }
  func.func @transform_3(%arg0: i32, %arg1: i32) -> (i32, i32, i32) {
    %c0_i32 = arith.constant 0 : i32
    %c0_i32_0 = arith.constant 0 : i32
    return %arg0, %arg1, %c0_i32 : i32, i32, i32
  }
}

module attributes {stable_mosaic.version = 11 : i64} {
  func.func @kernel(%arg0: i32, %arg1: i32, %arg2: memref<1x8x512xf32, #tpu.memory_space<vmem>>, %arg3: memref<1x512x64xf32, #tpu.memory_space<vmem>>, %arg4: memref<1x1x64xf32, #tpu.memory_space<vmem>>, %arg5: memref<1x8x64xf32, #tpu.memory_space<vmem>>) attributes {dimension_semantics = [#tpu.dimension_semantics<parallel>, #tpu.dimension_semantics<parallel>], iteration_bounds = array<i64: 6, 1>, scalar_prefetch = 0 : i64, scratch_operands = 0 : i64, tpu.core_type = #tpu.core_type<tc>, window_params = [{transform_indices = @transform_0, window_bounds = array<i64: 1, 8, 512>}, {transform_indices = @transform_1, window_bounds = array<i64: 1, 512, 64>}, {transform_indices = @transform_2, window_bounds = array<i64: 1, 1, 64>}, {transform_indices = @transform_3, window_bounds = array<i64: 1, 8, 64>}]} {
    %c0 = arith.constant 0 : index
    %c0_0 = arith.constant 0 : index
    %c0_1 = arith.constant 0 : index
    %0 = vector.load %arg2[%c0, %c0_0, %c0_1] : memref<1x8x512xf32, #tpu.memory_space<vmem>>, vector<1x8x512xf32>
    %1 = vector.shape_cast %0 : vector<1x8x512xf32> to vector<8x512xf32>
    %cst = arith.constant 2.000000e-01 : f32
    %2 = vector.broadcast %cst : f32 to vector<8x512xf32>
    %3 = arith.mulf %2, %1 : vector<8x512xf32>
    %4 = arith.maximumf %1, %3 : vector<8x512xf32>
    %c0_2 = arith.constant 0 : index
    %c0_3 = arith.constant 0 : index
    %c0_4 = arith.constant 0 : index
    %5 = vector.load %arg3[%c0_2, %c0_3, %c0_4] : memref<1x512x64xf32, #tpu.memory_space<vmem>>, vector<1x512x64xf32>
    %6 = vector.shape_cast %5 : vector<1x512x64xf32> to vector<512x64xf32>
    %cst_5 = arith.constant dense<0.000000e+00> : vector<8x64xf32>
    %7 = tpu.matmul %4, %6, %cst_5 {dimension_numbers = #tpu.dot_dimension_numbers<[1], [0], [0], [1], [0, 0, 1, 1], [], []>} : vector<8x512xf32>, vector<512x64xf32>, vector<8x64xf32> -> vector<8x64xf32>
    %c0_6 = arith.constant 0 : index
    %c0_7 = arith.constant 0 : index
    %c0_8 = arith.constant 0 : index
    %8 = vector.load %arg4[%c0_6, %c0_7, %c0_8] : memref<1x1x64xf32, #tpu.memory_space<vmem>>, vector<1x1x64xf32>
    %9 = vector.shape_cast %8 : vector<1x1x64xf32> to vector<1x64xf32>
    %10 = vector.broadcast %9 : vector<1x64xf32> to vector<8x64xf32>
    %11 = arith.addf %7, %10 : vector<8x64xf32>
    %c0_9 = arith.constant 0 : index
    %c0_10 = arith.constant 0 : index
    %c0_11 = arith.constant 0 : index
    %12 = vector.load %arg5[%c0_9, %c0_10, %c0_11] : memref<1x8x64xf32, #tpu.memory_space<vmem>>, vector<1x8x64xf32>
    %13 = vector.shape_cast %12 : vector<1x8x64xf32> to vector<8x64xf32>
    %14 = vector.shape_cast %11 : vector<8x64xf32> to vector<1x8x64xf32>
    tpu.vector_store %arg5[%c0_9, %c0_10, %c0_11], %14 {strides = array<i32>} : memref<1x8x64xf32, #tpu.memory_space<vmem>>, vector<1x8x64xf32>,
    return
  }
  func.func @transform_0(%arg0: i32, %arg1: i32) -> (i32, i32, i32) {
    %c0_i32 = arith.constant 0 : i32
    %c0_i32_0 = arith.constant 0 : i32
    return %arg0, %arg1, %c0_i32 : i32, i32, i32
  }
  func.func @transform_1(%arg0: i32, %arg1: i32) -> (i32, i32, i32) {
    %c0_i32 = arith.constant 0 : i32
    %c0_i32_0 = arith.constant 0 : i32
    %c0_i32_1 = arith.constant 0 : i32
    return %arg0, %c0_i32, %c0_i32_0 : i32, i32, i32
  }
  func.func @transform_2(%arg0: i32, %arg1: i32) -> (i32, i32, i32) {
    %c0_i32 = arith.constant 0 : i32
    %c0_i32_0 = arith.constant 0 : i32
    %c0_i32_1 = arith.constant 0 : i32
    return %arg0, %c0_i32, %c0_i32_0 : i32, i32, i32
  }
  func.func @transform_3(%arg0: i32, %arg1: i32) -> (i32, i32, i32) {
    %c0_i32 = arith.constant 0 : i32
    %c0_i32_0 = arith.constant 0 : i32
    return %arg0, %arg1, %c0_i32 : i32, i32, i32
  }
}

module attributes {stable_mosaic.version = 11 : i64} {
  func.func @_tail_kernel(%arg0: i32, %arg1: memref<1x2x256xf32, #tpu.memory_space<vmem>>, %arg2: memref<1x256x64xf32, #tpu.memory_space<vmem>>, %arg3: memref<1x1x64xf32, #tpu.memory_space<vmem>>, %arg4: memref<1x64x64xf32, #tpu.memory_space<vmem>>, %arg5: memref<1x64xf32, #tpu.memory_space<vmem>>, %arg6: memref<1x2x64xf32, #tpu.memory_space<vmem>>, %arg7: memref<2x64xf32, #tpu.memory_space<vmem>>) attributes {dimension_semantics = [#tpu.dimension_semantics<arbitrary>], iteration_bounds = array<i64: 6>, scalar_prefetch = 0 : i64, scratch_operands = 0 : i64, tpu.core_type = #tpu.core_type<tc>, window_params = [{transform_indices = @transform_0, window_bounds = array<i64: 1, 2, 256>}, {transform_indices = @transform_1, window_bounds = array<i64: 1, 256, 64>}, {transform_indices = @transform_2, window_bounds = array<i64: 1, 1, 64>}, {transform_indices = @transform_3, window_bounds = array<i64: 1, 64, 64>}, {pipeline_mode = #tpu.pipeline_mode<synchronous>, transform_indices = @transform_4, window_bounds = array<i64: 1, 64>}, {transform_indices = @transform_5, window_bounds = array<i64: 1, 2, 64>}, {pipeline_mode = #tpu.pipeline_mode<synchronous>, transform_indices = @transform_6, window_bounds = array<i64: 2, 64>}]} {
    %c0 = arith.constant 0 : index
    %c0_0 = arith.constant 0 : index
    %c0_1 = arith.constant 0 : index
    %0 = vector.load %arg1[%c0, %c0_0, %c0_1] : memref<1x2x256xf32, #tpu.memory_space<vmem>>, vector<1x2x256xf32>
    %1 = vector.shape_cast %0 : vector<1x2x256xf32> to vector<2x256xf32>
    %c0_2 = arith.constant 0 : index
    %c0_3 = arith.constant 0 : index
    %c0_4 = arith.constant 0 : index
    %2 = vector.load %arg1[%c0_2, %c0_3, %c0_4] : memref<1x2x256xf32, #tpu.memory_space<vmem>>, vector<1x2x256xf32>
    %3 = vector.shape_cast %2 : vector<1x2x256xf32> to vector<2x256xf32>
    %cst = arith.constant 2.000000e-01 : f32
    %4 = vector.broadcast %cst : f32 to vector<2x256xf32>
    %5 = arith.mulf %4, %3 : vector<2x256xf32>
    %6 = arith.maximumf %1, %5 : vector<2x256xf32>
    %c0_5 = arith.constant 0 : index
    %c0_6 = arith.constant 0 : index
    %c0_7 = arith.constant 0 : index
    %7 = vector.load %arg2[%c0_5, %c0_6, %c0_7] : memref<1x256x64xf32, #tpu.memory_space<vmem>>, vector<1x256x64xf32>
    %8 = vector.shape_cast %7 : vector<1x256x64xf32> to vector<256x64xf32>
    %cst_8 = arith.constant dense<0.000000e+00> : vector<2x64xf32>
    %9 = tpu.matmul %6, %8, %cst_8 {dimension_numbers = #tpu.dot_dimension_numbers<[1], [0], [0], [1], [0, 0, 1, 1], [], []>} : vector<2x256xf32>, vector<256x64xf32>, vector<2x64xf32> -> vector<2x64xf32>
    %c0_9 = arith.constant 0 : index
    %c0_10 = arith.constant 0 : index
    %c0_11 = arith.constant 0 : index
    %10 = vector.load %arg3[%c0_9, %c0_10, %c0_11] : memref<1x1x64xf32, #tpu.memory_space<vmem>>, vector<1x1x64xf32>
    %11 = vector.shape_cast %10 : vector<1x1x64xf32> to vector<1x64xf32>
    %12 = vector.broadcast %11 : vector<1x64xf32> to vector<2x64xf32>
    %13 = arith.addf %9, %12 : vector<2x64xf32>
    %c0_12 = arith.constant 0 : index
    %c0_13 = arith.constant 0 : index
    %c0_14 = arith.constant 0 : index
    %14 = vector.load %arg6[%c0_12, %c0_13, %c0_14] : memref<1x2x64xf32, #tpu.memory_space<vmem>>, vector<1x2x64xf32>
    %15 = vector.shape_cast %14 : vector<1x2x64xf32> to vector<2x64xf32>
    %16 = vector.shape_cast %13 : vector<2x64xf32> to vector<1x2x64xf32>
    tpu.vector_store %arg6[%c0_12, %c0_13, %c0_14], %16 {strides = array<i32>} : memref<1x2x64xf32, #tpu.memory_space<vmem>>, vector<1x2x64xf32>,
    %cst_15 = arith.constant 2.000000e-01 : f32
    %17 = vector.broadcast %cst_15 : f32 to vector<2x64xf32>
    %18 = arith.mulf %17, %13 : vector<2x64xf32>
    %19 = arith.maximumf %13, %18 : vector<2x64xf32>
    %c0_16 = arith.constant 0 : index
    %c0_17 = arith.constant 0 : index
    %c0_18 = arith.constant 0 : index
    %20 = vector.load %arg4[%c0_16, %c0_17, %c0_18] : memref<1x64x64xf32, #tpu.memory_space<vmem>>, vector<1x64x64xf32>
    %21 = vector.shape_cast %20 : vector<1x64x64xf32> to vector<64x64xf32>
    %cst_19 = arith.constant dense<0.000000e+00> : vector<2x64xf32>
    %22 = tpu.matmul %19, %21, %cst_19 {dimension_numbers = #tpu.dot_dimension_numbers<[1], [0], [0], [1], [0, 0, 1, 1], [], []>} : vector<2x64xf32>, vector<64x64xf32>, vector<2x64xf32> -> vector<2x64xf32>
    %c0_i32 = arith.constant 0 : i32
    %23 = arith.cmpi eq, %arg0, %c0_i32 : i32
    %24 = arith.extui %23 : i1 to i32
    %c0_i32_20 = arith.constant 0 : i32
    %25 = arith.cmpi ne, %24, %c0_i32_20 : i32
    scf.if %25 {
      %cst_25 = arith.constant 0.000000e+00 : f32
      %29 = vector.broadcast %cst_25 : f32 to vector<2x64xf32>
      %c0_26 = arith.constant 0 : index
      %c0_27 = arith.constant 0 : index
      %30 = vector.load %arg5[%c0_26, %c0_27] : memref<1x64xf32, #tpu.memory_space<vmem>>, vector<1x64xf32>
      %31 = vector.broadcast %30 : vector<1x64xf32> to vector<2x64xf32>
      %32 = arith.addf %29, %31 : vector<2x64xf32>
      %c0_28 = arith.constant 0 : index
      %c0_29 = arith.constant 0 : index
      %33 = vector.load %arg7[%c0_28, %c0_29] : memref<2x64xf32, #tpu.memory_space<vmem>>, vector<2x64xf32>
      tpu.vector_store %arg7[%c0_28, %c0_29], %32 {strides = array<i32>} : memref<2x64xf32, #tpu.memory_space<vmem>>, vector<2x64xf32>,
    } else {
    }
    %c0_21 = arith.constant 0 : index
    %c0_22 = arith.constant 0 : index
    %26 = vector.load %arg7[%c0_21, %c0_22] : memref<2x64xf32, #tpu.memory_space<vmem>>, vector<2x64xf32>
    %27 = arith.addf %26, %22 : vector<2x64xf32>
    %c0_23 = arith.constant 0 : index
    %c0_24 = arith.constant 0 : index
    %28 = vector.load %arg7[%c0_23, %c0_24] : memref<2x64xf32, #tpu.memory_space<vmem>>, vector<2x64xf32>
    tpu.vector_store %arg7[%c0_23, %c0_24], %27 {strides = array<i32>} : memref<2x64xf32, #tpu.memory_space<vmem>>, vector<2x64xf32>,
    return
  }
  func.func @transform_0(%arg0: i32) -> (i32, i32, i32) {
    %c0_i32 = arith.constant 0 : i32
    %c0_i32_0 = arith.constant 0 : i32
    %c0_i32_1 = arith.constant 0 : i32
    return %arg0, %c0_i32, %c0_i32_0 : i32, i32, i32
  }
  func.func @transform_1(%arg0: i32) -> (i32, i32, i32) {
    %c0_i32 = arith.constant 0 : i32
    %c0_i32_0 = arith.constant 0 : i32
    %c0_i32_1 = arith.constant 0 : i32
    return %arg0, %c0_i32, %c0_i32_0 : i32, i32, i32
  }
  func.func @transform_2(%arg0: i32) -> (i32, i32, i32) {
    %c0_i32 = arith.constant 0 : i32
    %c0_i32_0 = arith.constant 0 : i32
    %c0_i32_1 = arith.constant 0 : i32
    return %arg0, %c0_i32, %c0_i32_0 : i32, i32, i32
  }
  func.func @transform_3(%arg0: i32) -> (i32, i32, i32) {
    %c0_i32 = arith.constant 0 : i32
    %c0_i32_0 = arith.constant 0 : i32
    %c0_i32_1 = arith.constant 0 : i32
    return %arg0, %c0_i32, %c0_i32_0 : i32, i32, i32
  }
  func.func @transform_4(%arg0: i32) -> (i32, i32) {
    %c0_i32 = arith.constant 0 : i32
    %c0_i32_0 = arith.constant 0 : i32
    %c0_i32_1 = arith.constant 0 : i32
    return %c0_i32, %c0_i32_0 : i32, i32
  }
  func.func @transform_5(%arg0: i32) -> (i32, i32, i32) {
    %c0_i32 = arith.constant 0 : i32
    %c0_i32_0 = arith.constant 0 : i32
    %c0_i32_1 = arith.constant 0 : i32
    return %arg0, %c0_i32, %c0_i32_0 : i32, i32, i32
  }
  func.func @transform_6(%arg0: i32) -> (i32, i32) {
    %c0_i32 = arith.constant 0 : i32
    %c0_i32_0 = arith.constant 0 : i32
    %c0_i32_1 = arith.constant 0 : i32
    return %c0_i32, %c0_i32_0 : i32, i32
  }
}

</mosaic_0001>

<bundles_post_ra>
// kernel: encoder_forward.6
= control target key start
LH: loop header
LB: loop body
LE: loop exit
PB: predicated region body
PF: predicated region fallthrough
CT: control target
= control target key end

     0   :  { %s1974_s12 = smov 0   ;;  %s1976_s13 = smov 0   ;;  %s2864_s0 = inlined_call_operand.vmem [shape: f32[6,1024,256], index: 0, kind: input, shape index: {}]   ;;  %s2865_s1 = inlined_call_operand.vmem [shape: f32[6,256,256], index: 1, kind: input, shape index: {}]   ;;  %s2866_s2 = inlined_call_operand.vmem [shape: f32[6,1,256], index: 2, kind: input, shape index: {}]   ;;  %s2867_s3 = inlined_call_operand.vmem [shape: f32[6,1024,256], index: 3, kind: output, shape index: {}]  }
   0x1   :  { %s1978_s14 = smov 0  }
   0x2 LB: > { %s25_s15 = sadd.s32 1, %s1948_s13  ;;  %p1797_p0 = scmp.ge.s32.totalorder %s1952_s14, 1  ;;  %s1952_s14 = sphi %s1978_s14, %s13_s14   ;;  %s1948_s13 = sphi %s1976_s13, %s2869_s13   ;;  %s1944_s12 = sphi %s1974_s12, %s2868_s12  }
   0x3   : > { %p27_p1 = scmp.ge.s32.totalorder %s25_s15, 6  ;;  %p178_p2 = scmp.lt.s32.totalorder %s1952_s14, 7 }
   0x5   : > { %s2871_s15 = smov (%p27_p1, %s25_s15), 0  ;;  %p179_p3 = pnand %p1797_p0, %p178_p2 }
   0x6   : > { %p222_p4 = scmp.lt.s32.totalorder (!%p179_p3), %s1944_s12, 5 }
   0x7   : > { %182 = sbr.rel (%p179_p3) target bundleno = 552 (0x228), region = 32 }
   0xe   : > { %s2873_s12 = smov (!%p222_p4, %s1944_s12), 5 }
   0xf   : > { %s1808_s16 = sshll.u32 %s2873_s12, 9  ;;  %s1807_s20 = sshll.u32 %s2873_s12, 11 }
  0x10   : > { %s1998_s19 = scalar_lea.vmem %s2865_s1, %s1808_s16  ;;  %s2032_s23 = scalar_lea.vmem %s2864_s0, %s1807_s20 }
  0x11   : > { %v509_v0 = vld [vmem:[%s1998_s19 + $0x8] sm:$0xff]  ;;  %v511_v1 = vld [vmem:[%s1998_s19 + $0x18] sm:$0xff]  ;;  %v508_v2 = vld [vmem:[%s1998_s19] sm:$0xff]  ;;  %s1802_s24 = sshll.u32 %s2873_s12, 1  ;;  %s2303_s30 = scalar_lea.vmem %s2867_s3, %s1807_s20 }
  0x12   : > { %v1810_v3 = vpack.c.bf16 %v511_v1, %v509_v0  ;;  %v510_v4 = vld [vmem:[%s1998_s19 + $0x10] sm:$0xff]  ;;  %v513_v5 = vld [vmem:[%s1998_s19 + $0x28] sm:$0xff]  ;;  %v515_v6 = vld [vmem:[%s1998_s19 + $0x38] sm:$0xff]  ;;  %s240_s27 = scalar_lea.vmem %s2866_s2, %s1802_s24 }
  0x13   : > { %v1812_v7 = vpack.c.bf16 %v510_v4, %v508_v2  ;;  %v1814_v8 = vpack.c.bf16 %v515_v6, %v513_v5  ;;  %v512_v9 = vld [vmem:[%s1998_s19 + $0x20] sm:$0xff]  ;;  %v514_v10 = vld [vmem:[%s1998_s19 + $0x30] sm:$0xff]  ;;  %v517_v11 = vld [vmem:[%s1998_s19 + $0x48] sm:$0xff] }
  0x14   : > { %1811 = vmatprep.subr.bf16.mxu0 %v1810_v3  ;;  %1874 = vmatprep.subr.bf16.mxu1 %v1810_v3  ;;  %v519_v12 = vld [vmem:[%s1998_s19 + $0x58] sm:$0xff]  ;;  %v1816_v13 = vpack.c.bf16 %v514_v10, %v512_v9  ;;  %v516_v15 = vld [vmem:[%s1998_s19 + $0x40] sm:$0xff]  ;;  %v518_v16 = vld [vmem:[%s1998_s19 + $0x50] sm:$0xff] }
  0x15   : > { %1813 = vmatpush1.bf16.msra.mxu0 %v1812_v7  ;;  %1890 = vmatpush1.bf16.msra.mxu1 %v1812_v7  ;;  %v1818_v14 = vpack.c.bf16 %v519_v12, %v517_v11  ;;  %v521_v17 = vld [vmem:[%s1998_s19 + $0x68] sm:$0xff]  ;;  %v523_v18 = vld [vmem:[%s1998_s19 + $0x78] sm:$0xff]  ;;  %v1820_v19 = vpack.c.bf16 %v518_v16, %v516_v15  ;;  %v520_v21 = vld [vmem:[%s1998_s19 + $0x60] sm:$0xff] }
  0x16   : > { %1815 = vmatprep.subr.bf16.mxu0 %v1814_v8  ;;  %1875 = vmatprep.subr.bf16.mxu1 %v1814_v8  ;;  %v1822_v20 = vpack.c.bf16 %v523_v18, %v521_v17  ;;  %v522_v22 = vld [vmem:[%s1998_s19 + $0x70] sm:$0xff]  ;;  %v525_v23 = vld [vmem:[%s1998_s19 + $0x88] sm:$0xff]  ;;  %v527_v24 = vld [vmem:[%s1998_s19 + $0x98] sm:$0xff] }
  0x17   : > { %v1824_v25 = vpack.c.bf16 %v522_v22, %v520_v21  ;;  %v1826_v26 = vpack.c.bf16 %v527_v24, %v525_v23  ;;  %v524_v27 = vld [vmem:[%s1998_s19 + $0x80] sm:$0xff]  ;;  %v526_v28 = vld [vmem:[%s1998_s19 + $0x90] sm:$0xff]  ;;  %v529_v29 = vld [vmem:[%s1998_s19 + $0xa8] sm:$0xff] }
  0x18   : > { %v531_v30 = vld [vmem:[%s1998_s19 + $0xb8] sm:$0xff]  ;;  %v1828_v31 = vpack.c.bf16 %v526_v28, %v524_v27  ;;  %v528_v33 = vld [vmem:[%s1998_s19 + $0xa0] sm:$0xff]  ;;  %v530_v34 = vld [vmem:[%s1998_s19 + $0xb0] sm:$0xff] }
  0x19   : > { %1817 = vmatpush1.bf16.msra.mxu0 %v1816_v13  ;;  %1891 = vmatpush1.bf16.msra.mxu1 %v1816_v13  ;;  %v1830_v32 = vpack.c.bf16 %v531_v30, %v529_v29  ;;  %v533_v35 = vld [vmem:[%s1998_s19 + $0xc8] sm:$0xff]  ;;  %v535_v36 = vld [vmem:[%s1998_s19 + $0xd8] sm:$0xff]  ;;  %v1832_v37 = vpack.c.bf16 %v530_v34, %v528_v33  ;;  %v532_v38 = vld [vmem:[%s1998_s19 + $0xc0] sm:$0xff] }
  0x1a   : > { %1819 = vmatprep.subr.bf16.mxu0 %v1818_v14  ;;  %1876 = vmatprep.subr.bf16.mxu1 %v1818_v14  ;;  %v1834_v39 = vpack.c.bf16 %v535_v36, %v533_v35  ;;  %v534_v40 = vld [vmem:[%s1998_s19 + $0xd0] sm:$0xff]  ;;  %v253_v41 = vld [vmem:[%s2032_s23 + $0x8] sm:$0xff]  ;;  %v539_v44 = vld [vmem:[%s1998_s19 + $0xf8] sm:$0xff] }
  0x1b   : > { %v381_v42 = vld [vmem:[%s2032_s23 + $0x408] sm:$0xff]  ;;  %648 = vmatprep.mubr.f32.mxu0 %v253_v41  ;;  %v1836_v45 = vpack.c.bf16 %v534_v40, %v532_v38  ;;  %v536_v47 = vld [vmem:[%s1998_s19 + $0xe0] sm:$0xff]  ;;  %v538_v48 = vld [vmem:[%s1998_s19 + $0xf0] sm:$0xff] }
  0x1c   : > { %v537_v43 = vld [vmem:[%s1998_s19 + $0xe8] sm:$0xff]  ;;  %1032 = vmatprep.mubr.f32.mxu1 %v381_v42  ;;  %v543_v50 = vld [vmem:[%s1998_s19 + $0x118] sm:$0xff]  ;;  %v1840_v51 = vpack.c.bf16 %v538_v48, %v536_v47  ;;  %v540_v53 = vld [vmem:[%s1998_s19 + $0x100] sm:$0xff] }
  0x1d   : > { %1821 = vmatpush1.bf16.msra.mxu0 %v1820_v19  ;;  %1892 = vmatpush1.bf16.msra.mxu1 %v1820_v19  ;;  %v1838_v46 = vpack.c.bf16 %v539_v44, %v537_v43  ;;  %v541_v49 = vld [vmem:[%s1998_s19 + $0x108] sm:$0xff]  ;;  %v542_v54 = vld [vmem:[%s1998_s19 + $0x110] sm:$0xff]  ;;  %v547_v56 = vld [vmem:[%s1998_s19 + $0x138] sm:$0xff] }
  0x1e   : > { %1823 = vmatprep.subr.bf16.mxu0 %v1822_v20  ;;  %1877 = vmatprep.subr.bf16.mxu1 %v1822_v20  ;;  %v1842_v52 = vpack.c.bf16 %v543_v50, %v541_v49  ;;  %v545_v55 = vld [vmem:[%s1998_s19 + $0x128] sm:$0xff]  ;;  %v1844_v57 = vpack.c.bf16 %v542_v54, %v540_v53  ;;  %v544_v59 = vld [vmem:[%s1998_s19 + $0x120] sm:$0xff]  ;;  %v546_v60 = vld [vmem:[%s1998_s19 + $0x130] sm:$0xff] }
  0x1f   : > { %v1846_v58 = vpack.c.bf16 %v547_v56, %v545_v55  ;;  %v549_v61 = vld [vmem:[%s1998_s19 + $0x148] sm:$0xff]  ;;  %v551_v62 = vld [vmem:[%s1998_s19 + $0x158] sm:$0xff]  ;;  %v1848_v63 = vpack.c.bf16 %v546_v60, %v544_v59  ;;  %v548_v1 = vld [vmem:[%s1998_s19 + $0x140] sm:$0xff] }
  0x20   : > { %v1850_v0 = vpack.c.bf16 %v551_v62, %v549_v61  ;;  %v550_v2 = vld [vmem:[%s1998_s19 + $0x150] sm:$0xff]  ;;  %v553_v3 = vld [vmem:[%s1998_s19 + $0x168] sm:$0xff]  ;;  %v555_v4 = vld [vmem:[%s1998_s19 + $0x178] sm:$0xff] }
  0x21   : > { %1825 = vmatpush1.bf16.msra.mxu0 %v1824_v25  ;;  %1893 = vmatpush1.bf16.msra.mxu1 %v1824_v25  ;;  %v1852_v5 = vpack.c.bf16 %v550_v2, %v548_v1  ;;  %v1854_v6 = vpack.c.bf16 %v555_v4, %v553_v3  ;;  %v552_v7 = vld [vmem:[%s1998_s19 + $0x160] sm:$0xff]  ;;  %v554_v8 = vld [vmem:[%s1998_s19 + $0x170] sm:$0xff]  ;;  %v557_v9 = vld [vmem:[%s1998_s19 + $0x188] sm:$0xff] }
  0x22   : > { %1827 = vmatprep.subr.bf16.mxu0 %v1826_v26  ;;  %1878 = vmatprep.subr.bf16.mxu1 %v1826_v26  ;;  %v559_v10 = vld [vmem:[%s1998_s19 + $0x198] sm:$0xff]  ;;  %v1856_v11 = vpack.c.bf16 %v554_v8, %v552_v7  ;;  %v556_v13 = vld [vmem:[%s1998_s19 + $0x180] sm:$0xff]  ;;  %v558_v14 = vld [vmem:[%s1998_s19 + $0x190] sm:$0xff] }
  0x23   : > { %v1858_v12 = vpack.c.bf16 %v559_v10, %v557_v9  ;;  %v561_v15 = vld [vmem:[%s1998_s19 + $0x1a8] sm:$0xff]  ;;  %v563_v16 = vld [vmem:[%s1998_s19 + $0x1b8] sm:$0xff]  ;;  %v1860_v17 = vpack.c.bf16 %v558_v14, %v556_v13  ;;  %v560_v19 = vld [vmem:[%s1998_s19 + $0x1a0] sm:$0xff] }
  0x24   : > { %v1862_v18 = vpack.c.bf16 %v563_v16, %v561_v15  ;;  %v562_v20 = vld [vmem:[%s1998_s19 + $0x1b0] sm:$0xff]  ;;  %v565_v21 = vld [vmem:[%s1998_s19 + $0x1c8] sm:$0xff]  ;;  %v567_v22 = vld [vmem:[%s1998_s19 + $0x1d8] sm:$0xff] }
  0x25   : > { %1829 = vmatpush1.bf16.msra.mxu0 %v1828_v31  ;;  %1894 = vmatpush1.bf16.msra.mxu1 %v1828_v31  ;;  %v1864_v23 = vpack.c.bf16 %v562_v20, %v560_v19  ;;  %v1866_v24 = vpack.c.bf16 %v567_v22, %v565_v21  ;;  %v564_v25 = vld [vmem:[%s1998_s19 + $0x1c0] sm:$0xff]  ;;  %v566_v26 = vld [vmem:[%s1998_s19 + $0x1d0] sm:$0xff]  ;;  %v569_v27 = vld [vmem:[%s1998_s19 + $0x1e8] sm:$0xff] }
  0x26   : > { %1831 = vmatprep.subr.bf16.mxu0 %v1830_v32  ;;  %1879 = vmatprep.subr.bf16.mxu1 %v1830_v32  ;;  %v571_v28 = vld [vmem:[%s1998_s19 + $0x1f8] sm:$0xff]  ;;  %v1868_v29 = vpack.c.bf16 %v566_v26, %v564_v25  ;;  %v568_v31 = vld [vmem:[%s1998_s19 + $0x1e0] sm:$0xff]  ;;  %v570_v32 = vld [vmem:[%s1998_s19 + $0x1f0] sm:$0xff] }
  0x27   : > { %v1870_v30 = vpack.c.bf16 %v571_v28, %v569_v27  ;;  %v1872_v33 = vpack.c.bf16 %v570_v32, %v568_v31  ;;  %v252_v34 = vld [vmem:[%s2032_s23] sm:$0xff]  ;;  %v255_v36 = vld [vmem:[%s2032_s23 + $0x18] sm:$0xff]  ;;  %v254_v38 = vld [vmem:[%s2032_s23 + $0x10] sm:$0xff] }
  0x28   : > { %v380_v35 = vld [vmem:[%s2032_s23 + $0x400] sm:$0xff]  ;;  %v257_v40 = vld [vmem:[%s2032_s23 + $0x28] sm:$0xff]  ;;  %v259_v44 = vld [vmem:[%s2032_s23 + $0x38] sm:$0xff] }
  0x29   : > { %1833 = vmatpush1.bf16.msra.mxu0 %v1832_v37  ;;  %1895 = vmatpush1.bf16.msra.mxu1 %v1832_v37  ;;  %v383_v37 = vld [vmem:[%s2032_s23 + $0x418] sm:$0xff]  ;;  %v385_v41 = vld [vmem:[%s2032_s23 + $0x428] sm:$0xff]  ;;  %v256_v42 = vld [vmem:[%s2032_s23 + $0x20] sm:$0xff] }
  0x2a   : > { %1835 = vmatprep.subr.bf16.mxu0 %v1834_v39  ;;  %1880 = vmatprep.subr.bf16.mxu1 %v1834_v39  ;;  %v382_v39 = vld [vmem:[%s2032_s23 + $0x410] sm:$0xff]  ;;  %v384_v43 = vld [vmem:[%s2032_s23 + $0x420] sm:$0xff]  ;;  %v261_v48 = vld [vmem:[%s2032_s23 + $0x48] sm:$0xff] }
  0x2b   : > { %v386_v47 = vld [vmem:[%s2032_s23 + $0x430] sm:$0xff]  ;;  %v389_v49 = vld [vmem:[%s2032_s23 + $0x448] sm:$0xff]  ;;  %v260_v50 = vld [vmem:[%s2032_s23 + $0x40] sm:$0xff] }
  0x2c   : > { %v391_v53 = vld [vmem:[%s2032_s23 + $0x458] sm:$0xff]  ;;  %v262_v54 = vld [vmem:[%s2032_s23 + $0x50] sm:$0xff]  ;;  %v265_v56 = vld [vmem:[%s2032_s23 + $0x68] sm:$0xff] }
  0x2d   : > { %1837 = vmatpush1.bf16.msra.mxu0 %v1836_v45  ;;  %1896 = vmatpush1.bf16.msra.mxu1 %v1836_v45  ;;  %v387_v45 = vld [vmem:[%s2032_s23 + $0x438] sm:$0xff]  ;;  %v390_v55 = vld [vmem:[%s2032_s23 + $0x450] sm:$0xff]  ;;  %v392_v59 = vld [vmem:[%s2032_s23 + $0x460] sm:$0xff] }
  0x2e   : > { %1839 = vmatprep.subr.bf16.mxu0 %v1838_v46  ;;  %1881 = vmatprep.subr.bf16.mxu1 %v1838_v46  ;;  %v258_v46 = vld [vmem:[%s2032_s23 + $0x30] sm:$0xff]  ;;  %v267_v60 = vld [vmem:[%s2032_s23 + $0x78] sm:$0xff]  ;;  %v397_v1 = vld [vmem:[%s2032_s23 + $0x488] sm:$0xff] }
  0x2f   : > { %v395_v61 = vld [vmem:[%s2032_s23 + $0x478] sm:$0xff]  ;;  %v266_v62 = vld [vmem:[%s2032_s23 + $0x70] sm:$0xff]  ;;  %v268_v2 = vld [vmem:[%s2032_s23 + $0x80] sm:$0xff] }
  0x30   : > { %v396_v3 = vld [vmem:[%s2032_s23 + $0x480] sm:$0xff]  ;;  %v271_v4 = vld [vmem:[%s2032_s23 + $0x98] sm:$0xff]  ;;  %v398_v7 = vld [vmem:[%s2032_s23 + $0x490] sm:$0xff] }
  0x31   : > { %1841 = vmatpush1.bf16.msra.mxu0 %v1840_v51  ;;  %1897 = vmatpush1.bf16.msra.mxu1 %v1840_v51  ;;  %v388_v51 = vld [vmem:[%s2032_s23 + $0x440] sm:$0xff]  ;;  %v273_v8 = vld [vmem:[%s2032_s23 + $0xa8] sm:$0xff]  ;;  %v403_v13 = vld [vmem:[%s2032_s23 + $0x4b8] sm:$0xff] }
  0x32   : > { %1843 = vmatprep.subr.bf16.mxu0 %v1842_v52  ;;  %1882 = vmatprep.subr.bf16.mxu1 %v1842_v52  ;;  %v263_v52 = vld [vmem:[%s2032_s23 + $0x58] sm:$0xff]  ;;  %v401_v9 = vld [vmem:[%s2032_s23 + $0x4a8] sm:$0xff]  ;;  %v272_v10 = vld [vmem:[%s2032_s23 + $0xa0] sm:$0xff] }
  0x33   : > { %v274_v14 = vld [vmem:[%s2032_s23 + $0xb0] sm:$0xff]  ;;  %v277_v16 = vld [vmem:[%s2032_s23 + $0xc8] sm:$0xff]  ;;  %v404_v19 = vld [vmem:[%s2032_s23 + $0x4c0] sm:$0xff] }
  0x34   : > { %v402_v15 = vld [vmem:[%s2032_s23 + $0x4b0] sm:$0xff]  ;;  %v279_v20 = vld [vmem:[%s2032_s23 + $0xd8] sm:$0xff]  ;;  %v409_v25 = vld [vmem:[%s2032_s23 + $0x4e8] sm:$0xff] }
  0x35   : > { %1845 = vmatpush1.bf16.msra.mxu0 %v1844_v57  ;;  %1898 = vmatpush1.bf16.msra.mxu1 %v1844_v57  ;;  %v393_v57 = vld [vmem:[%s2032_s23 + $0x468] sm:$0xff]  ;;  %v407_v21 = vld [vmem:[%s2032_s23 + $0x4d8] sm:$0xff]  ;;  %v278_v22 = vld [vmem:[%s2032_s23 + $0xd0] sm:$0xff] }
  0x36   : > { %1847 = vmatprep.subr.bf16.mxu0 %v1846_v58  ;;  %1883 = vmatprep.subr.bf16.mxu1 %v1846_v58  ;;  %v264_v58 = vld [vmem:[%s2032_s23 + $0x60] sm:$0xff]  ;;  %v283_v28 = vld [vmem:[%s2032_s23 + $0xf8] sm:$0xff]  ;;  %v410_v31 = vld [vmem:[%s2032_s23 + $0x4f0] sm:$0xff] }
  0x37   : > { %v280_v26 = vld [vmem:[%s2032_s23 + $0xe0] sm:$0xff]  ;;  %v285_v32 = vld [vmem:[%s2032_s23 + $0x108] sm:$0xff] }
  0x38   : > { %v408_v27 = vld [vmem:[%s2032_s23 + $0x4e0] sm:$0xff] }
  0x39   : > { %1849 = vmatpush1.bf16.msra.mxu0 %v1848_v63  ;;  %1899 = vmatpush1.bf16.msra.mxu1 %v1848_v63  ;;  %v394_v63 = vld [vmem:[%s2032_s23 + $0x470] sm:$0xff] }
  0x3a   : > { %1851 = vmatprep.subr.bf16.mxu0 %v1850_v0  ;;  %1884 = vmatprep.subr.bf16.mxu1 %v1850_v0  ;;  %v269_v0 = vld [vmem:[%s2032_s23 + $0x88] sm:$0xff] }
  0x3d   : > { %1853 = vmatpush1.bf16.msra.mxu0 %v1852_v5  ;;  %1900 = vmatpush1.bf16.msra.mxu1 %v1852_v5  ;;  %v399_v5 = vld [vmem:[%s2032_s23 + $0x498] sm:$0xff] }
  0x3e   : > { %1855 = vmatprep.subr.bf16.mxu0 %v1854_v6  ;;  %1885 = vmatprep.subr.bf16.mxu1 %v1854_v6  ;;  %v270_v6 = vld [vmem:[%s2032_s23 + $0x90] sm:$0xff] }
  0x41   : > { %1857 = vmatpush1.bf16.msra.mxu0 %v1856_v11  ;;  %1901 = vmatpush1.bf16.msra.mxu1 %v1856_v11  ;;  %v400_v11 = vld [vmem:[%s2032_s23 + $0x4a0] sm:$0xff] }
  0x42   : > { %1859 = vmatprep.subr.bf16.mxu0 %v1858_v12  ;;  %1886 = vmatprep.subr.bf16.mxu1 %v1858_v12  ;;  %v275_v12 = vld [vmem:[%s2032_s23 + $0xb8] sm:$0xff] }
  0x45   : > { %1861 = vmatpush1.bf16.msra.mxu0 %v1860_v17  ;;  %1902 = vmatpush1.bf16.msra.mxu1 %v1860_v17  ;;  %v405_v17 = vld [vmem:[%s2032_s23 + $0x4c8] sm:$0xff] }
  0x46   : > { %1863 = vmatprep.subr.bf16.mxu0 %v1862_v18  ;;  %1887 = vmatprep.subr.bf16.mxu1 %v1862_v18  ;;  %v276_v18 = vld [vmem:[%s2032_s23 + $0xc0] sm:$0xff] }
  0x49   : > { %1865 = vmatpush1.bf16.msra.mxu0 %v1864_v23  ;;  %1903 = vmatpush1.bf16.msra.mxu1 %v1864_v23  ;;  %v406_v23 = vld [vmem:[%s2032_s23 + $0x4d0] sm:$0xff] }
  0x4a   : > { %1867 = vmatprep.subr.bf16.mxu0 %v1866_v24  ;;  %1888 = vmatprep.subr.bf16.mxu1 %v1866_v24  ;;  %v281_v24 = vld [vmem:[%s2032_s23 + $0xe8] sm:$0xff] }
  0x4d   : > { %1869 = vmatpush1.bf16.msra.mxu0 %v1868_v29  ;;  %1904 = vmatpush1.bf16.msra.mxu1 %v1868_v29  ;;  %v411_v29 = vld [vmem:[%s2032_s23 + $0x4f8] sm:$0xff] }
  0x4e   : > { %1871 = vmatprep.subr.bf16.mxu0 %v1870_v30  ;;  %1889 = vmatprep.subr.bf16.mxu1 %v1870_v30  ;;  %v282_v30 = vld [vmem:[%s2032_s23 + $0xf0] sm:$0xff] }
  0x51   : > { %1873 = vmatpush1.bf16.msra.mxu0 %v1872_v33  ;;  %1905 = vmatpush1.bf16.msra.mxu1 %v1872_v33  ;;  %v413_v33 = vld [vmem:[%s2032_s23 + $0x508] sm:$0xff] }
  0x54   : > { %649 = vmatmul.mubr.f32.vlgmr.msra.gmra.mrb[0].mxu0 %v252_v34  ;;  %1033 = vmatmul.mubr.f32.vlgmr.msra.gmra.mrb[0].mxu1 %v380_v35  ;;  %v284_v34 = vld [vmem:[%s2032_s23 + $0x100] sm:$0xff] }
  0x55   : > { %654 = vmatprep.mubr.f32.mxu0 %v255_v36  ;;  %1038 = vmatprep.mubr.f32.mxu1 %v383_v37  ;;  %v412_v35 = vld [vmem:[%s2032_s23 + $0x500] sm:$0xff]  ;;  %v287_v36 = vld [vmem:[%s2032_s23 + $0x118] sm:$0xff] }
  0x56   : > { %v415_v37 = vld [vmem:[%s2032_s23 + $0x518] sm:$0xff] }
  0x58   : > { %655 = vmatmul.mubr.f32.gmra.mrb[2].mxu0 %v254_v38  ;;  %1039 = vmatmul.mubr.f32.gmra.mrb[2].mxu1 %v382_v39  ;;  %v286_v38 = vld [vmem:[%s2032_s23 + $0x110] sm:$0xff] }
  0x59   : > { %660 = vmatprep.mubr.f32.mxu0 %v257_v40  ;;  %1044 = vmatprep.mubr.f32.mxu1 %v385_v41  ;;  %v414_v39 = vld [vmem:[%s2032_s23 + $0x510] sm:$0xff]  ;;  %v289_v40 = vld [vmem:[%s2032_s23 + $0x128] sm:$0xff] }
  0x5a   : > { %v417_v41 = vld [vmem:[%s2032_s23 + $0x528] sm:$0xff] }
  0x5c   : > { %661 = vmatmul.mubr.f32.gmra.mrb[4].mxu0 %v256_v42  ;;  %1045 = vmatmul.mubr.f32.gmra.mrb[4].mxu1 %v384_v43  ;;  %v288_v42 = vld [vmem:[%s2032_s23 + $0x120] sm:$0xff] }
  0x5d   : > { %666 = vmatprep.mubr.f32.mxu0 %v259_v44  ;;  %1050 = vmatprep.mubr.f32.mxu1 %v387_v45  ;;  %v416_v43 = vld [vmem:[%s2032_s23 + $0x520] sm:$0xff]  ;;  %v291_v44 = vld [vmem:[%s2032_s23 + $0x138] sm:$0xff] }
  0x5e   : > { %v419_v45 = vld [vmem:[%s2032_s23 + $0x538] sm:$0xff] }
  0x60   : > { %667 = vmatmul.mubr.f32.gmra.mrb[6].mxu0 %v258_v46  ;;  %1051 = vmatmul.mubr.f32.gmra.mrb[6].mxu1 %v386_v47  ;;  %v290_v46 = vld [vmem:[%s2032_s23 + $0x130] sm:$0xff] }
  0x61   : > { %672 = vmatprep.mubr.f32.mxu0 %v261_v48  ;;  %1056 = vmatprep.mubr.f32.mxu1 %v389_v49  ;;  %v418_v47 = vld [vmem:[%s2032_s23 + $0x530] sm:$0xff]  ;;  %v293_v48 = vld [vmem:[%s2032_s23 + $0x148] sm:$0xff] }
  0x62   : > { %v421_v49 = vld [vmem:[%s2032_s23 + $0x548] sm:$0xff] }
  0x64   : > { %673 = vmatmul.mubr.f32.gmra.mrb[8].mxu0 %v260_v50  ;;  %1057 = vmatmul.mubr.f32.gmra.mrb[8].mxu1 %v388_v51  ;;  %v292_v50 = vld [vmem:[%s2032_s23 + $0x140] sm:$0xff] }
  0x65   : > { %678 = vmatprep.mubr.f32.mxu0 %v263_v52  ;;  %1062 = vmatprep.mubr.f32.mxu1 %v391_v53  ;;  %v420_v51 = vld [vmem:[%s2032_s23 + $0x540] sm:$0xff]  ;;  %v295_v52 = vld [vmem:[%s2032_s23 + $0x158] sm:$0xff] }
  0x66   : > { %v423_v53 = vld [vmem:[%s2032_s23 + $0x558] sm:$0xff] }
  0x68   : > { %679 = vmatmul.mubr.f32.gmra.mrb[10].mxu0 %v262_v54  ;;  %1063 = vmatmul.mubr.f32.gmra.mrb[10].mxu1 %v390_v55  ;;  %v294_v54 = vld [vmem:[%s2032_s23 + $0x150] sm:$0xff] }
  0x69   : > { %684 = vmatprep.mubr.f32.mxu0 %v265_v56  ;;  %1068 = vmatprep.mubr.f32.mxu1 %v393_v57  ;;  %v422_v55 = vld [vmem:[%s2032_s23 + $0x550] sm:$0xff]  ;;  %v297_v56 = vld [vmem:[%s2032_s23 + $0x168] sm:$0xff] }
  0x6a   : > { %v425_v57 = vld [vmem:[%s2032_s23 + $0x568] sm:$0xff] }
  0x6c   : > { %685 = vmatmul.mubr.f32.gmra.mrb[12].mxu0 %v264_v58  ;;  %1069 = vmatmul.mubr.f32.gmra.mrb[12].mxu1 %v392_v59  ;;  %v296_v58 = vld [vmem:[%s2032_s23 + $0x160] sm:$0xff] }
  0x6d   : > { %690 = vmatprep.mubr.f32.mxu0 %v267_v60  ;;  %1074 = vmatprep.mubr.f32.mxu1 %v395_v61  ;;  %v424_v59 = vld [vmem:[%s2032_s23 + $0x560] sm:$0xff]  ;;  %v299_v60 = vld [vmem:[%s2032_s23 + $0x178] sm:$0xff] }
  0x6e   : > { %v427_v61 = vld [vmem:[%s2032_s23 + $0x578] sm:$0xff] }
  0x70   : > { %691 = vmatmul.mubr.f32.gmra.mrb[14].mxu0 %v266_v62  ;;  %1075 = vmatmul.mubr.f32.gmra.mrb[14].mxu1 %v394_v63  ;;  %v298_v62 = vld [vmem:[%s2032_s23 + $0x170] sm:$0xff] }
  0x71   : > { %696 = vmatprep.mubr.f32.mxu0 %v269_v0  ;;  %1080 = vmatprep.mubr.f32.mxu1 %v397_v1  ;;  %v426_v63 = vld [vmem:[%s2032_s23 + $0x570] sm:$0xff]  ;;  %v301_v0 = vld [vmem:[%s2032_s23 + $0x188] sm:$0xff] }
  0x72   : > { %v429_v1 = vld [vmem:[%s2032_s23 + $0x588] sm:$0xff] }
  0x74   : > { %697 = vmatmul.mubr.f32.gmra.mrb[16].mxu0 %v268_v2  ;;  %1081 = vmatmul.mubr.f32.gmra.mrb[16].mxu1 %v396_v3  ;;  %v300_v2 = vld [vmem:[%s2032_s23 + $0x180] sm:$0xff] }
  0x75   : > { %702 = vmatprep.mubr.f32.mxu0 %v271_v4  ;;  %1086 = vmatprep.mubr.f32.mxu1 %v399_v5  ;;  %v428_v3 = vld [vmem:[%s2032_s23 + $0x580] sm:$0xff]  ;;  %v303_v4 = vld [vmem:[%s2032_s23 + $0x198] sm:$0xff] }
  0x76   : > { %v431_v5 = vld [vmem:[%s2032_s23 + $0x598] sm:$0xff] }
  0x78   : > { %703 = vmatmul.mubr.f32.gmra.mrb[18].mxu0 %v270_v6  ;;  %1087 = vmatmul.mubr.f32.gmra.mrb[18].mxu1 %v398_v7  ;;  %v302_v6 = vld [vmem:[%s2032_s23 + $0x190] sm:$0xff] }
  0x79   : > { %708 = vmatprep.mubr.f32.mxu0 %v273_v8  ;;  %1092 = vmatprep.mubr.f32.mxu1 %v401_v9  ;;  %v430_v7 = vld [vmem:[%s2032_s23 + $0x590] sm:$0xff]  ;;  %v305_v8 = vld [vmem:[%s2032_s23 + $0x1a8] sm:$0xff] }
  0x7a   : > { %v433_v9 = vld [vmem:[%s2032_s23 + $0x5a8] sm:$0xff] }
  0x7c   : > { %709 = vmatmul.mubr.f32.gmra.mrb[20].mxu0 %v272_v10  ;;  %1093 = vmatmul.mubr.f32.gmra.mrb[20].mxu1 %v400_v11  ;;  %v304_v10 = vld [vmem:[%s2032_s23 + $0x1a0] sm:$0xff] }
  0x7d   : > { %714 = vmatprep.mubr.f32.mxu0 %v275_v12  ;;  %1098 = vmatprep.mubr.f32.mxu1 %v403_v13  ;;  %v432_v11 = vld [vmem:[%s2032_s23 + $0x5a0] sm:$0xff]  ;;  %v307_v12 = vld [vmem:[%s2032_s23 + $0x1b8] sm:$0xff] }
  0x7e   : > { %v435_v13 = vld [vmem:[%s2032_s23 + $0x5b8] sm:$0xff] }
  0x80   : > { %715 = vmatmul.mubr.f32.gmra.mrb[22].mxu0 %v274_v14  ;;  %1099 = vmatmul.mubr.f32.gmra.mrb[22].mxu1 %v402_v15  ;;  %v306_v14 = vld [vmem:[%s2032_s23 + $0x1b0] sm:$0xff] }
  0x81   : > { %720 = vmatprep.mubr.f32.mxu0 %v277_v16  ;;  %1104 = vmatprep.mubr.f32.mxu1 %v405_v17  ;;  %v434_v15 = vld [vmem:[%s2032_s23 + $0x5b0] sm:$0xff]  ;;  %v309_v16 = vld [vmem:[%s2032_s23 + $0x1c8] sm:$0xff] }
  0x82   : > { %v437_v17 = vld [vmem:[%s2032_s23 + $0x5c8] sm:$0xff] }
  0x84   : > { %721 = vmatmul.mubr.f32.gmra.mrb[24].mxu0 %v276_v18  ;;  %1105 = vmatmul.mubr.f32.gmra.mrb[24].mxu1 %v404_v19  ;;  %v308_v18 = vld [vmem:[%s2032_s23 + $0x1c0] sm:$0xff] }
  0x85   : > { %726 = vmatprep.mubr.f32.mxu0 %v279_v20  ;;  %1110 = vmatprep.mubr.f32.mxu1 %v407_v21  ;;  %v436_v19 = vld [vmem:[%s2032_s23 + $0x5c0] sm:$0xff]  ;;  %v311_v20 = vld [vmem:[%s2032_s23 + $0x1d8] sm:$0xff] }
  0x86   : > { %v439_v21 = vld [vmem:[%s2032_s23 + $0x5d8] sm:$0xff] }
  0x88   : > { %727 = vmatmul.mubr.f32.gmra.mrb[26].mxu0 %v278_v22  ;;  %1111 = vmatmul.mubr.f32.gmra.mrb[26].mxu1 %v406_v23  ;;  %v310_v22 = vld [vmem:[%s2032_s23 + $0x1d0] sm:$0xff] }
  0x89   : > { %732 = vmatprep.mubr.f32.mxu0 %v281_v24  ;;  %1116 = vmatprep.mubr.f32.mxu1 %v409_v25  ;;  %v438_v23 = vld [vmem:[%s2032_s23 + $0x5d0] sm:$0xff]  ;;  %v313_v24 = vld [vmem:[%s2032_s23 + $0x1e8] sm:$0xff] }
  0x8a   : > { %v441_v25 = vld [vmem:[%s2032_s23 + $0x5e8] sm:$0xff] }
  0x8c   : > { %733 = vmatmul.mubr.f32.gmra.mrb[28].mxu0 %v280_v26  ;;  %1117 = vmatmul.mubr.f32.gmra.mrb[28].mxu1 %v408_v27  ;;  %v312_v26 = vld [vmem:[%s2032_s23 + $0x1e0] sm:$0xff] }
  0x8d   : > { %738 = vmatprep.mubr.f32.mxu0 %v283_v28  ;;  %1122 = vmatprep.mubr.f32.mxu1 %v411_v29  ;;  %v440_v27 = vld [vmem:[%s2032_s23 + $0x5e0] sm:$0xff]  ;;  %v315_v28 = vld [vmem:[%s2032_s23 + $0x1f8] sm:$0xff] }
  0x8e   : > { %v443_v29 = vld [vmem:[%s2032_s23 + $0x5f8] sm:$0xff] }
  0x90   : > { %739 = vmatmul.mubr.f32.gmra.mrb[30].mxu0 %v282_v30  ;;  %1123 = vmatmul.mubr.f32.gmra.mrb[30].mxu1 %v410_v31  ;;  %v314_v30 = vld [vmem:[%s2032_s23 + $0x1f0] sm:$0xff] }
  0x91   : > { %744 = vmatprep.mubr.f32.mxu0 %v285_v32  ;;  %1128 = vmatprep.mubr.f32.mxu1 %v413_v33  ;;  %v442_v31 = vld [vmem:[%s2032_s23 + $0x5f0] sm:$0xff]  ;;  %v317_v32 = vld [vmem:[%s2032_s23 + $0x208] sm:$0xff] }
  0x92   : > { %v445_v33 = vld [vmem:[%s2032_s23 + $0x608] sm:$0xff] }
  0x94   : > { %745 = vmatmul.mubr.f32.gmra.mrb[32].mxu0 %v284_v34  ;;  %1129 = vmatmul.mubr.f32.gmra.mrb[32].mxu1 %v412_v35  ;;  %v316_v34 = vld [vmem:[%s2032_s23 + $0x200] sm:$0xff] }
  0x95   : > { %750 = vmatprep.mubr.f32.mxu0 %v287_v36  ;;  %1134 = vmatprep.mubr.f32.mxu1 %v415_v37  ;;  %v444_v35 = vld [vmem:[%s2032_s23 + $0x600] sm:$0xff]  ;;  %v319_v36 = vld [vmem:[%s2032_s23 + $0x218] sm:$0xff] }
  0x96   : > { %v447_v37 = vld [vmem:[%s2032_s23 + $0x618] sm:$0xff] }
  0x98   : > { %751 = vmatmul.mubr.f32.gmra.mrb[34].mxu0 %v286_v38  ;;  %1135 = vmatmul.mubr.f32.gmra.mrb[34].mxu1 %v414_v39  ;;  %v318_v38 = vld [vmem:[%s2032_s23 + $0x210] sm:$0xff] }
  0x99   : > { %756 = vmatprep.mubr.f32.mxu0 %v289_v40  ;;  %1140 = vmatprep.mubr.f32.mxu1 %v417_v41  ;;  %v446_v39 = vld [vmem:[%s2032_s23 + $0x610] sm:$0xff]  ;;  %v321_v40 = vld [vmem:[%s2032_s23 + $0x228] sm:$0xff] }
  0x9a   : > { %v449_v41 = vld [vmem:[%s2032_s23 + $0x628] sm:$0xff] }
  0x9c   : > { %757 = vmatmul.mubr.f32.gmra.mrb[36].mxu0 %v288_v42  ;;  %1141 = vmatmul.mubr.f32.gmra.mrb[36].mxu1 %v416_v43  ;;  %v320_v42 = vld [vmem:[%s2032_s23 + $0x220] sm:$0xff] }
  0x9d   : > { %762 = vmatprep.mubr.f32.mxu0 %v291_v44  ;;  %1146 = vmatprep.mubr.f32.mxu1 %v419_v45  ;;  %v448_v43 = vld [vmem:[%s2032_s23 + $0x620] sm:$0xff]  ;;  %v323_v44 = vld [vmem:[%s2032_s23 + $0x238] sm:$0xff] }
  0x9e   : > { %v451_v45 = vld [vmem:[%s2032_s23 + $0x638] sm:$0xff] }
  0xa0   : > { %763 = vmatmul.mubr.f32.gmra.mrb[38].mxu0 %v290_v46  ;;  %1147 = vmatmul.mubr.f32.gmra.mrb[38].mxu1 %v418_v47  ;;  %v322_v46 = vld [vmem:[%s2032_s23 + $0x230] sm:$0xff] }
  0xa1   : > { %768 = vmatprep.mubr.f32.mxu0 %v293_v48  ;;  %1152 = vmatprep.mubr.f32.mxu1 %v421_v49  ;;  %v450_v47 = vld [vmem:[%s2032_s23 + $0x630] sm:$0xff]  ;;  %v325_v48 = vld [vmem:[%s2032_s23 + $0x248] sm:$0xff] }
  0xa2   : > { %v453_v49 = vld [vmem:[%s2032_s23 + $0x648] sm:$0xff] }
  0xa4   : > { %769 = vmatmul.mubr.f32.gmra.mrb[40].mxu0 %v292_v50  ;;  %1153 = vmatmul.mubr.f32.gmra.mrb[40].mxu1 %v420_v51  ;;  %v324_v50 = vld [vmem:[%s2032_s23 + $0x240] sm:$0xff] }
  0xa5   : > { %774 = vmatprep.mubr.f32.mxu0 %v295_v52  ;;  %1158 = vmatprep.mubr.f32.mxu1 %v423_v53  ;;  %v452_v51 = vld [vmem:[%s2032_s23 + $0x640] sm:$0xff]  ;;  %v327_v52 = vld [vmem:[%s2032_s23 + $0x258] sm:$0xff] }
  0xa6   : > { %v455_v53 = vld [vmem:[%s2032_s23 + $0x658] sm:$0xff] }
  0xa8   : > { %775 = vmatmul.mubr.f32.gmra.mrb[42].mxu0 %v294_v54  ;;  %1159 = vmatmul.mubr.f32.gmra.mrb[42].mxu1 %v422_v55  ;;  %v326_v54 = vld [vmem:[%s2032_s23 + $0x250] sm:$0xff] }
  0xa9   : > { %780 = vmatprep.mubr.f32.mxu0 %v297_v56  ;;  %1164 = vmatprep.mubr.f32.mxu1 %v425_v57  ;;  %v454_v55 = vld [vmem:[%s2032_s23 + $0x650] sm:$0xff]  ;;  %v329_v56 = vld [vmem:[%s2032_s23 + $0x268] sm:$0xff] }
  0xaa   : > { %v457_v57 = vld [vmem:[%s2032_s23 + $0x668] sm:$0xff] }
  0xac   : > { %781 = vmatmul.mubr.f32.gmra.mrb[44].mxu0 %v296_v58  ;;  %1165 = vmatmul.mubr.f32.gmra.mrb[44].mxu1 %v424_v59  ;;  %v328_v58 = vld [vmem:[%s2032_s23 + $0x260] sm:$0xff] }
  0xad   : > { %786 = vmatprep.mubr.f32.mxu0 %v299_v60  ;;  %1170 = vmatprep.mubr.f32.mxu1 %v427_v61  ;;  %v456_v59 = vld [vmem:[%s2032_s23 + $0x660] sm:$0xff]  ;;  %v331_v60 = vld [vmem:[%s2032_s23 + $0x278] sm:$0xff] }
  0xae   : > { %v459_v61 = vld [vmem:[%s2032_s23 + $0x678] sm:$0xff] }
  0xb0   : > { %787 = vmatmul.mubr.f32.gmra.mrb[46].mxu0 %v298_v62  ;;  %1171 = vmatmul.mubr.f32.gmra.mrb[46].mxu1 %v426_v63  ;;  %v330_v62 = vld [vmem:[%s2032_s23 + $0x270] sm:$0xff] }
  0xb1   : > { %792 = vmatprep.mubr.f32.mxu0 %v301_v0  ;;  %1176 = vmatprep.mubr.f32.mxu1 %v429_v1  ;;  %v458_v63 = vld [vmem:[%s2032_s23 + $0x670] sm:$0xff]  ;;  %v333_v0 = vld [vmem:[%s2032_s23 + $0x288] sm:$0xff] }
  0xb2   : > { %v461_v1 = vld [vmem:[%s2032_s23 + $0x688] sm:$0xff] }
  0xb4   : > { %793 = vmatmul.mubr.f32.gmra.mrb[48].mxu0 %v300_v2  ;;  %1177 = vmatmul.mubr.f32.gmra.mrb[48].mxu1 %v428_v3  ;;  %v332_v2 = vld [vmem:[%s2032_s23 + $0x280] sm:$0xff] }
  0xb5   : > { %798 = vmatprep.mubr.f32.mxu0 %v303_v4  ;;  %1182 = vmatprep.mubr.f32.mxu1 %v431_v5  ;;  %v460_v3 = vld [vmem:[%s2032_s23 + $0x680] sm:$0xff]  ;;  %v335_v4 = vld [vmem:[%s2032_s23 + $0x298] sm:$0xff] }
  0xb6   : > { %v463_v5 = vld [vmem:[%s2032_s23 + $0x698] sm:$0xff] }
  0xb8   : > { %799 = vmatmul.mubr.f32.gmra.mrb[50].mxu0 %v302_v6  ;;  %1183 = vmatmul.mubr.f32.gmra.mrb[50].mxu1 %v430_v7  ;;  %v334_v6 = vld [vmem:[%s2032_s23 + $0x290] sm:$0xff] }
  0xb9   : > { %804 = vmatprep.mubr.f32.mxu0 %v305_v8  ;;  %1188 = vmatprep.mubr.f32.mxu1 %v433_v9  ;;  %v462_v7 = vld [vmem:[%s2032_s23 + $0x690] sm:$0xff]  ;;  %v337_v8 = vld [vmem:[%s2032_s23 + $0x2a8] sm:$0xff] }
  0xba   : > { %v465_v9 = vld [vmem:[%s2032_s23 + $0x6a8] sm:$0xff] }
  0xbc   : > { %805 = vmatmul.mubr.f32.gmra.mrb[52].mxu0 %v304_v10  ;;  %1189 = vmatmul.mubr.f32.gmra.mrb[52].mxu1 %v432_v11  ;;  %v336_v10 = vld [vmem:[%s2032_s23 + $0x2a0] sm:$0xff] }
  0xbd   : > { %810 = vmatprep.mubr.f32.mxu0 %v307_v12  ;;  %1194 = vmatprep.mubr.f32.mxu1 %v435_v13  ;;  %v464_v11 = vld [vmem:[%s2032_s23 + $0x6a0] sm:$0xff]  ;;  %v339_v12 = vld [vmem:[%s2032_s23 + $0x2b8] sm:$0xff] }
  0xbe   : > { %v467_v13 = vld [vmem:[%s2032_s23 + $0x6b8] sm:$0xff] }
  0xc0   : > { %811 = vmatmul.mubr.f32.gmra.mrb[54].mxu0 %v306_v14  ;;  %1195 = vmatmul.mubr.f32.gmra.mrb[54].mxu1 %v434_v15  ;;  %v338_v14 = vld [vmem:[%s2032_s23 + $0x2b0] sm:$0xff] }
  0xc1   : > { %816 = vmatprep.mubr.f32.mxu0 %v309_v16  ;;  %1200 = vmatprep.mubr.f32.mxu1 %v437_v17  ;;  %v466_v15 = vld [vmem:[%s2032_s23 + $0x6b0] sm:$0xff]  ;;  %v341_v16 = vld [vmem:[%s2032_s23 + $0x2c8] sm:$0xff] }
  0xc2   : > { %v469_v17 = vld [vmem:[%s2032_s23 + $0x6c8] sm:$0xff] }
  0xc4   : > { %817 = vmatmul.mubr.f32.gmra.mrb[56].mxu0 %v308_v18  ;;  %1201 = vmatmul.mubr.f32.gmra.mrb[56].mxu1 %v436_v19  ;;  %v340_v18 = vld [vmem:[%s2032_s23 + $0x2c0] sm:$0xff] }
  0xc5   : > { %822 = vmatprep.mubr.f32.mxu0 %v311_v20  ;;  %1206 = vmatprep.mubr.f32.mxu1 %v439_v21  ;;  %v468_v19 = vld [vmem:[%s2032_s23 + $0x6c0] sm:$0xff]  ;;  %v343_v20 = vld [vmem:[%s2032_s23 + $0x2d8] sm:$0xff] }
  0xc6   : > { %v471_v21 = vld [vmem:[%s2032_s23 + $0x6d8] sm:$0xff] }
  0xc8   : > { %823 = vmatmul.mubr.f32.gmra.mrb[58].mxu0 %v310_v22  ;;  %1207 = vmatmul.mubr.f32.gmra.mrb[58].mxu1 %v438_v23  ;;  %v342_v22 = vld [vmem:[%s2032_s23 + $0x2d0] sm:$0xff] }
  0xc9   : > { %828 = vmatprep.mubr.f32.mxu0 %v313_v24  ;;  %1212 = vmatprep.mubr.f32.mxu1 %v441_v25  ;;  %v470_v23 = vld [vmem:[%s2032_s23 + $0x6d0] sm:$0xff]  ;;  %v345_v24 = vld [vmem:[%s2032_s23 + $0x2e8] sm:$0xff] }
  0xca   : > { %v473_v25 = vld [vmem:[%s2032_s23 + $0x6e8] sm:$0xff] }
  0xcc   : > { %829 = vmatmul.mubr.f32.gmra.mrb[60].mxu0 %v312_v26  ;;  %1213 = vmatmul.mubr.f32.gmra.mrb[60].mxu1 %v440_v27  ;;  %v344_v26 = vld [vmem:[%s2032_s23 + $0x2e0] sm:$0xff] }
  0xcd   : > { %834 = vmatprep.mubr.f32.mxu0 %v315_v28  ;;  %1218 = vmatprep.mubr.f32.mxu1 %v443_v29  ;;  %v472_v27 = vld [vmem:[%s2032_s23 + $0x6e0] sm:$0xff]  ;;  %v347_v28 = vld [vmem:[%s2032_s23 + $0x2f8] sm:$0xff] }
  0xce   : > { %v475_v29 = vld [vmem:[%s2032_s23 + $0x6f8] sm:$0xff] }
  0xd0   : > { %835 = vmatmul.mubr.f32.gmra.mrb[62].mxu0 %v314_v30  ;;  %1219 = vmatmul.mubr.f32.gmra.mrb[62].mxu1 %v442_v31  ;;  %v346_v30 = vld [vmem:[%s2032_s23 + $0x2f0] sm:$0xff] }
  0xd1   : > { %840 = vmatprep.mubr.f32.mxu0 %v317_v32  ;;  %1224 = vmatprep.mubr.f32.mxu1 %v445_v33  ;;  %v474_v31 = vld [vmem:[%s2032_s23 + $0x6f0] sm:$0xff]  ;;  %v349_v32 = vld [vmem:[%s2032_s23 + $0x308] sm:$0xff] }
  0xd2   : > { %v477_v33 = vld [vmem:[%s2032_s23 + $0x708] sm:$0xff] }
  0xd4   : > { %841 = vmatmul.mubr.f32.gmra.mrb[64].mxu0 %v316_v34  ;;  %1225 = vmatmul.mubr.f32.gmra.mrb[64].mxu1 %v444_v35  ;;  %v348_v34 = vld [vmem:[%s2032_s23 + $0x300] sm:$0xff] }
  0xd5   : > { %846 = vmatprep.mubr.f32.mxu0 %v319_v36  ;;  %1230 = vmatprep.mubr.f32.mxu1 %v447_v37  ;;  %v476_v35 = vld [vmem:[%s2032_s23 + $0x700] sm:$0xff]  ;;  %v351_v36 = vld [vmem:[%s2032_s23 + $0x318] sm:$0xff] }
  0xd6   : > { %v479_v37 = vld [vmem:[%s2032_s23 + $0x718] sm:$0xff] }
  0xd8   : > { %847 = vmatmul.mubr.f32.gmra.mrb[66].mxu0 %v318_v38  ;;  %1231 = vmatmul.mubr.f32.gmra.mrb[66].mxu1 %v446_v39  ;;  %v350_v38 = vld [vmem:[%s2032_s23 + $0x310] sm:$0xff] }
  0xd9   : > { %852 = vmatprep.mubr.f32.mxu0 %v321_v40  ;;  %1236 = vmatprep.mubr.f32.mxu1 %v449_v41  ;;  %v478_v39 = vld [vmem:[%s2032_s23 + $0x710] sm:$0xff]  ;;  %v353_v40 = vld [vmem:[%s2032_s23 + $0x328] sm:$0xff] }
  0xda   : > { %v481_v41 = vld [vmem:[%s2032_s23 + $0x728] sm:$0xff] }
  0xdc   : > { %853 = vmatmul.mubr.f32.gmra.mrb[68].mxu0 %v320_v42  ;;  %1237 = vmatmul.mubr.f32.gmra.mrb[68].mxu1 %v448_v43  ;;  %v574_v42 = vlaneseq  ;;  %v352_v43 = vld [vmem:[%s2032_s23 + $0x320] sm:$0xff] }
  0xdd   : > { %858 = vmatprep.mubr.f32.mxu0 %v323_v44  ;;  %1242 = vmatprep.mubr.f32.mxu1 %v451_v45  ;;  %v480_v44 = vld [vmem:[%s2032_s23 + $0x720] sm:$0xff]  ;;  %v355_v45 = vld [vmem:[%s2032_s23 + $0x338] sm:$0xff] }
  0xe0   : > { %859 = vmatmul.mubr.f32.gmra.mrb[70].mxu0 %v322_v46  ;;  %1243 = vmatmul.mubr.f32.gmra.mrb[70].mxu1 %v450_v47  ;;  %v483_v46 = vld [vmem:[%s2032_s23 + $0x738] sm:$0xff]  ;;  %v575_v47 = vshrl.u32 %v574_v42, 7 }
  0xe1   : > { %864 = vmatprep.mubr.f32.mxu0 %v325_v48  ;;  %1248 = vmatprep.mubr.f32.mxu1 %v453_v49  ;;  %v354_v48 = vld [vmem:[%s2032_s23 + $0x330] sm:$0xff] }
  0xe2   : > { %v482_v49 = vld [vmem:[%s2032_s23 + $0x730] sm:$0xff] }
  0xe4   : > { %865 = vmatmul.mubr.f32.gmra.mrb[72].mxu0 %v324_v50  ;;  %1249 = vmatmul.mubr.f32.gmra.mrb[72].mxu1 %v452_v51  ;;  %v357_v50 = vld [vmem:[%s2032_s23 + $0x348] sm:$0xff] }
  0xe5   : > { %870 = vmatprep.mubr.f32.mxu0 %v327_v52  ;;  %1254 = vmatprep.mubr.f32.mxu1 %v455_v53  ;;  %v485_v51 = vld [vmem:[%s2032_s23 + $0x748] sm:$0xff]  ;;  %v576_v52 = vsub.s32 0, %v575_v47  ;;  %v356_v53 = vld [vmem:[%s2032_s23 + $0x340] sm:$0xff] }
  0xe8   : > { %871 = vmatmul.mubr.f32.gmra.mrb[74].mxu0 %v326_v54  ;;  %1255 = vmatmul.mubr.f32.gmra.mrb[74].mxu1 %v454_v55  ;;  %v484_v54 = vld [vmem:[%s2032_s23 + $0x740] sm:$0xff] }
  0xe9   : > { %876 = vmatprep.mubr.f32.mxu0 %v329_v56  ;;  %1260 = vmatprep.mubr.f32.mxu1 %v457_v57  ;;  %v572_v55 = vld [vmem:[%s240_s27] sm:$0x3]  ;;  %v580_v56 = vsub.s32 1, %v575_v47  ;;  %v359_v57 = vld [vmem:[%s2032_s23 + $0x358] sm:$0xff]  ;;  %v369_v47 = vld [vmem:[%s2032_s23 + $0x3a8] sm:$0xff] }
  0xec   : > { %877 = vmatmul.mubr.f32.gmra.mrb[76].mxu0 %v328_v58  ;;  %1261 = vmatmul.mubr.f32.gmra.mrb[76].mxu1 %v456_v59  ;;  %v487_v58 = vld [vmem:[%s2032_s23 + $0x758] sm:$0xff]  ;;  %v2290_v59 = vrot.slane %v572_v55, %v576_v52 }
  0xed   : > { %882 = vmatprep.mubr.f32.mxu0 %v331_v60  ;;  %1266 = vmatprep.mubr.f32.mxu1 %v459_v61  ;;  %v2292_v60 = vrot.slane %v572_v55, %v580_v56  ;;  %v358_v61 = vld [vmem:[%s2032_s23 + $0x350] sm:$0xff] }
  0xf0   : > { %883 = vmatmul.mubr.f32.gmra.mrb[78].mxu0 %v330_v62  ;;  %1267 = vmatmul.mubr.f32.gmra.mrb[78].mxu1 %v458_v63  ;;  %v486_v62 = vld [vmem:[%s2032_s23 + $0x750] sm:$0xff]  ;;  %v361_v63 = vld [vmem:[%s2032_s23 + $0x368] sm:$0xff] }
  0xf1   : > { %888 = vmatprep.mubr.f32.mxu0 %v333_v0  ;;  %1272 = vmatprep.mubr.f32.mxu1 %v461_v1  ;;  %v489_v0 = vld [vmem:[%s2032_s23 + $0x768] sm:$0xff] }
  0xf4   : > { %889 = vmatmul.mubr.f32.gmra.mrb[80].mxu0 %v332_v2  ;;  %1273 = vmatmul.mubr.f32.gmra.mrb[80].mxu1 %v460_v3 }
  0xf5   : > { %894 = vmatprep.mubr.f32.mxu0 %v335_v4  ;;  %1278 = vmatprep.mubr.f32.mxu1 %v463_v5 }
  0xf8   : > { %895 = vmatmul.mubr.f32.gmra.mrb[82].mxu0 %v334_v6  ;;  %1279 = vmatmul.mubr.f32.gmra.mrb[82].mxu1 %v462_v7 }
  0xf9   : > { %900 = vmatprep.mubr.f32.mxu0 %v337_v8  ;;  %1284 = vmatprep.mubr.f32.mxu1 %v465_v9  ;;  %v360_v9 = vld [vmem:[%s2032_s23 + $0x360] sm:$0xff] }
  0xfc   : > { %901 = vmatmul.mubr.f32.gmra.mrb[84].mxu0 %v336_v10  ;;  %1285 = vmatmul.mubr.f32.gmra.mrb[84].mxu1 %v464_v11  ;;  %v488_v10 = vld [vmem:[%s2032_s23 + $0x760] sm:$0xff]  ;;  %v363_v11 = vld [vmem:[%s2032_s23 + $0x378] sm:$0xff] }
  0xfd   : > { %906 = vmatprep.mubr.f32.mxu0 %v339_v12  ;;  %1290 = vmatprep.mubr.f32.mxu1 %v467_v13  ;;  %v491_v12 = vld [vmem:[%s2032_s23 + $0x778] sm:$0xff] }
 0x100   : > { %907 = vmatmul.mubr.f32.gmra.mrb[86].mxu0 %v338_v14  ;;  %1291 = vmatmul.mubr.f32.gmra.mrb[86].mxu1 %v466_v15 }
 0x101   : > { %912 = vmatprep.mubr.f32.mxu0 %v341_v16  ;;  %1296 = vmatprep.mubr.f32.mxu1 %v469_v17 }
 0x104   : > { %913 = vmatmul.mubr.f32.gmra.mrb[88].mxu0 %v340_v18  ;;  %1297 = vmatmul.mubr.f32.gmra.mrb[88].mxu1 %v468_v19 }
 0x105   : > { %918 = vmatprep.mubr.f32.mxu0 %v343_v20  ;;  %1302 = vmatprep.mubr.f32.mxu1 %v471_v21  ;;  %v362_v21 = vld [vmem:[%s2032_s23 + $0x370] sm:$0xff] }
 0x108   : > { %919 = vmatmul.mubr.f32.gmra.mrb[90].mxu0 %v342_v22  ;;  %1303 = vmatmul.mubr.f32.gmra.mrb[90].mxu1 %v470_v23  ;;  %v490_v22 = vld [vmem:[%s2032_s23 + $0x770] sm:$0xff]  ;;  %v365_v23 = vld [vmem:[%s2032_s23 + $0x388] sm:$0xff] }
 0x109   : > { %924 = vmatprep.mubr.f32.mxu0 %v345_v24  ;;  %1308 = vmatprep.mubr.f32.mxu1 %v473_v25  ;;  %v493_v24 = vld [vmem:[%s2032_s23 + $0x788] sm:$0xff] }
 0x10c   : > { %925 = vmatmul.mubr.f32.gmra.mrb[92].mxu0 %v344_v26  ;;  %1309 = vmatmul.mubr.f32.gmra.mrb[92].mxu1 %v472_v27 }
 0x10d   : > { %930 = vmatprep.mubr.f32.mxu0 %v347_v28  ;;  %1314 = vmatprep.mubr.f32.mxu1 %v475_v29 }
 0x110   : > { %931 = vmatmul.mubr.f32.gmra.mrb[94].mxu0 %v346_v30  ;;  %1315 = vmatmul.mubr.f32.gmra.mrb[94].mxu1 %v474_v31 }
 0x111   : > { %936 = vmatprep.mubr.f32.mxu0 %v349_v32  ;;  %1320 = vmatprep.mubr.f32.mxu1 %v477_v33  ;;  %v364_v33 = vld [vmem:[%s2032_s23 + $0x380] sm:$0xff] }
 0x114   : > { %937 = vmatmul.mubr.f32.gmra.mrb[96].mxu0 %v348_v34  ;;  %1321 = vmatmul.mubr.f32.gmra.mrb[96].mxu1 %v476_v35  ;;  %v492_v34 = vld [vmem:[%s2032_s23 + $0x780] sm:$0xff]  ;;  %v367_v35 = vld [vmem:[%s2032_s23 + $0x398] sm:$0xff] }
 0x115   : > { %942 = vmatprep.mubr.f32.mxu0 %v351_v36  ;;  %1326 = vmatprep.mubr.f32.mxu1 %v479_v37  ;;  %v495_v36 = vld [vmem:[%s2032_s23 + $0x798] sm:$0xff] }
 0x118   : > { %943 = vmatmul.mubr.f32.gmra.mrb[98].mxu0 %v350_v38  ;;  %1327 = vmatmul.mubr.f32.gmra.mrb[98].mxu1 %v478_v39 }
 0x119   : > { %948 = vmatprep.mubr.f32.mxu0 %v353_v40  ;;  %1332 = vmatprep.mubr.f32.mxu1 %v481_v41 }
 0x11c   : > { %949 = vmatmul.mubr.f32.gmra.mrb[100].mxu0 %v352_v43  ;;  %1333 = vmatmul.mubr.f32.gmra.mrb[100].mxu1 %v480_v44 }
 0x11d   : > { %954 = vmatprep.mubr.f32.mxu0 %v355_v45  ;;  %1338 = vmatprep.mubr.f32.mxu1 %v483_v46  ;;  %v366_v45 = vld [vmem:[%s2032_s23 + $0x390] sm:$0xff] }
 0x11e   : > { %v494_v46 = vld [vmem:[%s2032_s23 + $0x790] sm:$0xff] }
 0x120   : > { %955 = vmatmul.mubr.f32.gmra.mrb[102].mxu0 %v354_v48  ;;  %1339 = vmatmul.mubr.f32.gmra.mrb[102].mxu1 %v482_v49  ;;  %v497_v48 = vld [vmem:[%s2032_s23 + $0x7a8] sm:$0xff] }
 0x121   : > { %960 = vmatprep.mubr.f32.mxu0 %v357_v50  ;;  %1344 = vmatprep.mubr.f32.mxu1 %v485_v51 }
 0x124   : > { %961 = vmatmul.mubr.f32.gmra.mrb[104].mxu0 %v356_v53  ;;  %1345 = vmatmul.mubr.f32.gmra.mrb[104].mxu1 %v484_v54 }
 0x125   : > { %966 = vmatprep.mubr.f32.mxu0 %v359_v57  ;;  %1350 = vmatprep.mubr.f32.mxu1 %v487_v58  ;;  %v368_v57 = vld [vmem:[%s2032_s23 + $0x3a0] sm:$0xff] }
 0x126   : > { %v496_v58 = vld [vmem:[%s2032_s23 + $0x7a0] sm:$0xff] }
 0x127   : > { %v650_v1 = vpop.f32.mrb[0].mxu0  ;;  %v1034_v2 = vpop.f32.mrb[0].mxu1 }
 0x128   : > { %v651_v3 = vadd.f32 %v650_v1, %v2290_v59  ;;  %v1035_v4 = vadd.f32 %v1034_v2, %v2290_v59  ;;  %v652_v5 = vpop.f32.mrb[1].mxu0  ;;  %967 = vmatmul.mubr.f32.gmra.mrb[106].mxu0 %v358_v61  ;;  %v1036_v6 = vpop.f32.mrb[1].mxu1  ;;  %1351 = vmatmul.mubr.f32.gmra.mrb[106].mxu1 %v486_v62  ;;  %v371_v61 = vld [vmem:[%s2032_s23 + $0x3b8] sm:$0xff] }
 0x129   : > { %v653_v7 = vadd.f32 %v652_v5, %v2292_v60  ;;  %v1037_v8 = vadd.f32 %v1036_v6, %v2292_v60  ;;  %972 = vmatprep.mubr.f32.mxu0 %v361_v63  ;;  %1356 = vmatprep.mubr.f32.mxu1 %v489_v0  ;;  %v499_v62 = vld [vmem:[%s2032_s23 + $0x7b8] sm:$0xff] }
 0x12a   : > { %1417 = vst [vmem:[%s2303_s30] sm:$0xff] %v651_v3  ;;  %1545 = vst [vmem:[%s2303_s30 + $0x400] sm:$0xff] %v1035_v4 }
 0x12b   : > { %1418 = vst [vmem:[%s2303_s30 + $0x8] sm:$0xff] %v653_v7  ;;  %1546 = vst [vmem:[%s2303_s30 + $0x408] sm:$0xff] %v1037_v8  ;;  %v656_v13 = vpop.f32.mrb[2].mxu0  ;;  %v1040_v14 = vpop.f32.mrb[2].mxu1  ;;  %v370_v7 = vld [vmem:[%s2032_s23 + $0x3b0] sm:$0xff] }
 0x12c   : > { %v657_v15 = vadd.f32 %v656_v13, %v2290_v59  ;;  %v1041_v16 = vadd.f32 %v1040_v14, %v2290_v59  ;;  %v658_v17 = vpop.f32.mrb[3].mxu0  ;;  %973 = vmatmul.mubr.f32.gmra.mrb[108].mxu0 %v360_v9  ;;  %v1042_v18 = vpop.f32.mrb[3].mxu1  ;;  %1357 = vmatmul.mubr.f32.gmra.mrb[108].mxu1 %v488_v10  ;;  %v498_v8 = vld [vmem:[%s2032_s23 + $0x7b0] sm:$0xff]  ;;  %v373_v9 = vld [vmem:[%s2032_s23 + $0x3c8] sm:$0xff] }
 0x12d   : > { %v659_v19 = vadd.f32 %v658_v17, %v2292_v60  ;;  %v1043_v20 = vadd.f32 %v1042_v18, %v2292_v60  ;;  %978 = vmatprep.mubr.f32.mxu0 %v363_v11  ;;  %1362 = vmatprep.mubr.f32.mxu1 %v491_v12  ;;  %v501_v10 = vld [vmem:[%s2032_s23 + $0x7c8] sm:$0xff] }
 0x12e   : > { %1419 = vst [vmem:[%s2303_s30 + $0x10] sm:$0xff] %v657_v15  ;;  %1547 = vst [vmem:[%s2303_s30 + $0x410] sm:$0xff] %v1041_v16 }
 0x12f   : > { %1420 = vst [vmem:[%s2303_s30 + $0x18] sm:$0xff] %v659_v19  ;;  %1548 = vst [vmem:[%s2303_s30 + $0x418] sm:$0xff] %v1043_v20  ;;  %v662_v25 = vpop.f32.mrb[4].mxu0  ;;  %v1046_v26 = vpop.f32.mrb[4].mxu1  ;;  %v372_v19 = vld [vmem:[%s2032_s23 + $0x3c0] sm:$0xff] }
 0x130   : > { %v663_v27 = vadd.f32 %v662_v25, %v2290_v59  ;;  %v1047_v28 = vadd.f32 %v1046_v26, %v2290_v59  ;;  %v664_v29 = vpop.f32.mrb[5].mxu0  ;;  %979 = vmatmul.mubr.f32.gmra.mrb[110].mxu0 %v362_v21  ;;  %v1048_v30 = vpop.f32.mrb[5].mxu1  ;;  %1363 = vmatmul.mubr.f32.gmra.mrb[110].mxu1 %v490_v22  ;;  %v500_v20 = vld [vmem:[%s2032_s23 + $0x7c0] sm:$0xff]  ;;  %v375_v21 = vld [vmem:[%s2032_s23 + $0x3d8] sm:$0xff] }
 0x131   : > { %v665_v31 = vadd.f32 %v664_v29, %v2292_v60  ;;  %v1049_v32 = vadd.f32 %v1048_v30, %v2292_v60  ;;  %984 = vmatprep.mubr.f32.mxu0 %v365_v23  ;;  %1368 = vmatprep.mubr.f32.mxu1 %v493_v24  ;;  %v503_v22 = vld [vmem:[%s2032_s23 + $0x7d8] sm:$0xff] }
 0x132   : > { %1421 = vst [vmem:[%s2303_s30 + $0x20] sm:$0xff] %v663_v27  ;;  %1549 = vst [vmem:[%s2303_s30 + $0x420] sm:$0xff] %v1047_v28 }
 0x133   : > { %1422 = vst [vmem:[%s2303_s30 + $0x28] sm:$0xff] %v665_v31  ;;  %1550 = vst [vmem:[%s2303_s30 + $0x428] sm:$0xff] %v1049_v32  ;;  %v668_v37 = vpop.f32.mrb[6].mxu0  ;;  %v1052_v38 = vpop.f32.mrb[6].mxu1  ;;  %v374_v31 = vld [vmem:[%s2032_s23 + $0x3d0] sm:$0xff] }
 0x134   : > { %v669_v39 = vadd.f32 %v668_v37, %v2290_v59  ;;  %v1053_v40 = vadd.f32 %v1052_v38, %v2290_v59  ;;  %v670_v41 = vpop.f32.mrb[7].mxu0  ;;  %985 = vmatmul.mubr.f32.gmra.mrb[112].mxu0 %v364_v33  ;;  %v1054_v42 = vpop.f32.mrb[7].mxu1  ;;  %1369 = vmatmul.mubr.f32.gmra.mrb[112].mxu1 %v492_v34  ;;  %v502_v32 = vld [vmem:[%s2032_s23 + $0x7d0] sm:$0xff]  ;;  %v377_v33 = vld [vmem:[%s2032_s23 + $0x3e8] sm:$0xff] }
 0x135   : > { %v671_v43 = vadd.f32 %v670_v41, %v2292_v60  ;;  %v1055_v44 = vadd.f32 %v1054_v42, %v2292_v60  ;;  %990 = vmatprep.mubr.f32.mxu0 %v367_v35  ;;  %1374 = vmatprep.mubr.f32.mxu1 %v495_v36  ;;  %v505_v34 = vld [vmem:[%s2032_s23 + $0x7e8] sm:$0xff] }
 0x136   : > { %1423 = vst [vmem:[%s2303_s30 + $0x30] sm:$0xff] %v669_v39  ;;  %1551 = vst [vmem:[%s2303_s30 + $0x430] sm:$0xff] %v1053_v40 }
 0x137   : > { %1424 = vst [vmem:[%s2303_s30 + $0x38] sm:$0xff] %v671_v43  ;;  %1552 = vst [vmem:[%s2303_s30 + $0x438] sm:$0xff] %v1055_v44  ;;  %v674_v49 = vpop.f32.mrb[8].mxu0  ;;  %v1058_v50 = vpop.f32.mrb[8].mxu1  ;;  %v376_v43 = vld [vmem:[%s2032_s23 + $0x3e0] sm:$0xff] }
 0x138   : > { %v675_v51 = vadd.f32 %v674_v49, %v2290_v59  ;;  %v1059_v52 = vadd.f32 %v1058_v50, %v2290_v59  ;;  %v676_v53 = vpop.f32.mrb[9].mxu0  ;;  %991 = vmatmul.mubr.f32.gmra.mrb[114].mxu0 %v366_v45  ;;  %v1060_v54 = vpop.f32.mrb[9].mxu1  ;;  %1375 = vmatmul.mubr.f32.gmra.mrb[114].mxu1 %v494_v46  ;;  %v504_v44 = vld [vmem:[%s2032_s23 + $0x7e0] sm:$0xff]  ;;  %v379_v45 = vld [vmem:[%s2032_s23 + $0x3f8] sm:$0xff] }
 0x139   : > { %v677_v55 = vadd.f32 %v676_v53, %v2292_v60  ;;  %v1061_v56 = vadd.f32 %v1060_v54, %v2292_v60  ;;  %996 = vmatprep.mubr.f32.mxu0 %v369_v47  ;;  %1380 = vmatprep.mubr.f32.mxu1 %v497_v48  ;;  %v507_v46 = vld [vmem:[%s2032_s23 + $0x7f8] sm:$0xff] }
 0x13a   : > { %1425 = vst [vmem:[%s2303_s30 + $0x40] sm:$0xff] %v675_v51  ;;  %1553 = vst [vmem:[%s2303_s30 + $0x440] sm:$0xff] %v1059_v52 }
 0x13b   : > { %1426 = vst [vmem:[%s2303_s30 + $0x48] sm:$0xff] %v677_v55  ;;  %1554 = vst [vmem:[%s2303_s30 + $0x448] sm:$0xff] %v1061_v56  ;;  %v680_v63 = vpop.f32.mrb[10].mxu0  ;;  %v1064_v0 = vpop.f32.mrb[10].mxu1  ;;  %v378_v55 = vld [vmem:[%s2032_s23 + $0x3f0] sm:$0xff] }
 0x13c   : > { %v681_v1 = vadd.f32 %v680_v63, %v2290_v59  ;;  %v1065_v2 = vadd.f32 %v1064_v0, %v2290_v59  ;;  %v682_v3 = vpop.f32.mrb[11].mxu0  ;;  %997 = vmatmul.mubr.f32.gmra.mrb[116].mxu0 %v368_v57  ;;  %v1066_v4 = vpop.f32.mrb[11].mxu1  ;;  %1381 = vmatmul.mubr.f32.gmra.mrb[116].mxu1 %v496_v58  ;;  %v506_v56 = vld [vmem:[%s2032_s23 + $0x7f0] sm:$0xff] }
 0x13d   : > { %v683_v5 = vadd.f32 %v682_v3, %v2292_v60  ;;  %v1067_v6 = vadd.f32 %v1066_v4, %v2292_v60  ;;  %1002 = vmatprep.mubr.f32.mxu0 %v371_v61  ;;  %1386 = vmatprep.mubr.f32.mxu1 %v499_v62 }
 0x13e   : > { %1427 = vst [vmem:[%s2303_s30 + $0x50] sm:$0xff] %v681_v1  ;;  %1555 = vst [vmem:[%s2303_s30 + $0x450] sm:$0xff] %v1065_v2 }
 0x13f   : > { %1428 = vst [vmem:[%s2303_s30 + $0x58] sm:$0xff] %v683_v5  ;;  %1556 = vst [vmem:[%s2303_s30 + $0x458] sm:$0xff] %v1067_v6  ;;  %v686_v11 = vpop.f32.mrb[12].mxu0  ;;  %v1070_v12 = vpop.f32.mrb[12].mxu1 }
 0x140   : > { %v687_v13 = vadd.f32 %v686_v11, %v2290_v59  ;;  %v1071_v14 = vadd.f32 %v1070_v12, %v2290_v59  ;;  %v688_v15 = vpop.f32.mrb[13].mxu0  ;;  %1003 = vmatmul.mubr.f32.gmra.mrb[118].mxu0 %v370_v7  ;;  %v1072_v16 = vpop.f32.mrb[13].mxu1  ;;  %1387 = vmatmul.mubr.f32.gmra.mrb[118].mxu1 %v498_v8 }
 0x141   : > { %v689_v17 = vadd.f32 %v688_v15, %v2292_v60  ;;  %v1073_v18 = vadd.f32 %v1072_v16, %v2292_v60  ;;  %1008 = vmatprep.mubr.f32.mxu0 %v373_v9  ;;  %1392 = vmatprep.mubr.f32.mxu1 %v501_v10 }
 0x142   : > { %1429 = vst [vmem:[%s2303_s30 + $0x60] sm:$0xff] %v687_v13  ;;  %1557 = vst [vmem:[%s2303_s30 + $0x460] sm:$0xff] %v1071_v14 }
 0x143   : > { %1430 = vst [vmem:[%s2303_s30 + $0x68] sm:$0xff] %v689_v17  ;;  %1558 = vst [vmem:[%s2303_s30 + $0x468] sm:$0xff] %v1073_v18  ;;  %v692_v23 = vpop.f32.mrb[14].mxu0  ;;  %v1076_v24 = vpop.f32.mrb[14].mxu1 }
 0x144   : > { %v693_v25 = vadd.f32 %v692_v23, %v2290_v59  ;;  %v1077_v26 = vadd.f32 %v1076_v24, %v2290_v59  ;;  %v694_v27 = vpop.f32.mrb[15].mxu0  ;;  %1009 = vmatmul.mubr.f32.gmra.mrb[120].mxu0 %v372_v19  ;;  %v1078_v28 = vpop.f32.mrb[15].mxu1  ;;  %1393 = vmatmul.mubr.f32.gmra.mrb[120].mxu1 %v500_v20 }
 0x145   : > { %v695_v29 = vadd.f32 %v694_v27, %v2292_v60  ;;  %v1079_v30 = vadd.f32 %v1078_v28, %v2292_v60  ;;  %1014 = vmatprep.mubr.f32.mxu0 %v375_v21  ;;  %1398 = vmatprep.mubr.f32.mxu1 %v503_v22 }
 0x146   : > { %1431 = vst [vmem:[%s2303_s30 + $0x70] sm:$0xff] %v693_v25  ;;  %1559 = vst [vmem:[%s2303_s30 + $0x470] sm:$0xff] %v1077_v26 }
 0x147   : > { %1432 = vst [vmem:[%s2303_s30 + $0x78] sm:$0xff] %v695_v29  ;;  %1560 = vst [vmem:[%s2303_s30 + $0x478] sm:$0xff] %v1079_v30  ;;  %v698_v35 = vpop.f32.mrb[16].mxu0  ;;  %v1082_v36 = vpop.f32.mrb[16].mxu1 }
 0x148   : > { %v699_v37 = vadd.f32 %v698_v35, %v2290_v59  ;;  %v1083_v38 = vadd.f32 %v1082_v36, %v2290_v59  ;;  %v700_v39 = vpop.f32.mrb[17].mxu0  ;;  %1015 = vmatmul.mubr.f32.gmra.mrb[122].mxu0 %v374_v31  ;;  %v1084_v40 = vpop.f32.mrb[17].mxu1  ;;  %1399 = vmatmul.mubr.f32.gmra.mrb[122].mxu1 %v502_v32 }
 0x149   : > { %v701_v41 = vadd.f32 %v700_v39, %v2292_v60  ;;  %v1085_v42 = vadd.f32 %v1084_v40, %v2292_v60  ;;  %1020 = vmatprep.mubr.f32.mxu0 %v377_v33  ;;  %1404 = vmatprep.mubr.f32.mxu1 %v505_v34 }
 0x14a   : > { %1433 = vst [vmem:[%s2303_s30 + $0x80] sm:$0xff] %v699_v37  ;;  %1561 = vst [vmem:[%s2303_s30 + $0x480] sm:$0xff] %v1083_v38 }
 0x14b   : > { %1434 = vst [vmem:[%s2303_s30 + $0x88] sm:$0xff] %v701_v41  ;;  %1562 = vst [vmem:[%s2303_s30 + $0x488] sm:$0xff] %v1085_v42  ;;  %v704_v47 = vpop.f32.mrb[18].mxu0  ;;  %v1088_v48 = vpop.f32.mrb[18].mxu1 }
 0x14c   : > { %v705_v49 = vadd.f32 %v704_v47, %v2290_v59  ;;  %v1089_v50 = vadd.f32 %v1088_v48, %v2290_v59  ;;  %v706_v51 = vpop.f32.mrb[19].mxu0  ;;  %1021 = vmatmul.mubr.f32.gmra.mrb[124].mxu0 %v376_v43  ;;  %v1090_v52 = vpop.f32.mrb[19].mxu1  ;;  %1405 = vmatmul.mubr.f32.gmra.mrb[124].mxu1 %v504_v44 }
 0x14d   : > { %v707_v53 = vadd.f32 %v706_v51, %v2292_v60  ;;  %v1091_v54 = vadd.f32 %v1090_v52, %v2292_v60  ;;  %1026 = vmatprep.mubr.f32.mxu0 %v379_v45  ;;  %1410 = vmatprep.mubr.f32.mxu1 %v507_v46 }
 0x14e   : > { %1435 = vst [vmem:[%s2303_s30 + $0x90] sm:$0xff] %v705_v49  ;;  %1563 = vst [vmem:[%s2303_s30 + $0x490] sm:$0xff] %v1089_v50 }
 0x14f   : > { %1436 = vst [vmem:[%s2303_s30 + $0x98] sm:$0xff] %v707_v53  ;;  %1564 = vst [vmem:[%s2303_s30 + $0x498] sm:$0xff] %v1091_v54  ;;  %v710_v57 = vpop.f32.mrb[20].mxu0  ;;  %v1094_v58 = vpop.f32.mrb[20].mxu1 }
 0x150   : > { %v711_v61 = vadd.f32 %v710_v57, %v2290_v59  ;;  %v1095_v62 = vadd.f32 %v1094_v58, %v2290_v59  ;;  %v712_v63 = vpop.f32.mrb[21].mxu0  ;;  %1027 = vmatmul.mubr.f32.gmra.mrb[126].mxu0 %v378_v55  ;;  %v1096_v0 = vpop.f32.mrb[21].mxu1  ;;  %1411 = vmatmul.mubr.f32.gmra.mrb[126].mxu1 %v506_v56 }
 0x151   : > { %v713_v1 = vadd.f32 %v712_v63, %v2292_v60  ;;  %v1097_v2 = vadd.f32 %v1096_v0, %v2292_v60 }
 0x152   : > { %1437 = vst [vmem:[%s2303_s30 + $0xa0] sm:$0xff] %v711_v61  ;;  %1565 = vst [vmem:[%s2303_s30 + $0x4a0] sm:$0xff] %v1095_v62 }
 0x153   : > { %1438 = vst [vmem:[%s2303_s30 + $0xa8] sm:$0xff] %v713_v1  ;;  %1566 = vst [vmem:[%s2303_s30 + $0x4a8] sm:$0xff] %v1097_v2  ;;  %v716_v3 = vpop.f32.mrb[22].mxu0  ;;  %v1100_v4 = vpop.f32.mrb[22].mxu1 }
 0x154   : > { %v717_v5 = vadd.f32 %v716_v3, %v2290_v59  ;;  %v1101_v6 = vadd.f32 %v1100_v4, %v2290_v59  ;;  %v718_v7 = vpop.f32.mrb[23].mxu0  ;;  %v1102_v8 = vpop.f32.mrb[23].mxu1 }
 0x155   : > { %v719_v9 = vadd.f32 %v718_v7, %v2292_v60  ;;  %v1103_v10 = vadd.f32 %v1102_v8, %v2292_v60 }
 0x156   : > { %1439 = vst [vmem:[%s2303_s30 + $0xb0] sm:$0xff] %v717_v5  ;;  %1567 = vst [vmem:[%s2303_s30 + $0x4b0] sm:$0xff] %v1101_v6 }
 0x157   : > { %1440 = vst [vmem:[%s2303_s30 + $0xb8] sm:$0xff] %v719_v9  ;;  %1568 = vst [vmem:[%s2303_s30 + $0x4b8] sm:$0xff] %v1103_v10  ;;  %v722_v11 = vpop.f32.mrb[24].mxu0  ;;  %v1106_v12 = vpop.f32.mrb[24].mxu1 }
 0x158   : > { %v723_v13 = vadd.f32 %v722_v11, %v2290_v59  ;;  %v1107_v14 = vadd.f32 %v1106_v12, %v2290_v59  ;;  %v724_v15 = vpop.f32.mrb[25].mxu0  ;;  %v1108_v16 = vpop.f32.mrb[25].mxu1 }
 0x159   : > { %v725_v17 = vadd.f32 %v724_v15, %v2292_v60  ;;  %v1109_v18 = vadd.f32 %v1108_v16, %v2292_v60 }
 0x15a   : > { %1441 = vst [vmem:[%s2303_s30 + $0xc0] sm:$0xff] %v723_v13  ;;  %1569 = vst [vmem:[%s2303_s30 + $0x4c0] sm:$0xff] %v1107_v14 }
 0x15b   : > { %1442 = vst [vmem:[%s2303_s30 + $0xc8] sm:$0xff] %v725_v17  ;;  %1570 = vst [vmem:[%s2303_s30 + $0x4c8] sm:$0xff] %v1109_v18  ;;  %v728_v19 = vpop.f32.mrb[26].mxu0  ;;  %v1112_v20 = vpop.f32.mrb[26].mxu1 }
 0x15c   : > { %v729_v21 = vadd.f32 %v728_v19, %v2290_v59  ;;  %v1113_v22 = vadd.f32 %v1112_v20, %v2290_v59  ;;  %v730_v23 = vpop.f32.mrb[27].mxu0  ;;  %v1114_v24 = vpop.f32.mrb[27].mxu1 }
 0x15d   : > { %v731_v25 = vadd.f32 %v730_v23, %v2292_v60  ;;  %v1115_v26 = vadd.f32 %v1114_v24, %v2292_v60 }
 0x15e   : > { %1443 = vst [vmem:[%s2303_s30 + $0xd0] sm:$0xff] %v729_v21  ;;  %1571 = vst [vmem:[%s2303_s30 + $0x4d0] sm:$0xff] %v1113_v22 }
 0x15f   : > { %1444 = vst [vmem:[%s2303_s30 + $0xd8] sm:$0xff] %v731_v25  ;;  %1572 = vst [vmem:[%s2303_s30 + $0x4d8] sm:$0xff] %v1115_v26  ;;  %v734_v27 = vpop.f32.mrb[28].mxu0  ;;  %v1118_v28 = vpop.f32.mrb[28].mxu1 }
 0x160   : > { %v735_v29 = vadd.f32 %v734_v27, %v2290_v59  ;;  %v1119_v30 = vadd.f32 %v1118_v28, %v2290_v59  ;;  %v736_v31 = vpop.f32.mrb[29].mxu0  ;;  %v1120_v32 = vpop.f32.mrb[29].mxu1 }
 0x161   : > { %v737_v33 = vadd.f32 %v736_v31, %v2292_v60  ;;  %v1121_v34 = vadd.f32 %v1120_v32, %v2292_v60 }
 0x162   : > { %1445 = vst [vmem:[%s2303_s30 + $0xe0] sm:$0xff] %v735_v29  ;;  %1573 = vst [vmem:[%s2303_s30 + $0x4e0] sm:$0xff] %v1119_v30 }
 0x163   : > { %1446 = vst [vmem:[%s2303_s30 + $0xe8] sm:$0xff] %v737_v33  ;;  %1574 = vst [vmem:[%s2303_s30 + $0x4e8] sm:$0xff] %v1121_v34  ;;  %v740_v35 = vpop.f32.mrb[30].mxu0  ;;  %v1124_v36 = vpop.f32.mrb[30].mxu1 }
 0x164   : > { %v741_v37 = vadd.f32 %v740_v35, %v2290_v59  ;;  %v1125_v38 = vadd.f32 %v1124_v36, %v2290_v59  ;;  %v742_v39 = vpop.f32.mrb[31].mxu0  ;;  %v1126_v40 = vpop.f32.mrb[31].mxu1 }
 0x165   : > { %v743_v41 = vadd.f32 %v742_v39, %v2292_v60  ;;  %v1127_v42 = vadd.f32 %v1126_v40, %v2292_v60 }
 0x166   : > { %1447 = vst [vmem:[%s2303_s30 + $0xf0] sm:$0xff] %v741_v37  ;;  %1575 = vst [vmem:[%s2303_s30 + $0x4f0] sm:$0xff] %v1125_v38 }
 0x167   : > { %1448 = vst [vmem:[%s2303_s30 + $0xf8] sm:$0xff] %v743_v41  ;;  %1576 = vst [vmem:[%s2303_s30 + $0x4f8] sm:$0xff] %v1127_v42  ;;  %v746_v43 = vpop.f32.mrb[32].mxu0  ;;  %v1130_v44 = vpop.f32.mrb[32].mxu1 }
 0x168   : > { %v747_v45 = vadd.f32 %v746_v43, %v2290_v59  ;;  %v1131_v46 = vadd.f32 %v1130_v44, %v2290_v59  ;;  %v748_v47 = vpop.f32.mrb[33].mxu0  ;;  %v1132_v48 = vpop.f32.mrb[33].mxu1 }
 0x169   : > { %v749_v49 = vadd.f32 %v748_v47, %v2292_v60  ;;  %v1133_v50 = vadd.f32 %v1132_v48, %v2292_v60 }
 0x16a   : > { %1449 = vst [vmem:[%s2303_s30 + $0x100] sm:$0xff] %v747_v45  ;;  %1577 = vst [vmem:[%s2303_s30 + $0x500] sm:$0xff] %v1131_v46 }
 0x16b   : > { %1450 = vst [vmem:[%s2303_s30 + $0x108] sm:$0xff] %v749_v49  ;;  %1578 = vst [vmem:[%s2303_s30 + $0x508] sm:$0xff] %v1133_v50  ;;  %v752_v51 = vpop.f32.mrb[34].mxu0  ;;  %v1136_v52 = vpop.f32.mrb[34].mxu1 }
 0x16c   : > { %v753_v53 = vadd.f32 %v752_v51, %v2290_v59  ;;  %v1137_v54 = vadd.f32 %v1136_v52, %v2290_v59  ;;  %v754_v55 = vpop.f32.mrb[35].mxu0  ;;  %v1138_v56 = vpop.f32.mrb[35].mxu1 }
 0x16d   : > { %v755_v57 = vadd.f32 %v754_v55, %v2292_v60  ;;  %v1139_v58 = vadd.f32 %v1138_v56, %v2292_v60 }
 0x16e   : > { %1451 = vst [vmem:[%s2303_s30 + $0x110] sm:$0xff] %v753_v53  ;;  %1579 = vst [vmem:[%s2303_s30 + $0x510] sm:$0xff] %v1137_v54 }
 0x16f   : > { %1452 = vst [vmem:[%s2303_s30 + $0x118] sm:$0xff] %v755_v57  ;;  %1580 = vst [vmem:[%s2303_s30 + $0x518] sm:$0xff] %v1139_v58  ;;  %v758_v61 = vpop.f32.mrb[36].mxu0  ;;  %v1142_v62 = vpop.f32.mrb[36].mxu1 }
 0x170   : > { %v759_v63 = vadd.f32 %v758_v61, %v2290_v59  ;;  %v1143_v0 = vadd.f32 %v1142_v62, %v2290_v59  ;;  %v760_v1 = vpop.f32.mrb[37].mxu0  ;;  %v1144_v2 = vpop.f32.mrb[37].mxu1 }
 0x171   : > { %v761_v3 = vadd.f32 %v760_v1, %v2292_v60  ;;  %v1145_v4 = vadd.f32 %v1144_v2, %v2292_v60 }
 0x172   : > { %1453 = vst [vmem:[%s2303_s30 + $0x120] sm:$0xff] %v759_v63  ;;  %1581 = vst [vmem:[%s2303_s30 + $0x520] sm:$0xff] %v1143_v0 }
 0x173   : > { %1454 = vst [vmem:[%s2303_s30 + $0x128] sm:$0xff] %v761_v3  ;;  %1582 = vst [vmem:[%s2303_s30 + $0x528] sm:$0xff] %v1145_v4  ;;  %v764_v5 = vpop.f32.mrb[38].mxu0  ;;  %v1148_v6 = vpop.f32.mrb[38].mxu1 }
 0x174   : > { %v765_v7 = vadd.f32 %v764_v5, %v2290_v59  ;;  %v1149_v8 = vadd.f32 %v1148_v6, %v2290_v59  ;;  %v766_v9 = vpop.f32.mrb[39].mxu0  ;;  %v1150_v10 = vpop.f32.mrb[39].mxu1 }
 0x175   : > { %v767_v11 = vadd.f32 %v766_v9, %v2292_v60  ;;  %v1151_v12 = vadd.f32 %v1150_v10, %v2292_v60 }
 0x176   : > { %1455 = vst [vmem:[%s2303_s30 + $0x130] sm:$0xff] %v765_v7  ;;  %1583 = vst [vmem:[%s2303_s30 + $0x530] sm:$0xff] %v1149_v8 }
 0x177   : > { %1456 = vst [vmem:[%s2303_s30 + $0x138] sm:$0xff] %v767_v11  ;;  %1584 = vst [vmem:[%s2303_s30 + $0x538] sm:$0xff] %v1151_v12  ;;  %v770_v13 = vpop.f32.mrb[40].mxu0  ;;  %v1154_v14 = vpop.f32.mrb[40].mxu1 }
 0x178   : > { %v771_v15 = vadd.f32 %v770_v13, %v2290_v59  ;;  %v1155_v16 = vadd.f32 %v1154_v14, %v2290_v59  ;;  %v772_v17 = vpop.f32.mrb[41].mxu0  ;;  %v1156_v18 = vpop.f32.mrb[41].mxu1 }
 0x179   : > { %v773_v19 = vadd.f32 %v772_v17, %v2292_v60  ;;  %v1157_v20 = vadd.f32 %v1156_v18, %v2292_v60 }
 0x17a   : > { %1457 = vst [vmem:[%s2303_s30 + $0x140] sm:$0xff] %v771_v15  ;;  %1585 = vst [vmem:[%s2303_s30 + $0x540] sm:$0xff] %v1155_v16 }
 0x17b   : > { %1458 = vst [vmem:[%s2303_s30 + $0x148] sm:$0xff] %v773_v19  ;;  %1586 = vst [vmem:[%s2303_s30 + $0x548] sm:$0xff] %v1157_v20  ;;  %v776_v21 = vpop.f32.mrb[42].mxu0  ;;  %v1160_v22 = vpop.f32.mrb[42].mxu1 }
 0x17c   : > { %v777_v23 = vadd.f32 %v776_v21, %v2290_v59  ;;  %v1161_v24 = vadd.f32 %v1160_v22, %v2290_v59  ;;  %v778_v25 = vpop.f32.mrb[43].mxu0  ;;  %v1162_v26 = vpop.f32.mrb[43].mxu1 }
 0x17d   : > { %v779_v27 = vadd.f32 %v778_v25, %v2292_v60  ;;  %v1163_v28 = vadd.f32 %v1162_v26, %v2292_v60 }
 0x17e   : > { %1459 = vst [vmem:[%s2303_s30 + $0x150] sm:$0xff] %v777_v23  ;;  %1587 = vst [vmem:[%s2303_s30 + $0x550] sm:$0xff] %v1161_v24 }
 0x17f   : > { %1460 = vst [vmem:[%s2303_s30 + $0x158] sm:$0xff] %v779_v27  ;;  %1588 = vst [vmem:[%s2303_s30 + $0x558] sm:$0xff] %v1163_v28  ;;  %v782_v29 = vpop.f32.mrb[44].mxu0  ;;  %v1166_v30 = vpop.f32.mrb[44].mxu1 }
 0x180   : > { %v783_v31 = vadd.f32 %v782_v29, %v2290_v59  ;;  %v1167_v32 = vadd.f32 %v1166_v30, %v2290_v59  ;;  %v784_v33 = vpop.f32.mrb[45].mxu0  ;;  %v1168_v34 = vpop.f32.mrb[45].mxu1 }
 0x181   : > { %v785_v35 = vadd.f32 %v784_v33, %v2292_v60  ;;  %v1169_v36 = vadd.f32 %v1168_v34, %v2292_v60 }
 0x182   : > { %1461 = vst [vmem:[%s2303_s30 + $0x160] sm:$0xff] %v783_v31  ;;  %1589 = vst [vmem:[%s2303_s30 + $0x560] sm:$0xff] %v1167_v32 }
 0x183   : > { %1462 = vst [vmem:[%s2303_s30 + $0x168] sm:$0xff] %v785_v35  ;;  %1590 = vst [vmem:[%s2303_s30 + $0x568] sm:$0xff] %v1169_v36  ;;  %v788_v37 = vpop.f32.mrb[46].mxu0  ;;  %v1172_v38 = vpop.f32.mrb[46].mxu1 }
 0x184   : > { %v789_v39 = vadd.f32 %v788_v37, %v2290_v59  ;;  %v1173_v40 = vadd.f32 %v1172_v38, %v2290_v59  ;;  %v790_v41 = vpop.f32.mrb[47].mxu0  ;;  %v1174_v42 = vpop.f32.mrb[47].mxu1 }
 0x185   : > { %v791_v43 = vadd.f32 %v790_v41, %v2292_v60  ;;  %v1175_v44 = vadd.f32 %v1174_v42, %v2292_v60 }
 0x186   : > { %1463 = vst [vmem:[%s2303_s30 + $0x170] sm:$0xff] %v789_v39  ;;  %1591 = vst [vmem:[%s2303_s30 + $0x570] sm:$0xff] %v1173_v40 }
 0x187   : > { %1464 = vst [vmem:[%s2303_s30 + $0x178] sm:$0xff] %v791_v43  ;;  %1592 = vst [vmem:[%s2303_s30 + $0x578] sm:$0xff] %v1175_v44  ;;  %v794_v45 = vpop.f32.mrb[48].mxu0  ;;  %v1178_v46 = vpop.f32.mrb[48].mxu1 }
 0x188   : > { %v795_v47 = vadd.f32 %v794_v45, %v2290_v59  ;;  %v1179_v48 = vadd.f32 %v1178_v46, %v2290_v59  ;;  %v796_v49 = vpop.f32.mrb[49].mxu0  ;;  %v1180_v50 = vpop.f32.mrb[49].mxu1 }
 0x189   : > { %v797_v51 = vadd.f32 %v796_v49, %v2292_v60  ;;  %v1181_v52 = vadd.f32 %v1180_v50, %v2292_v60 }
 0x18a   : > { %1465 = vst [vmem:[%s2303_s30 + $0x180] sm:$0xff] %v795_v47  ;;  %1593 = vst [vmem:[%s2303_s30 + $0x580] sm:$0xff] %v1179_v48 }
 0x18b   : > { %1466 = vst [vmem:[%s2303_s30 + $0x188] sm:$0xff] %v797_v51  ;;  %1594 = vst [vmem:[%s2303_s30 + $0x588] sm:$0xff] %v1181_v52  ;;  %v800_v53 = vpop.f32.mrb[50].mxu0  ;;  %v1184_v54 = vpop.f32.mrb[50].mxu1 }
 0x18c   : > { %v801_v55 = vadd.f32 %v800_v53, %v2290_v59  ;;  %v1185_v56 = vadd.f32 %v1184_v54, %v2290_v59  ;;  %v802_v57 = vpop.f32.mrb[51].mxu0  ;;  %v1186_v58 = vpop.f32.mrb[51].mxu1 }
 0x18d   : > { %v803_v61 = vadd.f32 %v802_v57, %v2292_v60  ;;  %v1187_v62 = vadd.f32 %v1186_v58, %v2292_v60 }
 0x18e   : > { %1467 = vst [vmem:[%s2303_s30 + $0x190] sm:$0xff] %v801_v55  ;;  %1595 = vst [vmem:[%s2303_s30 + $0x590] sm:$0xff] %v1185_v56 }
 0x18f   : > { %1468 = vst [vmem:[%s2303_s30 + $0x198] sm:$0xff] %v803_v61  ;;  %1596 = vst [vmem:[%s2303_s30 + $0x598] sm:$0xff] %v1187_v62  ;;  %v806_v63 = vpop.f32.mrb[52].mxu0  ;;  %v1190_v0 = vpop.f32.mrb[52].mxu1 }
 0x190   : > { %v807_v1 = vadd.f32 %v806_v63, %v2290_v59  ;;  %v1191_v2 = vadd.f32 %v1190_v0, %v2290_v59  ;;  %v808_v3 = vpop.f32.mrb[53].mxu0  ;;  %v1192_v4 = vpop.f32.mrb[53].mxu1 }
 0x191   : > { %v809_v5 = vadd.f32 %v808_v3, %v2292_v60  ;;  %v1193_v6 = vadd.f32 %v1192_v4, %v2292_v60 }
 0x192   : > { %1469 = vst [vmem:[%s2303_s30 + $0x1a0] sm:$0xff] %v807_v1  ;;  %1597 = vst [vmem:[%s2303_s30 + $0x5a0] sm:$0xff] %v1191_v2 }
 0x193   : > { %1470 = vst [vmem:[%s2303_s30 + $0x1a8] sm:$0xff] %v809_v5  ;;  %1598 = vst [vmem:[%s2303_s30 + $0x5a8] sm:$0xff] %v1193_v6  ;;  %v812_v7 = vpop.f32.mrb[54].mxu0  ;;  %v1196_v8 = vpop.f32.mrb[54].mxu1 }
 0x194   : > { %v813_v9 = vadd.f32 %v812_v7, %v2290_v59  ;;  %v1197_v10 = vadd.f32 %v1196_v8, %v2290_v59  ;;  %v814_v11 = vpop.f32.mrb[55].mxu0  ;;  %v1198_v12 = vpop.f32.mrb[55].mxu1 }
 0x195   : > { %v815_v13 = vadd.f32 %v814_v11, %v2292_v60  ;;  %v1199_v14 = vadd.f32 %v1198_v12, %v2292_v60 }
 0x196   : > { %1471 = vst [vmem:[%s2303_s30 + $0x1b0] sm:$0xff] %v813_v9  ;;  %1599 = vst [vmem:[%s2303_s30 + $0x5b0] sm:$0xff] %v1197_v10 }
 0x197   : > { %1472 = vst [vmem:[%s2303_s30 + $0x1b8] sm:$0xff] %v815_v13  ;;  %1600 = vst [vmem:[%s2303_s30 + $0x5b8] sm:$0xff] %v1199_v14  ;;  %v818_v15 = vpop.f32.mrb[56].mxu0  ;;  %v1202_v16 = vpop.f32.mrb[56].mxu1 }
 0x198   : > { %v819_v17 = vadd.f32 %v818_v15, %v2290_v59  ;;  %v1203_v18 = vadd.f32 %v1202_v16, %v2290_v59  ;;  %v820_v19 = vpop.f32.mrb[57].mxu0  ;;  %v1204_v20 = vpop.f32.mrb[57].mxu1 }
 0x199   : > { %v821_v21 = vadd.f32 %v820_v19, %v2292_v60  ;;  %v1205_v22 = vadd.f32 %v1204_v20, %v2292_v60 }
 0x19a   : > { %1473 = vst [vmem:[%s2303_s30 + $0x1c0] sm:$0xff] %v819_v17  ;;  %1601 = vst [vmem:[%s2303_s30 + $0x5c0] sm:$0xff] %v1203_v18 }
 0x19b   : > { %1474 = vst [vmem:[%s2303_s30 + $0x1c8] sm:$0xff] %v821_v21  ;;  %1602 = vst [vmem:[%s2303_s30 + $0x5c8] sm:$0xff] %v1205_v22  ;;  %v824_v23 = vpop.f32.mrb[58].mxu0  ;;  %v1208_v24 = vpop.f32.mrb[58].mxu1 }
 0x19c   : > { %v825_v25 = vadd.f32 %v824_v23, %v2290_v59  ;;  %v1209_v26 = vadd.f32 %v1208_v24, %v2290_v59  ;;  %v826_v27 = vpop.f32.mrb[59].mxu0  ;;  %v1210_v28 = vpop.f32.mrb[59].mxu1 }
 0x19d   : > { %v827_v29 = vadd.f32 %v826_v27, %v2292_v60  ;;  %v1211_v30 = vadd.f32 %v1210_v28, %v2292_v60 }
 0x19e   : > { %1475 = vst [vmem:[%s2303_s30 + $0x1d0] sm:$0xff] %v825_v25  ;;  %1603 = vst [vmem:[%s2303_s30 + $0x5d0] sm:$0xff] %v1209_v26 }
 0x19f   : > { %1476 = vst [vmem:[%s2303_s30 + $0x1d8] sm:$0xff] %v827_v29  ;;  %1604 = vst [vmem:[%s2303_s30 + $0x5d8] sm:$0xff] %v1211_v30  ;;  %v830_v31 = vpop.f32.mrb[60].mxu0  ;;  %v1214_v32 = vpop.f32.mrb[60].mxu1 }
 0x1a0   : > { %v831_v33 = vadd.f32 %v830_v31, %v2290_v59  ;;  %v1215_v34 = vadd.f32 %v1214_v32, %v2290_v59  ;;  %v832_v35 = vpop.f32.mrb[61].mxu0  ;;  %v1216_v36 = vpop.f32.mrb[61].mxu1 }
 0x1a1   : > { %v833_v37 = vadd.f32 %v832_v35, %v2292_v60  ;;  %v1217_v38 = vadd.f32 %v1216_v36, %v2292_v60 }
 0x1a2   : > { %1477 = vst [vmem:[%s2303_s30 + $0x1e0] sm:$0xff] %v831_v33  ;;  %1605 = vst [vmem:[%s2303_s30 + $0x5e0] sm:$0xff] %v1215_v34 }
 0x1a3   : > { %1478 = vst [vmem:[%s2303_s30 + $0x1e8] sm:$0xff] %v833_v37  ;;  %1606 = vst [vmem:[%s2303_s30 + $0x5e8] sm:$0xff] %v1217_v38  ;;  %v836_v39 = vpop.f32.mrb[62].mxu0  ;;  %v1220_v40 = vpop.f32.mrb[62].mxu1 }
 0x1a4   : > { %v837_v41 = vadd.f32 %v836_v39, %v2290_v59  ;;  %v1221_v42 = vadd.f32 %v1220_v40, %v2290_v59  ;;  %v838_v43 = vpop.f32.mrb[63].mxu0  ;;  %v1222_v44 = vpop.f32.mrb[63].mxu1 }
 0x1a5   : > { %v839_v45 = vadd.f32 %v838_v43, %v2292_v60  ;;  %v1223_v46 = vadd.f32 %v1222_v44, %v2292_v60 }
 0x1a6   : > { %1479 = vst [vmem:[%s2303_s30 + $0x1f0] sm:$0xff] %v837_v41  ;;  %1607 = vst [vmem:[%s2303_s30 + $0x5f0] sm:$0xff] %v1221_v42 }
 0x1a7   : > { %1480 = vst [vmem:[%s2303_s30 + $0x1f8] sm:$0xff] %v839_v45  ;;  %1608 = vst [vmem:[%s2303_s30 + $0x5f8] sm:$0xff] %v1223_v46  ;;  %v842_v47 = vpop.f32.mrb[64].mxu0  ;;  %v1226_v48 = vpop.f32.mrb[64].mxu1 }
 0x1a8   : > { %v843_v49 = vadd.f32 %v842_v47, %v2290_v59  ;;  %v1227_v50 = vadd.f32 %v1226_v48, %v2290_v59  ;;  %v844_v51 = vpop.f32.mrb[65].mxu0  ;;  %v1228_v52 = vpop.f32.mrb[65].mxu1 }
 0x1a9   : > { %v845_v53 = vadd.f32 %v844_v51, %v2292_v60  ;;  %v1229_v54 = vadd.f32 %v1228_v52, %v2292_v60 }
 0x1aa   : > { %1481 = vst [vmem:[%s2303_s30 + $0x200] sm:$0xff] %v843_v49  ;;  %1609 = vst [vmem:[%s2303_s30 + $0x600] sm:$0xff] %v1227_v50 }
 0x1ab   : > { %1482 = vst [vmem:[%s2303_s30 + $0x208] sm:$0xff] %v845_v53  ;;  %1610 = vst [vmem:[%s2303_s30 + $0x608] sm:$0xff] %v1229_v54  ;;  %v848_v55 = vpop.f32.mrb[66].mxu0  ;;  %v1232_v56 = vpop.f32.mrb[66].mxu1 }
 0x1ac   : > { %v849_v57 = vadd.f32 %v848_v55, %v2290_v59  ;;  %v1233_v58 = vadd.f32 %v1232_v56, %v2290_v59  ;;  %v850_v61 = vpop.f32.mrb[67].mxu0  ;;  %v1234_v62 = vpop.f32.mrb[67].mxu1 }
 0x1ad   : > { %v851_v63 = vadd.f32 %v850_v61, %v2292_v60  ;;  %v1235_v0 = vadd.f32 %v1234_v62, %v2292_v60 }
 0x1ae   : > { %1483 = vst [vmem:[%s2303_s30 + $0x210] sm:$0xff] %v849_v57  ;;  %1611 = vst [vmem:[%s2303_s30 + $0x610] sm:$0xff] %v1233_v58 }
 0x1af   : > { %1484 = vst [vmem:[%s2303_s30 + $0x218] sm:$0xff] %v851_v63  ;;  %1612 = vst [vmem:[%s2303_s30 + $0x618] sm:$0xff] %v1235_v0  ;;  %v854_v1 = vpop.f32.mrb[68].mxu0  ;;  %v1238_v2 = vpop.f32.mrb[68].mxu1 }
 0x1b0   : > { %v855_v3 = vadd.f32 %v854_v1, %v2290_v59  ;;  %v1239_v4 = vadd.f32 %v1238_v2, %v2290_v59  ;;  %v856_v5 = vpop.f32.mrb[69].mxu0  ;;  %v1240_v6 = vpop.f32.mrb[69].mxu1 }
 0x1b1   : > { %v857_v7 = vadd.f32 %v856_v5, %v2292_v60  ;;  %v1241_v8 = vadd.f32 %v1240_v6, %v2292_v60 }
 0x1b2   : > { %1485 = vst [vmem:[%s2303_s30 + $0x220] sm:$0xff] %v855_v3  ;;  %1613 = vst [vmem:[%s2303_s30 + $0x620] sm:$0xff] %v1239_v4 }
 0x1b3   : > { %1486 = vst [vmem:[%s2303_s30 + $0x228] sm:$0xff] %v857_v7  ;;  %1614 = vst [vmem:[%s2303_s30 + $0x628] sm:$0xff] %v1241_v8  ;;  %v860_v9 = vpop.f32.mrb[70].mxu0  ;;  %v1244_v10 = vpop.f32.mrb[70].mxu1 }
 0x1b4   : > { %v861_v11 = vadd.f32 %v860_v9, %v2290_v59  ;;  %v1245_v12 = vadd.f32 %v1244_v10, %v2290_v59  ;;  %v862_v13 = vpop.f32.mrb[71].mxu0  ;;  %v1246_v14 = vpop.f32.mrb[71].mxu1 }
 0x1b5   : > { %v863_v15 = vadd.f32 %v862_v13, %v2292_v60  ;;  %v1247_v16 = vadd.f32 %v1246_v14, %v2292_v60 }
 0x1b6   : > { %1487 = vst [vmem:[%s2303_s30 + $0x230] sm:$0xff] %v861_v11  ;;  %1615 = vst [vmem:[%s2303_s30 + $0x630] sm:$0xff] %v1245_v12 }
 0x1b7   : > { %1488 = vst [vmem:[%s2303_s30 + $0x238] sm:$0xff] %v863_v15  ;;  %1616 = vst [vmem:[%s2303_s30 + $0x638] sm:$0xff] %v1247_v16  ;;  %v866_v17 = vpop.f32.mrb[72].mxu0  ;;  %v1250_v18 = vpop.f32.mrb[72].mxu1 }
 0x1b8   : > { %v867_v19 = vadd.f32 %v866_v17, %v2290_v59  ;;  %v1251_v20 = vadd.f32 %v1250_v18, %v2290_v59  ;;  %v868_v21 = vpop.f32.mrb[73].mxu0  ;;  %v1252_v22 = vpop.f32.mrb[73].mxu1 }
 0x1b9   : > { %v869_v23 = vadd.f32 %v868_v21, %v2292_v60  ;;  %v1253_v24 = vadd.f32 %v1252_v22, %v2292_v60 }
 0x1ba   : > { %1489 = vst [vmem:[%s2303_s30 + $0x240] sm:$0xff] %v867_v19  ;;  %1617 = vst [vmem:[%s2303_s30 + $0x640] sm:$0xff] %v1251_v20 }
 0x1bb   : > { %1490 = vst [vmem:[%s2303_s30 + $0x248] sm:$0xff] %v869_v23  ;;  %1618 = vst [vmem:[%s2303_s30 + $0x648] sm:$0xff] %v1253_v24  ;;  %v872_v25 = vpop.f32.mrb[74].mxu0  ;;  %v1256_v26 = vpop.f32.mrb[74].mxu1 }
 0x1bc   : > { %v873_v27 = vadd.f32 %v872_v25, %v2290_v59  ;;  %v1257_v28 = vadd.f32 %v1256_v26, %v2290_v59  ;;  %v874_v29 = vpop.f32.mrb[75].mxu0  ;;  %v1258_v30 = vpop.f32.mrb[75].mxu1 }
 0x1bd   : > { %v875_v31 = vadd.f32 %v874_v29, %v2292_v60  ;;  %v1259_v32 = vadd.f32 %v1258_v30, %v2292_v60 }
 0x1be   : > { %1491 = vst [vmem:[%s2303_s30 + $0x250] sm:$0xff] %v873_v27  ;;  %1619 = vst [vmem:[%s2303_s30 + $0x650] sm:$0xff] %v1257_v28 }
 0x1bf   : > { %1492 = vst [vmem:[%s2303_s30 + $0x258] sm:$0xff] %v875_v31  ;;  %1620 = vst [vmem:[%s2303_s30 + $0x658] sm:$0xff] %v1259_v32  ;;  %v878_v33 = vpop.f32.mrb[76].mxu0  ;;  %v1262_v34 = vpop.f32.mrb[76].mxu1 }
 0x1c0   : > { %v879_v35 = vadd.f32 %v878_v33, %v2290_v59  ;;  %v1263_v36 = vadd.f32 %v1262_v34, %v2290_v59  ;;  %v880_v37 = vpop.f32.mrb[77].mxu0  ;;  %v1264_v38 = vpop.f32.mrb[77].mxu1 }
 0x1c1   : > { %v881_v39 = vadd.f32 %v880_v37, %v2292_v60  ;;  %v1265_v40 = vadd.f32 %v1264_v38, %v2292_v60 }
 0x1c2   : > { %1493 = vst [vmem:[%s2303_s30 + $0x260] sm:$0xff] %v879_v35  ;;  %1621 = vst [vmem:[%s2303_s30 + $0x660] sm:$0xff] %v1263_v36 }
 0x1c3   : > { %1494 = vst [vmem:[%s2303_s30 + $0x268] sm:$0xff] %v881_v39  ;;  %1622 = vst [vmem:[%s2303_s30 + $0x668] sm:$0xff] %v1265_v40  ;;  %v884_v41 = vpop.f32.mrb[78].mxu0  ;;  %v1268_v42 = vpop.f32.mrb[78].mxu1 }
 0x1c4   : > { %v885_v43 = vadd.f32 %v884_v41, %v2290_v59  ;;  %v1269_v44 = vadd.f32 %v1268_v42, %v2290_v59  ;;  %v886_v45 = vpop.f32.mrb[79].mxu0  ;;  %v1270_v46 = vpop.f32.mrb[79].mxu1 }
 0x1c5   : > { %v887_v47 = vadd.f32 %v886_v45, %v2292_v60  ;;  %v1271_v48 = vadd.f32 %v1270_v46, %v2292_v60 }
 0x1c6   : > { %1495 = vst [vmem:[%s2303_s30 + $0x270] sm:$0xff] %v885_v43  ;;  %1623 = vst [vmem:[%s2303_s30 + $0x670] sm:$0xff] %v1269_v44 }
 0x1c7   : > { %1496 = vst [vmem:[%s2303_s30 + $0x278] sm:$0xff] %v887_v47  ;;  %1624 = vst [vmem:[%s2303_s30 + $0x678] sm:$0xff] %v1271_v48  ;;  %v890_v49 = vpop.f32.mrb[80].mxu0  ;;  %v1274_v50 = vpop.f32.mrb[80].mxu1 }
 0x1c8   : > { %v891_v51 = vadd.f32 %v890_v49, %v2290_v59  ;;  %v1275_v52 = vadd.f32 %v1274_v50, %v2290_v59  ;;  %v892_v53 = vpop.f32.mrb[81].mxu0  ;;  %v1276_v54 = vpop.f32.mrb[81].mxu1 }
 0x1c9   : > { %v893_v55 = vadd.f32 %v892_v53, %v2292_v60  ;;  %v1277_v56 = vadd.f32 %v1276_v54, %v2292_v60 }
 0x1ca   : > { %1497 = vst [vmem:[%s2303_s30 + $0x280] sm:$0xff] %v891_v51  ;;  %1625 = vst [vmem:[%s2303_s30 + $0x680] sm:$0xff] %v1275_v52 }
 0x1cb   : > { %1498 = vst [vmem:[%s2303_s30 + $0x288] sm:$0xff] %v893_v55  ;;  %1626 = vst [vmem:[%s2303_s30 + $0x688] sm:$0xff] %v1277_v56  ;;  %v896_v57 = vpop.f32.mrb[82].mxu0  ;;  %v1280_v58 = vpop.f32.mrb[82].mxu1 }
 0x1cc   : > { %v897_v61 = vadd.f32 %v896_v57, %v2290_v59  ;;  %v1281_v62 = vadd.f32 %v1280_v58, %v2290_v59  ;;  %v898_v63 = vpop.f32.mrb[83].mxu0  ;;  %v1282_v0 = vpop.f32.mrb[83].mxu1 }
 0x1cd   : > { %v899_v1 = vadd.f32 %v898_v63, %v2292_v60  ;;  %v1283_v2 = vadd.f32 %v1282_v0, %v2292_v60 }
 0x1ce   : > { %1499 = vst [vmem:[%s2303_s30 + $0x290] sm:$0xff] %v897_v61  ;;  %1627 = vst [vmem:[%s2303_s30 + $0x690] sm:$0xff] %v1281_v62 }
 0x1cf   : > { %1500 = vst [vmem:[%s2303_s30 + $0x298] sm:$0xff] %v899_v1  ;;  %1628 = vst [vmem:[%s2303_s30 + $0x698] sm:$0xff] %v1283_v2  ;;  %v902_v3 = vpop.f32.mrb[84].mxu0  ;;  %v1286_v4 = vpop.f32.mrb[84].mxu1 }
 0x1d0   : > { %v903_v5 = vadd.f32 %v902_v3, %v2290_v59  ;;  %v1287_v6 = vadd.f32 %v1286_v4, %v2290_v59  ;;  %v904_v7 = vpop.f32.mrb[85].mxu0  ;;  %v1288_v8 = vpop.f32.mrb[85].mxu1 }
 0x1d1   : > { %v905_v9 = vadd.f32 %v904_v7, %v2292_v60  ;;  %v1289_v10 = vadd.f32 %v1288_v8, %v2292_v60 }
 0x1d2   : > { %1501 = vst [vmem:[%s2303_s30 + $0x2a0] sm:$0xff] %v903_v5  ;;  %1629 = vst [vmem:[%s2303_s30 + $0x6a0] sm:$0xff] %v1287_v6 }
 0x1d3   : > { %1502 = vst [vmem:[%s2303_s30 + $0x2a8] sm:$0xff] %v905_v9  ;;  %1630 = vst [vmem:[%s2303_s30 + $0x6a8] sm:$0xff] %v1289_v10  ;;  %v908_v11 = vpop.f32.mrb[86].mxu0  ;;  %v1292_v12 = vpop.f32.mrb[86].mxu1 }
 0x1d4   : > { %v909_v13 = vadd.f32 %v908_v11, %v2290_v59  ;;  %v1293_v14 = vadd.f32 %v1292_v12, %v2290_v59  ;;  %v910_v15 = vpop.f32.mrb[87].mxu0  ;;  %v1294_v16 = vpop.f32.mrb[87].mxu1 }
 0x1d5   : > { %v911_v17 = vadd.f32 %v910_v15, %v2292_v60  ;;  %v1295_v18 = vadd.f32 %v1294_v16, %v2292_v60 }
 0x1d6   : > { %1503 = vst [vmem:[%s2303_s30 + $0x2b0] sm:$0xff] %v909_v13  ;;  %1631 = vst [vmem:[%s2303_s30 + $0x6b0] sm:$0xff] %v1293_v14 }
 0x1d7   : > { %1504 = vst [vmem:[%s2303_s30 + $0x2b8] sm:$0xff] %v911_v17  ;;  %1632 = vst [vmem:[%s2303_s30 + $0x6b8] sm:$0xff] %v1295_v18  ;;  %v914_v19 = vpop.f32.mrb[88].mxu0  ;;  %v1298_v20 = vpop.f32.mrb[88].mxu1 }
 0x1d8   : > { %v915_v21 = vadd.f32 %v914_v19, %v2290_v59  ;;  %v1299_v22 = vadd.f32 %v1298_v20, %v2290_v59  ;;  %v916_v23 = vpop.f32.mrb[89].mxu0  ;;  %v1300_v24 = vpop.f32.mrb[89].mxu1 }
 0x1d9   : > { %v917_v25 = vadd.f32 %v916_v23, %v2292_v60  ;;  %v1301_v26 = vadd.f32 %v1300_v24, %v2292_v60 }
 0x1da   : > { %1505 = vst [vmem:[%s2303_s30 + $0x2c0] sm:$0xff] %v915_v21  ;;  %1633 = vst [vmem:[%s2303_s30 + $0x6c0] sm:$0xff] %v1299_v22 }
 0x1db   : > { %1506 = vst [vmem:[%s2303_s30 + $0x2c8] sm:$0xff] %v917_v25  ;;  %1634 = vst [vmem:[%s2303_s30 + $0x6c8] sm:$0xff] %v1301_v26  ;;  %v920_v27 = vpop.f32.mrb[90].mxu0  ;;  %v1304_v28 = vpop.f32.mrb[90].mxu1 }
 0x1dc   : > { %v921_v29 = vadd.f32 %v920_v27, %v2290_v59  ;;  %v1305_v30 = vadd.f32 %v1304_v28, %v2290_v59  ;;  %v922_v31 = vpop.f32.mrb[91].mxu0  ;;  %v1306_v32 = vpop.f32.mrb[91].mxu1 }
 0x1dd   : > { %v923_v33 = vadd.f32 %v922_v31, %v2292_v60  ;;  %v1307_v34 = vadd.f32 %v1306_v32, %v2292_v60 }
 0x1de   : > { %1507 = vst [vmem:[%s2303_s30 + $0x2d0] sm:$0xff] %v921_v29  ;;  %1635 = vst [vmem:[%s2303_s30 + $0x6d0] sm:$0xff] %v1305_v30 }
 0x1df   : > { %1508 = vst [vmem:[%s2303_s30 + $0x2d8] sm:$0xff] %v923_v33  ;;  %1636 = vst [vmem:[%s2303_s30 + $0x6d8] sm:$0xff] %v1307_v34  ;;  %v926_v35 = vpop.f32.mrb[92].mxu0  ;;  %v1310_v36 = vpop.f32.mrb[92].mxu1 }
 0x1e0   : > { %v927_v37 = vadd.f32 %v926_v35, %v2290_v59  ;;  %v1311_v38 = vadd.f32 %v1310_v36, %v2290_v59  ;;  %v928_v39 = vpop.f32.mrb[93].mxu0  ;;  %v1312_v40 = vpop.f32.mrb[93].mxu1 }
 0x1e1   : > { %v929_v41 = vadd.f32 %v928_v39, %v2292_v60  ;;  %v1313_v42 = vadd.f32 %v1312_v40, %v2292_v60 }
 0x1e2   : > { %1509 = vst [vmem:[%s2303_s30 + $0x2e0] sm:$0xff] %v927_v37  ;;  %1637 = vst [vmem:[%s2303_s30 + $0x6e0] sm:$0xff] %v1311_v38 }
 0x1e3   : > { %1510 = vst [vmem:[%s2303_s30 + $0x2e8] sm:$0xff] %v929_v41  ;;  %1638 = vst [vmem:[%s2303_s30 + $0x6e8] sm:$0xff] %v1313_v42  ;;  %v932_v43 = vpop.f32.mrb[94].mxu0  ;;  %v1316_v44 = vpop.f32.mrb[94].mxu1 }
 0x1e4   : > { %v933_v45 = vadd.f32 %v932_v43, %v2290_v59  ;;  %v1317_v46 = vadd.f32 %v1316_v44, %v2290_v59  ;;  %v934_v47 = vpop.f32.mrb[95].mxu0  ;;  %v1318_v48 = vpop.f32.mrb[95].mxu1 }
 0x1e5   : > { %v935_v49 = vadd.f32 %v934_v47, %v2292_v60  ;;  %v1319_v50 = vadd.f32 %v1318_v48, %v2292_v60 }
 0x1e6   : > { %1511 = vst [vmem:[%s2303_s30 + $0x2f0] sm:$0xff] %v933_v45  ;;  %1639 = vst [vmem:[%s2303_s30 + $0x6f0] sm:$0xff] %v1317_v46 }
 0x1e7   : > { %1512 = vst [vmem:[%s2303_s30 + $0x2f8] sm:$0xff] %v935_v49  ;;  %1640 = vst [vmem:[%s2303_s30 + $0x6f8] sm:$0xff] %v1319_v50  ;;  %v938_v51 = vpop.f32.mrb[96].mxu0  ;;  %v1322_v52 = vpop.f32.mrb[96].mxu1 }
 0x1e8   : > { %v939_v53 = vadd.f32 %v938_v51, %v2290_v59  ;;  %v1323_v54 = vadd.f32 %v1322_v52, %v2290_v59  ;;  %v940_v55 = vpop.f32.mrb[97].mxu0  ;;  %v1324_v56 = vpop.f32.mrb[97].mxu1 }
 0x1e9   : > { %v941_v57 = vadd.f32 %v940_v55, %v2292_v60  ;;  %v1325_v58 = vadd.f32 %v1324_v56, %v2292_v60 }
 0x1ea   : > { %1513 = vst [vmem:[%s2303_s30 + $0x300] sm:$0xff] %v939_v53  ;;  %1641 = vst [vmem:[%s2303_s30 + $0x700] sm:$0xff] %v1323_v54 }
 0x1eb   : > { %1514 = vst [vmem:[%s2303_s30 + $0x308] sm:$0xff] %v941_v57  ;;  %1642 = vst [vmem:[%s2303_s30 + $0x708] sm:$0xff] %v1325_v58  ;;  %v944_v61 = vpop.f32.mrb[98].mxu0  ;;  %v1328_v62 = vpop.f32.mrb[98].mxu1 }
 0x1ec   : > { %v945_v63 = vadd.f32 %v944_v61, %v2290_v59  ;;  %v1329_v0 = vadd.f32 %v1328_v62, %v2290_v59  ;;  %v946_v1 = vpop.f32.mrb[99].mxu0  ;;  %v1330_v2 = vpop.f32.mrb[99].mxu1 }
 0x1ed   : > { %v947_v3 = vadd.f32 %v946_v1, %v2292_v60  ;;  %v1331_v4 = vadd.f32 %v1330_v2, %v2292_v60 }
 0x1ee   : > { %1515 = vst [vmem:[%s2303_s30 + $0x310] sm:$0xff] %v945_v63  ;;  %1643 = vst [vmem:[%s2303_s30 + $0x710] sm:$0xff] %v1329_v0 }
 0x1ef   : > { %1516 = vst [vmem:[%s2303_s30 + $0x318] sm:$0xff] %v947_v3  ;;  %1644 = vst [vmem:[%s2303_s30 + $0x718] sm:$0xff] %v1331_v4  ;;  %v950_v5 = vpop.f32.mrb[100].mxu0  ;;  %v1334_v6 = vpop.f32.mrb[100].mxu1 }
 0x1f0   : > { %v951_v7 = vadd.f32 %v950_v5, %v2290_v59  ;;  %v1335_v8 = vadd.f32 %v1334_v6, %v2290_v59  ;;  %v952_v9 = vpop.f32.mrb[101].mxu0  ;;  %v1336_v10 = vpop.f32.mrb[101].mxu1 }
 0x1f1   : > { %v953_v11 = vadd.f32 %v952_v9, %v2292_v60  ;;  %v1337_v12 = vadd.f32 %v1336_v10, %v2292_v60 }
 0x1f2   : > { %1517 = vst [vmem:[%s2303_s30 + $0x320] sm:$0xff] %v951_v7  ;;  %1645 = vst [vmem:[%s2303_s30 + $0x720] sm:$0xff] %v1335_v8 }
 0x1f3   : > { %1518 = vst [vmem:[%s2303_s30 + $0x328] sm:$0xff] %v953_v11  ;;  %1646 = vst [vmem:[%s2303_s30 + $0x728] sm:$0xff] %v1337_v12  ;;  %v956_v13 = vpop.f32.mrb[102].mxu0  ;;  %v1340_v14 = vpop.f32.mrb[102].mxu1 }
 0x1f4   : > { %v957_v15 = vadd.f32 %v956_v13, %v2290_v59  ;;  %v1341_v16 = vadd.f32 %v1340_v14, %v2290_v59  ;;  %v958_v17 = vpop.f32.mrb[103].mxu0  ;;  %v1342_v18 = vpop.f32.mrb[103].mxu1 }
 0x1f5   : > { %v959_v19 = vadd.f32 %v958_v17, %v2292_v60  ;;  %v1343_v20 = vadd.f32 %v1342_v18, %v2292_v60 }
 0x1f6   : > { %1519 = vst [vmem:[%s2303_s30 + $0x330] sm:$0xff] %v957_v15  ;;  %1647 = vst [vmem:[%s2303_s30 + $0x730] sm:$0xff] %v1341_v16 }
 0x1f7   : > { %1520 = vst [vmem:[%s2303_s30 + $0x338] sm:$0xff] %v959_v19  ;;  %1648 = vst [vmem:[%s2303_s30 + $0x738] sm:$0xff] %v1343_v20  ;;  %v962_v21 = vpop.f32.mrb[104].mxu0  ;;  %v1346_v22 = vpop.f32.mrb[104].mxu1 }
 0x1f8   : > { %v963_v23 = vadd.f32 %v962_v21, %v2290_v59  ;;  %v1347_v24 = vadd.f32 %v1346_v22, %v2290_v59  ;;  %v964_v25 = vpop.f32.mrb[105].mxu0  ;;  %v1348_v26 = vpop.f32.mrb[105].mxu1 }
 0x1f9   : > { %v965_v27 = vadd.f32 %v964_v25, %v2292_v60  ;;  %v1349_v28 = vadd.f32 %v1348_v26, %v2292_v60 }
 0x1fa   : > { %1521 = vst [vmem:[%s2303_s30 + $0x340] sm:$0xff] %v963_v23  ;;  %1649 = vst [vmem:[%s2303_s30 + $0x740] sm:$0xff] %v1347_v24 }
 0x1fb   : > { %1522 = vst [vmem:[%s2303_s30 + $0x348] sm:$0xff] %v965_v27  ;;  %1650 = vst [vmem:[%s2303_s30 + $0x748] sm:$0xff] %v1349_v28  ;;  %v968_v29 = vpop.f32.mrb[106].mxu0  ;;  %v1352_v30 = vpop.f32.mrb[106].mxu1 }
 0x1fc   : > { %v969_v31 = vadd.f32 %v968_v29, %v2290_v59  ;;  %v1353_v32 = vadd.f32 %v1352_v30, %v2290_v59  ;;  %v970_v33 = vpop.f32.mrb[107].mxu0  ;;  %v1354_v34 = vpop.f32.mrb[107].mxu1 }
 0x1fd   : > { %v971_v35 = vadd.f32 %v970_v33, %v2292_v60  ;;  %v1355_v36 = vadd.f32 %v1354_v34, %v2292_v60 }
 0x1fe   : > { %1523 = vst [vmem:[%s2303_s30 + $0x350] sm:$0xff] %v969_v31  ;;  %1651 = vst [vmem:[%s2303_s30 + $0x750] sm:$0xff] %v1353_v32 }
 0x1ff   : > { %1524 = vst [vmem:[%s2303_s30 + $0x358] sm:$0xff] %v971_v35  ;;  %1652 = vst [vmem:[%s2303_s30 + $0x758] sm:$0xff] %v1355_v36  ;;  %v974_v37 = vpop.f32.mrb[108].mxu0  ;;  %v1358_v38 = vpop.f32.mrb[108].mxu1 }
 0x200   : > { %v975_v39 = vadd.f32 %v974_v37, %v2290_v59  ;;  %v1359_v40 = vadd.f32 %v1358_v38, %v2290_v59  ;;  %v976_v41 = vpop.f32.mrb[109].mxu0  ;;  %v1360_v42 = vpop.f32.mrb[109].mxu1 }
 0x201   : > { %v977_v43 = vadd.f32 %v976_v41, %v2292_v60  ;;  %v1361_v44 = vadd.f32 %v1360_v42, %v2292_v60 }
 0x202   : > { %1525 = vst [vmem:[%s2303_s30 + $0x360] sm:$0xff] %v975_v39  ;;  %1653 = vst [vmem:[%s2303_s30 + $0x760] sm:$0xff] %v1359_v40 }
 0x203   : > { %1526 = vst [vmem:[%s2303_s30 + $0x368] sm:$0xff] %v977_v43  ;;  %1654 = vst [vmem:[%s2303_s30 + $0x768] sm:$0xff] %v1361_v44  ;;  %v980_v45 = vpop.f32.mrb[110].mxu0  ;;  %v1364_v46 = vpop.f32.mrb[110].mxu1 }
 0x204   : > { %v981_v47 = vadd.f32 %v980_v45, %v2290_v59  ;;  %v1365_v48 = vadd.f32 %v1364_v46, %v2290_v59  ;;  %v982_v49 = vpop.f32.mrb[111].mxu0  ;;  %v1366_v50 = vpop.f32.mrb[111].mxu1 }
 0x205   : > { %v983_v51 = vadd.f32 %v982_v49, %v2292_v60  ;;  %v1367_v52 = vadd.f32 %v1366_v50, %v2292_v60 }
 0x206   : > { %1527 = vst [vmem:[%s2303_s30 + $0x370] sm:$0xff] %v981_v47  ;;  %1655 = vst [vmem:[%s2303_s30 + $0x770] sm:$0xff] %v1365_v48 }
 0x207   : > { %1528 = vst [vmem:[%s2303_s30 + $0x378] sm:$0xff] %v983_v51  ;;  %1656 = vst [vmem:[%s2303_s30 + $0x778] sm:$0xff] %v1367_v52  ;;  %v986_v53 = vpop.f32.mrb[112].mxu0  ;;  %v1370_v54 = vpop.f32.mrb[112].mxu1 }
 0x208   : > { %v987_v55 = vadd.f32 %v986_v53, %v2290_v59  ;;  %v1371_v56 = vadd.f32 %v1370_v54, %v2290_v59  ;;  %v988_v57 = vpop.f32.mrb[113].mxu0  ;;  %v1372_v58 = vpop.f32.mrb[113].mxu1 }
 0x209   : > { %v989_v61 = vadd.f32 %v988_v57, %v2292_v60  ;;  %v1373_v62 = vadd.f32 %v1372_v58, %v2292_v60 }
 0x20a   : > { %1529 = vst [vmem:[%s2303_s30 + $0x380] sm:$0xff] %v987_v55  ;;  %1657 = vst [vmem:[%s2303_s30 + $0x780] sm:$0xff] %v1371_v56 }
 0x20b   : > { %1530 = vst [vmem:[%s2303_s30 + $0x388] sm:$0xff] %v989_v61  ;;  %1658 = vst [vmem:[%s2303_s30 + $0x788] sm:$0xff] %v1373_v62  ;;  %v992_v63 = vpop.f32.mrb[114].mxu0  ;;  %v1376_v0 = vpop.f32.mrb[114].mxu1 }
 0x20c   : > { %v993_v1 = vadd.f32 %v992_v63, %v2290_v59  ;;  %v1377_v2 = vadd.f32 %v1376_v0, %v2290_v59  ;;  %v994_v3 = vpop.f32.mrb[115].mxu0  ;;  %v1378_v4 = vpop.f32.mrb[115].mxu1 }
 0x20d   : > { %v995_v5 = vadd.f32 %v994_v3, %v2292_v60  ;;  %v1379_v6 = vadd.f32 %v1378_v4, %v2292_v60 }
 0x20e   : > { %1531 = vst [vmem:[%s2303_s30 + $0x390] sm:$0xff] %v993_v1  ;;  %1659 = vst [vmem:[%s2303_s30 + $0x790] sm:$0xff] %v1377_v2 }
 0x20f   : > { %1532 = vst [vmem:[%s2303_s30 + $0x398] sm:$0xff] %v995_v5  ;;  %1660 = vst [vmem:[%s2303_s30 + $0x798] sm:$0xff] %v1379_v6  ;;  %v998_v7 = vpop.f32.mrb[116].mxu0  ;;  %v1382_v8 = vpop.f32.mrb[116].mxu1 }
 0x210   : > { %v999_v9 = vadd.f32 %v998_v7, %v2290_v59  ;;  %v1383_v10 = vadd.f32 %v1382_v8, %v2290_v59  ;;  %v1000_v11 = vpop.f32.mrb[117].mxu0  ;;  %v1384_v12 = vpop.f32.mrb[117].mxu1 }
 0x211   : > { %v1001_v13 = vadd.f32 %v1000_v11, %v2292_v60  ;;  %v1385_v14 = vadd.f32 %v1384_v12, %v2292_v60 }
 0x212   : > { %1533 = vst [vmem:[%s2303_s30 + $0x3a0] sm:$0xff] %v999_v9  ;;  %1661 = vst [vmem:[%s2303_s30 + $0x7a0] sm:$0xff] %v1383_v10 }
 0x213   : > { %1534 = vst [vmem:[%s2303_s30 + $0x3a8] sm:$0xff] %v1001_v13  ;;  %1662 = vst [vmem:[%s2303_s30 + $0x7a8] sm:$0xff] %v1385_v14  ;;  %v1004_v15 = vpop.f32.mrb[118].mxu0  ;;  %v1388_v16 = vpop.f32.mrb[118].mxu1 }
 0x214   : > { %v1005_v17 = vadd.f32 %v1004_v15, %v2290_v59  ;;  %v1389_v18 = vadd.f32 %v1388_v16, %v2290_v59  ;;  %v1006_v19 = vpop.f32.mrb[119].mxu0  ;;  %v1390_v20 = vpop.f32.mrb[119].mxu1 }
 0x215   : > { %v1007_v21 = vadd.f32 %v1006_v19, %v2292_v60  ;;  %v1391_v22 = vadd.f32 %v1390_v20, %v2292_v60 }
 0x216   : > { %1535 = vst [vmem:[%s2303_s30 + $0x3b0] sm:$0xff] %v1005_v17  ;;  %1663 = vst [vmem:[%s2303_s30 + $0x7b0] sm:$0xff] %v1389_v18 }
 0x217   : > { %1536 = vst [vmem:[%s2303_s30 + $0x3b8] sm:$0xff] %v1007_v21  ;;  %1664 = vst [vmem:[%s2303_s30 + $0x7b8] sm:$0xff] %v1391_v22  ;;  %v1010_v23 = vpop.f32.mrb[120].mxu0  ;;  %v1394_v24 = vpop.f32.mrb[120].mxu1 }
 0x218   : > { %v1011_v25 = vadd.f32 %v1010_v23, %v2290_v59  ;;  %v1395_v26 = vadd.f32 %v1394_v24, %v2290_v59  ;;  %v1012_v27 = vpop.f32.mrb[121].mxu0  ;;  %v1396_v28 = vpop.f32.mrb[121].mxu1 }
 0x219   : > { %v1013_v29 = vadd.f32 %v1012_v27, %v2292_v60  ;;  %v1397_v30 = vadd.f32 %v1396_v28, %v2292_v60 }
 0x21a   : > { %1537 = vst [vmem:[%s2303_s30 + $0x3c0] sm:$0xff] %v1011_v25  ;;  %1665 = vst [vmem:[%s2303_s30 + $0x7c0] sm:$0xff] %v1395_v26 }
 0x21b   : > { %1538 = vst [vmem:[%s2303_s30 + $0x3c8] sm:$0xff] %v1013_v29  ;;  %1666 = vst [vmem:[%s2303_s30 + $0x7c8] sm:$0xff] %v1397_v30  ;;  %v1016_v31 = vpop.f32.mrb[122].mxu0  ;;  %v1400_v32 = vpop.f32.mrb[122].mxu1 }
 0x21c   : > { %v1017_v33 = vadd.f32 %v1016_v31, %v2290_v59  ;;  %v1401_v34 = vadd.f32 %v1400_v32, %v2290_v59  ;;  %v1018_v35 = vpop.f32.mrb[123].mxu0  ;;  %v1402_v36 = vpop.f32.mrb[123].mxu1 }
 0x21d   : > { %v1019_v37 = vadd.f32 %v1018_v35, %v2292_v60  ;;  %v1403_v38 = vadd.f32 %v1402_v36, %v2292_v60 }
 0x21e   : > { %1539 = vst [vmem:[%s2303_s30 + $0x3d0] sm:$0xff] %v1017_v33  ;;  %1667 = vst [vmem:[%s2303_s30 + $0x7d0] sm:$0xff] %v1401_v34 }
 0x21f   : > { %1540 = vst [vmem:[%s2303_s30 + $0x3d8] sm:$0xff] %v1019_v37  ;;  %1668 = vst [vmem:[%s2303_s30 + $0x7d8] sm:$0xff] %v1403_v38  ;;  %v1022_v39 = vpop.f32.mrb[124].mxu0  ;;  %v1406_v40 = vpop.f32.mrb[124].mxu1 }
 0x220   : > { %v1023_v41 = vadd.f32 %v1022_v39, %v2290_v59  ;;  %v1407_v42 = vadd.f32 %v1406_v40, %v2290_v59  ;;  %v1024_v43 = vpop.f32.mrb[125].mxu0  ;;  %v1408_v44 = vpop.f32.mrb[125].mxu1 }
 0x221   : > { %v1025_v45 = vadd.f32 %v1024_v43, %v2292_v60  ;;  %v1409_v46 = vadd.f32 %v1408_v44, %v2292_v60 }
 0x222   : > { %1541 = vst [vmem:[%s2303_s30 + $0x3e0] sm:$0xff] %v1023_v41  ;;  %1669 = vst [vmem:[%s2303_s30 + $0x7e0] sm:$0xff] %v1407_v42 }
 0x223   : > { %1542 = vst [vmem:[%s2303_s30 + $0x3e8] sm:$0xff] %v1025_v45  ;;  %1670 = vst [vmem:[%s2303_s30 + $0x7e8] sm:$0xff] %v1409_v46  ;;  %v1028_v47 = vpop.f32.mrb[126].mxu0  ;;  %v1412_v48 = vpop.f32.mrb[126].mxu1 }
 0x224   : > { %v1029_v49 = vadd.f32 %v1028_v47, %v2290_v59  ;;  %v1413_v50 = vadd.f32 %v1412_v48, %v2290_v59  ;;  %v1030_v51 = vpop.f32.mrb[127].mxu0  ;;  %v1414_v52 = vpop.f32.mrb[127].mxu1 }
 0x225   : > { %v1031_v53 = vadd.f32 %v1030_v51, %v2292_v60  ;;  %v1415_v54 = vadd.f32 %v1414_v52, %v2292_v60 }
 0x226   : > { %1543 = vst [vmem:[%s2303_s30 + $0x3f0] sm:$0xff] %v1029_v49  ;;  %1671 = vst [vmem:[%s2303_s30 + $0x7f0] sm:$0xff] %v1413_v50 }
 0x227   : > { %1544 = vst [vmem:[%s2303_s30 + $0x3f8] sm:$0xff] %v1031_v53  ;;  %1672 = vst [vmem:[%s2303_s30 + $0x7f8] sm:$0xff] %v1415_v54 }
 0x228 PF: > { %s13_s14 = sadd.s32 1, %s1952_s14   ;;  %s2868_s12 = smov %s1948_s13 }
 0x229   : > { %p10_p5 = scmp.ge.s32.totalorder %s13_s14, 8   ;;  %s2869_s13 = smov %s2871_s15 }
 0x22b   :  { %12 = sbr.rel (!%p10_p5) target bundleno = 2 (0x2), region = 68 }

// kernel: encoder_forward.7
= control target key start
LH: loop header
LB: loop body
LE: loop exit
PB: predicated region body
PF: predicated region fallthrough
CT: control target
= control target key end

     0   :  { %s2343_s12 = smov 0   ;;  %s2345_s13 = smov 0   ;;  %s2909_s0 = inlined_call_operand.vmem [shape: f32[6,512,512], index: 0, kind: input, shape index: {}]   ;;  %s2910_s1 = inlined_call_operand.vmem [shape: f32[6,512,128], index: 1, kind: input, shape index: {}]   ;;  %s2911_s2 = inlined_call_operand.vmem [shape: f32[6,1,128], index: 2, kind: input, shape index: {}]   ;;  %s2912_s3 = inlined_call_operand.vmem [shape: f32[6,512,128], index: 3, kind: output, shape index: {}]  }
   0x1   :  { %s2347_s14 = smov 0  }
   0x2 LB: > { %s25_s15 = sadd.s32 1, %s2316_s13  ;;  %p2035_p0 = scmp.ge.s32.totalorder %s2320_s14, 1  ;;  %s2320_s14 = sphi %s2347_s14, %s13_s14   ;;  %s2316_s13 = sphi %s2345_s13, %s2914_s13   ;;  %s2312_s12 = sphi %s2343_s12, %s2913_s12  }
   0x3   : > { %p27_p1 = scmp.ge.s32.totalorder %s25_s15, 6  ;;  %p177_p2 = scmp.lt.s32.totalorder %s2320_s14, 7 }
   0x5   : > { %s2916_s15 = smov (%p27_p1, %s25_s15), 0  ;;  %p178_p3 = pnand %p2035_p0, %p177_p2 }
   0x6   : > { %p219_p4 = scmp.lt.s32.totalorder (!%p178_p3), %s2312_s12, 5  ;;  %v2322_v0 = vmov (!%p178_p3), 0.0|0.0  }
   0x7   : > { %181 = sbr.rel (%p178_p3) target bundleno = 552 (0x228), region = 32  ;;  %2048 = vmatprep.subr.bf16.mxu1 (!%p178_p3), %v2322_v0  ;;  %2096 = vmatprep.subr.bf16.mxu0 (!%p178_p3), %v2322_v0 }
   0xe   : > { %s2918_s12 = smov (!%p219_p4, %s2312_s12), 5 }
   0xf   : > { %s2046_s16 = sshll.u32 %s2918_s12, 9  ;;  %s2045_s20 = sshll.u32 %s2918_s12, 11 }
  0x10   : > { %s2371_s19 = scalar_lea.vmem %s2910_s1, %s2046_s16  ;;  %s2409_s23 = scalar_lea.vmem %s2909_s0, %s2045_s20 }
  0x11   : > { %v1015_v1 = vld [vmem:[%s2371_s19] sm:$0xff]  ;;  %v1016_v2 = vld [vmem:[%s2371_s19 + $0x8] sm:$0xff]  ;;  %v1017_v6 = vld [vmem:[%s2371_s19 + $0x10] sm:$0xff]  ;;  %s2695_s26 = scalar_lea.vmem %s2911_s2, %s2918_s12  ;;  %s2716_s29 = scalar_lea.vmem %s2912_s3, %s2046_s16 }
  0x12   : > { %v1047_v3 = vld [vmem:[%s2371_s19 + $0x100] sm:$0xff]  ;;  %v2049_v4 = vpack.c.bf16 %v1016_v2, %v1015_v1  ;;  %v1048_v5 = vld [vmem:[%s2371_s19 + $0x108] sm:$0xff]  ;;  %v1018_v7 = vld [vmem:[%s2371_s19 + $0x18] sm:$0xff] }
  0x13   : > { %v2097_v8 = vpack.c.bf16 %v1048_v5, %v1047_v3  ;;  %v1049_v9 = vld [vmem:[%s2371_s19 + $0x110] sm:$0xff]  ;;  %v1050_v10 = vld [vmem:[%s2371_s19 + $0x118] sm:$0xff]  ;;  %v2052_v11 = vpack.c.bf16 %v1018_v7, %v1017_v6  ;;  %v1019_v13 = vld [vmem:[%s2371_s19 + $0x20] sm:$0xff] }
  0x14   : > { %2050 = vmatpush1.bf16.msra.mxu1 %v2049_v4  ;;  %v2100_v12 = vpack.c.bf16 %v1050_v10, %v1049_v9  ;;  %v1020_v14 = vld [vmem:[%s2371_s19 + $0x28] sm:$0xff]  ;;  %v1051_v15 = vld [vmem:[%s2371_s19 + $0x120] sm:$0xff]  ;;  %v1021_v19 = vld [vmem:[%s2371_s19 + $0x30] sm:$0xff] }
  0x15   : > { %2098 = vmatpush1.bf16.msra.mxu0 %v2097_v8  ;;  %2051 = vmatprep.subr.bf16.mxu1 %v2322_v0  ;;  %v1052_v16 = vld [vmem:[%s2371_s19 + $0x128] sm:$0xff]  ;;  %v2055_v17 = vpack.c.bf16 %v1020_v14, %v1019_v13  ;;  %v1022_v20 = vld [vmem:[%s2371_s19 + $0x38] sm:$0xff]  ;;  %v1053_v21 = vld [vmem:[%s2371_s19 + $0x130] sm:$0xff] }
  0x16   : > { %2099 = vmatprep.subr.bf16.mxu0 %v2322_v0  ;;  %v2103_v18 = vpack.c.bf16 %v1052_v16, %v1051_v15  ;;  %v1054_v22 = vld [vmem:[%s2371_s19 + $0x138] sm:$0xff]  ;;  %v2058_v23 = vpack.c.bf16 %v1022_v20, %v1021_v19  ;;  %v1023_v25 = vld [vmem:[%s2371_s19 + $0x40] sm:$0xff]  ;;  %v1024_v26 = vld [vmem:[%s2371_s19 + $0x48] sm:$0xff] }
  0x17   : > { %v2106_v24 = vpack.c.bf16 %v1054_v22, %v1053_v21  ;;  %v1055_v27 = vld [vmem:[%s2371_s19 + $0x140] sm:$0xff]  ;;  %v1056_v28 = vld [vmem:[%s2371_s19 + $0x148] sm:$0xff]  ;;  %v2061_v29 = vpack.c.bf16 %v1024_v26, %v1023_v25  ;;  %v1025_v31 = vld [vmem:[%s2371_s19 + $0x50] sm:$0xff] }
  0x18   : > { %2053 = vmatpush1.bf16.msra.mxu1 %v2052_v11  ;;  %v2109_v30 = vpack.c.bf16 %v1056_v28, %v1055_v27  ;;  %v1026_v32 = vld [vmem:[%s2371_s19 + $0x58] sm:$0xff]  ;;  %v1057_v33 = vld [vmem:[%s2371_s19 + $0x150] sm:$0xff]  ;;  %v1027_v37 = vld [vmem:[%s2371_s19 + $0x60] sm:$0xff] }
  0x19   : > { %2101 = vmatpush1.bf16.msra.mxu0 %v2100_v12  ;;  %2054 = vmatprep.subr.bf16.mxu1 %v2322_v0  ;;  %v1058_v34 = vld [vmem:[%s2371_s19 + $0x158] sm:$0xff]  ;;  %v2064_v35 = vpack.c.bf16 %v1026_v32, %v1025_v31  ;;  %v1028_v38 = vld [vmem:[%s2371_s19 + $0x68] sm:$0xff]  ;;  %v1059_v39 = vld [vmem:[%s2371_s19 + $0x160] sm:$0xff] }
  0x1a   : > { %2102 = vmatprep.subr.bf16.mxu0 %v2322_v0  ;;  %v2112_v36 = vpack.c.bf16 %v1058_v34, %v1057_v33  ;;  %v1060_v40 = vld [vmem:[%s2371_s19 + $0x168] sm:$0xff]  ;;  %v250_v43 = vld [vmem:[%s2409_s23 + $0x18] sm:$0xff]  ;;  %v2067_v44 = vpack.c.bf16 %v1028_v38, %v1027_v37  ;;  %v1029_v47 = vld [vmem:[%s2371_s19 + $0x70] sm:$0xff] }
  0x1b   : > { %v248_v41 = vld [vmem:[%s2409_s23 + $0x8] sm:$0xff]  ;;  %v506_v45 = vmul.f32 0.2, %v250_v43  ;;  %v2115_v46 = vpack.c.bf16 %v1060_v40, %v1059_v39  ;;  %v1030_v48 = vld [vmem:[%s2371_s19 + $0x78] sm:$0xff]  ;;  %v1061_v50 = vld [vmem:[%s2371_s19 + $0x170] sm:$0xff] }
  0x1c   : > { %2056 = vmatpush1.bf16.msra.mxu1 %v2055_v17  ;;  %v504_v42 = vmul.f32 0.2, %v248_v41  ;;  %v1062_v51 = vld [vmem:[%s2371_s19 + $0x178] sm:$0xff]  ;;  %v2070_v53 = vpack.c.bf16 %v1030_v48, %v1029_v47  ;;  %v1031_v55 = vld [vmem:[%s2371_s19 + $0x80] sm:$0xff]  ;;  %v1032_v56 = vld [vmem:[%s2371_s19 + $0x88] sm:$0xff] }
  0x1d   : > { %2104 = vmatpush1.bf16.msra.mxu0 %v2103_v18  ;;  %2057 = vmatprep.subr.bf16.mxu1 %v2322_v0  ;;  %v762_v52 = vmax.f32 %v250_v43, %v506_v45  ;;  %v2118_v54 = vpack.c.bf16 %v1062_v51, %v1061_v50  ;;  %v1063_v57 = vld [vmem:[%s2371_s19 + $0x180] sm:$0xff]  ;;  %v1064_v58 = vld [vmem:[%s2371_s19 + $0x188] sm:$0xff]  ;;  %v2073_v59 = vpack.c.bf16 %v1032_v56, %v1031_v55  ;;  %v1033_v61 = vld [vmem:[%s2371_s19 + $0x90] sm:$0xff] }
  0x1e   : > { %2105 = vmatprep.subr.bf16.mxu0 %v2322_v0  ;;  %v760_v49 = vmax.f32 %v248_v41, %v504_v42  ;;  %v2121_v60 = vpack.c.bf16 %v1064_v58, %v1063_v57  ;;  %v1034_v62 = vld [vmem:[%s2371_s19 + $0x98] sm:$0xff]  ;;  %v1065_v63 = vld [vmem:[%s2371_s19 + $0x190] sm:$0xff]  ;;  %v1035_v4 = vld [vmem:[%s2371_s19 + $0xa0] sm:$0xff] }
  0x1f   : > { %1535 = vmatprep.mubr.f32.mxu0 %v762_v52  ;;  %v1066_v1 = vld [vmem:[%s2371_s19 + $0x198] sm:$0xff]  ;;  %v2076_v2 = vpack.c.bf16 %v1034_v62, %v1033_v61  ;;  %v1036_v5 = vld [vmem:[%s2371_s19 + $0xa8] sm:$0xff]  ;;  %v1067_v6 = vld [vmem:[%s2371_s19 + $0x1a0] sm:$0xff] }
  0x20   : > { %2059 = vmatpush1.bf16.msra.mxu1 %v2058_v23  ;;  %1150 = vmatprep.mubr.f32.mxu1 %v760_v49  ;;  %v2124_v3 = vpack.c.bf16 %v1066_v1, %v1065_v63  ;;  %v1068_v7 = vld [vmem:[%s2371_s19 + $0x1a8] sm:$0xff]  ;;  %v2079_v8 = vpack.c.bf16 %v1036_v5, %v1035_v4  ;;  %v1037_v10 = vld [vmem:[%s2371_s19 + $0xb0] sm:$0xff]  ;;  %v1038_v11 = vld [vmem:[%s2371_s19 + $0xb8] sm:$0xff] }
  0x21   : > { %2107 = vmatpush1.bf16.msra.mxu0 %v2106_v24  ;;  %2060 = vmatprep.subr.bf16.mxu1 %v2322_v0  ;;  %v2127_v9 = vpack.c.bf16 %v1068_v7, %v1067_v6  ;;  %v1069_v12 = vld [vmem:[%s2371_s19 + $0x1b0] sm:$0xff]  ;;  %v1070_v13 = vld [vmem:[%s2371_s19 + $0x1b8] sm:$0xff]  ;;  %v2082_v14 = vpack.c.bf16 %v1038_v11, %v1037_v10  ;;  %v1039_v16 = vld [vmem:[%s2371_s19 + $0xc0] sm:$0xff] }
  0x22   : > { %2108 = vmatprep.subr.bf16.mxu0 %v2322_v0  ;;  %v2130_v15 = vpack.c.bf16 %v1070_v13, %v1069_v12  ;;  %v1040_v17 = vld [vmem:[%s2371_s19 + $0xc8] sm:$0xff]  ;;  %v1071_v18 = vld [vmem:[%s2371_s19 + $0x1c0] sm:$0xff]  ;;  %v1041_v22 = vld [vmem:[%s2371_s19 + $0xd0] sm:$0xff] }
  0x23   : > { %v1072_v19 = vld [vmem:[%s2371_s19 + $0x1c8] sm:$0xff]  ;;  %v2085_v20 = vpack.c.bf16 %v1040_v17, %v1039_v16  ;;  %v1042_v23 = vld [vmem:[%s2371_s19 + $0xd8] sm:$0xff]  ;;  %v1073_v24 = vld [vmem:[%s2371_s19 + $0x1d0] sm:$0xff] }
  0x24   : > { %2062 = vmatpush1.bf16.msra.mxu1 %v2061_v29  ;;  %v2133_v21 = vpack.c.bf16 %v1072_v19, %v1071_v18  ;;  %v1074_v25 = vld [vmem:[%s2371_s19 + $0x1d8] sm:$0xff]  ;;  %v2088_v26 = vpack.c.bf16 %v1042_v23, %v1041_v22  ;;  %v1043_v28 = vld [vmem:[%s2371_s19 + $0xe0] sm:$0xff]  ;;  %v1044_v29 = vld [vmem:[%s2371_s19 + $0xe8] sm:$0xff] }
  0x25   : > { %2110 = vmatpush1.bf16.msra.mxu0 %v2109_v30  ;;  %2063 = vmatprep.subr.bf16.mxu1 %v2322_v0  ;;  %v2136_v27 = vpack.c.bf16 %v1074_v25, %v1073_v24  ;;  %v1075_v30 = vld [vmem:[%s2371_s19 + $0x1e0] sm:$0xff]  ;;  %v1076_v31 = vld [vmem:[%s2371_s19 + $0x1e8] sm:$0xff]  ;;  %v2091_v32 = vpack.c.bf16 %v1044_v29, %v1043_v28  ;;  %v1045_v33 = vld [vmem:[%s2371_s19 + $0xf0] sm:$0xff] }
  0x26   : > { %2111 = vmatprep.subr.bf16.mxu0 %v2322_v0  ;;  %v247_v34 = vld [vmem:[%s2409_s23] sm:$0xff]  ;;  %v249_v37 = vld [vmem:[%s2409_s23 + $0x10] sm:$0xff]  ;;  %v252_v38 = vld [vmem:[%s2409_s23 + $0x28] sm:$0xff] }
  0x27   : > { %v1077_v39 = vld [vmem:[%s2371_s19 + $0x1f0] sm:$0xff]  ;;  %v1078_v40 = vld [vmem:[%s2371_s19 + $0x1f8] sm:$0xff]  ;;  %v503_v42 = vmul.f32 0.2, %v247_v34  ;;  %v508_v45 = vmul.f32 0.2, %v252_v38 }
  0x28   : > { %2065 = vmatpush1.bf16.msra.mxu1 %v2064_v35  ;;  %v2139_v35 = vpack.c.bf16 %v1076_v31, %v1075_v30  ;;  %v254_v41 = vld [vmem:[%s2409_s23 + $0x38] sm:$0xff]  ;;  %v2142_v47 = vpack.c.bf16 %v1078_v40, %v1077_v39  ;;  %v253_v49 = vld [vmem:[%s2409_s23 + $0x30] sm:$0xff]  ;;  %v256_v50 = vld [vmem:[%s2409_s23 + $0x48] sm:$0xff] }
  0x29   : > { %2113 = vmatpush1.bf16.msra.mxu0 %v2112_v36  ;;  %2066 = vmatprep.subr.bf16.mxu1 %v2322_v0  ;;  %v1046_v36 = vld [vmem:[%s2371_s19 + $0xf8] sm:$0xff]  ;;  %v510_v48 = vmul.f32 0.2, %v254_v41  ;;  %v759_v52 = vmax.f32 %v247_v34, %v503_v42  ;;  %v764_v55 = vmax.f32 %v252_v38, %v508_v45  ;;  %v509_v56 = vmul.f32 0.2, %v253_v49  ;;  %v255_v58 = vld [vmem:[%s2409_s23 + $0x40] sm:$0xff] }
  0x2a   : > { %2114 = vmatprep.subr.bf16.mxu0 %v2322_v0  ;;  %v2094_v43 = vpack.c.bf16 %v1046_v36, %v1045_v33  ;;  %v258_v51 = vld [vmem:[%s2409_s23 + $0x58] sm:$0xff]  ;;  %v512_v57 = vmul.f32 0.2, %v256_v50  ;;  %v257_v61 = vld [vmem:[%s2409_s23 + $0x50] sm:$0xff]  ;;  %v260_v62 = vld [vmem:[%s2409_s23 + $0x68] sm:$0xff] }
  0x2b   : > { %v262_v63 = vld [vmem:[%s2409_s23 + $0x78] sm:$0xff]  ;;  %v511_v1 = vmul.f32 0.2, %v255_v58  ;;  %v513_v4 = vmul.f32 0.2, %v257_v61  ;;  %v259_v6 = vld [vmem:[%s2409_s23 + $0x60] sm:$0xff] }
  0x2c   : > { %2068 = vmatpush1.bf16.msra.mxu1 %v2067_v44  ;;  %v505_v44 = vmul.f32 0.2, %v249_v37  ;;  %v516_v5 = vmul.f32 0.2, %v260_v62  ;;  %v264_v10 = vld [vmem:[%s2409_s23 + $0x88] sm:$0xff]  ;;  %v266_v11 = vld [vmem:[%s2409_s23 + $0x98] sm:$0xff] }
  0x2d   : > { %2116 = vmatpush1.bf16.msra.mxu0 %v2115_v46  ;;  %2069 = vmatprep.subr.bf16.mxu1 %v2322_v0  ;;  %v251_v46 = vld [vmem:[%s2409_s23 + $0x20] sm:$0xff]  ;;  %v767_v12 = vmax.f32 %v255_v58, %v511_v1  ;;  %v515_v13 = vmul.f32 0.2, %v259_v6  ;;  %v520_v17 = vmul.f32 0.2, %v264_v10  ;;  %v268_v22 = vld [vmem:[%s2409_s23 + $0xa8] sm:$0xff] }
  0x2e   : > { %2117 = vmatprep.subr.bf16.mxu0 %v2322_v0  ;;  %v263_v18 = vld [vmem:[%s2409_s23 + $0x80] sm:$0xff]  ;;  %v270_v23 = vld [vmem:[%s2409_s23 + $0xb8] sm:$0xff]  ;;  %v524_v29 = vmul.f32 0.2, %v268_v22  ;;  %v269_v33 = vld [vmem:[%s2409_s23 + $0xb0] sm:$0xff] }
  0x2f   : > { %v771_v24 = vmax.f32 %v259_v6, %v515_v13  ;;  %v519_v25 = vmul.f32 0.2, %v263_v18  ;;  %v267_v30 = vld [vmem:[%s2409_s23 + $0xa0] sm:$0xff]  ;;  %v272_v34 = vld [vmem:[%s2409_s23 + $0xc8] sm:$0xff]  ;;  %v525_v40 = vmul.f32 0.2, %v269_v33 }
  0x30   : > { %2071 = vmatpush1.bf16.msra.mxu1 %v2070_v53  ;;  %v507_v53 = vmul.f32 0.2, %v251_v46  ;;  %v780_v39 = vmax.f32 %v268_v22, %v524_v29  ;;  %v271_v42 = vld [vmem:[%s2409_s23 + $0xc0] sm:$0xff]  ;;  %v273_v45 = vld [vmem:[%s2409_s23 + $0xd0] sm:$0xff]  ;;  %v280_v58 = vld [vmem:[%s2409_s23 + $0x108] sm:$0xff] }
  0x31   : > { %2119 = vmatpush1.bf16.msra.mxu0 %v2118_v54  ;;  %2072 = vmatprep.subr.bf16.mxu1 %v2322_v0  ;;  %v761_v54 = vmax.f32 %v249_v37, %v505_v44  ;;  %v775_v36 = vmax.f32 %v263_v18, %v519_v25  ;;  %v523_v37 = vmul.f32 0.2, %v267_v30  ;;  %v536_v1 = vmul.f32 0.2, %v280_v58  ;;  %v284_v6 = vld [vmem:[%s2409_s23 + $0x128] sm:$0xff]  ;;  %v289_v29 = vld [vmem:[%s2409_s23 + $0x150] sm:$0xff] }
  0x32   : > { %2120 = vmatprep.subr.bf16.mxu0 %v2322_v0  ;;  %v540_v13 = vmul.f32 0.2, %v284_v6  ;;  %v288_v18 = vld [vmem:[%s2409_s23 + $0x148] sm:$0xff] }
  0x33   : > { %v544_v25 = vmul.f32 0.2, %v288_v18 }
  0x34   : > { %2074 = vmatpush1.bf16.msra.mxu1 %v2073_v59  ;;  %v766_v59 = vmax.f32 %v254_v41, %v510_v48  ;;  %v528_v41 = vmul.f32 0.2, %v272_v34  ;;  %v779_v48 = vmax.f32 %v267_v30, %v523_v37  ;;  %v292_v30 = vld [vmem:[%s2409_s23 + $0x168] sm:$0xff] }
  0x35   : > { %2122 = vmatpush1.bf16.msra.mxu0 %v2121_v60  ;;  %2075 = vmatprep.subr.bf16.mxu1 %v2322_v0  ;;  %v514_v60 = vmul.f32 0.2, %v258_v51  ;;  %v548_v37 = vmul.f32 0.2, %v292_v30 }
  0x36   : > { %2123 = vmatprep.subr.bf16.mxu0 %v2322_v0 }
  0x37   : > { %v770_v7 = vmax.f32 %v258_v51, %v514_v60  ;;  %v784_v51 = vmax.f32 %v272_v34, %v528_v41  ;;  %v293_v41 = vld [vmem:[%s2409_s23 + $0x170] sm:$0xff] }
  0x38   : > { %2077 = vmatpush1.bf16.msra.mxu1 %v2076_v2  ;;  %v765_v2 = vmax.f32 %v253_v49, %v509_v56  ;;  %v527_v49 = vmul.f32 0.2, %v271_v42 }
  0x39   : > { %2125 = vmatpush1.bf16.msra.mxu0 %v2124_v3  ;;  %2078 = vmatprep.subr.bf16.mxu1 %v2322_v0  ;;  %v768_v3 = vmax.f32 %v256_v50, %v512_v57  ;;  %v781_v50 = vmax.f32 %v269_v33, %v525_v40  ;;  %v277_v57 = vld [vmem:[%s2409_s23 + $0xf0] sm:$0xff] }
  0x3a   : > { %2126 = vmatprep.subr.bf16.mxu0 %v2322_v0  ;;  %v783_v60 = vmax.f32 %v271_v42, %v527_v49  ;;  %v296_v42 = vld [vmem:[%s2409_s23 + $0x188] sm:$0xff] }
  0x3b   : > { %v552_v49 = vmul.f32 0.2, %v296_v42 }
  0x3c   : > { %2080 = vmatpush1.bf16.msra.mxu1 %v2079_v8  ;;  %v518_v8 = vmul.f32 0.2, %v262_v63 }
  0x3d   : > { %2128 = vmatpush1.bf16.msra.mxu0 %v2127_v9  ;;  %2081 = vmatprep.subr.bf16.mxu1 %v2322_v0  ;;  %v261_v9 = vld [vmem:[%s2409_s23 + $0x70] sm:$0xff] }
  0x3e   : > { %2129 = vmatprep.subr.bf16.mxu0 %v2322_v0  ;;  %v517_v16 = vmul.f32 0.2, %v261_v9  ;;  %v774_v19 = vmax.f32 %v262_v63, %v518_v8 }
  0x40   : > { %2083 = vmatpush1.bf16.msra.mxu1 %v2082_v14  ;;  %v769_v14 = vmax.f32 %v257_v61, %v513_v4 }
  0x41   : > { %2131 = vmatpush1.bf16.msra.mxu0 %v2130_v15  ;;  %2084 = vmatprep.subr.bf16.mxu1 %v2322_v0  ;;  %v772_v15 = vmax.f32 %v260_v62, %v516_v5  ;;  %v281_v5 = vld [vmem:[%s2409_s23 + $0x110] sm:$0xff] }
  0x42   : > { %2132 = vmatprep.subr.bf16.mxu0 %v2322_v0 }
  0x44   : > { %2086 = vmatpush1.bf16.msra.mxu1 %v2085_v20  ;;  %v522_v20 = vmul.f32 0.2, %v266_v11 }
  0x45   : > { %2134 = vmatpush1.bf16.msra.mxu0 %v2133_v21  ;;  %2087 = vmatprep.subr.bf16.mxu1 %v2322_v0  ;;  %v265_v21 = vld [vmem:[%s2409_s23 + $0x90] sm:$0xff] }
  0x46   : > { %2135 = vmatprep.subr.bf16.mxu0 %v2322_v0  ;;  %v521_v28 = vmul.f32 0.2, %v265_v21  ;;  %v778_v31 = vmax.f32 %v266_v11, %v522_v20  ;;  %v792_v11 = vmax.f32 %v280_v58, %v536_v1  ;;  %v301_v1 = vld [vmem:[%s2409_s23 + $0x1b0] sm:$0xff] }
  0x48   : > { %2089 = vmatpush1.bf16.msra.mxu1 %v2088_v26  ;;  %v773_v26 = vmax.f32 %v261_v9, %v517_v16  ;;  %v777_v38 = vmax.f32 %v265_v21, %v521_v28 }
  0x49   : > { %2137 = vmatpush1.bf16.msra.mxu0 %v2136_v27  ;;  %2090 = vmatprep.subr.bf16.mxu1 %v2322_v0  ;;  %v776_v27 = vmax.f32 %v264_v10, %v520_v17  ;;  %v285_v17 = vld [vmem:[%s2409_s23 + $0x130] sm:$0xff] }
  0x4a   : > { %2138 = vmatprep.subr.bf16.mxu0 %v2322_v0 }
  0x4c   : > { %2092 = vmatpush1.bf16.msra.mxu1 %v2091_v32  ;;  %v526_v32 = vmul.f32 0.2, %v270_v23 }
  0x4d   : > { %2140 = vmatpush1.bf16.msra.mxu0 %v2139_v35  ;;  %2093 = vmatprep.subr.bf16.mxu1 %v2322_v0  ;;  %v274_v35 = vld [vmem:[%s2409_s23 + $0xd8] sm:$0xff] }
  0x4e   : > { %2141 = vmatprep.subr.bf16.mxu0 %v2322_v0  ;;  %v763_v0 = vmax.f32 %v251_v46, %v507_v53  ;;  %v530_v44 = vmul.f32 0.2, %v274_v35  ;;  %v276_v46 = vld [vmem:[%s2409_s23 + $0xe8] sm:$0xff] }
  0x4f   : > { %v532_v53 = vmul.f32 0.2, %v276_v46 }
  0x50   : > { %2095 = vmatpush1.bf16.msra.mxu1 %v2094_v43  ;;  %v782_v43 = vmax.f32 %v270_v23, %v526_v32  ;;  %v796_v23 = vmax.f32 %v284_v6, %v540_v13  ;;  %v305_v13 = vld [vmem:[%s2409_s23 + $0x1d0] sm:$0xff] }
  0x51   : > { %2143 = vmatpush1.bf16.msra.mxu0 %v2142_v47  ;;  %v278_v47 = vld [vmem:[%s2409_s23 + $0xf8] sm:$0xff]  ;;  %v788_v63 = vmax.f32 %v276_v46, %v532_v53  ;;  %v297_v53 = vld [vmem:[%s2409_s23 + $0x190] sm:$0xff] }
  0x52   : > { %v534_v56 = vmul.f32 0.2, %v278_v47 }
  0x53   : > { %1151 = vmatmul.mubr.f32.vlgmr.msra.gmra.mrb[0].mxu1 %v759_v52  ;;  %v529_v52 = vmul.f32 0.2, %v273_v45 }
  0x54   : > { %1536 = vmatmul.mubr.f32.vlgmr.msra.gmra.mrb[0].mxu0 %v761_v54  ;;  %1155 = vmatprep.mubr.f32.mxu1 %v764_v55  ;;  %v275_v54 = vld [vmem:[%s2409_s23 + $0xe0] sm:$0xff]  ;;  %v786_v55 = vmax.f32 %v274_v35, %v530_v44  ;;  %v800_v35 = vmax.f32 %v288_v18, %v544_v25  ;;  %v309_v25 = vld [vmem:[%s2409_s23 + $0x1f0] sm:$0xff] }
  0x55   : > { %1540 = vmatprep.mubr.f32.mxu0 %v766_v59  ;;  %v282_v59 = vld [vmem:[%s2409_s23 + $0x118] sm:$0xff]  ;;  %v531_v61 = vmul.f32 0.2, %v275_v54  ;;  %v785_v62 = vmax.f32 %v273_v45, %v529_v52 }
  0x56   : > { %v538_v4 = vmul.f32 0.2, %v282_v59 }
  0x57   : > { %1156 = vmatmul.mubr.f32.gmra.mrb[2].mxu1 %v763_v0  ;;  %v533_v0 = vmul.f32 0.2, %v277_v57  ;;  %v787_v8 = vmax.f32 %v275_v54, %v531_v61  ;;  %v300_v54 = vld [vmem:[%s2409_s23 + $0x1a8] sm:$0xff] }
  0x58   : > { %1541 = vmatmul.mubr.f32.gmra.mrb[2].mxu0 %v765_v2  ;;  %1160 = vmatprep.mubr.f32.mxu1 %v768_v3  ;;  %v279_v2 = vld [vmem:[%s2409_s23 + $0x100] sm:$0xff]  ;;  %v790_v3 = vmax.f32 %v278_v47, %v534_v56  ;;  %v804_v47 = vmax.f32 %v292_v30, %v548_v37  ;;  %v556_v61 = vmul.f32 0.2, %v300_v54  ;;  %v313_v37 = vld [vmem:[%s2409_s23 + $0x210] sm:$0xff] }
  0x59   : > { %1545 = vmatprep.mubr.f32.mxu0 %v770_v7  ;;  %v286_v7 = vld [vmem:[%s2409_s23 + $0x138] sm:$0xff]  ;;  %v535_v9 = vmul.f32 0.2, %v279_v2  ;;  %v789_v10 = vmax.f32 %v277_v57, %v533_v0 }
  0x5a   : > { %v542_v16 = vmul.f32 0.2, %v286_v7 }
  0x5b   : > { %1161 = vmatmul.mubr.f32.gmra.mrb[4].mxu1 %v767_v12  ;;  %v537_v12 = vmul.f32 0.2, %v281_v5  ;;  %v791_v20 = vmax.f32 %v279_v2, %v535_v9  ;;  %v304_v2 = vld [vmem:[%s2409_s23 + $0x1c8] sm:$0xff] }
  0x5c   : > { %1546 = vmatmul.mubr.f32.gmra.mrb[4].mxu0 %v769_v14  ;;  %1165 = vmatprep.mubr.f32.mxu1 %v772_v15  ;;  %v283_v14 = vld [vmem:[%s2409_s23 + $0x120] sm:$0xff]  ;;  %v794_v15 = vmax.f32 %v282_v59, %v538_v4  ;;  %v808_v59 = vmax.f32 %v296_v42, %v552_v49  ;;  %v560_v9 = vmul.f32 0.2, %v304_v2  ;;  %v317_v49 = vld [vmem:[%s2409_s23 + $0x230] sm:$0xff] }
  0x5d   : > { %1550 = vmatprep.mubr.f32.mxu0 %v774_v19  ;;  %v290_v19 = vld [vmem:[%s2409_s23 + $0x158] sm:$0xff]  ;;  %v539_v21 = vmul.f32 0.2, %v283_v14  ;;  %v793_v22 = vmax.f32 %v281_v5, %v537_v12 }
  0x5e   : > { %v546_v28 = vmul.f32 0.2, %v290_v19 }
  0x5f   : > { %1166 = vmatmul.mubr.f32.gmra.mrb[6].mxu1 %v771_v24  ;;  %v541_v24 = vmul.f32 0.2, %v285_v17  ;;  %v795_v32 = vmax.f32 %v283_v14, %v539_v21  ;;  %v308_v14 = vld [vmem:[%s2409_s23 + $0x1e8] sm:$0xff] }
  0x60   : > { %1551 = vmatmul.mubr.f32.gmra.mrb[6].mxu0 %v773_v26  ;;  %1170 = vmatprep.mubr.f32.mxu1 %v776_v27  ;;  %v287_v26 = vld [vmem:[%s2409_s23 + $0x140] sm:$0xff]  ;;  %v798_v27 = vmax.f32 %v286_v7, %v542_v16  ;;  %v812_v7 = vmax.f32 %v300_v54, %v556_v61  ;;  %v564_v21 = vmul.f32 0.2, %v308_v14  ;;  %v321_v61 = vld [vmem:[%s2409_s23 + $0x250] sm:$0xff] }
  0x61   : > { %1555 = vmatprep.mubr.f32.mxu0 %v778_v31  ;;  %v294_v31 = vld [vmem:[%s2409_s23 + $0x178] sm:$0xff]  ;;  %v543_v33 = vmul.f32 0.2, %v287_v26  ;;  %v797_v34 = vmax.f32 %v285_v17, %v541_v24 }
  0x62   : > { %v550_v40 = vmul.f32 0.2, %v294_v31 }
  0x63   : > { %1171 = vmatmul.mubr.f32.gmra.mrb[8].mxu1 %v775_v36  ;;  %v545_v36 = vmul.f32 0.2, %v289_v29  ;;  %v799_v44 = vmax.f32 %v287_v26, %v543_v33  ;;  %v312_v26 = vld [vmem:[%s2409_s23 + $0x208] sm:$0xff] }
  0x64   : > { %1556 = vmatmul.mubr.f32.gmra.mrb[8].mxu0 %v777_v38  ;;  %1175 = vmatprep.mubr.f32.mxu1 %v780_v39  ;;  %v291_v38 = vld [vmem:[%s2409_s23 + $0x160] sm:$0xff]  ;;  %v802_v39 = vmax.f32 %v290_v19, %v546_v28  ;;  %v816_v19 = vmax.f32 %v304_v2, %v560_v9  ;;  %v568_v33 = vmul.f32 0.2, %v312_v26  ;;  %v325_v9 = vld [vmem:[%s2409_s23 + $0x270] sm:$0xff] }
  0x65   : > { %1560 = vmatprep.mubr.f32.mxu0 %v782_v43  ;;  %v298_v43 = vld [vmem:[%s2409_s23 + $0x198] sm:$0xff]  ;;  %v547_v45 = vmul.f32 0.2, %v291_v38  ;;  %v801_v46 = vmax.f32 %v289_v29, %v545_v36 }
  0x66   : > { %v554_v52 = vmul.f32 0.2, %v298_v43 }
  0x67   : > { %1176 = vmatmul.mubr.f32.gmra.mrb[10].mxu1 %v779_v48  ;;  %v549_v48 = vmul.f32 0.2, %v293_v41  ;;  %v803_v56 = vmax.f32 %v291_v38, %v547_v45  ;;  %v316_v38 = vld [vmem:[%s2409_s23 + $0x228] sm:$0xff] }
  0x68   : > { %1561 = vmatmul.mubr.f32.gmra.mrb[10].mxu0 %v781_v50  ;;  %1180 = vmatprep.mubr.f32.mxu1 %v784_v51  ;;  %v295_v50 = vld [vmem:[%s2409_s23 + $0x180] sm:$0xff]  ;;  %v806_v51 = vmax.f32 %v294_v31, %v550_v40  ;;  %v820_v31 = vmax.f32 %v308_v14, %v564_v21  ;;  %v572_v45 = vmul.f32 0.2, %v316_v38  ;;  %v329_v21 = vld [vmem:[%s2409_s23 + $0x290] sm:$0xff] }
  0x69   : > { %1565 = vmatprep.mubr.f32.mxu0 %v786_v55  ;;  %v302_v55 = vld [vmem:[%s2409_s23 + $0x1b8] sm:$0xff]  ;;  %v551_v57 = vmul.f32 0.2, %v295_v50  ;;  %v805_v58 = vmax.f32 %v293_v41, %v549_v48 }
  0x6a   : > { %v558_v0 = vmul.f32 0.2, %v302_v55 }
  0x6b   : > { %1181 = vmatmul.mubr.f32.gmra.mrb[12].mxu1 %v783_v60  ;;  %v553_v60 = vmul.f32 0.2, %v297_v53  ;;  %v807_v4 = vmax.f32 %v295_v50, %v551_v57  ;;  %v320_v50 = vld [vmem:[%s2409_s23 + $0x248] sm:$0xff] }
  0x6c   : > { %1566 = vmatmul.mubr.f32.gmra.mrb[12].mxu0 %v785_v62  ;;  %1185 = vmatprep.mubr.f32.mxu1 %v788_v63  ;;  %v299_v62 = vld [vmem:[%s2409_s23 + $0x1a0] sm:$0xff]  ;;  %v810_v63 = vmax.f32 %v298_v43, %v554_v52  ;;  %v824_v43 = vmax.f32 %v312_v26, %v568_v33  ;;  %v576_v57 = vmul.f32 0.2, %v320_v50  ;;  %v333_v33 = vld [vmem:[%s2409_s23 + $0x2b0] sm:$0xff] }
  0x6d   : > { %1570 = vmatprep.mubr.f32.mxu0 %v790_v3  ;;  %v306_v3 = vld [vmem:[%s2409_s23 + $0x1d8] sm:$0xff]  ;;  %v555_v5 = vmul.f32 0.2, %v299_v62  ;;  %v809_v6 = vmax.f32 %v297_v53, %v553_v60 }
  0x6e   : > { %v562_v12 = vmul.f32 0.2, %v306_v3 }
  0x6f   : > { %1186 = vmatmul.mubr.f32.gmra.mrb[14].mxu1 %v787_v8  ;;  %v557_v8 = vmul.f32 0.2, %v301_v1  ;;  %v811_v16 = vmax.f32 %v299_v62, %v555_v5  ;;  %v324_v62 = vld [vmem:[%s2409_s23 + $0x268] sm:$0xff] }
  0x70   : > { %1571 = vmatmul.mubr.f32.gmra.mrb[14].mxu0 %v789_v10  ;;  %1190 = vmatprep.mubr.f32.mxu1 %v792_v11  ;;  %v303_v10 = vld [vmem:[%s2409_s23 + $0x1c0] sm:$0xff]  ;;  %v814_v11 = vmax.f32 %v302_v55, %v558_v0  ;;  %v828_v55 = vmax.f32 %v316_v38, %v572_v45  ;;  %v580_v5 = vmul.f32 0.2, %v324_v62  ;;  %v337_v45 = vld [vmem:[%s2409_s23 + $0x2d0] sm:$0xff] }
  0x71   : > { %1575 = vmatprep.mubr.f32.mxu0 %v794_v15  ;;  %v310_v15 = vld [vmem:[%s2409_s23 + $0x1f8] sm:$0xff]  ;;  %v559_v17 = vmul.f32 0.2, %v303_v10  ;;  %v813_v18 = vmax.f32 %v301_v1, %v557_v8 }
  0x72   : > { %v566_v24 = vmul.f32 0.2, %v310_v15 }
  0x73   : > { %1191 = vmatmul.mubr.f32.gmra.mrb[16].mxu1 %v791_v20  ;;  %v561_v20 = vmul.f32 0.2, %v305_v13  ;;  %v815_v28 = vmax.f32 %v303_v10, %v559_v17  ;;  %v328_v10 = vld [vmem:[%s2409_s23 + $0x288] sm:$0xff] }
  0x74   : > { %1576 = vmatmul.mubr.f32.gmra.mrb[16].mxu0 %v793_v22  ;;  %1195 = vmatprep.mubr.f32.mxu1 %v796_v23  ;;  %v307_v22 = vld [vmem:[%s2409_s23 + $0x1e0] sm:$0xff]  ;;  %v818_v23 = vmax.f32 %v306_v3, %v562_v12  ;;  %v832_v3 = vmax.f32 %v320_v50, %v576_v57  ;;  %v584_v17 = vmul.f32 0.2, %v328_v10  ;;  %v341_v57 = vld [vmem:[%s2409_s23 + $0x2f0] sm:$0xff] }
  0x75   : > { %1580 = vmatprep.mubr.f32.mxu0 %v798_v27  ;;  %v314_v27 = vld [vmem:[%s2409_s23 + $0x218] sm:$0xff]  ;;  %v563_v29 = vmul.f32 0.2, %v307_v22  ;;  %v817_v30 = vmax.f32 %v305_v13, %v561_v20 }
  0x76   : > { %v570_v36 = vmul.f32 0.2, %v314_v27 }
  0x77   : > { %1196 = vmatmul.mubr.f32.gmra.mrb[18].mxu1 %v795_v32  ;;  %v565_v32 = vmul.f32 0.2, %v309_v25  ;;  %v819_v40 = vmax.f32 %v307_v22, %v563_v29  ;;  %v332_v22 = vld [vmem:[%s2409_s23 + $0x2a8] sm:$0xff] }
  0x78   : > { %1581 = vmatmul.mubr.f32.gmra.mrb[18].mxu0 %v797_v34  ;;  %1200 = vmatprep.mubr.f32.mxu1 %v800_v35  ;;  %v311_v34 = vld [vmem:[%s2409_s23 + $0x200] sm:$0xff]  ;;  %v822_v35 = vmax.f32 %v310_v15, %v566_v24  ;;  %v836_v15 = vmax.f32 %v324_v62, %v580_v5  ;;  %v588_v29 = vmul.f32 0.2, %v332_v22  ;;  %v345_v5 = vld [vmem:[%s2409_s23 + $0x310] sm:$0xff] }
  0x79   : > { %1585 = vmatprep.mubr.f32.mxu0 %v802_v39  ;;  %v318_v39 = vld [vmem:[%s2409_s23 + $0x238] sm:$0xff]  ;;  %v567_v41 = vmul.f32 0.2, %v311_v34  ;;  %v821_v42 = vmax.f32 %v309_v25, %v565_v32 }
  0x7a   : > { %v574_v48 = vmul.f32 0.2, %v318_v39 }
  0x7b   : > { %1201 = vmatmul.mubr.f32.gmra.mrb[20].mxu1 %v799_v44  ;;  %v569_v44 = vmul.f32 0.2, %v313_v37  ;;  %v823_v52 = vmax.f32 %v311_v34, %v567_v41  ;;  %v336_v34 = vld [vmem:[%s2409_s23 + $0x2c8] sm:$0xff] }
  0x7c   : > { %1586 = vmatmul.mubr.f32.gmra.mrb[20].mxu0 %v801_v46  ;;  %1205 = vmatprep.mubr.f32.mxu1 %v804_v47  ;;  %v315_v46 = vld [vmem:[%s2409_s23 + $0x220] sm:$0xff]  ;;  %v826_v47 = vmax.f32 %v314_v27, %v570_v36  ;;  %v840_v27 = vmax.f32 %v328_v10, %v584_v17  ;;  %v592_v41 = vmul.f32 0.2, %v336_v34  ;;  %v349_v17 = vld [vmem:[%s2409_s23 + $0x330] sm:$0xff] }
  0x7d   : > { %1590 = vmatprep.mubr.f32.mxu0 %v806_v51  ;;  %v322_v51 = vld [vmem:[%s2409_s23 + $0x258] sm:$0xff]  ;;  %v571_v53 = vmul.f32 0.2, %v315_v46  ;;  %v825_v54 = vmax.f32 %v313_v37, %v569_v44 }
  0x7e   : > { %v578_v60 = vmul.f32 0.2, %v322_v51 }
  0x7f   : > { %1206 = vmatmul.mubr.f32.gmra.mrb[22].mxu1 %v803_v56  ;;  %v573_v56 = vmul.f32 0.2, %v317_v49  ;;  %v827_v0 = vmax.f32 %v315_v46, %v571_v53  ;;  %v340_v46 = vld [vmem:[%s2409_s23 + $0x2e8] sm:$0xff] }
  0x80   : > { %1591 = vmatmul.mubr.f32.gmra.mrb[22].mxu0 %v805_v58  ;;  %1210 = vmatprep.mubr.f32.mxu1 %v808_v59  ;;  %v319_v58 = vld [vmem:[%s2409_s23 + $0x240] sm:$0xff]  ;;  %v830_v59 = vmax.f32 %v318_v39, %v574_v48  ;;  %v844_v39 = vmax.f32 %v332_v22, %v588_v29  ;;  %v596_v53 = vmul.f32 0.2, %v340_v46  ;;  %v353_v29 = vld [vmem:[%s2409_s23 + $0x350] sm:$0xff] }
  0x81   : > { %1595 = vmatprep.mubr.f32.mxu0 %v810_v63  ;;  %v326_v63 = vld [vmem:[%s2409_s23 + $0x278] sm:$0xff]  ;;  %v575_v1 = vmul.f32 0.2, %v319_v58  ;;  %v829_v2 = vmax.f32 %v317_v49, %v573_v56 }
  0x82   : > { %v582_v8 = vmul.f32 0.2, %v326_v63 }
  0x83   : > { %1211 = vmatmul.mubr.f32.gmra.mrb[24].mxu1 %v807_v4  ;;  %v577_v4 = vmul.f32 0.2, %v321_v61  ;;  %v831_v12 = vmax.f32 %v319_v58, %v575_v1  ;;  %v344_v58 = vld [vmem:[%s2409_s23 + $0x308] sm:$0xff] }
  0x84   : > { %1596 = vmatmul.mubr.f32.gmra.mrb[24].mxu0 %v809_v6  ;;  %1215 = vmatprep.mubr.f32.mxu1 %v812_v7  ;;  %v323_v6 = vld [vmem:[%s2409_s23 + $0x260] sm:$0xff]  ;;  %v834_v7 = vmax.f32 %v322_v51, %v578_v60  ;;  %v848_v51 = vmax.f32 %v336_v34, %v592_v41  ;;  %v600_v1 = vmul.f32 0.2, %v344_v58  ;;  %v357_v41 = vld [vmem:[%s2409_s23 + $0x370] sm:$0xff] }
  0x85   : > { %1600 = vmatprep.mubr.f32.mxu0 %v814_v11  ;;  %v330_v11 = vld [vmem:[%s2409_s23 + $0x298] sm:$0xff]  ;;  %v579_v13 = vmul.f32 0.2, %v323_v6  ;;  %v833_v14 = vmax.f32 %v321_v61, %v577_v4 }
  0x86   : > { %v586_v20 = vmul.f32 0.2, %v330_v11 }
  0x87   : > { %1216 = vmatmul.mubr.f32.gmra.mrb[26].mxu1 %v811_v16  ;;  %v581_v16 = vmul.f32 0.2, %v325_v9  ;;  %v835_v24 = vmax.f32 %v323_v6, %v579_v13  ;;  %v348_v6 = vld [vmem:[%s2409_s23 + $0x328] sm:$0xff] }
  0x88   : > { %1601 = vmatmul.mubr.f32.gmra.mrb[26].mxu0 %v813_v18  ;;  %1220 = vmatprep.mubr.f32.mxu1 %v816_v19  ;;  %v327_v18 = vld [vmem:[%s2409_s23 + $0x280] sm:$0xff]  ;;  %v838_v19 = vmax.f32 %v326_v63, %v582_v8  ;;  %v852_v63 = vmax.f32 %v340_v46, %v596_v53  ;;  %v604_v13 = vmul.f32 0.2, %v348_v6  ;;  %v361_v53 = vld [vmem:[%s2409_s23 + $0x390] sm:$0xff] }
  0x89   : > { %1605 = vmatprep.mubr.f32.mxu0 %v818_v23  ;;  %v334_v23 = vld [vmem:[%s2409_s23 + $0x2b8] sm:$0xff]  ;;  %v583_v25 = vmul.f32 0.2, %v327_v18  ;;  %v837_v26 = vmax.f32 %v325_v9, %v581_v16 }
  0x8a   : > { %v590_v32 = vmul.f32 0.2, %v334_v23 }
  0x8b   : > { %1221 = vmatmul.mubr.f32.gmra.mrb[28].mxu1 %v815_v28  ;;  %v585_v28 = vmul.f32 0.2, %v329_v21  ;;  %v839_v36 = vmax.f32 %v327_v18, %v583_v25  ;;  %v352_v18 = vld [vmem:[%s2409_s23 + $0x348] sm:$0xff] }
  0x8c   : > { %1606 = vmatmul.mubr.f32.gmra.mrb[28].mxu0 %v817_v30  ;;  %1225 = vmatprep.mubr.f32.mxu1 %v820_v31  ;;  %v331_v30 = vld [vmem:[%s2409_s23 + $0x2a0] sm:$0xff]  ;;  %v842_v31 = vmax.f32 %v330_v11, %v586_v20  ;;  %v856_v11 = vmax.f32 %v344_v58, %v600_v1  ;;  %v608_v25 = vmul.f32 0.2, %v352_v18  ;;  %v365_v1 = vld [vmem:[%s2409_s23 + $0x3b0] sm:$0xff] }
  0x8d   : > { %1610 = vmatprep.mubr.f32.mxu0 %v822_v35  ;;  %v338_v35 = vld [vmem:[%s2409_s23 + $0x2d8] sm:$0xff]  ;;  %v587_v37 = vmul.f32 0.2, %v331_v30  ;;  %v841_v38 = vmax.f32 %v329_v21, %v585_v28 }
  0x8e   : > { %v594_v44 = vmul.f32 0.2, %v338_v35 }
  0x8f   : > { %1226 = vmatmul.mubr.f32.gmra.mrb[30].mxu1 %v819_v40  ;;  %v589_v40 = vmul.f32 0.2, %v333_v33  ;;  %v843_v48 = vmax.f32 %v331_v30, %v587_v37  ;;  %v356_v30 = vld [vmem:[%s2409_s23 + $0x368] sm:$0xff] }
  0x90   : > { %1611 = vmatmul.mubr.f32.gmra.mrb[30].mxu0 %v821_v42  ;;  %1230 = vmatprep.mubr.f32.mxu1 %v824_v43  ;;  %v335_v42 = vld [vmem:[%s2409_s23 + $0x2c0] sm:$0xff]  ;;  %v846_v43 = vmax.f32 %v334_v23, %v590_v32  ;;  %v860_v23 = vmax.f32 %v348_v6, %v604_v13  ;;  %v612_v37 = vmul.f32 0.2, %v356_v30  ;;  %v369_v13 = vld [vmem:[%s2409_s23 + $0x3d0] sm:$0xff] }
  0x91   : > { %1615 = vmatprep.mubr.f32.mxu0 %v826_v47  ;;  %v342_v47 = vld [vmem:[%s2409_s23 + $0x2f8] sm:$0xff]  ;;  %v591_v49 = vmul.f32 0.2, %v335_v42  ;;  %v845_v50 = vmax.f32 %v333_v33, %v589_v40 }
  0x92   : > { %v598_v56 = vmul.f32 0.2, %v342_v47 }
  0x93   : > { %1231 = vmatmul.mubr.f32.gmra.mrb[32].mxu1 %v823_v52  ;;  %v593_v52 = vmul.f32 0.2, %v337_v45  ;;  %v847_v60 = vmax.f32 %v335_v42, %v591_v49  ;;  %v360_v42 = vld [vmem:[%s2409_s23 + $0x388] sm:$0xff] }
  0x94   : > { %1616 = vmatmul.mubr.f32.gmra.mrb[32].mxu0 %v825_v54  ;;  %1235 = vmatprep.mubr.f32.mxu1 %v828_v55  ;;  %v339_v54 = vld [vmem:[%s2409_s23 + $0x2e0] sm:$0xff]  ;;  %v850_v55 = vmax.f32 %v338_v35, %v594_v44  ;;  %v864_v35 = vmax.f32 %v352_v18, %v608_v25  ;;  %v616_v49 = vmul.f32 0.2, %v360_v42  ;;  %v373_v25 = vld [vmem:[%s2409_s23 + $0x3f0] sm:$0xff] }
  0x95   : > { %1620 = vmatprep.mubr.f32.mxu0 %v830_v59  ;;  %v346_v59 = vld [vmem:[%s2409_s23 + $0x318] sm:$0xff]  ;;  %v595_v61 = vmul.f32 0.2, %v339_v54  ;;  %v849_v62 = vmax.f32 %v337_v45, %v593_v52 }
  0x96   : > { %v602_v4 = vmul.f32 0.2, %v346_v59 }
  0x97   : > { %1236 = vmatmul.mubr.f32.gmra.mrb[34].mxu1 %v827_v0  ;;  %v597_v0 = vmul.f32 0.2, %v341_v57  ;;  %v851_v8 = vmax.f32 %v339_v54, %v595_v61  ;;  %v364_v54 = vld [vmem:[%s2409_s23 + $0x3a8] sm:$0xff] }
  0x98   : > { %1621 = vmatmul.mubr.f32.gmra.mrb[34].mxu0 %v829_v2  ;;  %1240 = vmatprep.mubr.f32.mxu1 %v832_v3  ;;  %v343_v2 = vld [vmem:[%s2409_s23 + $0x300] sm:$0xff]  ;;  %v854_v3 = vmax.f32 %v342_v47, %v598_v56  ;;  %v868_v47 = vmax.f32 %v356_v30, %v612_v37  ;;  %v620_v61 = vmul.f32 0.2, %v364_v54  ;;  %v377_v37 = vld [vmem:[%s2409_s23 + $0x410] sm:$0xff] }
  0x99   : > { %1625 = vmatprep.mubr.f32.mxu0 %v834_v7  ;;  %v350_v7 = vld [vmem:[%s2409_s23 + $0x338] sm:$0xff]  ;;  %v599_v9 = vmul.f32 0.2, %v343_v2  ;;  %v853_v10 = vmax.f32 %v341_v57, %v597_v0 }
  0x9a   : > { %v606_v16 = vmul.f32 0.2, %v350_v7 }
  0x9b   : > { %1241 = vmatmul.mubr.f32.gmra.mrb[36].mxu1 %v831_v12  ;;  %v601_v12 = vmul.f32 0.2, %v345_v5  ;;  %v855_v20 = vmax.f32 %v343_v2, %v599_v9  ;;  %v368_v2 = vld [vmem:[%s2409_s23 + $0x3c8] sm:$0xff] }
  0x9c   : > { %1626 = vmatmul.mubr.f32.gmra.mrb[36].mxu0 %v833_v14  ;;  %1245 = vmatprep.mubr.f32.mxu1 %v836_v15  ;;  %v347_v14 = vld [vmem:[%s2409_s23 + $0x320] sm:$0xff]  ;;  %v858_v15 = vmax.f32 %v346_v59, %v602_v4  ;;  %v872_v59 = vmax.f32 %v360_v42, %v616_v49  ;;  %v624_v9 = vmul.f32 0.2, %v368_v2  ;;  %v381_v49 = vld [vmem:[%s2409_s23 + $0x430] sm:$0xff] }
  0x9d   : > { %1630 = vmatprep.mubr.f32.mxu0 %v838_v19  ;;  %v354_v19 = vld [vmem:[%s2409_s23 + $0x358] sm:$0xff]  ;;  %v603_v21 = vmul.f32 0.2, %v347_v14  ;;  %v857_v22 = vmax.f32 %v345_v5, %v601_v12 }
  0x9e   : > { %v610_v28 = vmul.f32 0.2, %v354_v19 }
  0x9f   : > { %1246 = vmatmul.mubr.f32.gmra.mrb[38].mxu1 %v835_v24  ;;  %v605_v24 = vmul.f32 0.2, %v349_v17  ;;  %v859_v32 = vmax.f32 %v347_v14, %v603_v21  ;;  %v372_v14 = vld [vmem:[%s2409_s23 + $0x3e8] sm:$0xff] }
  0xa0   : > { %1631 = vmatmul.mubr.f32.gmra.mrb[38].mxu0 %v837_v26  ;;  %1250 = vmatprep.mubr.f32.mxu1 %v840_v27  ;;  %v351_v26 = vld [vmem:[%s2409_s23 + $0x340] sm:$0xff]  ;;  %v862_v27 = vmax.f32 %v350_v7, %v606_v16  ;;  %v876_v7 = vmax.f32 %v364_v54, %v620_v61  ;;  %v628_v21 = vmul.f32 0.2, %v372_v14  ;;  %v385_v61 = vld [vmem:[%s2409_s23 + $0x450] sm:$0xff] }
  0xa1   : > { %1635 = vmatprep.mubr.f32.mxu0 %v842_v31  ;;  %v358_v31 = vld [vmem:[%s2409_s23 + $0x378] sm:$0xff]  ;;  %v607_v33 = vmul.f32 0.2, %v351_v26  ;;  %v861_v34 = vmax.f32 %v349_v17, %v605_v24 }
  0xa2   : > { %v614_v40 = vmul.f32 0.2, %v358_v31 }
  0xa3   : > { %1251 = vmatmul.mubr.f32.gmra.mrb[40].mxu1 %v839_v36  ;;  %v609_v36 = vmul.f32 0.2, %v353_v29  ;;  %v863_v44 = vmax.f32 %v351_v26, %v607_v33  ;;  %v376_v26 = vld [vmem:[%s2409_s23 + $0x408] sm:$0xff] }
  0xa4   : > { %1636 = vmatmul.mubr.f32.gmra.mrb[40].mxu0 %v841_v38  ;;  %1255 = vmatprep.mubr.f32.mxu1 %v844_v39  ;;  %v355_v38 = vld [vmem:[%s2409_s23 + $0x360] sm:$0xff]  ;;  %v866_v39 = vmax.f32 %v354_v19, %v610_v28  ;;  %v880_v19 = vmax.f32 %v368_v2, %v624_v9  ;;  %v632_v33 = vmul.f32 0.2, %v376_v26  ;;  %v389_v9 = vld [vmem:[%s2409_s23 + $0x470] sm:$0xff] }
  0xa5   : > { %1640 = vmatprep.mubr.f32.mxu0 %v846_v43  ;;  %v362_v43 = vld [vmem:[%s2409_s23 + $0x398] sm:$0xff]  ;;  %v611_v45 = vmul.f32 0.2, %v355_v38  ;;  %v865_v46 = vmax.f32 %v353_v29, %v609_v36 }
  0xa6   : > { %v618_v52 = vmul.f32 0.2, %v362_v43 }
  0xa7   : > { %1256 = vmatmul.mubr.f32.gmra.mrb[42].mxu1 %v843_v48  ;;  %v613_v48 = vmul.f32 0.2, %v357_v41  ;;  %v867_v56 = vmax.f32 %v355_v38, %v611_v45  ;;  %v380_v38 = vld [vmem:[%s2409_s23 + $0x428] sm:$0xff] }
  0xa8   : > { %1641 = vmatmul.mubr.f32.gmra.mrb[42].mxu0 %v845_v50  ;;  %1260 = vmatprep.mubr.f32.mxu1 %v848_v51  ;;  %v359_v50 = vld [vmem:[%s2409_s23 + $0x380] sm:$0xff]  ;;  %v870_v51 = vmax.f32 %v358_v31, %v614_v40  ;;  %v884_v31 = vmax.f32 %v372_v14, %v628_v21  ;;  %v636_v45 = vmul.f32 0.2, %v380_v38  ;;  %v393_v21 = vld [vmem:[%s2409_s23 + $0x490] sm:$0xff] }
  0xa9   : > { %1645 = vmatprep.mubr.f32.mxu0 %v850_v55  ;;  %v366_v55 = vld [vmem:[%s2409_s23 + $0x3b8] sm:$0xff]  ;;  %v615_v57 = vmul.f32 0.2, %v359_v50  ;;  %v869_v58 = vmax.f32 %v357_v41, %v613_v48 }
  0xaa   : > { %v622_v0 = vmul.f32 0.2, %v366_v55 }
  0xab   : > { %1261 = vmatmul.mubr.f32.gmra.mrb[44].mxu1 %v847_v60  ;;  %v617_v60 = vmul.f32 0.2, %v361_v53  ;;  %v871_v4 = vmax.f32 %v359_v50, %v615_v57  ;;  %v384_v50 = vld [vmem:[%s2409_s23 + $0x448] sm:$0xff] }
  0xac   : > { %1646 = vmatmul.mubr.f32.gmra.mrb[44].mxu0 %v849_v62  ;;  %1265 = vmatprep.mubr.f32.mxu1 %v852_v63  ;;  %v363_v62 = vld [vmem:[%s2409_s23 + $0x3a0] sm:$0xff]  ;;  %v874_v63 = vmax.f32 %v362_v43, %v618_v52  ;;  %v888_v43 = vmax.f32 %v376_v26, %v632_v33  ;;  %v640_v57 = vmul.f32 0.2, %v384_v50  ;;  %v397_v33 = vld [vmem:[%s2409_s23 + $0x4b0] sm:$0xff] }
  0xad   : > { %1650 = vmatprep.mubr.f32.mxu0 %v854_v3  ;;  %v370_v3 = vld [vmem:[%s2409_s23 + $0x3d8] sm:$0xff]  ;;  %v619_v5 = vmul.f32 0.2, %v363_v62  ;;  %v873_v6 = vmax.f32 %v361_v53, %v617_v60 }
  0xae   : > { %v626_v12 = vmul.f32 0.2, %v370_v3 }
  0xaf   : > { %1266 = vmatmul.mubr.f32.gmra.mrb[46].mxu1 %v851_v8  ;;  %v621_v8 = vmul.f32 0.2, %v365_v1  ;;  %v875_v16 = vmax.f32 %v363_v62, %v619_v5  ;;  %v388_v62 = vld [vmem:[%s2409_s23 + $0x468] sm:$0xff] }
  0xb0   : > { %1651 = vmatmul.mubr.f32.gmra.mrb[46].mxu0 %v853_v10  ;;  %1270 = vmatprep.mubr.f32.mxu1 %v856_v11  ;;  %v367_v10 = vld [vmem:[%s2409_s23 + $0x3c0] sm:$0xff]  ;;  %v878_v11 = vmax.f32 %v366_v55, %v622_v0  ;;  %v892_v55 = vmax.f32 %v380_v38, %v636_v45  ;;  %v644_v5 = vmul.f32 0.2, %v388_v62  ;;  %v401_v45 = vld [vmem:[%s2409_s23 + $0x4d0] sm:$0xff] }
  0xb1   : > { %1655 = vmatprep.mubr.f32.mxu0 %v858_v15  ;;  %v374_v15 = vld [vmem:[%s2409_s23 + $0x3f8] sm:$0xff]  ;;  %v623_v17 = vmul.f32 0.2, %v367_v10  ;;  %v877_v18 = vmax.f32 %v365_v1, %v621_v8 }
  0xb2   : > { %v630_v24 = vmul.f32 0.2, %v374_v15 }
  0xb3   : > { %1271 = vmatmul.mubr.f32.gmra.mrb[48].mxu1 %v855_v20  ;;  %v625_v20 = vmul.f32 0.2, %v369_v13  ;;  %v879_v28 = vmax.f32 %v367_v10, %v623_v17  ;;  %v392_v10 = vld [vmem:[%s2409_s23 + $0x488] sm:$0xff] }
  0xb4   : > { %1656 = vmatmul.mubr.f32.gmra.mrb[48].mxu0 %v857_v22  ;;  %1275 = vmatprep.mubr.f32.mxu1 %v860_v23  ;;  %v371_v22 = vld [vmem:[%s2409_s23 + $0x3e0] sm:$0xff]  ;;  %v882_v23 = vmax.f32 %v370_v3, %v626_v12  ;;  %v896_v3 = vmax.f32 %v384_v50, %v640_v57  ;;  %v648_v17 = vmul.f32 0.2, %v392_v10  ;;  %v405_v57 = vld [vmem:[%s2409_s23 + $0x4f0] sm:$0xff] }
  0xb5   : > { %1660 = vmatprep.mubr.f32.mxu0 %v862_v27  ;;  %v378_v27 = vld [vmem:[%s2409_s23 + $0x418] sm:$0xff]  ;;  %v627_v29 = vmul.f32 0.2, %v371_v22  ;;  %v881_v30 = vmax.f32 %v369_v13, %v625_v20 }
  0xb6   : > { %v634_v36 = vmul.f32 0.2, %v378_v27 }
  0xb7   : > { %1276 = vmatmul.mubr.f32.gmra.mrb[50].mxu1 %v859_v32  ;;  %v629_v32 = vmul.f32 0.2, %v373_v25  ;;  %v883_v40 = vmax.f32 %v371_v22, %v627_v29  ;;  %v396_v22 = vld [vmem:[%s2409_s23 + $0x4a8] sm:$0xff] }
  0xb8   : > { %1661 = vmatmul.mubr.f32.gmra.mrb[50].mxu0 %v861_v34  ;;  %1280 = vmatprep.mubr.f32.mxu1 %v864_v35  ;;  %v375_v34 = vld [vmem:[%s2409_s23 + $0x400] sm:$0xff]  ;;  %v886_v35 = vmax.f32 %v374_v15, %v630_v24  ;;  %v900_v15 = vmax.f32 %v388_v62, %v644_v5  ;;  %v652_v29 = vmul.f32 0.2, %v396_v22  ;;  %v409_v5 = vld [vmem:[%s2409_s23 + $0x510] sm:$0xff] }
  0xb9   : > { %1665 = vmatprep.mubr.f32.mxu0 %v866_v39  ;;  %v382_v39 = vld [vmem:[%s2409_s23 + $0x438] sm:$0xff]  ;;  %v631_v41 = vmul.f32 0.2, %v375_v34  ;;  %v885_v42 = vmax.f32 %v373_v25, %v629_v32 }
  0xba   : > { %v638_v48 = vmul.f32 0.2, %v382_v39 }
  0xbb   : > { %1281 = vmatmul.mubr.f32.gmra.mrb[52].mxu1 %v863_v44  ;;  %v633_v44 = vmul.f32 0.2, %v377_v37  ;;  %v887_v52 = vmax.f32 %v375_v34, %v631_v41  ;;  %v400_v34 = vld [vmem:[%s2409_s23 + $0x4c8] sm:$0xff] }
  0xbc   : > { %1666 = vmatmul.mubr.f32.gmra.mrb[52].mxu0 %v865_v46  ;;  %1285 = vmatprep.mubr.f32.mxu1 %v868_v47  ;;  %v379_v46 = vld [vmem:[%s2409_s23 + $0x420] sm:$0xff]  ;;  %v890_v47 = vmax.f32 %v378_v27, %v634_v36  ;;  %v904_v27 = vmax.f32 %v392_v10, %v648_v17  ;;  %v656_v41 = vmul.f32 0.2, %v400_v34  ;;  %v413_v17 = vld [vmem:[%s2409_s23 + $0x530] sm:$0xff] }
  0xbd   : > { %1670 = vmatprep.mubr.f32.mxu0 %v870_v51  ;;  %v386_v51 = vld [vmem:[%s2409_s23 + $0x458] sm:$0xff]  ;;  %v635_v53 = vmul.f32 0.2, %v379_v46  ;;  %v889_v54 = vmax.f32 %v377_v37, %v633_v44 }
  0xbe   : > { %v642_v60 = vmul.f32 0.2, %v386_v51 }
  0xbf   : > { %1286 = vmatmul.mubr.f32.gmra.mrb[54].mxu1 %v867_v56  ;;  %v637_v56 = vmul.f32 0.2, %v381_v49  ;;  %v891_v0 = vmax.f32 %v379_v46, %v635_v53  ;;  %v404_v46 = vld [vmem:[%s2409_s23 + $0x4e8] sm:$0xff] }
  0xc0   : > { %1671 = vmatmul.mubr.f32.gmra.mrb[54].mxu0 %v869_v58  ;;  %1290 = vmatprep.mubr.f32.mxu1 %v872_v59  ;;  %v383_v58 = vld [vmem:[%s2409_s23 + $0x440] sm:$0xff]  ;;  %v894_v59 = vmax.f32 %v382_v39, %v638_v48  ;;  %v908_v39 = vmax.f32 %v396_v22, %v652_v29  ;;  %v660_v53 = vmul.f32 0.2, %v404_v46  ;;  %v417_v29 = vld [vmem:[%s2409_s23 + $0x550] sm:$0xff] }
  0xc1   : > { %1675 = vmatprep.mubr.f32.mxu0 %v874_v63  ;;  %v390_v63 = vld [vmem:[%s2409_s23 + $0x478] sm:$0xff]  ;;  %v639_v1 = vmul.f32 0.2, %v383_v58  ;;  %v893_v2 = vmax.f32 %v381_v49, %v637_v56 }
  0xc2   : > { %v646_v8 = vmul.f32 0.2, %v390_v63 }
  0xc3   : > { %1291 = vmatmul.mubr.f32.gmra.mrb[56].mxu1 %v871_v4  ;;  %v641_v4 = vmul.f32 0.2, %v385_v61  ;;  %v895_v12 = vmax.f32 %v383_v58, %v639_v1  ;;  %v408_v58 = vld [vmem:[%s2409_s23 + $0x508] sm:$0xff] }
  0xc4   : > { %1676 = vmatmul.mubr.f32.gmra.mrb[56].mxu0 %v873_v6  ;;  %1295 = vmatprep.mubr.f32.mxu1 %v876_v7  ;;  %v387_v6 = vld [vmem:[%s2409_s23 + $0x460] sm:$0xff]  ;;  %v898_v7 = vmax.f32 %v386_v51, %v642_v60  ;;  %v912_v51 = vmax.f32 %v400_v34, %v656_v41  ;;  %v664_v1 = vmul.f32 0.2, %v408_v58  ;;  %v421_v41 = vld [vmem:[%s2409_s23 + $0x570] sm:$0xff] }
  0xc5   : > { %1680 = vmatprep.mubr.f32.mxu0 %v878_v11  ;;  %v394_v11 = vld [vmem:[%s2409_s23 + $0x498] sm:$0xff]  ;;  %v643_v13 = vmul.f32 0.2, %v387_v6  ;;  %v897_v14 = vmax.f32 %v385_v61, %v641_v4 }
  0xc6   : > { %v650_v20 = vmul.f32 0.2, %v394_v11 }
  0xc7   : > { %1296 = vmatmul.mubr.f32.gmra.mrb[58].mxu1 %v875_v16  ;;  %v645_v16 = vmul.f32 0.2, %v389_v9  ;;  %v899_v24 = vmax.f32 %v387_v6, %v643_v13  ;;  %v412_v6 = vld [vmem:[%s2409_s23 + $0x528] sm:$0xff] }
  0xc8   : > { %1681 = vmatmul.mubr.f32.gmra.mrb[58].mxu0 %v877_v18  ;;  %1300 = vmatprep.mubr.f32.mxu1 %v880_v19  ;;  %v391_v18 = vld [vmem:[%s2409_s23 + $0x480] sm:$0xff]  ;;  %v902_v19 = vmax.f32 %v390_v63, %v646_v8  ;;  %v916_v63 = vmax.f32 %v404_v46, %v660_v53  ;;  %v668_v13 = vmul.f32 0.2, %v412_v6  ;;  %v425_v53 = vld [vmem:[%s2409_s23 + $0x590] sm:$0xff] }
  0xc9   : > { %1685 = vmatprep.mubr.f32.mxu0 %v882_v23  ;;  %v398_v23 = vld [vmem:[%s2409_s23 + $0x4b8] sm:$0xff]  ;;  %v647_v25 = vmul.f32 0.2, %v391_v18  ;;  %v901_v26 = vmax.f32 %v389_v9, %v645_v16 }
  0xca   : > { %v654_v32 = vmul.f32 0.2, %v398_v23 }
  0xcb   : > { %1301 = vmatmul.mubr.f32.gmra.mrb[60].mxu1 %v879_v28  ;;  %v649_v28 = vmul.f32 0.2, %v393_v21  ;;  %v903_v36 = vmax.f32 %v391_v18, %v647_v25  ;;  %v416_v18 = vld [vmem:[%s2409_s23 + $0x548] sm:$0xff] }
  0xcc   : > { %1686 = vmatmul.mubr.f32.gmra.mrb[60].mxu0 %v881_v30  ;;  %1305 = vmatprep.mubr.f32.mxu1 %v884_v31  ;;  %v395_v30 = vld [vmem:[%s2409_s23 + $0x4a0] sm:$0xff]  ;;  %v906_v31 = vmax.f32 %v394_v11, %v650_v20  ;;  %v920_v11 = vmax.f32 %v408_v58, %v664_v1  ;;  %v672_v25 = vmul.f32 0.2, %v416_v18  ;;  %v429_v1 = vld [vmem:[%s2409_s23 + $0x5b0] sm:$0xff] }
  0xcd   : > { %1690 = vmatprep.mubr.f32.mxu0 %v886_v35  ;;  %v402_v35 = vld [vmem:[%s2409_s23 + $0x4d8] sm:$0xff]  ;;  %v651_v37 = vmul.f32 0.2, %v395_v30  ;;  %v905_v38 = vmax.f32 %v393_v21, %v649_v28 }
  0xce   : > { %v658_v44 = vmul.f32 0.2, %v402_v35 }
  0xcf   : > { %1306 = vmatmul.mubr.f32.gmra.mrb[62].mxu1 %v883_v40  ;;  %v653_v40 = vmul.f32 0.2, %v397_v33  ;;  %v907_v48 = vmax.f32 %v395_v30, %v651_v37  ;;  %v420_v30 = vld [vmem:[%s2409_s23 + $0x568] sm:$0xff] }
  0xd0   : > { %1691 = vmatmul.mubr.f32.gmra.mrb[62].mxu0 %v885_v42  ;;  %1310 = vmatprep.mubr.f32.mxu1 %v888_v43  ;;  %v399_v42 = vld [vmem:[%s2409_s23 + $0x4c0] sm:$0xff]  ;;  %v910_v43 = vmax.f32 %v398_v23, %v654_v32  ;;  %v924_v23 = vmax.f32 %v412_v6, %v668_v13  ;;  %v676_v37 = vmul.f32 0.2, %v420_v30  ;;  %v433_v13 = vld [vmem:[%s2409_s23 + $0x5d0] sm:$0xff] }
  0xd1   : > { %1695 = vmatprep.mubr.f32.mxu0 %v890_v47  ;;  %v406_v47 = vld [vmem:[%s2409_s23 + $0x4f8] sm:$0xff]  ;;  %v655_v49 = vmul.f32 0.2, %v399_v42  ;;  %v909_v50 = vmax.f32 %v397_v33, %v653_v40 }
  0xd2   : > { %v662_v56 = vmul.f32 0.2, %v406_v47 }
  0xd3   : > { %1311 = vmatmul.mubr.f32.gmra.mrb[64].mxu1 %v887_v52  ;;  %v657_v52 = vmul.f32 0.2, %v401_v45  ;;  %v911_v60 = vmax.f32 %v399_v42, %v655_v49  ;;  %v424_v42 = vld [vmem:[%s2409_s23 + $0x588] sm:$0xff] }
  0xd4   : > { %1696 = vmatmul.mubr.f32.gmra.mrb[64].mxu0 %v889_v54  ;;  %1315 = vmatprep.mubr.f32.mxu1 %v892_v55  ;;  %v403_v54 = vld [vmem:[%s2409_s23 + $0x4e0] sm:$0xff]  ;;  %v914_v55 = vmax.f32 %v402_v35, %v658_v44  ;;  %v928_v35 = vmax.f32 %v416_v18, %v672_v25  ;;  %v680_v49 = vmul.f32 0.2, %v424_v42  ;;  %v437_v25 = vld [vmem:[%s2409_s23 + $0x5f0] sm:$0xff] }
  0xd5   : > { %1700 = vmatprep.mubr.f32.mxu0 %v894_v59  ;;  %v410_v59 = vld [vmem:[%s2409_s23 + $0x518] sm:$0xff]  ;;  %v659_v61 = vmul.f32 0.2, %v403_v54  ;;  %v913_v62 = vmax.f32 %v401_v45, %v657_v52 }
  0xd6   : > { %v666_v4 = vmul.f32 0.2, %v410_v59 }
  0xd7   : > { %1316 = vmatmul.mubr.f32.gmra.mrb[66].mxu1 %v891_v0  ;;  %v661_v0 = vmul.f32 0.2, %v405_v57  ;;  %v915_v8 = vmax.f32 %v403_v54, %v659_v61  ;;  %v428_v54 = vld [vmem:[%s2409_s23 + $0x5a8] sm:$0xff] }
  0xd8   : > { %1701 = vmatmul.mubr.f32.gmra.mrb[66].mxu0 %v893_v2  ;;  %1320 = vmatprep.mubr.f32.mxu1 %v896_v3  ;;  %v407_v2 = vld [vmem:[%s2409_s23 + $0x500] sm:$0xff]  ;;  %v918_v3 = vmax.f32 %v406_v47, %v662_v56  ;;  %v932_v47 = vmax.f32 %v420_v30, %v676_v37  ;;  %v684_v61 = vmul.f32 0.2, %v428_v54  ;;  %v441_v37 = vld [vmem:[%s2409_s23 + $0x610] sm:$0xff] }
  0xd9   : > { %1705 = vmatprep.mubr.f32.mxu0 %v898_v7  ;;  %v414_v7 = vld [vmem:[%s2409_s23 + $0x538] sm:$0xff]  ;;  %v663_v9 = vmul.f32 0.2, %v407_v2  ;;  %v917_v10 = vmax.f32 %v405_v57, %v661_v0 }
  0xda   : > { %v670_v16 = vmul.f32 0.2, %v414_v7 }
  0xdb   : > { %1321 = vmatmul.mubr.f32.gmra.mrb[68].mxu1 %v895_v12  ;;  %v665_v12 = vmul.f32 0.2, %v409_v5  ;;  %v919_v20 = vmax.f32 %v407_v2, %v663_v9  ;;  %v432_v2 = vld [vmem:[%s2409_s23 + $0x5c8] sm:$0xff] }
  0xdc   : > { %1706 = vmatmul.mubr.f32.gmra.mrb[68].mxu0 %v897_v14  ;;  %1325 = vmatprep.mubr.f32.mxu1 %v900_v15  ;;  %v411_v14 = vld [vmem:[%s2409_s23 + $0x520] sm:$0xff]  ;;  %v922_v15 = vmax.f32 %v410_v59, %v666_v4  ;;  %v936_v59 = vmax.f32 %v424_v42, %v680_v49  ;;  %v688_v9 = vmul.f32 0.2, %v432_v2  ;;  %v445_v49 = vld [vmem:[%s2409_s23 + $0x630] sm:$0xff] }
  0xdd   : > { %1710 = vmatprep.mubr.f32.mxu0 %v902_v19  ;;  %v418_v19 = vld [vmem:[%s2409_s23 + $0x558] sm:$0xff]  ;;  %v667_v21 = vmul.f32 0.2, %v411_v14  ;;  %v921_v22 = vmax.f32 %v409_v5, %v665_v12 }
  0xde   : > { %v674_v28 = vmul.f32 0.2, %v418_v19 }
  0xdf   : > { %1326 = vmatmul.mubr.f32.gmra.mrb[70].mxu1 %v899_v24  ;;  %v669_v24 = vmul.f32 0.2, %v413_v17  ;;  %v923_v32 = vmax.f32 %v411_v14, %v667_v21  ;;  %v436_v14 = vld [vmem:[%s2409_s23 + $0x5e8] sm:$0xff] }
  0xe0   : > { %1711 = vmatmul.mubr.f32.gmra.mrb[70].mxu0 %v901_v26  ;;  %1330 = vmatprep.mubr.f32.mxu1 %v904_v27  ;;  %v415_v26 = vld [vmem:[%s2409_s23 + $0x540] sm:$0xff]  ;;  %v926_v27 = vmax.f32 %v414_v7, %v670_v16  ;;  %v940_v7 = vmax.f32 %v428_v54, %v684_v61  ;;  %v692_v21 = vmul.f32 0.2, %v436_v14  ;;  %v449_v61 = vld [vmem:[%s2409_s23 + $0x650] sm:$0xff] }
  0xe1   : > { %1715 = vmatprep.mubr.f32.mxu0 %v906_v31  ;;  %v422_v31 = vld [vmem:[%s2409_s23 + $0x578] sm:$0xff]  ;;  %v671_v33 = vmul.f32 0.2, %v415_v26  ;;  %v925_v34 = vmax.f32 %v413_v17, %v669_v24 }
  0xe2   : > { %v678_v40 = vmul.f32 0.2, %v422_v31 }
  0xe3   : > { %1331 = vmatmul.mubr.f32.gmra.mrb[72].mxu1 %v903_v36  ;;  %v673_v36 = vmul.f32 0.2, %v417_v29  ;;  %v927_v44 = vmax.f32 %v415_v26, %v671_v33  ;;  %v440_v26 = vld [vmem:[%s2409_s23 + $0x608] sm:$0xff] }
  0xe4   : > { %1716 = vmatmul.mubr.f32.gmra.mrb[72].mxu0 %v905_v38  ;;  %1335 = vmatprep.mubr.f32.mxu1 %v908_v39  ;;  %v419_v38 = vld [vmem:[%s2409_s23 + $0x560] sm:$0xff]  ;;  %v930_v39 = vmax.f32 %v418_v19, %v674_v28  ;;  %v944_v19 = vmax.f32 %v432_v2, %v688_v9  ;;  %v696_v33 = vmul.f32 0.2, %v440_v26  ;;  %v453_v9 = vld [vmem:[%s2409_s23 + $0x670] sm:$0xff] }
  0xe5   : > { %1720 = vmatprep.mubr.f32.mxu0 %v910_v43  ;;  %v426_v43 = vld [vmem:[%s2409_s23 + $0x598] sm:$0xff]  ;;  %v675_v45 = vmul.f32 0.2, %v419_v38  ;;  %v929_v46 = vmax.f32 %v417_v29, %v673_v36 }
  0xe6   : > { %v682_v52 = vmul.f32 0.2, %v426_v43 }
  0xe7   : > { %1336 = vmatmul.mubr.f32.gmra.mrb[74].mxu1 %v907_v48  ;;  %v677_v48 = vmul.f32 0.2, %v421_v41  ;;  %v931_v56 = vmax.f32 %v419_v38, %v675_v45  ;;  %v444_v38 = vld [vmem:[%s2409_s23 + $0x628] sm:$0xff] }
  0xe8   : > { %1721 = vmatmul.mubr.f32.gmra.mrb[74].mxu0 %v909_v50  ;;  %1340 = vmatprep.mubr.f32.mxu1 %v912_v51  ;;  %v423_v50 = vld [vmem:[%s2409_s23 + $0x580] sm:$0xff]  ;;  %v934_v51 = vmax.f32 %v422_v31, %v678_v40  ;;  %v948_v31 = vmax.f32 %v436_v14, %v692_v21  ;;  %v700_v45 = vmul.f32 0.2, %v444_v38  ;;  %v457_v21 = vld [vmem:[%s2409_s23 + $0x690] sm:$0xff] }
  0xe9   : > { %1725 = vmatprep.mubr.f32.mxu0 %v914_v55  ;;  %v430_v55 = vld [vmem:[%s2409_s23 + $0x5b8] sm:$0xff]  ;;  %v679_v57 = vmul.f32 0.2, %v423_v50  ;;  %v933_v58 = vmax.f32 %v421_v41, %v677_v48 }
  0xea   : > { %v686_v0 = vmul.f32 0.2, %v430_v55 }
  0xeb   : > { %1341 = vmatmul.mubr.f32.gmra.mrb[76].mxu1 %v911_v60  ;;  %v681_v60 = vmul.f32 0.2, %v425_v53  ;;  %v935_v4 = vmax.f32 %v423_v50, %v679_v57  ;;  %v448_v50 = vld [vmem:[%s2409_s23 + $0x648] sm:$0xff] }
  0xec   : > { %1726 = vmatmul.mubr.f32.gmra.mrb[76].mxu0 %v913_v62  ;;  %1345 = vmatprep.mubr.f32.mxu1 %v916_v63  ;;  %v427_v62 = vld [vmem:[%s2409_s23 + $0x5a0] sm:$0xff]  ;;  %v938_v63 = vmax.f32 %v426_v43, %v682_v52  ;;  %v952_v43 = vmax.f32 %v440_v26, %v696_v33  ;;  %v704_v57 = vmul.f32 0.2, %v448_v50  ;;  %v461_v33 = vld [vmem:[%s2409_s23 + $0x6b0] sm:$0xff] }
  0xed   : > { %1730 = vmatprep.mubr.f32.mxu0 %v918_v3  ;;  %v434_v3 = vld [vmem:[%s2409_s23 + $0x5d8] sm:$0xff]  ;;  %v683_v5 = vmul.f32 0.2, %v427_v62  ;;  %v937_v6 = vmax.f32 %v425_v53, %v681_v60 }
  0xee   : > { %v690_v12 = vmul.f32 0.2, %v434_v3 }
  0xef   : > { %1346 = vmatmul.mubr.f32.gmra.mrb[78].mxu1 %v915_v8  ;;  %v685_v8 = vmul.f32 0.2, %v429_v1  ;;  %v939_v16 = vmax.f32 %v427_v62, %v683_v5  ;;  %v452_v62 = vld [vmem:[%s2409_s23 + $0x668] sm:$0xff] }
  0xf0   : > { %1731 = vmatmul.mubr.f32.gmra.mrb[78].mxu0 %v917_v10  ;;  %1350 = vmatprep.mubr.f32.mxu1 %v920_v11  ;;  %v431_v10 = vld [vmem:[%s2409_s23 + $0x5c0] sm:$0xff]  ;;  %v942_v11 = vmax.f32 %v430_v55, %v686_v0  ;;  %v956_v55 = vmax.f32 %v444_v38, %v700_v45  ;;  %v708_v5 = vmul.f32 0.2, %v452_v62  ;;  %v465_v45 = vld [vmem:[%s2409_s23 + $0x6d0] sm:$0xff] }
  0xf1   : > { %1735 = vmatprep.mubr.f32.mxu0 %v922_v15  ;;  %v438_v15 = vld [vmem:[%s2409_s23 + $0x5f8] sm:$0xff]  ;;  %v687_v17 = vmul.f32 0.2, %v431_v10  ;;  %v941_v18 = vmax.f32 %v429_v1, %v685_v8 }
  0xf2   : > { %v694_v24 = vmul.f32 0.2, %v438_v15 }
  0xf3   : > { %1351 = vmatmul.mubr.f32.gmra.mrb[80].mxu1 %v919_v20  ;;  %v689_v20 = vmul.f32 0.2, %v433_v13  ;;  %v943_v28 = vmax.f32 %v431_v10, %v687_v17  ;;  %v456_v10 = vld [vmem:[%s2409_s23 + $0x688] sm:$0xff] }
  0xf4   : > { %1736 = vmatmul.mubr.f32.gmra.mrb[80].mxu0 %v921_v22  ;;  %1355 = vmatprep.mubr.f32.mxu1 %v924_v23  ;;  %v435_v22 = vld [vmem:[%s2409_s23 + $0x5e0] sm:$0xff]  ;;  %v946_v23 = vmax.f32 %v434_v3, %v690_v12  ;;  %v960_v3 = vmax.f32 %v448_v50, %v704_v57  ;;  %v712_v17 = vmul.f32 0.2, %v456_v10 }
  0xf5   : > { %1740 = vmatprep.mubr.f32.mxu0 %v926_v27  ;;  %v442_v27 = vld [vmem:[%s2409_s23 + $0x618] sm:$0xff]  ;;  %v691_v29 = vmul.f32 0.2, %v435_v22  ;;  %v945_v30 = vmax.f32 %v433_v13, %v689_v20 }
  0xf6   : > { %v698_v36 = vmul.f32 0.2, %v442_v27 }
  0xf7   : > { %1356 = vmatmul.mubr.f32.gmra.mrb[82].mxu1 %v923_v32  ;;  %v693_v32 = vmul.f32 0.2, %v437_v25  ;;  %v947_v40 = vmax.f32 %v435_v22, %v691_v29  ;;  %v460_v22 = vld [vmem:[%s2409_s23 + $0x6a8] sm:$0xff] }
  0xf8   : > { %1741 = vmatmul.mubr.f32.gmra.mrb[82].mxu0 %v925_v34  ;;  %1360 = vmatprep.mubr.f32.mxu1 %v928_v35  ;;  %v439_v34 = vld [vmem:[%s2409_s23 + $0x600] sm:$0xff]  ;;  %v950_v35 = vmax.f32 %v438_v15, %v694_v24  ;;  %v964_v15 = vmax.f32 %v452_v62, %v708_v5  ;;  %v716_v29 = vmul.f32 0.2, %v460_v22 }
  0xf9   : > { %1745 = vmatprep.mubr.f32.mxu0 %v930_v39  ;;  %v446_v39 = vld [vmem:[%s2409_s23 + $0x638] sm:$0xff]  ;;  %v695_v41 = vmul.f32 0.2, %v439_v34  ;;  %v949_v42 = vmax.f32 %v437_v25, %v693_v32 }
  0xfa   : > { %v702_v48 = vmul.f32 0.2, %v446_v39 }
  0xfb   : > { %1361 = vmatmul.mubr.f32.gmra.mrb[84].mxu1 %v927_v44  ;;  %v697_v44 = vmul.f32 0.2, %v441_v37  ;;  %v951_v52 = vmax.f32 %v439_v34, %v695_v41  ;;  %v464_v34 = vld [vmem:[%s2409_s23 + $0x6c8] sm:$0xff] }
  0xfc   : > { %1746 = vmatmul.mubr.f32.gmra.mrb[84].mxu0 %v929_v46  ;;  %1365 = vmatprep.mubr.f32.mxu1 %v932_v47  ;;  %v443_v46 = vld [vmem:[%s2409_s23 + $0x620] sm:$0xff]  ;;  %v954_v47 = vmax.f32 %v442_v27, %v698_v36  ;;  %v968_v27 = vmax.f32 %v456_v10, %v712_v17  ;;  %v720_v41 = vmul.f32 0.2, %v464_v34 }
  0xfd   : > { %1750 = vmatprep.mubr.f32.mxu0 %v934_v51  ;;  %v450_v51 = vld [vmem:[%s2409_s23 + $0x658] sm:$0xff]  ;;  %v699_v53 = vmul.f32 0.2, %v443_v46  ;;  %v953_v54 = vmax.f32 %v441_v37, %v697_v44 }
  0xfe   : > { %v706_v60 = vmul.f32 0.2, %v450_v51 }
  0xff   : > { %1366 = vmatmul.mubr.f32.gmra.mrb[86].mxu1 %v931_v56  ;;  %v701_v56 = vmul.f32 0.2, %v445_v49  ;;  %v955_v0 = vmax.f32 %v443_v46, %v699_v53  ;;  %v468_v46 = vld [vmem:[%s2409_s23 + $0x6e8] sm:$0xff]  ;;  %v721_v53 = vmul.f32 0.2, %v465_v45 }
 0x100   : > { %1751 = vmatmul.mubr.f32.gmra.mrb[86].mxu0 %v933_v58  ;;  %1370 = vmatprep.mubr.f32.mxu1 %v936_v59  ;;  %v447_v58 = vld [vmem:[%s2409_s23 + $0x640] sm:$0xff]  ;;  %v958_v59 = vmax.f32 %v446_v39, %v702_v48  ;;  %v972_v39 = vmax.f32 %v460_v22, %v716_v29 }
 0x101   : > { %1755 = vmatprep.mubr.f32.mxu0 %v938_v63  ;;  %v454_v63 = vld [vmem:[%s2409_s23 + $0x678] sm:$0xff]  ;;  %v703_v1 = vmul.f32 0.2, %v447_v58  ;;  %v957_v2 = vmax.f32 %v445_v49, %v701_v56  ;;  %v2702_v48 = vld [vmem:[%s2695_s26] ss:$0 sm:$0xff] }
 0x102   : > { %v710_v8 = vmul.f32 0.2, %v454_v63 }
 0x103   : > { %1371 = vmatmul.mubr.f32.gmra.mrb[88].mxu1 %v935_v4  ;;  %v705_v4 = vmul.f32 0.2, %v449_v61  ;;  %v959_v12 = vmax.f32 %v447_v58, %v703_v1  ;;  %v469_v58 = vld [vmem:[%s2409_s23 + $0x6f0] sm:$0xff] }
 0x104   : > { %1756 = vmatmul.mubr.f32.gmra.mrb[88].mxu0 %v937_v6  ;;  %1375 = vmatprep.mubr.f32.mxu1 %v940_v7  ;;  %v451_v6 = vld [vmem:[%s2409_s23 + $0x660] sm:$0xff]  ;;  %v962_v7 = vmax.f32 %v450_v51, %v706_v60 }
 0x105   : > { %1760 = vmatprep.mubr.f32.mxu0 %v942_v11  ;;  %v458_v11 = vld [vmem:[%s2409_s23 + $0x698] sm:$0xff]  ;;  %v707_v13 = vmul.f32 0.2, %v451_v6  ;;  %v961_v14 = vmax.f32 %v449_v61, %v705_v4  ;;  %v977_v4 = vmax.f32 %v465_v45, %v721_v53 }
 0x106   : > { %v714_v20 = vmul.f32 0.2, %v458_v11  ;;  %v2708_v61 = vld [vmem:[%s2409_s23 + $0x718] sm:$0xff] }
 0x107   : > { %1376 = vmatmul.mubr.f32.gmra.mrb[90].mxu1 %v939_v16  ;;  %v709_v16 = vmul.f32 0.2, %v453_v9  ;;  %v963_v24 = vmax.f32 %v451_v6, %v707_v13  ;;  %v725_v6 = vmul.f32 0.2, %v469_v58  ;;  %v476_v13 = vld [vmem:[%s2409_s23 + $0x728] sm:$0xff] }
 0x108   : > { %1761 = vmatmul.mubr.f32.gmra.mrb[90].mxu0 %v941_v18  ;;  %1380 = vmatprep.mubr.f32.mxu1 %v944_v19  ;;  %v455_v18 = vld [vmem:[%s2409_s23 + $0x680] sm:$0xff]  ;;  %v966_v19 = vmax.f32 %v454_v63, %v710_v8 }
 0x109   : > { %1765 = vmatprep.mubr.f32.mxu0 %v946_v23  ;;  %v462_v23 = vld [vmem:[%s2409_s23 + $0x6b8] sm:$0xff]  ;;  %v711_v25 = vmul.f32 0.2, %v455_v18  ;;  %v965_v26 = vmax.f32 %v453_v9, %v709_v16  ;;  %v471_v8 = vld [vmem:[%s2409_s23 + $0x700] sm:$0xff]  ;;  %v981_v22 = vmax.f32 %v469_v58, %v725_v6 }
 0x10a   : > { %v718_v32 = vmul.f32 0.2, %v462_v23  ;;  %v2753_v6 = vld [vmem:[%s2409_s23 + $0x798] sm:$0xff] }
 0x10b   : > { %1381 = vmatmul.mubr.f32.gmra.mrb[92].mxu1 %v943_v28  ;;  %v713_v28 = vmul.f32 0.2, %v457_v21  ;;  %v967_v36 = vmax.f32 %v455_v18, %v711_v25  ;;  %v732_v25 = vmul.f32 0.2, %v476_v13 }
 0x10c   : > { %1766 = vmatmul.mubr.f32.gmra.mrb[92].mxu0 %v945_v30  ;;  %1385 = vmatprep.mubr.f32.mxu1 %v948_v31  ;;  %v459_v30 = vld [vmem:[%s2409_s23 + $0x6a0] sm:$0xff]  ;;  %v970_v31 = vmax.f32 %v458_v11, %v714_v20  ;;  %v730_v11 = vmul.f32 0.2, %v2708_v61  ;;  %v727_v20 = vmul.f32 0.2, %v471_v8 }
 0x10d   : > { %1770 = vmatprep.mubr.f32.mxu0 %v950_v35  ;;  %v466_v35 = vld [vmem:[%s2409_s23 + $0x6d8] sm:$0xff]  ;;  %v715_v37 = vmul.f32 0.2, %v459_v30  ;;  %v969_v38 = vmax.f32 %v457_v21, %v713_v28 }
 0x10e   : > { %v722_v44 = vmul.f32 0.2, %v466_v35  ;;  %v986_v28 = vmax.f32 %v2708_v61, %v730_v11 }
 0x10f   : > { %1386 = vmatmul.mubr.f32.gmra.mrb[94].mxu1 %v947_v40  ;;  %v717_v40 = vmul.f32 0.2, %v461_v33  ;;  %v971_v49 = vmax.f32 %v459_v30, %v715_v37  ;;  %v477_v30 = vld [vmem:[%s2409_s23 + $0x730] sm:$0xff]  ;;  %v983_v37 = vmax.f32 %v471_v8, %v727_v20  ;;  %v746_v20 = vmul.f32 0.2, %v2753_v6 }
 0x110   : > { %1771 = vmatmul.mubr.f32.gmra.mrb[94].mxu0 %v949_v42  ;;  %1390 = vmatprep.mubr.f32.mxu1 %v952_v43  ;;  %v463_v42 = vld [vmem:[%s2409_s23 + $0x6c0] sm:$0xff]  ;;  %v974_v43 = vmax.f32 %v462_v23, %v718_v32  ;;  %v978_v56 = vmax.f32 %v466_v35, %v722_v44 }
 0x111   : > { %1775 = vmatprep.mubr.f32.mxu0 %v954_v47  ;;  %v470_v47 = vld [vmem:[%s2409_s23 + $0x6f8] sm:$0xff]  ;;  %v719_v50 = vmul.f32 0.2, %v463_v42  ;;  %v973_v51 = vmax.f32 %v461_v33, %v717_v40  ;;  %v479_v44 = vld [vmem:[%s2409_s23 + $0x740] sm:$0xff] }
 0x112   : > { %v726_v57 = vmul.f32 0.2, %v470_v47  ;;  %v2733_v33 = vld [vmem:[%s2409_s23 + $0x758] sm:$0xff] }
 0x113   : > { %1391 = vmatmul.mubr.f32.gmra.mrb[96].mxu1 %v951_v52  ;;  %v976_v52 = vmax.f32 %v464_v34, %v720_v41  ;;  %v975_v1 = vmax.f32 %v463_v42, %v719_v50  ;;  %v988_v41 = vmax.f32 %v476_v13, %v732_v25  ;;  %v733_v42 = vmul.f32 0.2, %v477_v30  ;;  %v484_v50 = vld [vmem:[%s2409_s23 + $0x768] sm:$0xff] }
 0x114   : > { %1776 = vmatmul.mubr.f32.gmra.mrb[96].mxu0 %v953_v54  ;;  %1395 = vmatprep.mubr.f32.mxu1 %v956_v55  ;;  %v724_v54 = vmul.f32 0.2, %v468_v46  ;;  %v467_v55 = vld [vmem:[%s2409_s23 + $0x6e0] sm:$0xff]  ;;  %v982_v10 = vmax.f32 %v470_v47, %v726_v57  ;;  %v738_v47 = vmul.f32 0.2, %v2733_v33 }
 0x115   : > { %1780 = vmatprep.mubr.f32.mxu0 %v958_v59  ;;  %v472_v59 = vld [vmem:[%s2409_s23 + $0x708] sm:$0xff]  ;;  %v735_v57 = vmul.f32 0.2, %v479_v44 }
 0x116   : > { %v980_v5 = vmax.f32 %v468_v46, %v724_v54 }
 0x117   : > { %1396 = vmatmul.mubr.f32.gmra.mrb[98].mxu1 %v955_v0 }
 0x118   : > { %1781 = vmatmul.mubr.f32.gmra.mrb[98].mxu0 %v957_v2  ;;  %1400 = vmatprep.mubr.f32.mxu1 %v960_v3  ;;  %v723_v2 = vmul.f32 0.2, %v467_v55 }
 0x119   : > { %1785 = vmatprep.mubr.f32.mxu0 %v962_v7  ;;  %v728_v7 = vmul.f32 0.2, %v472_v59 }
 0x11b   : > { %1401 = vmatmul.mubr.f32.gmra.mrb[100].mxu1 %v959_v12  ;;  %v473_v12 = vld [vmem:[%s2409_s23 + $0x710] sm:$0xff]  ;;  %v984_v23 = vmax.f32 %v472_v59, %v728_v7  ;;  %v989_v59 = vmax.f32 %v477_v30, %v733_v42  ;;  %v498_v42 = vld [vmem:[%s2409_s23 + $0x7d8] sm:$0xff] }
 0x11c   : > { %1786 = vmatmul.mubr.f32.gmra.mrb[100].mxu0 %v961_v14  ;;  %1405 = vmatprep.mubr.f32.mxu1 %v964_v15  ;;  %v2723_v15 = vld [vmem:[%s2409_s23 + $0x738] sm:$0xff] }
 0x11d   : > { %1790 = vmatprep.mubr.f32.mxu0 %v966_v19  ;;  %v979_v19 = vmax.f32 %v467_v55, %v723_v2  ;;  %v734_v29 = vmul.f32 0.2, %v2723_v15 }
 0x11f   : > { %1406 = vmatmul.mubr.f32.gmra.mrb[102].mxu1 %v963_v24  ;;  %v729_v24 = vmul.f32 0.2, %v473_v12  ;;  %v990_v46 = vmax.f32 %v2723_v15, %v734_v29 }
 0x120   : > { %1791 = vmatmul.mubr.f32.gmra.mrb[102].mxu0 %v965_v26  ;;  %1410 = vmatprep.mubr.f32.mxu1 %v968_v27  ;;  %v475_v26 = vld [vmem:[%s2409_s23 + $0x720] sm:$0xff] }
 0x121   : > { %1795 = vmatprep.mubr.f32.mxu0 %v970_v31  ;;  %v480_v31 = vld [vmem:[%s2409_s23 + $0x748] sm:$0xff]  ;;  %v985_v40 = vmax.f32 %v473_v12, %v729_v24  ;;  %v2763_v24 = vld [vmem:[%s2409_s23 + $0x7b8] sm:$0xff] }
 0x123   : > { %1411 = vmatmul.mubr.f32.gmra.mrb[104].mxu1 %v967_v36 }
 0x124   : > { %1796 = vmatmul.mubr.f32.gmra.mrb[104].mxu0 %v969_v38  ;;  %1415 = vmatprep.mubr.f32.mxu1 %v972_v39  ;;  %v731_v38 = vmul.f32 0.2, %v475_v26 }
 0x125   : > { %1800 = vmatprep.mubr.f32.mxu0 %v974_v43  ;;  %v736_v43 = vmul.f32 0.2, %v480_v31 }
 0x126   : > { %v1152_v60 = vpop.f32.mrb[0].mxu1 }
 0x127   : > { %v1153_v62 = vadd.f32 %v2702_v48, %v1152_v60  ;;  %v1154_v63 = vpop.f32.mrb[1].mxu1  ;;  %1416 = vmatmul.mubr.f32.gmra.mrb[106].mxu1 %v971_v49  ;;  %v1537_v0 = vpop.f32.mrb[0].mxu0  ;;  %v481_v49 = vld [vmem:[%s2409_s23 + $0x750] sm:$0xff]  ;;  %v992_v60 = vmax.f32 %v480_v31, %v736_v43 }
 0x128   : > { %v1539_v3 = vpop.f32.mrb[1].mxu0  ;;  %1801 = vmatmul.mubr.f32.gmra.mrb[106].mxu0 %v973_v51  ;;  %1420 = vmatprep.mubr.f32.mxu1 %v976_v52  ;;  %v2743_v52 = vld [vmem:[%s2409_s23 + $0x778] sm:$0xff]  ;;  %v737_v61 = vmul.f32 0.2, %v481_v49  ;;  %v483_v63 = vld [vmem:[%s2409_s23 + $0x760] sm:$0xff] }
 0x129   : > { %v1538_v9 = vadd.f32 %v1537_v0, %v1153_v62  ;;  %1805 = vmatprep.mubr.f32.mxu0 %v978_v56  ;;  %v987_v56 = vmax.f32 %v475_v26, %v731_v38  ;;  %v740_v62 = vmul.f32 0.2, %v484_v50  ;;  %v742_v2 = vmul.f32 0.2, %v2743_v52  ;;  %v485_v3 = vld [vmem:[%s2409_s23 + $0x770] sm:$0xff] }
 0x12a   : > { %v1157_v14 = vpop.f32.mrb[2].mxu1  ;;  %v739_v11 = vmul.f32 0.2, %v483_v63  ;;  %v993_v13 = vmax.f32 %v481_v49, %v737_v61  ;;  %v741_v15 = vmul.f32 0.2, %v485_v3  ;;  %v502_v61 = vld [vmem:[%s2409_s23 + $0x7f8] sm:$0xff] }
 0x12b   : > { %1856 = vst [vmem:[%s2716_s29] sm:$0xff] %v1538_v9  ;;  %v1158_v16 = vadd.f32 %v2702_v48, %v1157_v14  ;;  %v1159_v17 = vpop.f32.mrb[3].mxu1  ;;  %1421 = vmatmul.mubr.f32.gmra.mrb[108].mxu1 %v975_v1  ;;  %v1542_v18 = vpop.f32.mrb[2].mxu0  ;;  %v994_v1 = vmax.f32 %v2733_v33, %v738_v47  ;;  %v996_v14 = vmax.f32 %v484_v50, %v740_v62  ;;  %v750_v38 = vmul.f32 0.2, %v2763_v24 }
 0x12c   : > { %v1544_v21 = vpop.f32.mrb[3].mxu0  ;;  %1806 = vmatmul.mubr.f32.gmra.mrb[108].mxu0 %v977_v4  ;;  %1425 = vmatprep.mubr.f32.mxu1 %v980_v5  ;;  %v488_v4 = vld [vmem:[%s2409_s23 + $0x788] sm:$0xff]  ;;  %v487_v17 = vld [vmem:[%s2409_s23 + $0x780] sm:$0xff]  ;;  %v997_v31 = vmax.f32 %v485_v3, %v741_v15 }
 0x12d   : > { %v1543_v27 = vadd.f32 %v1542_v18, %v1158_v16  ;;  %1810 = vmatprep.mubr.f32.mxu0 %v982_v10  ;;  %v991_v10 = vmax.f32 %v479_v44, %v735_v57  ;;  %v744_v16 = vmul.f32 0.2, %v488_v4  ;;  %v489_v21 = vld [vmem:[%s2409_s23 + $0x790] sm:$0xff]  ;;  %v743_v29 = vmul.f32 0.2, %v487_v17 }
 0x12e   : > { %v1162_v32 = vpop.f32.mrb[4].mxu1  ;;  %v745_v33 = vmul.f32 0.2, %v489_v21  ;;  %v754_v57 = vmul.f32 0.2, %v498_v42 }
 0x12f   : > { %1857 = vst [vmem:[%s2716_s29 + $0x8] sm:$0xff] %v1543_v27  ;;  %v1163_v34 = vadd.f32 %v2702_v48, %v1162_v32  ;;  %v1164_v35 = vpop.f32.mrb[5].mxu1  ;;  %1426 = vmatmul.mubr.f32.gmra.mrb[110].mxu1 %v979_v19  ;;  %v1547_v36 = vpop.f32.mrb[4].mxu0  ;;  %v998_v19 = vmax.f32 %v2743_v52, %v742_v2  ;;  %v1000_v32 = vmax.f32 %v488_v4, %v744_v16 }
 0x130   : > { %v1549_v39 = vpop.f32.mrb[5].mxu0  ;;  %1811 = vmatmul.mubr.f32.gmra.mrb[110].mxu0 %v981_v22  ;;  %1430 = vmatprep.mubr.f32.mxu1 %v984_v23  ;;  %v492_v22 = vld [vmem:[%s2409_s23 + $0x7a8] sm:$0xff]  ;;  %v491_v35 = vld [vmem:[%s2409_s23 + $0x7a0] sm:$0xff]  ;;  %v1001_v50 = vmax.f32 %v489_v21, %v745_v33 }
 0x131   : > { %v1548_v45 = vadd.f32 %v1547_v36, %v1163_v34  ;;  %1815 = vmatprep.mubr.f32.mxu0 %v986_v28  ;;  %v995_v28 = vmax.f32 %v483_v63, %v739_v11  ;;  %v748_v34 = vmul.f32 0.2, %v492_v22  ;;  %v493_v39 = vld [vmem:[%s2409_s23 + $0x7b0] sm:$0xff]  ;;  %v747_v47 = vmul.f32 0.2, %v491_v35 }
 0x132   : > { %v1167_v51 = vpop.f32.mrb[6].mxu1  ;;  %v749_v52 = vmul.f32 0.2, %v493_v39  ;;  %v758_v11 = vmul.f32 0.2, %v502_v61 }
 0x133   : > { %1858 = vst [vmem:[%s2716_s29 + $0x10] sm:$0xff] %v1548_v45  ;;  %v1168_v53 = vadd.f32 %v2702_v48, %v1167_v51  ;;  %v1169_v54 = vpop.f32.mrb[7].mxu1  ;;  %1431 = vmatmul.mubr.f32.gmra.mrb[112].mxu1 %v983_v37  ;;  %v1552_v55 = vpop.f32.mrb[6].mxu0  ;;  %v1002_v37 = vmax.f32 %v2753_v6, %v746_v20  ;;  %v1004_v51 = vmax.f32 %v492_v22, %v748_v34 }
 0x134   : > { %v1554_v58 = vpop.f32.mrb[7].mxu0  ;;  %1816 = vmatmul.mubr.f32.gmra.mrb[112].mxu0 %v985_v40  ;;  %1435 = vmatprep.mubr.f32.mxu1 %v988_v41  ;;  %v496_v40 = vld [vmem:[%s2409_s23 + $0x7c8] sm:$0xff]  ;;  %v495_v54 = vld [vmem:[%s2409_s23 + $0x7c0] sm:$0xff]  ;;  %v1005_v4 = vmax.f32 %v493_v39, %v749_v52 }
 0x135   : > { %v1553_v0 = vadd.f32 %v1552_v55, %v1168_v53  ;;  %1820 = vmatprep.mubr.f32.mxu0 %v990_v46  ;;  %v999_v46 = vmax.f32 %v487_v17, %v743_v29  ;;  %v752_v53 = vmul.f32 0.2, %v496_v40  ;;  %v497_v58 = vld [vmem:[%s2409_s23 + $0x7d0] sm:$0xff]  ;;  %v751_v2 = vmul.f32 0.2, %v495_v54 }
 0x136   : > { %v1172_v5 = vpop.f32.mrb[8].mxu1  ;;  %v753_v6 = vmul.f32 0.2, %v497_v58 }
 0x137   : > { %1859 = vst [vmem:[%s2716_s29 + $0x18] sm:$0xff] %v1553_v0  ;;  %v1173_v7 = vadd.f32 %v2702_v48, %v1172_v5  ;;  %v1174_v8 = vpop.f32.mrb[9].mxu1  ;;  %1436 = vmatmul.mubr.f32.gmra.mrb[114].mxu1 %v987_v56  ;;  %v1557_v9 = vpop.f32.mrb[8].mxu0  ;;  %v1006_v56 = vmax.f32 %v2763_v24, %v750_v38  ;;  %v1008_v5 = vmax.f32 %v496_v40, %v752_v53 }
 0x138   : > { %v1559_v12 = vpop.f32.mrb[9].mxu0  ;;  %1821 = vmatmul.mubr.f32.gmra.mrb[114].mxu0 %v989_v59  ;;  %1440 = vmatprep.mubr.f32.mxu1 %v992_v60  ;;  %v500_v59 = vld [vmem:[%s2409_s23 + $0x7e8] sm:$0xff]  ;;  %v499_v8 = vld [vmem:[%s2409_s23 + $0x7e0] sm:$0xff]  ;;  %v1007_v17 = vmax.f32 %v495_v54, %v751_v2  ;;  %v1009_v20 = vmax.f32 %v497_v58, %v753_v6  ;;  %v1014_v24 = vmax.f32 %v502_v61, %v758_v11 }
 0x139   : > { %v1558_v18 = vadd.f32 %v1557_v9, %v1173_v7  ;;  %1825 = vmatprep.mubr.f32.mxu0 %v994_v1  ;;  %v1003_v1 = vmax.f32 %v491_v35, %v747_v47  ;;  %v756_v7 = vmul.f32 0.2, %v500_v59  ;;  %v501_v12 = vld [vmem:[%s2409_s23 + $0x7f0] sm:$0xff] }
 0x13a   : > { %v1177_v23 = vpop.f32.mrb[10].mxu1  ;;  %v757_v22 = vmul.f32 0.2, %v501_v12 }
 0x13b   : > { %1860 = vst [vmem:[%s2716_s29 + $0x20] sm:$0xff] %v1558_v18  ;;  %v1178_v25 = vadd.f32 %v2702_v48, %v1177_v23  ;;  %v1179_v26 = vpop.f32.mrb[11].mxu1  ;;  %1441 = vmatmul.mubr.f32.gmra.mrb[116].mxu1 %v991_v10  ;;  %v1562_v27 = vpop.f32.mrb[10].mxu0  ;;  %v1010_v10 = vmax.f32 %v498_v42, %v754_v57  ;;  %v755_v18 = vmul.f32 0.2, %v499_v8  ;;  %v1012_v21 = vmax.f32 %v500_v59, %v756_v7 }
 0x13c   : > { %v1564_v30 = vpop.f32.mrb[11].mxu0  ;;  %1826 = vmatmul.mubr.f32.gmra.mrb[116].mxu0 %v993_v13  ;;  %1445 = vmatprep.mubr.f32.mxu1 %v996_v14 }
 0x13d   : > { %v1563_v36 = vadd.f32 %v1562_v27, %v1178_v25  ;;  %1830 = vmatprep.mubr.f32.mxu0 %v998_v19  ;;  %v1011_v29 = vmax.f32 %v499_v8, %v755_v18 }
 0x13e   : > { %v1182_v41 = vpop.f32.mrb[12].mxu1 }
 0x13f   : > { %1861 = vst [vmem:[%s2716_s29 + $0x28] sm:$0xff] %v1563_v36  ;;  %v1183_v43 = vadd.f32 %v2702_v48, %v1182_v41  ;;  %v1184_v44 = vpop.f32.mrb[13].mxu1  ;;  %1446 = vmatmul.mubr.f32.gmra.mrb[118].mxu1 %v995_v28  ;;  %v1567_v45 = vpop.f32.mrb[12].mxu0 }
 0x140   : > { %v1569_v49 = vpop.f32.mrb[13].mxu0  ;;  %1831 = vmatmul.mubr.f32.gmra.mrb[118].mxu0 %v997_v31  ;;  %1450 = vmatprep.mubr.f32.mxu1 %v1000_v32  ;;  %v1013_v31 = vmax.f32 %v501_v12, %v757_v22 }
 0x141   : > { %v1568_v55 = vadd.f32 %v1567_v45, %v1183_v43  ;;  %1835 = vmatprep.mubr.f32.mxu0 %v1002_v37 }
 0x142   : > { %v1187_v60 = vpop.f32.mrb[14].mxu1 }
 0x143   : > { %1862 = vst [vmem:[%s2716_s29 + $0x30] sm:$0xff] %v1568_v55  ;;  %v1188_v62 = vadd.f32 %v2702_v48, %v1187_v60  ;;  %v1189_v63 = vpop.f32.mrb[15].mxu1  ;;  %1451 = vmatmul.mubr.f32.gmra.mrb[120].mxu1 %v999_v46  ;;  %v1572_v0 = vpop.f32.mrb[14].mxu0 }
 0x144   : > { %v1574_v3 = vpop.f32.mrb[15].mxu0  ;;  %1836 = vmatmul.mubr.f32.gmra.mrb[120].mxu0 %v1001_v50  ;;  %1455 = vmatprep.mubr.f32.mxu1 %v1004_v51 }
 0x145   : > { %v1573_v9 = vadd.f32 %v1572_v0, %v1188_v62  ;;  %1840 = vmatprep.mubr.f32.mxu0 %v1006_v56 }
 0x146   : > { %v1192_v13 = vpop.f32.mrb[16].mxu1 }
 0x147   : > { %1863 = vst [vmem:[%s2716_s29 + $0x38] sm:$0xff] %v1573_v9  ;;  %v1193_v14 = vadd.f32 %v2702_v48, %v1192_v13  ;;  %v1194_v15 = vpop.f32.mrb[17].mxu1  ;;  %1456 = vmatmul.mubr.f32.gmra.mrb[122].mxu1 %v1003_v1  ;;  %v1577_v16 = vpop.f32.mrb[16].mxu0 }
 0x148   : > { %v1579_v19 = vpop.f32.mrb[17].mxu0  ;;  %1841 = vmatmul.mubr.f32.gmra.mrb[122].mxu0 %v1005_v4  ;;  %1460 = vmatprep.mubr.f32.mxu1 %v1008_v5 }
 0x149   : > { %v1578_v23 = vadd.f32 %v1577_v16, %v1193_v14  ;;  %1845 = vmatprep.mubr.f32.mxu0 %v1010_v10 }
 0x14a   : > { %v1197_v25 = vpop.f32.mrb[18].mxu1 }
 0x14b   : > { %1864 = vst [vmem:[%s2716_s29 + $0x40] sm:$0xff] %v1578_v23  ;;  %v1198_v26 = vadd.f32 %v2702_v48, %v1197_v25  ;;  %v1199_v27 = vpop.f32.mrb[19].mxu1  ;;  %1461 = vmatmul.mubr.f32.gmra.mrb[124].mxu1 %v1007_v17  ;;  %v1582_v28 = vpop.f32.mrb[18].mxu0 }
 0x14c   : > { %v1584_v30 = vpop.f32.mrb[19].mxu0  ;;  %1846 = vmatmul.mubr.f32.gmra.mrb[124].mxu0 %v1009_v20  ;;  %1465 = vmatprep.mubr.f32.mxu1 %v1012_v21 }
 0x14d   : > { %v1583_v32 = vadd.f32 %v1582_v28, %v1198_v26  ;;  %1850 = vmatprep.mubr.f32.mxu0 %v1014_v24 }
 0x14e   : > { %v1202_v33 = vpop.f32.mrb[20].mxu1 }
 0x14f   : > { %1865 = vst [vmem:[%s2716_s29 + $0x48] sm:$0xff] %v1583_v32  ;;  %v1203_v34 = vadd.f32 %v2702_v48, %v1202_v33  ;;  %v1204_v35 = vpop.f32.mrb[21].mxu1  ;;  %1466 = vmatmul.mubr.f32.gmra.mrb[126].mxu1 %v1011_v29  ;;  %v1587_v36 = vpop.f32.mrb[20].mxu0 }
 0x150   : > { %v1589_v37 = vpop.f32.mrb[21].mxu0  ;;  %1851 = vmatmul.mubr.f32.gmra.mrb[126].mxu0 %v1013_v31 }
 0x151   : > { %v1588_v38 = vadd.f32 %v1587_v36, %v1203_v34 }
 0x152   : > { %v1207_v39 = vpop.f32.mrb[22].mxu1 }
 0x153   : > { %1866 = vst [vmem:[%s2716_s29 + $0x50] sm:$0xff] %v1588_v38  ;;  %v1208_v40 = vadd.f32 %v2702_v48, %v1207_v39  ;;  %v1209_v41 = vpop.f32.mrb[23].mxu1  ;;  %v1592_v42 = vpop.f32.mrb[22].mxu0 }
 0x154   : > { %v1594_v43 = vpop.f32.mrb[23].mxu0 }
 0x155   : > { %v1593_v44 = vadd.f32 %v1592_v42, %v1208_v40 }
 0x156   : > { %v1212_v45 = vpop.f32.mrb[24].mxu1 }
 0x157   : > { %1867 = vst [vmem:[%s2716_s29 + $0x58] sm:$0xff] %v1593_v44  ;;  %v1213_v46 = vadd.f32 %v2702_v48, %v1212_v45  ;;  %v1214_v47 = vpop.f32.mrb[25].mxu1  ;;  %v1597_v49 = vpop.f32.mrb[24].mxu0 }
 0x158   : > { %v1599_v50 = vpop.f32.mrb[25].mxu0 }
 0x159   : > { %v1598_v51 = vadd.f32 %v1597_v49, %v1213_v46 }
 0x15a   : > { %v1217_v52 = vpop.f32.mrb[26].mxu1 }
 0x15b   : > { %1868 = vst [vmem:[%s2716_s29 + $0x60] sm:$0xff] %v1598_v51  ;;  %v1218_v53 = vadd.f32 %v2702_v48, %v1217_v52  ;;  %v1219_v54 = vpop.f32.mrb[27].mxu1  ;;  %v1602_v55 = vpop.f32.mrb[26].mxu0 }
 0x15c   : > { %v1604_v56 = vpop.f32.mrb[27].mxu0 }
 0x15d   : > { %v1603_v57 = vadd.f32 %v1602_v55, %v1218_v53 }
 0x15e   : > { %v1222_v58 = vpop.f32.mrb[28].mxu1 }
 0x15f   : > { %1869 = vst [vmem:[%s2716_s29 + $0x68] sm:$0xff] %v1603_v57  ;;  %v1223_v59 = vadd.f32 %v2702_v48, %v1222_v58  ;;  %v1224_v60 = vpop.f32.mrb[29].mxu1  ;;  %v1607_v61 = vpop.f32.mrb[28].mxu0 }
 0x160   : > { %v1609_v62 = vpop.f32.mrb[29].mxu0 }
 0x161   : > { %v1608_v63 = vadd.f32 %v1607_v61, %v1223_v59 }
 0x162   : > { %v1227_v0 = vpop.f32.mrb[30].mxu1 }
 0x163   : > { %1870 = vst [vmem:[%s2716_s29 + $0x70] sm:$0xff] %v1608_v63  ;;  %v1228_v1 = vadd.f32 %v2702_v48, %v1227_v0  ;;  %v1229_v2 = vpop.f32.mrb[31].mxu1  ;;  %v1612_v3 = vpop.f32.mrb[30].mxu0 }
 0x164   : > { %v1614_v4 = vpop.f32.mrb[31].mxu0 }
 0x165   : > { %v1613_v5 = vadd.f32 %v1612_v3, %v1228_v1 }
 0x166   : > { %v1232_v6 = vpop.f32.mrb[32].mxu1 }
 0x167   : > { %1871 = vst [vmem:[%s2716_s29 + $0x78] sm:$0xff] %v1613_v5  ;;  %v1233_v7 = vadd.f32 %v2702_v48, %v1232_v6  ;;  %v1234_v8 = vpop.f32.mrb[33].mxu1  ;;  %v1617_v9 = vpop.f32.mrb[32].mxu0 }
 0x168   : > { %v1619_v10 = vpop.f32.mrb[33].mxu0 }
 0x169   : > { %v1618_v11 = vadd.f32 %v1617_v9, %v1233_v7 }
 0x16a   : > { %v1237_v12 = vpop.f32.mrb[34].mxu1 }
 0x16b   : > { %1872 = vst [vmem:[%s2716_s29 + $0x80] sm:$0xff] %v1618_v11  ;;  %v1238_v13 = vadd.f32 %v2702_v48, %v1237_v12  ;;  %v1239_v14 = vpop.f32.mrb[35].mxu1  ;;  %v1622_v15 = vpop.f32.mrb[34].mxu0 }
 0x16c   : > { %v1624_v16 = vpop.f32.mrb[35].mxu0 }
 0x16d   : > { %v1623_v17 = vadd.f32 %v1622_v15, %v1238_v13 }
 0x16e   : > { %v1242_v18 = vpop.f32.mrb[36].mxu1 }
 0x16f   : > { %1873 = vst [vmem:[%s2716_s29 + $0x88] sm:$0xff] %v1623_v17  ;;  %v1243_v19 = vadd.f32 %v2702_v48, %v1242_v18  ;;  %v1244_v20 = vpop.f32.mrb[37].mxu1  ;;  %v1627_v21 = vpop.f32.mrb[36].mxu0 }
 0x170   : > { %v1629_v22 = vpop.f32.mrb[37].mxu0 }
 0x171   : > { %v1628_v23 = vadd.f32 %v1627_v21, %v1243_v19 }
 0x172   : > { %v1247_v24 = vpop.f32.mrb[38].mxu1 }
 0x173   : > { %1874 = vst [vmem:[%s2716_s29 + $0x90] sm:$0xff] %v1628_v23  ;;  %v1248_v25 = vadd.f32 %v2702_v48, %v1247_v24  ;;  %v1249_v26 = vpop.f32.mrb[39].mxu1  ;;  %v1632_v27 = vpop.f32.mrb[38].mxu0 }
 0x174   : > { %v1634_v28 = vpop.f32.mrb[39].mxu0 }
 0x175   : > { %v1633_v29 = vadd.f32 %v1632_v27, %v1248_v25 }
 0x176   : > { %v1252_v30 = vpop.f32.mrb[40].mxu1 }
 0x177   : > { %1875 = vst [vmem:[%s2716_s29 + $0x98] sm:$0xff] %v1633_v29  ;;  %v1253_v31 = vadd.f32 %v2702_v48, %v1252_v30  ;;  %v1254_v32 = vpop.f32.mrb[41].mxu1  ;;  %v1637_v33 = vpop.f32.mrb[40].mxu0 }
 0x178   : > { %v1639_v34 = vpop.f32.mrb[41].mxu0 }
 0x179   : > { %v1638_v35 = vadd.f32 %v1637_v33, %v1253_v31 }
 0x17a   : > { %v1257_v36 = vpop.f32.mrb[42].mxu1 }
 0x17b   : > { %1876 = vst [vmem:[%s2716_s29 + $0xa0] sm:$0xff] %v1638_v35  ;;  %v1258_v37 = vadd.f32 %v2702_v48, %v1257_v36  ;;  %v1259_v38 = vpop.f32.mrb[43].mxu1  ;;  %v1642_v39 = vpop.f32.mrb[42].mxu0 }
 0x17c   : > { %v1644_v40 = vpop.f32.mrb[43].mxu0 }
 0x17d   : > { %v1643_v41 = vadd.f32 %v1642_v39, %v1258_v37 }
 0x17e   : > { %v1262_v42 = vpop.f32.mrb[44].mxu1 }
 0x17f   : > { %1877 = vst [vmem:[%s2716_s29 + $0xa8] sm:$0xff] %v1643_v41  ;;  %v1263_v43 = vadd.f32 %v2702_v48, %v1262_v42  ;;  %v1264_v44 = vpop.f32.mrb[45].mxu1  ;;  %v1647_v45 = vpop.f32.mrb[44].mxu0 }
 0x180   : > { %v1649_v46 = vpop.f32.mrb[45].mxu0 }
 0x181   : > { %v1648_v47 = vadd.f32 %v1647_v45, %v1263_v43 }
 0x182   : > { %v1267_v49 = vpop.f32.mrb[46].mxu1 }
 0x183   : > { %1878 = vst [vmem:[%s2716_s29 + $0xb0] sm:$0xff] %v1648_v47  ;;  %v1268_v50 = vadd.f32 %v2702_v48, %v1267_v49  ;;  %v1269_v51 = vpop.f32.mrb[47].mxu1  ;;  %v1652_v52 = vpop.f32.mrb[46].mxu0 }
 0x184   : > { %v1654_v53 = vpop.f32.mrb[47].mxu0 }
 0x185   : > { %v1653_v54 = vadd.f32 %v1652_v52, %v1268_v50 }
 0x186   : > { %v1272_v55 = vpop.f32.mrb[48].mxu1 }
 0x187   : > { %1879 = vst [vmem:[%s2716_s29 + $0xb8] sm:$0xff] %v1653_v54  ;;  %v1273_v56 = vadd.f32 %v2702_v48, %v1272_v55  ;;  %v1274_v57 = vpop.f32.mrb[49].mxu1  ;;  %v1657_v58 = vpop.f32.mrb[48].mxu0 }
 0x188   : > { %v1659_v59 = vpop.f32.mrb[49].mxu0 }
 0x189   : > { %v1658_v60 = vadd.f32 %v1657_v58, %v1273_v56 }
 0x18a   : > { %v1277_v61 = vpop.f32.mrb[50].mxu1 }
 0x18b   : > { %1880 = vst [vmem:[%s2716_s29 + $0xc0] sm:$0xff] %v1658_v60  ;;  %v1278_v62 = vadd.f32 %v2702_v48, %v1277_v61  ;;  %v1279_v63 = vpop.f32.mrb[51].mxu1  ;;  %v1662_v0 = vpop.f32.mrb[50].mxu0 }
 0x18c   : > { %v1664_v1 = vpop.f32.mrb[51].mxu0 }
 0x18d   : > { %v1663_v2 = vadd.f32 %v1662_v0, %v1278_v62 }
 0x18e   : > { %v1282_v3 = vpop.f32.mrb[52].mxu1 }
 0x18f   : > { %1881 = vst [vmem:[%s2716_s29 + $0xc8] sm:$0xff] %v1663_v2  ;;  %v1283_v4 = vadd.f32 %v2702_v48, %v1282_v3  ;;  %v1284_v5 = vpop.f32.mrb[53].mxu1  ;;  %v1667_v6 = vpop.f32.mrb[52].mxu0 }
 0x190   : > { %v1669_v7 = vpop.f32.mrb[53].mxu0 }
 0x191   : > { %v1668_v8 = vadd.f32 %v1667_v6, %v1283_v4 }
 0x192   : > { %v1287_v9 = vpop.f32.mrb[54].mxu1 }
 0x193   : > { %1882 = vst [vmem:[%s2716_s29 + $0xd0] sm:$0xff] %v1668_v8  ;;  %v1288_v10 = vadd.f32 %v2702_v48, %v1287_v9  ;;  %v1289_v11 = vpop.f32.mrb[55].mxu1  ;;  %v1672_v12 = vpop.f32.mrb[54].mxu0 }
 0x194   : > { %v1674_v13 = vpop.f32.mrb[55].mxu0 }
 0x195   : > { %v1673_v14 = vadd.f32 %v1672_v12, %v1288_v10 }
 0x196   : > { %v1292_v15 = vpop.f32.mrb[56].mxu1 }
 0x197   : > { %1883 = vst [vmem:[%s2716_s29 + $0xd8] sm:$0xff] %v1673_v14  ;;  %v1293_v16 = vadd.f32 %v2702_v48, %v1292_v15  ;;  %v1294_v17 = vpop.f32.mrb[57].mxu1  ;;  %v1677_v18 = vpop.f32.mrb[56].mxu0 }
 0x198   : > { %v1679_v19 = vpop.f32.mrb[57].mxu0 }
 0x199   : > { %v1678_v20 = vadd.f32 %v1677_v18, %v1293_v16 }
 0x19a   : > { %v1297_v21 = vpop.f32.mrb[58].mxu1 }
 0x19b   : > { %1884 = vst [vmem:[%s2716_s29 + $0xe0] sm:$0xff] %v1678_v20  ;;  %v1298_v22 = vadd.f32 %v2702_v48, %v1297_v21  ;;  %v1299_v23 = vpop.f32.mrb[59].mxu1  ;;  %v1682_v24 = vpop.f32.mrb[58].mxu0 }
 0x19c   : > { %v1684_v25 = vpop.f32.mrb[59].mxu0 }
 0x19d   : > { %v1683_v26 = vadd.f32 %v1682_v24, %v1298_v22 }
 0x19e   : > { %v1302_v27 = vpop.f32.mrb[60].mxu1 }
 0x19f   : > { %1885 = vst [vmem:[%s2716_s29 + $0xe8] sm:$0xff] %v1683_v26  ;;  %v1303_v28 = vadd.f32 %v2702_v48, %v1302_v27  ;;  %v1304_v29 = vpop.f32.mrb[61].mxu1  ;;  %v1687_v30 = vpop.f32.mrb[60].mxu0 }
 0x1a0   : > { %v1689_v31 = vpop.f32.mrb[61].mxu0 }
 0x1a1   : > { %v1688_v32 = vadd.f32 %v1687_v30, %v1303_v28 }
 0x1a2   : > { %v1307_v33 = vpop.f32.mrb[62].mxu1 }
 0x1a3   : > { %1886 = vst [vmem:[%s2716_s29 + $0xf0] sm:$0xff] %v1688_v32  ;;  %v1308_v34 = vadd.f32 %v2702_v48, %v1307_v33  ;;  %v1309_v35 = vpop.f32.mrb[63].mxu1  ;;  %v1692_v36 = vpop.f32.mrb[62].mxu0 }
 0x1a4   : > { %v1694_v37 = vpop.f32.mrb[63].mxu0 }
 0x1a5   : > { %v1693_v38 = vadd.f32 %v1692_v36, %v1308_v34 }
 0x1a6   : > { %v1312_v39 = vpop.f32.mrb[64].mxu1 }
 0x1a7   : > { %1887 = vst [vmem:[%s2716_s29 + $0xf8] sm:$0xff] %v1693_v38  ;;  %v1313_v40 = vadd.f32 %v2702_v48, %v1312_v39  ;;  %v1314_v41 = vpop.f32.mrb[65].mxu1  ;;  %v1697_v42 = vpop.f32.mrb[64].mxu0 }
 0x1a8   : > { %v1699_v43 = vpop.f32.mrb[65].mxu0 }
 0x1a9   : > { %v1698_v44 = vadd.f32 %v1697_v42, %v1313_v40 }
 0x1aa   : > { %v1317_v45 = vpop.f32.mrb[66].mxu1 }
 0x1ab   : > { %1888 = vst [vmem:[%s2716_s29 + $0x100] sm:$0xff] %v1698_v44  ;;  %v1318_v46 = vadd.f32 %v2702_v48, %v1317_v45  ;;  %v1319_v47 = vpop.f32.mrb[67].mxu1  ;;  %v1702_v49 = vpop.f32.mrb[66].mxu0 }
 0x1ac   : > { %v1704_v50 = vpop.f32.mrb[67].mxu0 }
 0x1ad   : > { %v1703_v51 = vadd.f32 %v1702_v49, %v1318_v46 }
 0x1ae   : > { %v1322_v52 = vpop.f32.mrb[68].mxu1 }
 0x1af   : > { %1889 = vst [vmem:[%s2716_s29 + $0x108] sm:$0xff] %v1703_v51  ;;  %v1323_v53 = vadd.f32 %v2702_v48, %v1322_v52  ;;  %v1324_v54 = vpop.f32.mrb[69].mxu1  ;;  %v1707_v55 = vpop.f32.mrb[68].mxu0 }
 0x1b0   : > { %v1709_v56 = vpop.f32.mrb[69].mxu0 }
 0x1b1   : > { %v1708_v57 = vadd.f32 %v1707_v55, %v1323_v53 }
 0x1b2   : > { %v1327_v58 = vpop.f32.mrb[70].mxu1 }
 0x1b3   : > { %1890 = vst [vmem:[%s2716_s29 + $0x110] sm:$0xff] %v1708_v57  ;;  %v1328_v59 = vadd.f32 %v2702_v48, %v1327_v58  ;;  %v1329_v60 = vpop.f32.mrb[71].mxu1  ;;  %v1712_v61 = vpop.f32.mrb[70].mxu0 }
 0x1b4   : > { %v1714_v62 = vpop.f32.mrb[71].mxu0 }
 0x1b5   : > { %v1713_v63 = vadd.f32 %v1712_v61, %v1328_v59 }
 0x1b6   : > { %v1332_v0 = vpop.f32.mrb[72].mxu1 }
 0x1b7   : > { %1891 = vst [vmem:[%s2716_s29 + $0x118] sm:$0xff] %v1713_v63  ;;  %v1333_v1 = vadd.f32 %v2702_v48, %v1332_v0  ;;  %v1334_v2 = vpop.f32.mrb[73].mxu1  ;;  %v1717_v3 = vpop.f32.mrb[72].mxu0 }
 0x1b8   : > { %v1719_v4 = vpop.f32.mrb[73].mxu0 }
 0x1b9   : > { %v1718_v5 = vadd.f32 %v1717_v3, %v1333_v1 }
 0x1ba   : > { %v1337_v6 = vpop.f32.mrb[74].mxu1 }
 0x1bb   : > { %1892 = vst [vmem:[%s2716_s29 + $0x120] sm:$0xff] %v1718_v5  ;;  %v1338_v7 = vadd.f32 %v2702_v48, %v1337_v6  ;;  %v1339_v8 = vpop.f32.mrb[75].mxu1  ;;  %v1722_v9 = vpop.f32.mrb[74].mxu0 }
 0x1bc   : > { %v1724_v10 = vpop.f32.mrb[75].mxu0 }
 0x1bd   : > { %v1723_v11 = vadd.f32 %v1722_v9, %v1338_v7 }
 0x1be   : > { %v1342_v12 = vpop.f32.mrb[76].mxu1 }
 0x1bf   : > { %1893 = vst [vmem:[%s2716_s29 + $0x128] sm:$0xff] %v1723_v11  ;;  %v1343_v13 = vadd.f32 %v2702_v48, %v1342_v12  ;;  %v1344_v14 = vpop.f32.mrb[77].mxu1  ;;  %v1727_v15 = vpop.f32.mrb[76].mxu0 }
 0x1c0   : > { %v1729_v16 = vpop.f32.mrb[77].mxu0 }
 0x1c1   : > { %v1728_v17 = vadd.f32 %v1727_v15, %v1343_v13 }
 0x1c2   : > { %v1347_v18 = vpop.f32.mrb[78].mxu1 }
 0x1c3   : > { %1894 = vst [vmem:[%s2716_s29 + $0x130] sm:$0xff] %v1728_v17  ;;  %v1348_v19 = vadd.f32 %v2702_v48, %v1347_v18  ;;  %v1349_v20 = vpop.f32.mrb[79].mxu1  ;;  %v1732_v21 = vpop.f32.mrb[78].mxu0 }
 0x1c4   : > { %v1734_v22 = vpop.f32.mrb[79].mxu0 }
 0x1c5   : > { %v1733_v23 = vadd.f32 %v1732_v21, %v1348_v19  ;;  %v2870_v22 = vld [vmem:[%s2695_s26] ss:$0 sm:$0xff] }
 0x1c6   : > { %v1352_v24 = vpop.f32.mrb[80].mxu1 }
 0x1c7   : > { %1895 = vst [vmem:[%s2716_s29 + $0x138] sm:$0xff] %v1733_v23  ;;  %v1353_v25 = vadd.f32 %v2702_v48, %v1352_v24  ;;  %v1354_v26 = vpop.f32.mrb[81].mxu1  ;;  %v1737_v27 = vpop.f32.mrb[80].mxu0 }
 0x1c8   : > { %v1739_v28 = vpop.f32.mrb[81].mxu0 }
 0x1c9   : > { %v1738_v29 = vadd.f32 %v1737_v27, %v1353_v25 }
 0x1ca   : > { %v1357_v30 = vpop.f32.mrb[82].mxu1 }
 0x1cb   : > { %1896 = vst [vmem:[%s2716_s29 + $0x140] sm:$0xff] %v1738_v29  ;;  %v1358_v31 = vadd.f32 %v2702_v48, %v1357_v30  ;;  %v1359_v32 = vpop.f32.mrb[83].mxu1  ;;  %v1742_v33 = vpop.f32.mrb[82].mxu0 }
 0x1cc   : > { %v1744_v34 = vpop.f32.mrb[83].mxu0 }
 0x1cd   : > { %v1743_v35 = vadd.f32 %v1742_v33, %v1358_v31 }
 0x1ce   : > { %v1362_v36 = vpop.f32.mrb[84].mxu1 }
 0x1cf   : > { %1897 = vst [vmem:[%s2716_s29 + $0x148] sm:$0xff] %v1743_v35  ;;  %v1363_v37 = vadd.f32 %v2702_v48, %v1362_v36  ;;  %v1364_v38 = vpop.f32.mrb[85].mxu1  ;;  %v1747_v39 = vpop.f32.mrb[84].mxu0 }
 0x1d0   : > { %v1749_v40 = vpop.f32.mrb[85].mxu0 }
 0x1d1   : > { %v1748_v41 = vadd.f32 %v1747_v39, %v1363_v37 }
 0x1d2   : > { %v1367_v42 = vpop.f32.mrb[86].mxu1 }
 0x1d3   : > { %1898 = vst [vmem:[%s2716_s29 + $0x150] sm:$0xff] %v1748_v41  ;;  %v1368_v43 = vadd.f32 %v2702_v48, %v1367_v42  ;;  %v1369_v44 = vpop.f32.mrb[87].mxu1  ;;  %v1752_v45 = vpop.f32.mrb[86].mxu0 }
 0x1d4   : > { %v1754_v46 = vpop.f32.mrb[87].mxu0 }
 0x1d5   : > { %v1753_v47 = vadd.f32 %v1752_v45, %v1368_v43 }
 0x1d6   : > { %v1372_v49 = vpop.f32.mrb[88].mxu1 }
 0x1d7   : > { %1899 = vst [vmem:[%s2716_s29 + $0x158] sm:$0xff] %v1753_v47  ;;  %v1373_v50 = vadd.f32 %v2702_v48, %v1372_v49  ;;  %v1374_v51 = vpop.f32.mrb[89].mxu1  ;;  %v1757_v52 = vpop.f32.mrb[88].mxu0 }
 0x1d8   : > { %v1759_v53 = vpop.f32.mrb[89].mxu0 }
 0x1d9   : > { %v1758_v54 = vadd.f32 %v1757_v52, %v1373_v50 }
 0x1da   : > { %v1377_v55 = vpop.f32.mrb[90].mxu1 }
 0x1db   : > { %1900 = vst [vmem:[%s2716_s29 + $0x160] sm:$0xff] %v1758_v54  ;;  %v1378_v56 = vadd.f32 %v2702_v48, %v1377_v55  ;;  %v1379_v57 = vpop.f32.mrb[91].mxu1  ;;  %v1762_v58 = vpop.f32.mrb[90].mxu0 }
 0x1dc   : > { %v1764_v59 = vpop.f32.mrb[91].mxu0 }
 0x1dd   : > { %v1763_v60 = vadd.f32 %v1762_v58, %v1378_v56 }
 0x1de   : > { %v1382_v61 = vpop.f32.mrb[92].mxu1 }
 0x1df   : > { %1901 = vst [vmem:[%s2716_s29 + $0x168] sm:$0xff] %v1763_v60  ;;  %v1383_v62 = vadd.f32 %v2702_v48, %v1382_v61  ;;  %v1384_v63 = vpop.f32.mrb[93].mxu1  ;;  %v1767_v0 = vpop.f32.mrb[92].mxu0 }
 0x1e0   : > { %v1769_v1 = vpop.f32.mrb[93].mxu0 }
 0x1e1   : > { %v1768_v2 = vadd.f32 %v1767_v0, %v1383_v62 }
 0x1e2   : > { %v1387_v3 = vpop.f32.mrb[94].mxu1 }
 0x1e3   : > { %1902 = vst [vmem:[%s2716_s29 + $0x170] sm:$0xff] %v1768_v2  ;;  %v1388_v4 = vadd.f32 %v2702_v48, %v1387_v3  ;;  %v1389_v5 = vpop.f32.mrb[95].mxu1  ;;  %v1772_v6 = vpop.f32.mrb[94].mxu0 }
 0x1e4   : > { %v1774_v7 = vpop.f32.mrb[95].mxu0 }
 0x1e5   : > { %v1773_v8 = vadd.f32 %v1772_v6, %v1388_v4 }
 0x1e6   : > { %v1392_v9 = vpop.f32.mrb[96].mxu1 }
 0x1e7   : > { %1903 = vst [vmem:[%s2716_s29 + $0x178] sm:$0xff] %v1773_v8  ;;  %v1393_v10 = vadd.f32 %v2702_v48, %v1392_v9  ;;  %v1394_v11 = vpop.f32.mrb[97].mxu1  ;;  %v1777_v12 = vpop.f32.mrb[96].mxu0 }
 0x1e8   : > { %v1779_v13 = vpop.f32.mrb[97].mxu0 }
 0x1e9   : > { %v1778_v14 = vadd.f32 %v1777_v12, %v1393_v10 }
 0x1ea   : > { %v1397_v15 = vpop.f32.mrb[98].mxu1 }
 0x1eb   : > { %1904 = vst [vmem:[%s2716_s29 + $0x180] sm:$0xff] %v1778_v14  ;;  %v1398_v16 = vadd.f32 %v2702_v48, %v1397_v15  ;;  %v1399_v17 = vpop.f32.mrb[99].mxu1  ;;  %v1782_v18 = vpop.f32.mrb[98].mxu0 }
 0x1ec   : > { %v1784_v19 = vpop.f32.mrb[99].mxu0 }
 0x1ed   : > { %v1783_v20 = vadd.f32 %v1782_v18, %v1398_v16 }
 0x1ee   : > { %v1402_v21 = vpop.f32.mrb[100].mxu1 }
 0x1ef   : > { %1905 = vst [vmem:[%s2716_s29 + $0x188] sm:$0xff] %v1783_v20  ;;  %v1403_v23 = vadd.f32 %v2870_v22, %v1402_v21  ;;  %v1404_v24 = vpop.f32.mrb[101].mxu1  ;;  %v1787_v25 = vpop.f32.mrb[100].mxu0 }
 0x1f0   : > { %v1789_v26 = vpop.f32.mrb[101].mxu0 }
 0x1f1   : > { %v1788_v27 = vadd.f32 %v1787_v25, %v1403_v23 }
 0x1f2   : > { %v1407_v28 = vpop.f32.mrb[102].mxu1 }
 0x1f3   : > { %1906 = vst [vmem:[%s2716_s29 + $0x190] sm:$0xff] %v1788_v27  ;;  %v1408_v48 = vadd.f32 %v2870_v22, %v1407_v28  ;;  %v1409_v29 = vpop.f32.mrb[103].mxu1  ;;  %v1792_v30 = vpop.f32.mrb[102].mxu0 }
 0x1f4   : > { %v1794_v31 = vpop.f32.mrb[103].mxu0 }
 0x1f5   : > { %v1793_v32 = vadd.f32 %v1792_v30, %v1408_v48 }
 0x1f6   : > { %v1412_v33 = vpop.f32.mrb[104].mxu1 }
 0x1f7   : > { %1907 = vst [vmem:[%s2716_s29 + $0x198] sm:$0xff] %v1793_v32  ;;  %v1413_v34 = vadd.f32 %v2870_v22, %v1412_v33  ;;  %v1414_v35 = vpop.f32.mrb[105].mxu1  ;;  %v1797_v36 = vpop.f32.mrb[104].mxu0 }
 0x1f8   : > { %v1799_v37 = vpop.f32.mrb[105].mxu0 }
 0x1f9   : > { %v1798_v38 = vadd.f32 %v1797_v36, %v1413_v34 }
 0x1fa   : > { %v1417_v39 = vpop.f32.mrb[106].mxu1 }
 0x1fb   : > { %1908 = vst [vmem:[%s2716_s29 + $0x1a0] sm:$0xff] %v1798_v38  ;;  %v1418_v40 = vadd.f32 %v2870_v22, %v1417_v39  ;;  %v1419_v41 = vpop.f32.mrb[107].mxu1  ;;  %v1802_v42 = vpop.f32.mrb[106].mxu0 }
 0x1fc   : > { %v1804_v43 = vpop.f32.mrb[107].mxu0 }
 0x1fd   : > { %v1803_v44 = vadd.f32 %v1802_v42, %v1418_v40 }
 0x1fe   : > { %v1422_v45 = vpop.f32.mrb[108].mxu1 }
 0x1ff   : > { %1909 = vst [vmem:[%s2716_s29 + $0x1a8] sm:$0xff] %v1803_v44  ;;  %v1423_v46 = vadd.f32 %v2870_v22, %v1422_v45  ;;  %v1424_v47 = vpop.f32.mrb[109].mxu1  ;;  %v1807_v49 = vpop.f32.mrb[108].mxu0 }
 0x200   : > { %v1809_v50 = vpop.f32.mrb[109].mxu0 }
 0x201   : > { %v1808_v51 = vadd.f32 %v1807_v49, %v1423_v46 }
 0x202   : > { %v1427_v52 = vpop.f32.mrb[110].mxu1 }
 0x203   : > { %1910 = vst [vmem:[%s2716_s29 + $0x1b0] sm:$0xff] %v1808_v51  ;;  %v1428_v53 = vadd.f32 %v2870_v22, %v1427_v52  ;;  %v1429_v54 = vpop.f32.mrb[111].mxu1  ;;  %v1812_v55 = vpop.f32.mrb[110].mxu0 }
 0x204   : > { %v1814_v56 = vpop.f32.mrb[111].mxu0 }
 0x205   : > { %v1813_v57 = vadd.f32 %v1812_v55, %v1428_v53 }
 0x206   : > { %v1432_v58 = vpop.f32.mrb[112].mxu1 }
 0x207   : > { %1911 = vst [vmem:[%s2716_s29 + $0x1b8] sm:$0xff] %v1813_v57  ;;  %v1433_v59 = vadd.f32 %v2870_v22, %v1432_v58  ;;  %v1434_v60 = vpop.f32.mrb[113].mxu1  ;;  %v1817_v61 = vpop.f32.mrb[112].mxu0 }
 0x208   : > { %v1819_v62 = vpop.f32.mrb[113].mxu0 }
 0x209   : > { %v1818_v63 = vadd.f32 %v1817_v61, %v1433_v59 }
 0x20a   : > { %v1437_v0 = vpop.f32.mrb[114].mxu1 }
 0x20b   : > { %1912 = vst [vmem:[%s2716_s29 + $0x1c0] sm:$0xff] %v1818_v63  ;;  %v1438_v1 = vadd.f32 %v2870_v22, %v1437_v0  ;;  %v1439_v2 = vpop.f32.mrb[115].mxu1  ;;  %v1822_v3 = vpop.f32.mrb[114].mxu0 }
 0x20c   : > { %v1824_v4 = vpop.f32.mrb[115].mxu0 }
 0x20d   : > { %v1823_v5 = vadd.f32 %v1822_v3, %v1438_v1 }
 0x20e   : > { %v1442_v6 = vpop.f32.mrb[116].mxu1 }
 0x20f   : > { %1913 = vst [vmem:[%s2716_s29 + $0x1c8] sm:$0xff] %v1823_v5  ;;  %v1443_v7 = vadd.f32 %v2870_v22, %v1442_v6  ;;  %v1444_v8 = vpop.f32.mrb[117].mxu1  ;;  %v1827_v9 = vpop.f32.mrb[116].mxu0 }
 0x210   : > { %v1829_v10 = vpop.f32.mrb[117].mxu0 }
 0x211   : > { %v1828_v11 = vadd.f32 %v1827_v9, %v1443_v7 }
 0x212   : > { %v1447_v12 = vpop.f32.mrb[118].mxu1 }
 0x213   : > { %1914 = vst [vmem:[%s2716_s29 + $0x1d0] sm:$0xff] %v1828_v11  ;;  %v1448_v13 = vadd.f32 %v2870_v22, %v1447_v12  ;;  %v1449_v14 = vpop.f32.mrb[119].mxu1  ;;  %v1832_v15 = vpop.f32.mrb[118].mxu0 }
 0x214   : > { %v1834_v16 = vpop.f32.mrb[119].mxu0 }
 0x215   : > { %v1833_v17 = vadd.f32 %v1832_v15, %v1448_v13 }
 0x216   : > { %v1452_v18 = vpop.f32.mrb[120].mxu1 }
 0x217   : > { %1915 = vst [vmem:[%s2716_s29 + $0x1d8] sm:$0xff] %v1833_v17  ;;  %v1453_v19 = vadd.f32 %v2870_v22, %v1452_v18  ;;  %v1454_v20 = vpop.f32.mrb[121].mxu1  ;;  %v1837_v21 = vpop.f32.mrb[120].mxu0 }
 0x218   : > { %v1839_v23 = vpop.f32.mrb[121].mxu0 }
 0x219   : > { %v1838_v24 = vadd.f32 %v1837_v21, %v1453_v19 }
 0x21a   : > { %v1457_v25 = vpop.f32.mrb[122].mxu1 }
 0x21b   : > { %1916 = vst [vmem:[%s2716_s29 + $0x1e0] sm:$0xff] %v1838_v24  ;;  %v1458_v26 = vadd.f32 %v2870_v22, %v1457_v25  ;;  %v1459_v27 = vpop.f32.mrb[123].mxu1  ;;  %v1842_v28 = vpop.f32.mrb[122].mxu0 }
 0x21c   : > { %v1844_v48 = vpop.f32.mrb[123].mxu0 }
 0x21d   : > { %v1843_v29 = vadd.f32 %v1842_v28, %v1458_v26 }
 0x21e   : > { %v1462_v30 = vpop.f32.mrb[124].mxu1 }
 0x21f   : > { %1917 = vst [vmem:[%s2716_s29 + $0x1e8] sm:$0xff] %v1843_v29  ;;  %v1463_v31 = vadd.f32 %v2870_v22, %v1462_v30  ;;  %v1464_v32 = vpop.f32.mrb[125].mxu1  ;;  %v1847_v33 = vpop.f32.mrb[124].mxu0 }
 0x220   : > { %v1849_v34 = vpop.f32.mrb[125].mxu0 }
 0x221   : > { %v1848_v35 = vadd.f32 %v1847_v33, %v1463_v31 }
 0x222   : > { %v1467_v36 = vpop.f32.mrb[126].mxu1 }
 0x223   : > { %1918 = vst [vmem:[%s2716_s29 + $0x1f0] sm:$0xff] %v1848_v35  ;;  %v1468_v37 = vadd.f32 %v2870_v22, %v1467_v36  ;;  %v1469_v38 = vpop.f32.mrb[127].mxu1  ;;  %v1852_v39 = vpop.f32.mrb[126].mxu0 }
 0x224   : > { %v1854_v40 = vpop.f32.mrb[127].mxu0 }
 0x225   : > { %v1853_v41 = vadd.f32 %v1852_v39, %v1468_v37 }
 0x227   : > { %1919 = vst [vmem:[%s2716_s29 + $0x1f8] sm:$0xff] %v1853_v41 }
 0x228 PF: > { %s13_s14 = sadd.s32 1, %s2320_s14   ;;  %s2913_s12 = smov %s2316_s13 }
 0x229   : > { %p10_p5 = scmp.ge.s32.totalorder %s13_s14, 8   ;;  %s2914_s13 = smov %s2916_s15 }
 0x22b   :  { %12 = sbr.rel (!%p10_p5) target bundleno = 2 (0x2), region = 68 }

// kernel: encoder_forward.8
= control target key start
LH: loop header
LB: loop body
LE: loop exit
PB: predicated region body
PF: predicated region fallthrough
CT: control target
= control target key end

     0   :  { %s1236_s12 = smov 0   ;;  %s1238_s13 = smov 0   ;;  %s1452_s0 = inlined_call_operand.vmem [shape: f32[6,128,512], index: 0, kind: input, shape index: {}]   ;;  %s1453_s1 = inlined_call_operand.vmem [shape: f32[6,512,128], index: 1, kind: input, shape index: {}]   ;;  %s1454_s2 = inlined_call_operand.vmem [shape: f32[6,1,128], index: 2, kind: input, shape index: {}]   ;;  %s1455_s3 = inlined_call_operand.vmem [shape: f32[6,128,128], index: 3, kind: output, shape index: {}]  }
   0x1   :  { %s1240_s14 = smov 0  }
   0x2 LB: > { %s25_s15 = sadd.s32 1, %s1210_s13  ;;  %p931_p0 = scmp.ge.s32.totalorder %s1214_s14, 1  ;;  %s1214_s14 = sphi %s1240_s14, %s13_s14   ;;  %s1210_s13 = sphi %s1238_s13, %s1457_s13   ;;  %s1206_s12 = sphi %s1236_s12, %s1456_s12  }
   0x3   : > { %p27_p1 = scmp.ge.s32.totalorder %s25_s15, 6  ;;  %p177_p2 = scmp.lt.s32.totalorder %s1214_s14, 7 }
   0x5   : > { %s1459_s15 = smov (%p27_p1, %s25_s15), 0  ;;  %p178_p3 = pnand %p931_p0, %p177_p2 }
   0x6   : > { %p219_p4 = scmp.lt.s32.totalorder (!%p178_p3), %s1206_s12, 5 }
   0x7   : > { %181 = sbr.rel (%p178_p3) target bundleno = 332 (0x14c), region = 32 }
   0xe   : > { %s1461_s12 = smov (!%p219_p4, %s1206_s12), 5 }
   0xf   : > { %s941_s16 = sshll.u32 %s1461_s12, 9  ;;  %s236_s25 = scalar_lea.vmem %s1454_s2, %s1461_s12 }
  0x10   : > { %s1262_s19 = scalar_lea.vmem %s1453_s1, %s941_s16  ;;  %s1319_s22 = scalar_lea.vmem %s1452_s0, %s941_s16 }
  0x11   : > { %v455_v0 = vld [vmem:[%s1262_s19 + $0x80] sm:$0xff]  ;;  %v456_v1 = vld [vmem:[%s1262_s19 + $0x88] sm:$0xff]  ;;  %v457_v11 = vld [vmem:[%s1262_s19 + $0x90] sm:$0xff]  ;;  %s943_s26 = sshll.u32 %s1461_s12, 7 }
  0x12   : > { %v439_v2 = vld [vmem:[%s1262_s19] sm:$0xff]  ;;  %v1104_v3 = vpack.c.bf16 %v456_v1, %v455_v0  ;;  %v440_v4 = vld [vmem:[%s1262_s19 + $0x8] sm:$0xff]  ;;  %v458_v13 = vld [vmem:[%s1262_s19 + $0x98] sm:$0xff]  ;;  %s1410_s29 = scalar_lea.vmem %s1455_s3, %s943_s26 }
  0x13   : > { %v487_v5 = vld [vmem:[%s1262_s19 + $0x180] sm:$0xff]  ;;  %v488_v6 = vld [vmem:[%s1262_s19 + $0x188] sm:$0xff]  ;;  %v1106_v7 = vpack.c.bf16 %v440_v4, %v439_v2  ;;  %v441_v14 = vld [vmem:[%s1262_s19 + $0x10] sm:$0xff]  ;;  %v1108_v16 = vpack.c.bf16 %v458_v13, %v457_v11 }
  0x14   : > { %v1136_v8 = vpack.c.bf16 %v488_v6, %v487_v5  ;;  %v471_v9 = vld [vmem:[%s1262_s19 + $0x100] sm:$0xff]  ;;  %v472_v10 = vld [vmem:[%s1262_s19 + $0x108] sm:$0xff]  ;;  %1105 = vmatprep.subr.bf16.mxu0 %v1104_v3  ;;  %v442_v15 = vld [vmem:[%s1262_s19 + $0x18] sm:$0xff] }
  0x15   : > { %v1138_v12 = vpack.c.bf16 %v472_v10, %v471_v9  ;;  %1107 = vmatpush3.bf16.msra.mxu0 %v1106_v7  ;;  %v1110_v17 = vpack.c.bf16 %v442_v15, %v441_v14  ;;  %v489_v18 = vld [vmem:[%s1262_s19 + $0x190] sm:$0xff]  ;;  %v490_v19 = vld [vmem:[%s1262_s19 + $0x198] sm:$0xff]  ;;  %v459_v23 = vld [vmem:[%s1262_s19 + $0xa0] sm:$0xff] }
  0x16   : > { %1137 = vmatprep.subr.bf16.mxu1 %v1136_v8  ;;  %v473_v20 = vld [vmem:[%s1262_s19 + $0x110] sm:$0xff]  ;;  %v1140_v21 = vpack.c.bf16 %v490_v19, %v489_v18  ;;  %v474_v22 = vld [vmem:[%s1262_s19 + $0x118] sm:$0xff]  ;;  %v460_v24 = vld [vmem:[%s1262_s19 + $0xa8] sm:$0xff]  ;;  %1109 = vmatprep.subr.bf16.mxu0 %v1108_v16 }
  0x17   : > { %1139 = vmatpush3.bf16.msra.mxu1 %v1138_v12  ;;  %v1142_v25 = vpack.c.bf16 %v474_v22, %v473_v20  ;;  %v1112_v26 = vpack.c.bf16 %v460_v24, %v459_v23  ;;  %v443_v27 = vld [vmem:[%s1262_s19 + $0x20] sm:$0xff]  ;;  %v444_v28 = vld [vmem:[%s1262_s19 + $0x28] sm:$0xff]  ;;  %v461_v35 = vld [vmem:[%s1262_s19 + $0xb0] sm:$0xff] }
  0x18   : > { %v491_v29 = vld [vmem:[%s1262_s19 + $0x1a0] sm:$0xff]  ;;  %1141 = vmatprep.subr.bf16.mxu1 %v1140_v21  ;;  %v492_v30 = vld [vmem:[%s1262_s19 + $0x1a8] sm:$0xff]  ;;  %v1114_v33 = vpack.c.bf16 %v444_v28, %v443_v27  ;;  %v462_v36 = vld [vmem:[%s1262_s19 + $0xb8] sm:$0xff] }
  0x19   : > { %v475_v31 = vld [vmem:[%s1262_s19 + $0x120] sm:$0xff]  ;;  %v476_v32 = vld [vmem:[%s1262_s19 + $0x128] sm:$0xff]  ;;  %1111 = vmatpush3.bf16.msra.mxu0 %v1110_v17  ;;  %v1144_v34 = vpack.c.bf16 %v492_v30, %v491_v29  ;;  %v445_v37 = vld [vmem:[%s1262_s19 + $0x30] sm:$0xff]  ;;  %v1116_v39 = vpack.c.bf16 %v462_v36, %v461_v35 }
  0x1a   : > { %1113 = vmatprep.subr.bf16.mxu0 %v1112_v26  ;;  %v1146_v38 = vpack.c.bf16 %v476_v32, %v475_v31  ;;  %v446_v40 = vld [vmem:[%s1262_s19 + $0x38] sm:$0xff]  ;;  %v493_v41 = vld [vmem:[%s1262_s19 + $0x1b0] sm:$0xff]  ;;  %v463_v46 = vld [vmem:[%s1262_s19 + $0xc0] sm:$0xff] }
  0x1b   : > { %1143 = vmatpush3.bf16.msra.mxu1 %v1142_v25  ;;  %v494_v42 = vld [vmem:[%s1262_s19 + $0x1b8] sm:$0xff]  ;;  %v477_v44 = vld [vmem:[%s1262_s19 + $0x130] sm:$0xff]  ;;  %v464_v47 = vld [vmem:[%s1262_s19 + $0xc8] sm:$0xff]  ;;  %v1118_v48 = vpack.c.bf16 %v446_v40, %v445_v37 }
  0x1c   : > { %1145 = vmatprep.subr.bf16.mxu1 %v1144_v34  ;;  %v1148_v43 = vpack.c.bf16 %v494_v42, %v493_v41  ;;  %v478_v45 = vld [vmem:[%s1262_s19 + $0x138] sm:$0xff]  ;;  %v495_v49 = vld [vmem:[%s1262_s19 + $0x1c0] sm:$0xff]  ;;  %v496_v50 = vld [vmem:[%s1262_s19 + $0x1c8] sm:$0xff]  ;;  %v1120_v52 = vpack.c.bf16 %v464_v47, %v463_v46 }
  0x1d   : > { %1115 = vmatpush3.bf16.msra.mxu0 %v1114_v33  ;;  %v1150_v51 = vpack.c.bf16 %v478_v45, %v477_v44  ;;  %v447_v53 = vld [vmem:[%s1262_s19 + $0x40] sm:$0xff]  ;;  %v448_v54 = vld [vmem:[%s1262_s19 + $0x48] sm:$0xff]  ;;  %v1152_v56 = vpack.c.bf16 %v496_v50, %v495_v49  ;;  %v465_v58 = vld [vmem:[%s1262_s19 + $0xd0] sm:$0xff] }
  0x1e   : > { %1117 = vmatprep.subr.bf16.mxu0 %v1116_v39  ;;  %v479_v55 = vld [vmem:[%s1262_s19 + $0x140] sm:$0xff]  ;;  %v480_v57 = vld [vmem:[%s1262_s19 + $0x148] sm:$0xff]  ;;  %v466_v59 = vld [vmem:[%s1262_s19 + $0xd8] sm:$0xff]  ;;  %v1122_v62 = vpack.c.bf16 %v448_v54, %v447_v53 }
  0x1f   : > { %1147 = vmatpush3.bf16.msra.mxu1 %v1146_v38  ;;  %v497_v60 = vld [vmem:[%s1262_s19 + $0x1d0] sm:$0xff]  ;;  %v498_v61 = vld [vmem:[%s1262_s19 + $0x1d8] sm:$0xff]  ;;  %v1154_v63 = vpack.c.bf16 %v480_v57, %v479_v55  ;;  %v1124_v0 = vpack.c.bf16 %v466_v59, %v465_v58  ;;  %v467_v6 = vld [vmem:[%s1262_s19 + $0xe0] sm:$0xff] }
  0x20   : > { %1149 = vmatprep.subr.bf16.mxu1 %v1148_v43  ;;  %v449_v1 = vld [vmem:[%s1262_s19 + $0x50] sm:$0xff]  ;;  %v450_v2 = vld [vmem:[%s1262_s19 + $0x58] sm:$0xff]  ;;  %v1156_v4 = vpack.c.bf16 %v498_v61, %v497_v60  ;;  %v468_v7 = vld [vmem:[%s1262_s19 + $0xe8] sm:$0xff] }
  0x21   : > { %1119 = vmatpush3.bf16.msra.mxu0 %v1118_v48  ;;  %v481_v3 = vld [vmem:[%s1262_s19 + $0x150] sm:$0xff]  ;;  %v482_v5 = vld [vmem:[%s1262_s19 + $0x158] sm:$0xff]  ;;  %v499_v8 = vld [vmem:[%s1262_s19 + $0x1e0] sm:$0xff]  ;;  %v1126_v10 = vpack.c.bf16 %v450_v2, %v449_v1  ;;  %v1128_v14 = vpack.c.bf16 %v468_v7, %v467_v6 }
  0x22   : > { %1121 = vmatprep.subr.bf16.mxu0 %v1120_v52  ;;  %v500_v9 = vld [vmem:[%s1262_s19 + $0x1e8] sm:$0xff]  ;;  %v451_v11 = vld [vmem:[%s1262_s19 + $0x60] sm:$0xff]  ;;  %v1158_v13 = vpack.c.bf16 %v482_v5, %v481_v3  ;;  %v469_v19 = vld [vmem:[%s1262_s19 + $0xf0] sm:$0xff] }
  0x23   : > { %1151 = vmatpush3.bf16.msra.mxu1 %v1150_v51  ;;  %v452_v12 = vld [vmem:[%s1262_s19 + $0x68] sm:$0xff]  ;;  %v483_v15 = vld [vmem:[%s1262_s19 + $0x160] sm:$0xff]  ;;  %v1160_v18 = vpack.c.bf16 %v500_v9, %v499_v8  ;;  %v470_v20 = vld [vmem:[%s1262_s19 + $0xf8] sm:$0xff] }
  0x24   : > { %1153 = vmatprep.subr.bf16.mxu1 %v1152_v56  ;;  %v484_v16 = vld [vmem:[%s1262_s19 + $0x168] sm:$0xff]  ;;  %v250_v22 = vld [vmem:[%s1319_s22 + $0x18] sm:$0xff]  ;;  %v501_v23 = vld [vmem:[%s1262_s19 + $0x1f0] sm:$0xff]  ;;  %v1130_v26 = vpack.c.bf16 %v452_v12, %v451_v11  ;;  %v1132_v31 = vpack.c.bf16 %v470_v20, %v469_v19 }
  0x25   : > { %1123 = vmatpush3.bf16.msra.mxu0 %v1122_v62  ;;  %v248_v17 = vld [vmem:[%s1319_s22 + $0x8] sm:$0xff]  ;;  %v502_v24 = vld [vmem:[%s1262_s19 + $0x1f8] sm:$0xff]  ;;  %v314_v25 = vmul.f32 0.2, %v250_v22  ;;  %v453_v27 = vld [vmem:[%s1262_s19 + $0x70] sm:$0xff]  ;;  %v1162_v30 = vpack.c.bf16 %v484_v16, %v483_v15 }
  0x26   : > { %1125 = vmatprep.subr.bf16.mxu0 %v1124_v0  ;;  %v312_v21 = vmul.f32 0.2, %v248_v17  ;;  %v247_v29 = vld [vmem:[%s1319_s22] sm:$0xff]  ;;  %v454_v32 = vld [vmem:[%s1262_s19 + $0x78] sm:$0xff]  ;;  %v249_v34 = vld [vmem:[%s1319_s22 + $0x10] sm:$0xff]  ;;  %v1164_v36 = vpack.c.bf16 %v502_v24, %v501_v23 }
  0x27   : > { %1155 = vmatpush3.bf16.msra.mxu1 %v1154_v63  ;;  %v378_v33 = vmax.f32 %v250_v22, %v314_v25  ;;  %v252_v35 = vld [vmem:[%s1319_s22 + $0x28] sm:$0xff]  ;;  %v485_v37 = vld [vmem:[%s1262_s19 + $0x170] sm:$0xff]  ;;  %v486_v38 = vld [vmem:[%s1262_s19 + $0x178] sm:$0xff]  ;;  %v311_v40 = vmul.f32 0.2, %v247_v29  ;;  %v1134_v41 = vpack.c.bf16 %v454_v32, %v453_v27 }
  0x28   : > { %1157 = vmatprep.subr.bf16.mxu1 %v1156_v4  ;;  %v376_v28 = vmax.f32 %v248_v17, %v312_v21  ;;  %v254_v39 = vld [vmem:[%s1319_s22 + $0x38] sm:$0xff]  ;;  %v313_v42 = vmul.f32 0.2, %v249_v34  ;;  %v316_v43 = vmul.f32 0.2, %v252_v35  ;;  %v251_v44 = vld [vmem:[%s1319_s22 + $0x20] sm:$0xff]  ;;  %v1166_v45 = vpack.c.bf16 %v486_v38, %v485_v37 }
  0x29   : > { %1127 = vmatpush3.bf16.msra.mxu0 %v1126_v10  ;;  %719 = vmatprep.mubr.f32.mxu1 %v378_v33  ;;  %v318_v46 = vmul.f32 0.2, %v254_v39  ;;  %v253_v47 = vld [vmem:[%s1319_s22 + $0x30] sm:$0xff]  ;;  %v256_v48 = vld [vmem:[%s1319_s22 + $0x48] sm:$0xff]  ;;  %v258_v49 = vld [vmem:[%s1319_s22 + $0x58] sm:$0xff]  ;;  %v375_v50 = vmax.f32 %v247_v29, %v311_v40 }
  0x2a   : > { %1129 = vmatprep.subr.bf16.mxu0 %v1128_v14  ;;  %574 = vmatprep.mubr.f32.mxu0 %v376_v28  ;;  %v315_v51 = vmul.f32 0.2, %v251_v44  ;;  %v377_v52 = vmax.f32 %v249_v34, %v313_v42  ;;  %v380_v53 = vmax.f32 %v252_v35, %v316_v43  ;;  %v317_v54 = vmul.f32 0.2, %v253_v47  ;;  %v255_v56 = vld [vmem:[%s1319_s22 + $0x40] sm:$0xff]  ;;  %v257_v59 = vld [vmem:[%s1319_s22 + $0x50] sm:$0xff] }
  0x2b   : > { %1159 = vmatpush3.bf16.msra.mxu1 %v1158_v13  ;;  %v320_v55 = vmul.f32 0.2, %v256_v48  ;;  %v382_v57 = vmax.f32 %v254_v39, %v318_v46  ;;  %v322_v58 = vmul.f32 0.2, %v258_v49  ;;  %v260_v60 = vld [vmem:[%s1319_s22 + $0x68] sm:$0xff]  ;;  %v262_v61 = vld [vmem:[%s1319_s22 + $0x78] sm:$0xff] }
  0x2c   : > { %1161 = vmatprep.subr.bf16.mxu1 %v1160_v18  ;;  %v379_v62 = vmax.f32 %v251_v44, %v315_v51  ;;  %v319_v63 = vmul.f32 0.2, %v255_v56  ;;  %v381_v0 = vmax.f32 %v253_v47, %v317_v54  ;;  %v321_v2 = vmul.f32 0.2, %v257_v59  ;;  %v259_v4 = vld [vmem:[%s1319_s22 + $0x60] sm:$0xff]  ;;  %v261_v7 = vld [vmem:[%s1319_s22 + $0x70] sm:$0xff] }
  0x2d   : > { %1131 = vmatpush3.bf16.msra.mxu0 %v1130_v26  ;;  %v384_v1 = vmax.f32 %v256_v48, %v320_v55  ;;  %v324_v3 = vmul.f32 0.2, %v260_v60  ;;  %v386_v5 = vmax.f32 %v258_v49, %v322_v58  ;;  %v326_v6 = vmul.f32 0.2, %v262_v61  ;;  %v264_v8 = vld [vmem:[%s1319_s22 + $0x88] sm:$0xff]  ;;  %v266_v9 = vld [vmem:[%s1319_s22 + $0x98] sm:$0xff] }
  0x2e   : > { %1133 = vmatprep.subr.bf16.mxu0 %v1132_v31  ;;  %v383_v10 = vmax.f32 %v255_v56, %v319_v63  ;;  %v323_v11 = vmul.f32 0.2, %v259_v4  ;;  %v385_v12 = vmax.f32 %v257_v59, %v321_v2  ;;  %v325_v14 = vmul.f32 0.2, %v261_v7  ;;  %v263_v16 = vld [vmem:[%s1319_s22 + $0x80] sm:$0xff]  ;;  %v265_v19 = vld [vmem:[%s1319_s22 + $0x90] sm:$0xff] }
  0x2f   : > { %1163 = vmatpush3.bf16.msra.mxu1 %v1162_v30  ;;  %v388_v13 = vmax.f32 %v260_v60, %v324_v3  ;;  %v328_v15 = vmul.f32 0.2, %v264_v8  ;;  %v390_v17 = vmax.f32 %v262_v61, %v326_v6  ;;  %v330_v18 = vmul.f32 0.2, %v266_v9  ;;  %v268_v20 = vld [vmem:[%s1319_s22 + $0xa8] sm:$0xff]  ;;  %v270_v21 = vld [vmem:[%s1319_s22 + $0xb8] sm:$0xff] }
  0x30   : > { %1165 = vmatprep.subr.bf16.mxu1 %v1164_v36  ;;  %v387_v22 = vmax.f32 %v259_v4, %v323_v11  ;;  %v327_v23 = vmul.f32 0.2, %v263_v16  ;;  %v389_v24 = vmax.f32 %v261_v7, %v325_v14  ;;  %v329_v26 = vmul.f32 0.2, %v265_v19  ;;  %v267_v28 = vld [vmem:[%s1319_s22 + $0xa0] sm:$0xff]  ;;  %v269_v31 = vld [vmem:[%s1319_s22 + $0xb0] sm:$0xff] }
  0x31   : > { %1135 = vmatpush3.bf16.msra.mxu0 %v1134_v41  ;;  %v392_v25 = vmax.f32 %v264_v8, %v328_v15  ;;  %v332_v27 = vmul.f32 0.2, %v268_v20  ;;  %v394_v29 = vmax.f32 %v266_v9, %v330_v18  ;;  %v334_v30 = vmul.f32 0.2, %v270_v21  ;;  %v272_v32 = vld [vmem:[%s1319_s22 + $0xc8] sm:$0xff]  ;;  %v274_v33 = vld [vmem:[%s1319_s22 + $0xd8] sm:$0xff] }
  0x32   : > { %v391_v34 = vmax.f32 %v263_v16, %v327_v23  ;;  %v331_v35 = vmul.f32 0.2, %v267_v28  ;;  %v393_v36 = vmax.f32 %v265_v19, %v329_v26  ;;  %v333_v38 = vmul.f32 0.2, %v269_v31  ;;  %v271_v40 = vld [vmem:[%s1319_s22 + $0xc0] sm:$0xff]  ;;  %v273_v43 = vld [vmem:[%s1319_s22 + $0xd0] sm:$0xff] }
  0x33   : > { %1167 = vmatpush3.bf16.msra.mxu1 %v1166_v45  ;;  %v396_v37 = vmax.f32 %v268_v20, %v332_v27  ;;  %v336_v39 = vmul.f32 0.2, %v272_v32  ;;  %v398_v41 = vmax.f32 %v270_v21, %v334_v30  ;;  %v338_v42 = vmul.f32 0.2, %v274_v33  ;;  %v276_v44 = vld [vmem:[%s1319_s22 + $0xe8] sm:$0xff]  ;;  %v278_v45 = vld [vmem:[%s1319_s22 + $0xf8] sm:$0xff] }
  0x34   : > { %575 = vmatmul.mubr.f32.vlgmr.msra.gmra.mrb[0].mxu0 %v375_v50  ;;  %v395_v46 = vmax.f32 %v267_v28, %v331_v35  ;;  %v335_v47 = vmul.f32 0.2, %v271_v40  ;;  %v397_v48 = vmax.f32 %v269_v31, %v333_v38  ;;  %v337_v50 = vmul.f32 0.2, %v273_v43  ;;  %v277_v55 = vld [vmem:[%s1319_s22 + $0xf0] sm:$0xff]  ;;  %v280_v56 = vld [vmem:[%s1319_s22 + $0x108] sm:$0xff] }
  0x35   : > { %579 = vmatprep.mubr.f32.mxu0 %v380_v53  ;;  %v400_v49 = vmax.f32 %v272_v32, %v336_v39  ;;  %v340_v51 = vmul.f32 0.2, %v276_v44  ;;  %v402_v53 = vmax.f32 %v274_v33, %v338_v42  ;;  %v342_v54 = vmul.f32 0.2, %v278_v45  ;;  %v281_v3 = vld [vmem:[%s1319_s22 + $0x110] sm:$0xff]  ;;  %v284_v4 = vld [vmem:[%s1319_s22 + $0x128] sm:$0xff] }
  0x36   : > { %720 = vmatmul.mubr.f32.vlgmr.msra.gmra.mrb[0].mxu1 %v377_v52  ;;  %v275_v52 = vld [vmem:[%s1319_s22 + $0xe0] sm:$0xff]  ;;  %v399_v58 = vmax.f32 %v271_v40, %v335_v47  ;;  %v401_v60 = vmax.f32 %v273_v43, %v337_v50  ;;  %v344_v63 = vmul.f32 0.2, %v280_v56  ;;  %v348_v11 = vmul.f32 0.2, %v284_v4  ;;  %v285_v15 = vld [vmem:[%s1319_s22 + $0x130] sm:$0xff] }
  0x37   : > { %724 = vmatprep.mubr.f32.mxu1 %v382_v57  ;;  %v282_v57 = vld [vmem:[%s1319_s22 + $0x118] sm:$0xff]  ;;  %v339_v59 = vmul.f32 0.2, %v275_v52  ;;  %v404_v61 = vmax.f32 %v276_v44, %v340_v51  ;;  %v288_v16 = vld [vmem:[%s1319_s22 + $0x148] sm:$0xff]  ;;  %v289_v27 = vld [vmem:[%s1319_s22 + $0x150] sm:$0xff] }
  0x38   : > { %580 = vmatmul.mubr.f32.gmra.mrb[2].mxu0 %v379_v62  ;;  %v341_v62 = vmul.f32 0.2, %v277_v55  ;;  %v346_v2 = vmul.f32 0.2, %v282_v57  ;;  %v408_v9 = vmax.f32 %v280_v56, %v344_v63  ;;  %v412_v21 = vmax.f32 %v284_v4, %v348_v11  ;;  %v292_v28 = vld [vmem:[%s1319_s22 + $0x168] sm:$0xff]  ;;  %v293_v39 = vld [vmem:[%s1319_s22 + $0x170] sm:$0xff] }
  0x39   : > { %584 = vmatprep.mubr.f32.mxu0 %v384_v1  ;;  %v406_v1 = vmax.f32 %v278_v45, %v342_v54  ;;  %v403_v6 = vmax.f32 %v275_v52, %v339_v59  ;;  %v352_v23 = vmul.f32 0.2, %v288_v16  ;;  %v356_v35 = vmul.f32 0.2, %v292_v28  ;;  %v296_v40 = vld [vmem:[%s1319_s22 + $0x188] sm:$0xff]  ;;  %v297_v51 = vld [vmem:[%s1319_s22 + $0x190] sm:$0xff] }
  0x3a   : > { %725 = vmatmul.mubr.f32.gmra.mrb[2].mxu1 %v381_v0  ;;  %v279_v0 = vld [vmem:[%s1319_s22 + $0x100] sm:$0xff]  ;;  %v405_v8 = vmax.f32 %v277_v55, %v341_v62  ;;  %v360_v47 = vmul.f32 0.2, %v296_v40  ;;  %v300_v52 = vld [vmem:[%s1319_s22 + $0x1a8] sm:$0xff]  ;;  %v301_v63 = vld [vmem:[%s1319_s22 + $0x1b0] sm:$0xff] }
  0x3b   : > { %729 = vmatprep.mubr.f32.mxu1 %v386_v5  ;;  %v286_v5 = vld [vmem:[%s1319_s22 + $0x138] sm:$0xff]  ;;  %v343_v7 = vmul.f32 0.2, %v279_v0  ;;  %v416_v33 = vmax.f32 %v288_v16, %v352_v23  ;;  %v420_v45 = vmax.f32 %v292_v28, %v356_v35  ;;  %v364_v59 = vmul.f32 0.2, %v300_v52  ;;  %v305_v11 = vld [vmem:[%s1319_s22 + $0x1d0] sm:$0xff] }
  0x3c   : > { %585 = vmatmul.mubr.f32.gmra.mrb[4].mxu0 %v383_v10  ;;  %v345_v10 = vmul.f32 0.2, %v281_v3  ;;  %v350_v14 = vmul.f32 0.2, %v286_v5  ;;  %v309_v23 = vld [vmem:[%s1319_s22 + $0x1f0] sm:$0xff] }
  0x3d   : > { %589 = vmatprep.mubr.f32.mxu0 %v388_v13  ;;  %v410_v13 = vmax.f32 %v282_v57, %v346_v2  ;;  %v407_v18 = vmax.f32 %v279_v0, %v343_v7  ;;  %v424_v57 = vmax.f32 %v296_v40, %v360_v47  ;;  %v304_v0 = vld [vmem:[%s1319_s22 + $0x1c8] sm:$0xff]  ;;  %v373_v28 = vmul.f32 0.2, %v309_v23 }
  0x3e   : > { %730 = vmatmul.mubr.f32.gmra.mrb[4].mxu1 %v385_v12  ;;  %v283_v12 = vld [vmem:[%s1319_s22 + $0x120] sm:$0xff]  ;;  %v409_v20 = vmax.f32 %v281_v3, %v345_v10  ;;  %v368_v7 = vmul.f32 0.2, %v304_v0 }
  0x3f   : > { %734 = vmatprep.mubr.f32.mxu1 %v390_v17  ;;  %v290_v17 = vld [vmem:[%s1319_s22 + $0x158] sm:$0xff]  ;;  %v347_v19 = vmul.f32 0.2, %v283_v12 }
  0x40   : > { %590 = vmatmul.mubr.f32.gmra.mrb[6].mxu0 %v387_v22  ;;  %v349_v22 = vmul.f32 0.2, %v285_v15  ;;  %v354_v26 = vmul.f32 0.2, %v290_v17 }
  0x41   : > { %594 = vmatprep.mubr.f32.mxu0 %v392_v25  ;;  %v414_v25 = vmax.f32 %v286_v5, %v350_v14  ;;  %v411_v30 = vmax.f32 %v283_v12, %v347_v19  ;;  %v428_v5 = vmax.f32 %v300_v52, %v364_v59  ;;  %v308_v12 = vld [vmem:[%s1319_s22 + $0x1e8] sm:$0xff] }
  0x42   : > { %735 = vmatmul.mubr.f32.gmra.mrb[6].mxu1 %v389_v24  ;;  %v287_v24 = vld [vmem:[%s1319_s22 + $0x140] sm:$0xff]  ;;  %v413_v32 = vmax.f32 %v285_v15, %v349_v22  ;;  %v372_v19 = vmul.f32 0.2, %v308_v12 }
  0x43   : > { %739 = vmatprep.mubr.f32.mxu1 %v394_v29  ;;  %v294_v29 = vld [vmem:[%s1319_s22 + $0x178] sm:$0xff]  ;;  %v351_v31 = vmul.f32 0.2, %v287_v24 }
  0x44   : > { %595 = vmatmul.mubr.f32.gmra.mrb[8].mxu0 %v391_v34  ;;  %v353_v34 = vmul.f32 0.2, %v289_v27  ;;  %v358_v38 = vmul.f32 0.2, %v294_v29 }
  0x45   : > { %599 = vmatprep.mubr.f32.mxu0 %v396_v37  ;;  %v418_v37 = vmax.f32 %v290_v17, %v354_v26  ;;  %v415_v42 = vmax.f32 %v287_v24, %v351_v31  ;;  %v432_v17 = vmax.f32 %v304_v0, %v368_v7  ;;  %v437_v31 = vmax.f32 %v309_v23, %v373_v28 }
  0x46   : > { %740 = vmatmul.mubr.f32.gmra.mrb[8].mxu1 %v393_v36  ;;  %v291_v36 = vld [vmem:[%s1319_s22 + $0x160] sm:$0xff]  ;;  %v417_v44 = vmax.f32 %v289_v27, %v353_v34  ;;  %v436_v27 = vmax.f32 %v308_v12, %v372_v19 }
  0x47   : > { %744 = vmatprep.mubr.f32.mxu1 %v398_v41  ;;  %v298_v41 = vld [vmem:[%s1319_s22 + $0x198] sm:$0xff]  ;;  %v355_v43 = vmul.f32 0.2, %v291_v36 }
  0x48   : > { %600 = vmatmul.mubr.f32.gmra.mrb[10].mxu0 %v395_v46  ;;  %v357_v46 = vmul.f32 0.2, %v293_v39  ;;  %v362_v50 = vmul.f32 0.2, %v298_v41 }
  0x49   : > { %604 = vmatprep.mubr.f32.mxu0 %v400_v49  ;;  %v422_v49 = vmax.f32 %v294_v29, %v358_v38  ;;  %v419_v54 = vmax.f32 %v291_v36, %v355_v43 }
  0x4a   : > { %745 = vmatmul.mubr.f32.gmra.mrb[10].mxu1 %v397_v48  ;;  %v295_v48 = vld [vmem:[%s1319_s22 + $0x180] sm:$0xff]  ;;  %v421_v56 = vmax.f32 %v293_v39, %v357_v46 }
  0x4b   : > { %749 = vmatprep.mubr.f32.mxu1 %v402_v53  ;;  %v302_v53 = vld [vmem:[%s1319_s22 + $0x1b8] sm:$0xff]  ;;  %v359_v55 = vmul.f32 0.2, %v295_v48 }
  0x4c   : > { %605 = vmatmul.mubr.f32.gmra.mrb[12].mxu0 %v399_v58  ;;  %v361_v58 = vmul.f32 0.2, %v297_v51  ;;  %v366_v62 = vmul.f32 0.2, %v302_v53 }
  0x4d   : > { %609 = vmatprep.mubr.f32.mxu0 %v404_v61  ;;  %v426_v61 = vmax.f32 %v298_v41, %v362_v50  ;;  %v423_v2 = vmax.f32 %v295_v48, %v359_v55 }
  0x4e   : > { %750 = vmatmul.mubr.f32.gmra.mrb[12].mxu1 %v401_v60  ;;  %v299_v60 = vld [vmem:[%s1319_s22 + $0x1a0] sm:$0xff]  ;;  %v425_v4 = vmax.f32 %v297_v51, %v361_v58 }
  0x4f   : > { %754 = vmatprep.mubr.f32.mxu1 %v406_v1  ;;  %v306_v1 = vld [vmem:[%s1319_s22 + $0x1d8] sm:$0xff]  ;;  %v363_v3 = vmul.f32 0.2, %v299_v60 }
  0x50   : > { %610 = vmatmul.mubr.f32.gmra.mrb[14].mxu0 %v403_v6  ;;  %v365_v6 = vmul.f32 0.2, %v301_v63  ;;  %v370_v10 = vmul.f32 0.2, %v306_v1 }
  0x51   : > { %614 = vmatprep.mubr.f32.mxu0 %v408_v9  ;;  %v430_v9 = vmax.f32 %v302_v53, %v366_v62  ;;  %v427_v14 = vmax.f32 %v299_v60, %v363_v3 }
  0x52   : > { %755 = vmatmul.mubr.f32.gmra.mrb[14].mxu1 %v405_v8  ;;  %v303_v8 = vld [vmem:[%s1319_s22 + $0x1c0] sm:$0xff]  ;;  %v429_v16 = vmax.f32 %v301_v63, %v365_v6 }
  0x53   : > { %759 = vmatprep.mubr.f32.mxu1 %v410_v13  ;;  %v310_v13 = vld [vmem:[%s1319_s22 + $0x1f8] sm:$0xff]  ;;  %v367_v15 = vmul.f32 0.2, %v303_v8 }
  0x54   : > { %615 = vmatmul.mubr.f32.gmra.mrb[16].mxu0 %v407_v18  ;;  %v369_v18 = vmul.f32 0.2, %v305_v11  ;;  %v374_v22 = vmul.f32 0.2, %v310_v13 }
  0x55   : > { %619 = vmatprep.mubr.f32.mxu0 %v412_v21  ;;  %v434_v21 = vmax.f32 %v306_v1, %v370_v10  ;;  %v431_v24 = vmax.f32 %v303_v8, %v367_v15 }
  0x56   : > { %760 = vmatmul.mubr.f32.gmra.mrb[16].mxu1 %v409_v20  ;;  %v307_v20 = vld [vmem:[%s1319_s22 + $0x1e0] sm:$0xff]  ;;  %v433_v26 = vmax.f32 %v305_v11, %v369_v18  ;;  %v438_v29 = vmax.f32 %v310_v13, %v374_v22 }
  0x57   : > { %764 = vmatprep.mubr.f32.mxu1 %v414_v25  ;;  %v371_v25 = vmul.f32 0.2, %v307_v20 }
  0x58   : > { %620 = vmatmul.mubr.f32.gmra.mrb[18].mxu0 %v411_v30 }
  0x59   : > { %624 = vmatprep.mubr.f32.mxu0 %v416_v33  ;;  %v435_v30 = vmax.f32 %v307_v20, %v371_v25  ;;  %v1403_v33 = vld [vmem:[%s236_s25] ss:$0 sm:$0xff] }
  0x5a   : > { %765 = vmatmul.mubr.f32.gmra.mrb[18].mxu1 %v413_v32 }
  0x5b   : > { %769 = vmatprep.mubr.f32.mxu1 %v418_v37 }
  0x5c   : > { %625 = vmatmul.mubr.f32.gmra.mrb[20].mxu0 %v415_v42 }
  0x5d   : > { %629 = vmatprep.mubr.f32.mxu0 %v420_v45 }
  0x5e   : > { %770 = vmatmul.mubr.f32.gmra.mrb[20].mxu1 %v417_v44 }
  0x5f   : > { %774 = vmatprep.mubr.f32.mxu1 %v422_v49 }
  0x60   : > { %630 = vmatmul.mubr.f32.gmra.mrb[22].mxu0 %v419_v54 }
  0x61   : > { %634 = vmatprep.mubr.f32.mxu0 %v424_v57 }
  0x62   : > { %775 = vmatmul.mubr.f32.gmra.mrb[22].mxu1 %v421_v56 }
  0x63   : > { %779 = vmatprep.mubr.f32.mxu1 %v426_v61 }
  0x64   : > { %635 = vmatmul.mubr.f32.gmra.mrb[24].mxu0 %v423_v2 }
  0x65   : > { %639 = vmatprep.mubr.f32.mxu0 %v428_v5 }
  0x66   : > { %780 = vmatmul.mubr.f32.gmra.mrb[24].mxu1 %v425_v4 }
  0x67   : > { %784 = vmatprep.mubr.f32.mxu1 %v430_v9 }
  0x68   : > { %640 = vmatmul.mubr.f32.gmra.mrb[26].mxu0 %v427_v14 }
  0x69   : > { %644 = vmatprep.mubr.f32.mxu0 %v432_v17 }
  0x6a   : > { %785 = vmatmul.mubr.f32.gmra.mrb[26].mxu1 %v429_v16 }
  0x6b   : > { %789 = vmatprep.mubr.f32.mxu1 %v434_v21 }
  0x6c   : > { %645 = vmatmul.mubr.f32.gmra.mrb[28].mxu0 %v431_v24 }
  0x6d   : > { %649 = vmatprep.mubr.f32.mxu0 %v436_v27 }
  0x6e   : > { %790 = vmatmul.mubr.f32.gmra.mrb[28].mxu1 %v433_v26 }
  0x6f   : > { %794 = vmatprep.mubr.f32.mxu1 %v438_v29 }
  0x70   : > { %650 = vmatmul.mubr.f32.gmra.mrb[30].mxu0 %v435_v30 }
  0x72   : > { %795 = vmatmul.mubr.f32.gmra.mrb[30].mxu1 %v437_v31 }
 0x107   : > { %v976_v32 = vpop.f32.mrb[0].mxu0 }
 0x108   : > { %v977_v34 = vpop.f32.mrb[1].mxu0 }
 0x109   : > { %v1056_v35 = vpop.f32.mrb[0].mxu1  ;;  %v978_v36 = vadd.f32 %v977_v34, %v976_v32 }
 0x10a   : > { %v1057_v37 = vpop.f32.mrb[1].mxu1 }
 0x10b   : > { %v1058_v38 = vadd.f32 %v1057_v37, %v1056_v35  ;;  %v577_v39 = vadd.f32 %v978_v36, %v1403_v33  ;;  %v979_v40 = vpop.f32.mrb[2].mxu0 }
 0x10c   : > { %v980_v41 = vpop.f32.mrb[3].mxu0 }
 0x10d   : > { %v1059_v42 = vpop.f32.mrb[2].mxu1  ;;  %v722_v43 = vadd.f32 %v1058_v38, %v577_v39  ;;  %v981_v44 = vadd.f32 %v980_v41, %v979_v40 }
 0x10e   : > { %v1060_v45 = vpop.f32.mrb[3].mxu1 }
 0x10f   : > { %v1061_v46 = vadd.f32 %v1060_v45, %v1059_v42  ;;  %800 = vst [vmem:[%s1410_s29] sm:$0xff] %v722_v43  ;;  %v582_v47 = vadd.f32 %v981_v44, %v1403_v33  ;;  %v982_v48 = vpop.f32.mrb[4].mxu0 }
 0x110   : > { %v983_v49 = vpop.f32.mrb[5].mxu0 }
 0x111   : > { %v1062_v50 = vpop.f32.mrb[4].mxu1  ;;  %v727_v51 = vadd.f32 %v1061_v46, %v582_v47  ;;  %v984_v52 = vadd.f32 %v983_v49, %v982_v48 }
 0x112   : > { %v1063_v53 = vpop.f32.mrb[5].mxu1 }
 0x113   : > { %v1064_v54 = vadd.f32 %v1063_v53, %v1062_v50  ;;  %801 = vst [vmem:[%s1410_s29 + $0x8] sm:$0xff] %v727_v51  ;;  %v587_v55 = vadd.f32 %v984_v52, %v1403_v33  ;;  %v985_v56 = vpop.f32.mrb[6].mxu0 }
 0x114   : > { %v986_v57 = vpop.f32.mrb[7].mxu0 }
 0x115   : > { %v1065_v58 = vpop.f32.mrb[6].mxu1  ;;  %v732_v59 = vadd.f32 %v1064_v54, %v587_v55  ;;  %v987_v60 = vadd.f32 %v986_v57, %v985_v56 }
 0x116   : > { %v1066_v61 = vpop.f32.mrb[7].mxu1 }
 0x117   : > { %v1067_v62 = vadd.f32 %v1066_v61, %v1065_v58  ;;  %802 = vst [vmem:[%s1410_s29 + $0x10] sm:$0xff] %v732_v59  ;;  %v592_v63 = vadd.f32 %v987_v60, %v1403_v33  ;;  %v988_v0 = vpop.f32.mrb[8].mxu0 }
 0x118   : > { %v989_v1 = vpop.f32.mrb[9].mxu0 }
 0x119   : > { %v1068_v2 = vpop.f32.mrb[8].mxu1  ;;  %v737_v3 = vadd.f32 %v1067_v62, %v592_v63  ;;  %v990_v4 = vadd.f32 %v989_v1, %v988_v0 }
 0x11a   : > { %v1069_v5 = vpop.f32.mrb[9].mxu1 }
 0x11b   : > { %v1070_v6 = vadd.f32 %v1069_v5, %v1068_v2  ;;  %803 = vst [vmem:[%s1410_s29 + $0x18] sm:$0xff] %v737_v3  ;;  %v597_v7 = vadd.f32 %v990_v4, %v1403_v33  ;;  %v991_v8 = vpop.f32.mrb[10].mxu0 }
 0x11c   : > { %v992_v9 = vpop.f32.mrb[11].mxu0 }
 0x11d   : > { %v1071_v10 = vpop.f32.mrb[10].mxu1  ;;  %v742_v11 = vadd.f32 %v1070_v6, %v597_v7  ;;  %v993_v12 = vadd.f32 %v992_v9, %v991_v8 }
 0x11e   : > { %v1072_v13 = vpop.f32.mrb[11].mxu1 }
 0x11f   : > { %v1073_v14 = vadd.f32 %v1072_v13, %v1071_v10  ;;  %804 = vst [vmem:[%s1410_s29 + $0x20] sm:$0xff] %v742_v11  ;;  %v602_v15 = vadd.f32 %v993_v12, %v1403_v33  ;;  %v994_v16 = vpop.f32.mrb[12].mxu0 }
 0x120   : > { %v995_v17 = vpop.f32.mrb[13].mxu0 }
 0x121   : > { %v1074_v18 = vpop.f32.mrb[12].mxu1  ;;  %v747_v19 = vadd.f32 %v1073_v14, %v602_v15  ;;  %v996_v20 = vadd.f32 %v995_v17, %v994_v16 }
 0x122   : > { %v1075_v21 = vpop.f32.mrb[13].mxu1 }
 0x123   : > { %v1076_v22 = vadd.f32 %v1075_v21, %v1074_v18  ;;  %805 = vst [vmem:[%s1410_s29 + $0x28] sm:$0xff] %v747_v19  ;;  %v607_v23 = vadd.f32 %v996_v20, %v1403_v33  ;;  %v997_v24 = vpop.f32.mrb[14].mxu0 }
 0x124   : > { %v998_v25 = vpop.f32.mrb[15].mxu0 }
 0x125   : > { %v1077_v26 = vpop.f32.mrb[14].mxu1  ;;  %v752_v27 = vadd.f32 %v1076_v22, %v607_v23  ;;  %v999_v28 = vadd.f32 %v998_v25, %v997_v24 }
 0x126   : > { %v1078_v29 = vpop.f32.mrb[15].mxu1 }
 0x127   : > { %v1079_v30 = vadd.f32 %v1078_v29, %v1077_v26  ;;  %806 = vst [vmem:[%s1410_s29 + $0x30] sm:$0xff] %v752_v27  ;;  %v612_v31 = vadd.f32 %v999_v28, %v1403_v33  ;;  %v1000_v32 = vpop.f32.mrb[16].mxu0 }
 0x128   : > { %v1001_v34 = vpop.f32.mrb[17].mxu0 }
 0x129   : > { %v1080_v35 = vpop.f32.mrb[16].mxu1  ;;  %v757_v36 = vadd.f32 %v1079_v30, %v612_v31  ;;  %v1002_v37 = vadd.f32 %v1001_v34, %v1000_v32 }
 0x12a   : > { %v1081_v38 = vpop.f32.mrb[17].mxu1 }
 0x12b   : > { %v1082_v39 = vadd.f32 %v1081_v38, %v1080_v35  ;;  %807 = vst [vmem:[%s1410_s29 + $0x38] sm:$0xff] %v757_v36  ;;  %v617_v40 = vadd.f32 %v1002_v37, %v1403_v33  ;;  %v1003_v41 = vpop.f32.mrb[18].mxu0 }
 0x12c   : > { %v1004_v42 = vpop.f32.mrb[19].mxu0 }
 0x12d   : > { %v1083_v43 = vpop.f32.mrb[18].mxu1  ;;  %v762_v44 = vadd.f32 %v1082_v39, %v617_v40  ;;  %v1005_v45 = vadd.f32 %v1004_v42, %v1003_v41 }
 0x12e   : > { %v1084_v46 = vpop.f32.mrb[19].mxu1 }
 0x12f   : > { %v1085_v47 = vadd.f32 %v1084_v46, %v1083_v43  ;;  %808 = vst [vmem:[%s1410_s29 + $0x40] sm:$0xff] %v762_v44  ;;  %v622_v48 = vadd.f32 %v1005_v45, %v1403_v33  ;;  %v1006_v49 = vpop.f32.mrb[20].mxu0 }
 0x130   : > { %v1007_v50 = vpop.f32.mrb[21].mxu0 }
 0x131   : > { %v1086_v51 = vpop.f32.mrb[20].mxu1  ;;  %v767_v52 = vadd.f32 %v1085_v47, %v622_v48  ;;  %v1008_v53 = vadd.f32 %v1007_v50, %v1006_v49 }
 0x132   : > { %v1087_v54 = vpop.f32.mrb[21].mxu1 }
 0x133   : > { %v1088_v55 = vadd.f32 %v1087_v54, %v1086_v51  ;;  %809 = vst [vmem:[%s1410_s29 + $0x48] sm:$0xff] %v767_v52  ;;  %v627_v56 = vadd.f32 %v1008_v53, %v1403_v33  ;;  %v1009_v57 = vpop.f32.mrb[22].mxu0 }
 0x134   : > { %v1010_v58 = vpop.f32.mrb[23].mxu0 }
 0x135   : > { %v1089_v59 = vpop.f32.mrb[22].mxu1  ;;  %v772_v60 = vadd.f32 %v1088_v55, %v627_v56  ;;  %v1011_v61 = vadd.f32 %v1010_v58, %v1009_v57 }
 0x136   : > { %v1090_v62 = vpop.f32.mrb[23].mxu1 }
 0x137   : > { %v1091_v63 = vadd.f32 %v1090_v62, %v1089_v59  ;;  %810 = vst [vmem:[%s1410_s29 + $0x50] sm:$0xff] %v772_v60  ;;  %v632_v0 = vadd.f32 %v1011_v61, %v1403_v33  ;;  %v1012_v1 = vpop.f32.mrb[24].mxu0 }
 0x138   : > { %v1013_v2 = vpop.f32.mrb[25].mxu0 }
 0x139   : > { %v1092_v3 = vpop.f32.mrb[24].mxu1  ;;  %v777_v4 = vadd.f32 %v1091_v63, %v632_v0  ;;  %v1014_v5 = vadd.f32 %v1013_v2, %v1012_v1 }
 0x13a   : > { %v1093_v6 = vpop.f32.mrb[25].mxu1 }
 0x13b   : > { %v1094_v7 = vadd.f32 %v1093_v6, %v1092_v3  ;;  %811 = vst [vmem:[%s1410_s29 + $0x58] sm:$0xff] %v777_v4  ;;  %v637_v8 = vadd.f32 %v1014_v5, %v1403_v33  ;;  %v1015_v9 = vpop.f32.mrb[26].mxu0 }
 0x13c   : > { %v1016_v10 = vpop.f32.mrb[27].mxu0 }
 0x13d   : > { %v1095_v11 = vpop.f32.mrb[26].mxu1  ;;  %v782_v12 = vadd.f32 %v1094_v7, %v637_v8  ;;  %v1017_v13 = vadd.f32 %v1016_v10, %v1015_v9 }
 0x13e   : > { %v1096_v14 = vpop.f32.mrb[27].mxu1 }
 0x13f   : > { %v1097_v15 = vadd.f32 %v1096_v14, %v1095_v11  ;;  %812 = vst [vmem:[%s1410_s29 + $0x60] sm:$0xff] %v782_v12  ;;  %v642_v16 = vadd.f32 %v1017_v13, %v1403_v33  ;;  %v1018_v17 = vpop.f32.mrb[28].mxu0 }
 0x140   : > { %v1019_v18 = vpop.f32.mrb[29].mxu0 }
 0x141   : > { %v1098_v19 = vpop.f32.mrb[28].mxu1  ;;  %v787_v20 = vadd.f32 %v1097_v15, %v642_v16  ;;  %v1020_v21 = vadd.f32 %v1019_v18, %v1018_v17 }
 0x142   : > { %v1099_v22 = vpop.f32.mrb[29].mxu1 }
 0x143   : > { %v1100_v23 = vadd.f32 %v1099_v22, %v1098_v19  ;;  %813 = vst [vmem:[%s1410_s29 + $0x68] sm:$0xff] %v787_v20  ;;  %v647_v24 = vadd.f32 %v1020_v21, %v1403_v33  ;;  %v1021_v25 = vpop.f32.mrb[30].mxu0 }
 0x144   : > { %v1022_v26 = vpop.f32.mrb[31].mxu0 }
 0x145   : > { %v1101_v27 = vpop.f32.mrb[30].mxu1  ;;  %v792_v28 = vadd.f32 %v1100_v23, %v647_v24  ;;  %v1023_v29 = vadd.f32 %v1022_v26, %v1021_v25 }
 0x146   : > { %v1102_v30 = vpop.f32.mrb[31].mxu1 }
 0x147   : > { %v1103_v31 = vadd.f32 %v1102_v30, %v1101_v27  ;;  %814 = vst [vmem:[%s1410_s29 + $0x70] sm:$0xff] %v792_v28  ;;  %v652_v32 = vadd.f32 %v1023_v29, %v1403_v33 }
 0x149   : > { %v797_v34 = vadd.f32 %v1103_v31, %v652_v32 }
 0x14b   : > { %815 = vst [vmem:[%s1410_s29 + $0x78] sm:$0xff] %v797_v34 }
 0x14c PF: > { %s13_s14 = sadd.s32 1, %s1214_s14   ;;  %s1456_s12 = smov %s1210_s13 }
 0x14d   : > { %p10_p5 = scmp.ge.s32.totalorder %s13_s14, 8   ;;  %s1457_s13 = smov %s1459_s15 }
 0x14f   :  { %12 = sbr.rel (!%p10_p5) target bundleno = 2 (0x2), region = 68 }

// kernel: encoder_forward.9
= control target key start
LH: loop header
LB: loop body
LE: loop exit
PB: predicated region body
PF: predicated region fallthrough
CT: control target
= control target key end

     0   :  { %s888_s12 = smov 0   ;;  %s890_s13 = smov 0   ;;  %s1017_s0 = inlined_call_operand.vmem [shape: f32[6,32,512], index: 0, kind: input, shape index: {}]   ;;  %s1018_s1 = inlined_call_operand.vmem [shape: f32[6,512,128], index: 1, kind: input, shape index: {}]   ;;  %s1019_s2 = inlined_call_operand.vmem [shape: f32[6,1,128], index: 2, kind: input, shape index: {}]   ;;  %s1020_s3 = inlined_call_operand.vmem [shape: f32[6,32,128], index: 3, kind: output, shape index: {}]  }
   0x1   :  { %s892_s14 = smov 0  }
   0x2 LB: > { %s25_s15 = sadd.s32 1, %s862_s13  ;;  %p655_p0 = scmp.ge.s32.totalorder %s866_s14, 1  ;;  %s866_s14 = sphi %s892_s14, %s13_s14   ;;  %s862_s13 = sphi %s890_s13, %s1022_s13   ;;  %s858_s12 = sphi %s888_s12, %s1021_s12  }
   0x3   : > { %p27_p1 = scmp.ge.s32.totalorder %s25_s15, 6  ;;  %p177_p2 = scmp.lt.s32.totalorder %s866_s14, 7 }
   0x5   : > { %s1024_s15 = smov (%p27_p1, %s25_s15), 0  ;;  %p178_p3 = pnand %p655_p0, %p177_p2 }
   0x6   : > { %p219_p4 = scmp.lt.s32.totalorder (!%p178_p3), %s858_s12, 5 }
   0x7   : > { %181 = sbr.rel (%p178_p3) target bundleno = 284 (0x11c), region = 32 }
   0xe   : > { %s1026_s12 = smov (!%p219_p4, %s858_s12), 5 }
   0xf   : > { %s666_s16 = sshll.u32 %s1026_s12, 9  ;;  %s665_s20 = sshll.u32 %s1026_s12, 7 }
  0x10   : > { %s912_s19 = scalar_lea.vmem %s1018_s1, %s666_s16  ;;  %s968_s23 = scalar_lea.vmem %s1017_s0, %s665_s20 }
  0x11   : > { %v311_v0 = vld [vmem:[%s912_s19 + $0x80] sm:$0xff]  ;;  %v312_v1 = vld [vmem:[%s912_s19 + $0x88] sm:$0xff]  ;;  %v313_v11 = vld [vmem:[%s912_s19 + $0x90] sm:$0xff]  ;;  %s236_s26 = scalar_lea.vmem %s1019_s2, %s1026_s12  ;;  %s667_s27 = sshll.u32 %s1026_s12, 5 }
  0x12   : > { %v295_v2 = vld [vmem:[%s912_s19] sm:$0xff]  ;;  %v756_v3 = vpack.c.bf16 %v312_v1, %v311_v0  ;;  %v296_v4 = vld [vmem:[%s912_s19 + $0x8] sm:$0xff]  ;;  %v314_v13 = vld [vmem:[%s912_s19 + $0x98] sm:$0xff]  ;;  %s245_s30 = scalar_lea.vmem %s1020_s3, %s667_s27 }
  0x13   : > { %v343_v5 = vld [vmem:[%s912_s19 + $0x180] sm:$0xff]  ;;  %v344_v6 = vld [vmem:[%s912_s19 + $0x188] sm:$0xff]  ;;  %v758_v7 = vpack.c.bf16 %v296_v4, %v295_v2  ;;  %v297_v14 = vld [vmem:[%s912_s19 + $0x10] sm:$0xff]  ;;  %v760_v16 = vpack.c.bf16 %v314_v13, %v313_v11 }
  0x14   : > { %v788_v8 = vpack.c.bf16 %v344_v6, %v343_v5  ;;  %v327_v9 = vld [vmem:[%s912_s19 + $0x100] sm:$0xff]  ;;  %v328_v10 = vld [vmem:[%s912_s19 + $0x108] sm:$0xff]  ;;  %757 = vmatprep.subr.bf16.mxu0 %v756_v3  ;;  %v298_v15 = vld [vmem:[%s912_s19 + $0x18] sm:$0xff] }
  0x15   : > { %v790_v12 = vpack.c.bf16 %v328_v10, %v327_v9  ;;  %759 = vmatpush3.bf16.msra.mxu0 %v758_v7  ;;  %v762_v17 = vpack.c.bf16 %v298_v15, %v297_v14  ;;  %v345_v18 = vld [vmem:[%s912_s19 + $0x190] sm:$0xff]  ;;  %v346_v19 = vld [vmem:[%s912_s19 + $0x198] sm:$0xff]  ;;  %v315_v23 = vld [vmem:[%s912_s19 + $0xa0] sm:$0xff] }
  0x16   : > { %789 = vmatprep.subr.bf16.mxu1 %v788_v8  ;;  %v329_v20 = vld [vmem:[%s912_s19 + $0x110] sm:$0xff]  ;;  %v792_v21 = vpack.c.bf16 %v346_v19, %v345_v18  ;;  %v330_v22 = vld [vmem:[%s912_s19 + $0x118] sm:$0xff]  ;;  %v316_v24 = vld [vmem:[%s912_s19 + $0xa8] sm:$0xff]  ;;  %761 = vmatprep.subr.bf16.mxu0 %v760_v16 }
  0x17   : > { %791 = vmatpush3.bf16.msra.mxu1 %v790_v12  ;;  %v794_v25 = vpack.c.bf16 %v330_v22, %v329_v20  ;;  %v764_v26 = vpack.c.bf16 %v316_v24, %v315_v23  ;;  %v299_v27 = vld [vmem:[%s912_s19 + $0x20] sm:$0xff]  ;;  %v300_v28 = vld [vmem:[%s912_s19 + $0x28] sm:$0xff]  ;;  %v317_v35 = vld [vmem:[%s912_s19 + $0xb0] sm:$0xff] }
  0x18   : > { %v347_v29 = vld [vmem:[%s912_s19 + $0x1a0] sm:$0xff]  ;;  %793 = vmatprep.subr.bf16.mxu1 %v792_v21  ;;  %v348_v30 = vld [vmem:[%s912_s19 + $0x1a8] sm:$0xff]  ;;  %v766_v33 = vpack.c.bf16 %v300_v28, %v299_v27  ;;  %v318_v36 = vld [vmem:[%s912_s19 + $0xb8] sm:$0xff] }
  0x19   : > { %v331_v31 = vld [vmem:[%s912_s19 + $0x120] sm:$0xff]  ;;  %v332_v32 = vld [vmem:[%s912_s19 + $0x128] sm:$0xff]  ;;  %763 = vmatpush3.bf16.msra.mxu0 %v762_v17  ;;  %v796_v34 = vpack.c.bf16 %v348_v30, %v347_v29  ;;  %v301_v37 = vld [vmem:[%s912_s19 + $0x30] sm:$0xff]  ;;  %v768_v39 = vpack.c.bf16 %v318_v36, %v317_v35 }
  0x1a   : > { %765 = vmatprep.subr.bf16.mxu0 %v764_v26  ;;  %v798_v38 = vpack.c.bf16 %v332_v32, %v331_v31  ;;  %v302_v40 = vld [vmem:[%s912_s19 + $0x38] sm:$0xff]  ;;  %v349_v41 = vld [vmem:[%s912_s19 + $0x1b0] sm:$0xff]  ;;  %v319_v46 = vld [vmem:[%s912_s19 + $0xc0] sm:$0xff] }
  0x1b   : > { %795 = vmatpush3.bf16.msra.mxu1 %v794_v25  ;;  %v350_v42 = vld [vmem:[%s912_s19 + $0x1b8] sm:$0xff]  ;;  %v333_v44 = vld [vmem:[%s912_s19 + $0x130] sm:$0xff]  ;;  %v320_v47 = vld [vmem:[%s912_s19 + $0xc8] sm:$0xff]  ;;  %v770_v48 = vpack.c.bf16 %v302_v40, %v301_v37 }
  0x1c   : > { %797 = vmatprep.subr.bf16.mxu1 %v796_v34  ;;  %v800_v43 = vpack.c.bf16 %v350_v42, %v349_v41  ;;  %v334_v45 = vld [vmem:[%s912_s19 + $0x138] sm:$0xff]  ;;  %v351_v49 = vld [vmem:[%s912_s19 + $0x1c0] sm:$0xff]  ;;  %v352_v50 = vld [vmem:[%s912_s19 + $0x1c8] sm:$0xff]  ;;  %v772_v52 = vpack.c.bf16 %v320_v47, %v319_v46 }
  0x1d   : > { %767 = vmatpush3.bf16.msra.mxu0 %v766_v33  ;;  %v802_v51 = vpack.c.bf16 %v334_v45, %v333_v44  ;;  %v303_v53 = vld [vmem:[%s912_s19 + $0x40] sm:$0xff]  ;;  %v304_v54 = vld [vmem:[%s912_s19 + $0x48] sm:$0xff]  ;;  %v804_v56 = vpack.c.bf16 %v352_v50, %v351_v49  ;;  %v321_v58 = vld [vmem:[%s912_s19 + $0xd0] sm:$0xff] }
  0x1e   : > { %769 = vmatprep.subr.bf16.mxu0 %v768_v39  ;;  %v335_v55 = vld [vmem:[%s912_s19 + $0x140] sm:$0xff]  ;;  %v336_v57 = vld [vmem:[%s912_s19 + $0x148] sm:$0xff]  ;;  %v322_v59 = vld [vmem:[%s912_s19 + $0xd8] sm:$0xff]  ;;  %v774_v62 = vpack.c.bf16 %v304_v54, %v303_v53 }
  0x1f   : > { %799 = vmatpush3.bf16.msra.mxu1 %v798_v38  ;;  %v353_v60 = vld [vmem:[%s912_s19 + $0x1d0] sm:$0xff]  ;;  %v354_v61 = vld [vmem:[%s912_s19 + $0x1d8] sm:$0xff]  ;;  %v806_v63 = vpack.c.bf16 %v336_v57, %v335_v55  ;;  %v776_v0 = vpack.c.bf16 %v322_v59, %v321_v58  ;;  %v323_v6 = vld [vmem:[%s912_s19 + $0xe0] sm:$0xff] }
  0x20   : > { %801 = vmatprep.subr.bf16.mxu1 %v800_v43  ;;  %v305_v1 = vld [vmem:[%s912_s19 + $0x50] sm:$0xff]  ;;  %v306_v2 = vld [vmem:[%s912_s19 + $0x58] sm:$0xff]  ;;  %v808_v4 = vpack.c.bf16 %v354_v61, %v353_v60  ;;  %v324_v7 = vld [vmem:[%s912_s19 + $0xe8] sm:$0xff] }
  0x21   : > { %771 = vmatpush3.bf16.msra.mxu0 %v770_v48  ;;  %v337_v3 = vld [vmem:[%s912_s19 + $0x150] sm:$0xff]  ;;  %v338_v5 = vld [vmem:[%s912_s19 + $0x158] sm:$0xff]  ;;  %v355_v8 = vld [vmem:[%s912_s19 + $0x1e0] sm:$0xff]  ;;  %v778_v10 = vpack.c.bf16 %v306_v2, %v305_v1  ;;  %v780_v14 = vpack.c.bf16 %v324_v7, %v323_v6 }
  0x22   : > { %773 = vmatprep.subr.bf16.mxu0 %v772_v52  ;;  %v356_v9 = vld [vmem:[%s912_s19 + $0x1e8] sm:$0xff]  ;;  %v307_v11 = vld [vmem:[%s912_s19 + $0x60] sm:$0xff]  ;;  %v810_v13 = vpack.c.bf16 %v338_v5, %v337_v3  ;;  %v325_v19 = vld [vmem:[%s912_s19 + $0xf0] sm:$0xff] }
  0x23   : > { %803 = vmatpush3.bf16.msra.mxu1 %v802_v51  ;;  %v308_v12 = vld [vmem:[%s912_s19 + $0x68] sm:$0xff]  ;;  %v339_v15 = vld [vmem:[%s912_s19 + $0x160] sm:$0xff]  ;;  %v812_v18 = vpack.c.bf16 %v356_v9, %v355_v8  ;;  %v326_v20 = vld [vmem:[%s912_s19 + $0xf8] sm:$0xff] }
  0x24   : > { %805 = vmatprep.subr.bf16.mxu1 %v804_v56  ;;  %v340_v16 = vld [vmem:[%s912_s19 + $0x168] sm:$0xff]  ;;  %v250_v22 = vld [vmem:[%s968_s23 + $0x18] sm:$0xff]  ;;  %v357_v23 = vld [vmem:[%s912_s19 + $0x1f0] sm:$0xff]  ;;  %v782_v26 = vpack.c.bf16 %v308_v12, %v307_v11  ;;  %v784_v31 = vpack.c.bf16 %v326_v20, %v325_v19 }
  0x25   : > { %775 = vmatpush3.bf16.msra.mxu0 %v774_v62  ;;  %v248_v17 = vld [vmem:[%s968_s23 + $0x8] sm:$0xff]  ;;  %v358_v24 = vld [vmem:[%s912_s19 + $0x1f8] sm:$0xff]  ;;  %v266_v25 = vmul.f32 0.2, %v250_v22  ;;  %v309_v27 = vld [vmem:[%s912_s19 + $0x70] sm:$0xff]  ;;  %v814_v30 = vpack.c.bf16 %v340_v16, %v339_v15 }
  0x26   : > { %777 = vmatprep.subr.bf16.mxu0 %v776_v0  ;;  %v264_v21 = vmul.f32 0.2, %v248_v17  ;;  %v247_v29 = vld [vmem:[%s968_s23] sm:$0xff]  ;;  %v310_v32 = vld [vmem:[%s912_s19 + $0x78] sm:$0xff]  ;;  %v249_v34 = vld [vmem:[%s968_s23 + $0x10] sm:$0xff]  ;;  %v816_v36 = vpack.c.bf16 %v358_v24, %v357_v23 }
  0x27   : > { %807 = vmatpush3.bf16.msra.mxu1 %v806_v63  ;;  %v282_v33 = vmax.f32 %v250_v22, %v266_v25  ;;  %v252_v35 = vld [vmem:[%s968_s23 + $0x28] sm:$0xff]  ;;  %v341_v37 = vld [vmem:[%s912_s19 + $0x170] sm:$0xff]  ;;  %v342_v38 = vld [vmem:[%s912_s19 + $0x178] sm:$0xff]  ;;  %v263_v40 = vmul.f32 0.2, %v247_v29  ;;  %v786_v41 = vpack.c.bf16 %v310_v32, %v309_v27 }
  0x28   : > { %809 = vmatprep.subr.bf16.mxu1 %v808_v4  ;;  %v280_v28 = vmax.f32 %v248_v17, %v264_v21  ;;  %v254_v39 = vld [vmem:[%s968_s23 + $0x38] sm:$0xff]  ;;  %v265_v42 = vmul.f32 0.2, %v249_v34  ;;  %v268_v43 = vmul.f32 0.2, %v252_v35  ;;  %v251_v44 = vld [vmem:[%s968_s23 + $0x20] sm:$0xff]  ;;  %v818_v45 = vpack.c.bf16 %v342_v38, %v341_v37 }
  0x29   : > { %779 = vmatpush3.bf16.msra.mxu0 %v778_v10  ;;  %515 = vmatprep.mubr.f32.mxu1 %v282_v33  ;;  %v270_v46 = vmul.f32 0.2, %v254_v39  ;;  %v253_v47 = vld [vmem:[%s968_s23 + $0x30] sm:$0xff]  ;;  %v256_v48 = vld [vmem:[%s968_s23 + $0x48] sm:$0xff]  ;;  %v258_v49 = vld [vmem:[%s968_s23 + $0x58] sm:$0xff]  ;;  %v279_v50 = vmax.f32 %v247_v29, %v263_v40 }
  0x2a   : > { %781 = vmatprep.subr.bf16.mxu0 %v780_v14  ;;  %430 = vmatprep.mubr.f32.mxu0 %v280_v28  ;;  %v267_v51 = vmul.f32 0.2, %v251_v44  ;;  %v281_v52 = vmax.f32 %v249_v34, %v265_v42  ;;  %v284_v53 = vmax.f32 %v252_v35, %v268_v43  ;;  %v269_v54 = vmul.f32 0.2, %v253_v47  ;;  %v255_v56 = vld [vmem:[%s968_s23 + $0x40] sm:$0xff]  ;;  %v257_v59 = vld [vmem:[%s968_s23 + $0x50] sm:$0xff] }
  0x2b   : > { %811 = vmatpush3.bf16.msra.mxu1 %v810_v13  ;;  %v272_v55 = vmul.f32 0.2, %v256_v48  ;;  %v286_v57 = vmax.f32 %v254_v39, %v270_v46  ;;  %v274_v58 = vmul.f32 0.2, %v258_v49  ;;  %v260_v60 = vld [vmem:[%s968_s23 + $0x68] sm:$0xff]  ;;  %v262_v61 = vld [vmem:[%s968_s23 + $0x78] sm:$0xff] }
  0x2c   : > { %813 = vmatprep.subr.bf16.mxu1 %v812_v18  ;;  %v283_v62 = vmax.f32 %v251_v44, %v267_v51  ;;  %v271_v63 = vmul.f32 0.2, %v255_v56  ;;  %v285_v0 = vmax.f32 %v253_v47, %v269_v54  ;;  %v273_v2 = vmul.f32 0.2, %v257_v59  ;;  %v259_v4 = vld [vmem:[%s968_s23 + $0x60] sm:$0xff]  ;;  %v261_v7 = vld [vmem:[%s968_s23 + $0x70] sm:$0xff] }
  0x2d   : > { %783 = vmatpush3.bf16.msra.mxu0 %v782_v26  ;;  %v288_v1 = vmax.f32 %v256_v48, %v272_v55  ;;  %v276_v3 = vmul.f32 0.2, %v260_v60  ;;  %v290_v5 = vmax.f32 %v258_v49, %v274_v58  ;;  %v278_v6 = vmul.f32 0.2, %v262_v61  ;;  %v662_v17 = vld [vmem:[%s236_s26] ss:$0 sm:$0xff] }
  0x2e   : > { %785 = vmatprep.subr.bf16.mxu0 %v784_v31  ;;  %v287_v8 = vmax.f32 %v255_v56, %v271_v63  ;;  %v275_v9 = vmul.f32 0.2, %v259_v4  ;;  %v289_v10 = vmax.f32 %v257_v59, %v273_v2  ;;  %v277_v12 = vmul.f32 0.2, %v261_v7 }
  0x2f   : > { %815 = vmatpush3.bf16.msra.mxu1 %v814_v30  ;;  %v292_v11 = vmax.f32 %v260_v60, %v276_v3  ;;  %v294_v13 = vmax.f32 %v262_v61, %v278_v6 }
  0x30   : > { %817 = vmatprep.subr.bf16.mxu1 %v816_v36  ;;  %v291_v14 = vmax.f32 %v259_v4, %v275_v9  ;;  %v293_v15 = vmax.f32 %v261_v7, %v277_v12 }
  0x31   : > { %787 = vmatpush3.bf16.msra.mxu0 %v786_v41 }
  0x33   : > { %819 = vmatpush3.bf16.msra.mxu1 %v818_v45 }
  0x34   : > { %431 = vmatmul.mubr.f32.vlgmr.msra.gmra.mrb[0].mxu0 %v279_v50 }
  0x35   : > { %435 = vmatprep.mubr.f32.mxu0 %v284_v53 }
  0x36   : > { %516 = vmatmul.mubr.f32.vlgmr.msra.gmra.mrb[0].mxu1 %v281_v52 }
  0x37   : > { %520 = vmatprep.mubr.f32.mxu1 %v286_v57 }
  0x38   : > { %436 = vmatmul.mubr.f32.gmra.mrb[2].mxu0 %v283_v62 }
  0x39   : > { %440 = vmatprep.mubr.f32.mxu0 %v288_v1 }
  0x3a   : > { %521 = vmatmul.mubr.f32.gmra.mrb[2].mxu1 %v285_v0 }
  0x3b   : > { %525 = vmatprep.mubr.f32.mxu1 %v290_v5 }
  0x3c   : > { %441 = vmatmul.mubr.f32.gmra.mrb[4].mxu0 %v287_v8 }
  0x3d   : > { %445 = vmatprep.mubr.f32.mxu0 %v292_v11 }
  0x3e   : > { %526 = vmatmul.mubr.f32.gmra.mrb[4].mxu1 %v289_v10 }
  0x3f   : > { %530 = vmatprep.mubr.f32.mxu1 %v294_v13 }
  0x40   : > { %446 = vmatmul.mubr.f32.gmra.mrb[6].mxu0 %v291_v14 }
  0x42   : > { %531 = vmatmul.mubr.f32.gmra.mrb[6].mxu1 %v293_v15 }
 0x107   : > { %v700_v16 = vpop.f32.mrb[0].mxu0 }
 0x108   : > { %v701_v18 = vpop.f32.mrb[1].mxu0 }
 0x109   : > { %v744_v19 = vpop.f32.mrb[0].mxu1  ;;  %v702_v20 = vadd.f32 %v701_v18, %v700_v16 }
 0x10a   : > { %v745_v21 = vpop.f32.mrb[1].mxu1 }
 0x10b   : > { %v746_v22 = vadd.f32 %v745_v21, %v744_v19  ;;  %v433_v23 = vadd.f32 %v702_v20, %v662_v17  ;;  %v703_v24 = vpop.f32.mrb[2].mxu0 }
 0x10c   : > { %v704_v25 = vpop.f32.mrb[3].mxu0 }
 0x10d   : > { %v747_v26 = vpop.f32.mrb[2].mxu1  ;;  %v518_v27 = vadd.f32 %v746_v22, %v433_v23  ;;  %v705_v28 = vadd.f32 %v704_v25, %v703_v24 }
 0x10e   : > { %v748_v29 = vpop.f32.mrb[3].mxu1 }
 0x10f   : > { %v749_v30 = vadd.f32 %v748_v29, %v747_v26  ;;  %536 = vst [vmem:[%s245_s30] sm:$0xff] %v518_v27  ;;  %v438_v31 = vadd.f32 %v705_v28, %v662_v17  ;;  %v706_v32 = vpop.f32.mrb[4].mxu0 }
 0x110   : > { %v707_v33 = vpop.f32.mrb[5].mxu0 }
 0x111   : > { %v750_v34 = vpop.f32.mrb[4].mxu1  ;;  %v523_v35 = vadd.f32 %v749_v30, %v438_v31  ;;  %v708_v36 = vadd.f32 %v707_v33, %v706_v32 }
 0x112   : > { %v751_v37 = vpop.f32.mrb[5].mxu1 }
 0x113   : > { %v752_v38 = vadd.f32 %v751_v37, %v750_v34  ;;  %537 = vst [vmem:[%s245_s30 + $0x8] sm:$0xff] %v523_v35  ;;  %v443_v39 = vadd.f32 %v708_v36, %v662_v17  ;;  %v709_v40 = vpop.f32.mrb[6].mxu0 }
 0x114   : > { %v710_v41 = vpop.f32.mrb[7].mxu0 }
 0x115   : > { %v753_v42 = vpop.f32.mrb[6].mxu1  ;;  %v528_v43 = vadd.f32 %v752_v38, %v443_v39  ;;  %v711_v44 = vadd.f32 %v710_v41, %v709_v40 }
 0x116   : > { %v754_v45 = vpop.f32.mrb[7].mxu1 }
 0x117   : > { %v755_v46 = vadd.f32 %v754_v45, %v753_v42  ;;  %538 = vst [vmem:[%s245_s30 + $0x10] sm:$0xff] %v528_v43  ;;  %v448_v47 = vadd.f32 %v711_v44, %v662_v17 }
 0x119   : > { %v533_v48 = vadd.f32 %v755_v46, %v448_v47 }
 0x11b   : > { %539 = vst [vmem:[%s245_s30 + $0x18] sm:$0xff] %v533_v48 }
 0x11c PF: > { %s13_s14 = sadd.s32 1, %s866_s14   ;;  %s1021_s12 = smov %s862_s13 }
 0x11d   : > { %p10_p5 = scmp.ge.s32.totalorder %s13_s14, 8   ;;  %s1022_s13 = smov %s1024_s15 }
 0x11f   :  { %12 = sbr.rel (!%p10_p5) target bundleno = 2 (0x2), region = 68 }

// kernel: encoder_forward.10
= control target key start
LH: loop header
LB: loop body
LE: loop exit
PB: predicated region body
PF: predicated region fallthrough
CT: control target
= control target key end

     0   :  { %s780_s12 = smov 0   ;;  %s782_s13 = smov 0   ;;  %s897_s0 = inlined_call_operand.vmem [shape: f32[6,8,512], index: 0, kind: input, shape index: {}]   ;;  %s898_s1 = inlined_call_operand.vmem [shape: f32[6,512,64], index: 1, kind: input, shape index: {}]   ;;  %s899_s2 = inlined_call_operand.vmem [shape: f32[6,1,64], index: 2, kind: input, shape index: {}]   ;;  %s900_s3 = inlined_call_operand.vmem [shape: f32[6,8,64], index: 3, kind: output, shape index: {}]  }
   0x1   :  { %s784_s14 = smov 0  }
   0x2 LB: > { %s25_s15 = sadd.s32 1, %s754_s13  ;;  %p567_p0 = scmp.ge.s32.totalorder %s758_s14, 1  ;;  %s758_s14 = sphi %s784_s14, %s13_s14   ;;  %s754_s13 = sphi %s782_s13, %s902_s13   ;;  %s750_s12 = sphi %s780_s12, %s901_s12  }
   0x3   : > { %p27_p1 = scmp.ge.s32.totalorder %s25_s15, 6  ;;  %p175_p2 = scmp.lt.s32.totalorder %s758_s14, 7 }
   0x5   : > { %s904_s15 = smov (%p27_p1, %s25_s15), 0  ;;  %p176_p3 = pnand %p567_p0, %p175_p2 }
   0x6   : > { %p213_p4 = scmp.lt.s32.totalorder (!%p176_p3), %s750_s12, 5  ;;  %vm460_vm0 = vcmask (!%p176_p3), 523264  }
   0x7   : > { %179 = sbr.rel (%p176_p3) target bundleno = 272 (0x110), region = 32 }
   0xe   : > { %s906_s12 = smov (!%p213_p4, %s750_s12), 5 }
   0xf   : > { %s577_s16 = sshll.u32 %s906_s12, 9  ;;  %s576_s20 = sshll.u32 %s906_s12, 5 }
  0x10   : > { %s804_s19 = scalar_lea.vmem %s898_s1, %s577_s16  ;;  %s860_s23 = scalar_lea.vmem %s897_s0, %s576_s20 }
  0x11   : > { %v265_v0 = vld [vmem:[%s804_s19 + $0x80] sm:$0xff]  ;;  %v266_v1 = vld [vmem:[%s804_s19 + $0x88] sm:$0xff]  ;;  %v267_v11 = vld [vmem:[%s804_s19 + $0x90] sm:$0xff]  ;;  %s229_s26 = scalar_lea.vmem %s899_s2, %s906_s12  ;;  %s572_s27 = sshll.u32 %s906_s12, 3 }
  0x12   : > { %v249_v2 = vld [vmem:[%s804_s19] sm:$0xff]  ;;  %v648_v3 = vpack.c.bf16 %v266_v1, %v265_v0  ;;  %v250_v4 = vld [vmem:[%s804_s19 + $0x8] sm:$0xff]  ;;  %v268_v13 = vld [vmem:[%s804_s19 + $0x98] sm:$0xff]  ;;  %s236_s30 = scalar_lea.vmem %s900_s3, %s572_s27 }
  0x13   : > { %v297_v5 = vld [vmem:[%s804_s19 + $0x180] sm:$0xff]  ;;  %v298_v6 = vld [vmem:[%s804_s19 + $0x188] sm:$0xff]  ;;  %v650_v7 = vpack.c.bf16 %v250_v4, %v249_v2  ;;  %v251_v14 = vld [vmem:[%s804_s19 + $0x10] sm:$0xff]  ;;  %v652_v16 = vpack.c.bf16 %v268_v13, %v267_v11 }
  0x14   : > { %v680_v8 = vpack.c.bf16 %v298_v6, %v297_v5  ;;  %v281_v9 = vld [vmem:[%s804_s19 + $0x100] sm:$0xff]  ;;  %v282_v10 = vld [vmem:[%s804_s19 + $0x108] sm:$0xff]  ;;  %649 = vmatprep.subr.bf16.mxu0 %v648_v3  ;;  %v252_v15 = vld [vmem:[%s804_s19 + $0x18] sm:$0xff] }
  0x15   : > { %v682_v12 = vpack.c.bf16 %v282_v10, %v281_v9  ;;  %651 = vmatpush3.bf16.msra.mxu0 %v650_v7  ;;  %v654_v17 = vpack.c.bf16 %v252_v15, %v251_v14  ;;  %v299_v18 = vld [vmem:[%s804_s19 + $0x190] sm:$0xff]  ;;  %v300_v19 = vld [vmem:[%s804_s19 + $0x198] sm:$0xff]  ;;  %v269_v23 = vld [vmem:[%s804_s19 + $0xa0] sm:$0xff] }
  0x16   : > { %681 = vmatprep.subr.bf16.mxu1 %v680_v8  ;;  %v283_v20 = vld [vmem:[%s804_s19 + $0x110] sm:$0xff]  ;;  %v684_v21 = vpack.c.bf16 %v300_v19, %v299_v18  ;;  %v284_v22 = vld [vmem:[%s804_s19 + $0x118] sm:$0xff]  ;;  %v270_v24 = vld [vmem:[%s804_s19 + $0xa8] sm:$0xff]  ;;  %653 = vmatprep.subr.bf16.mxu0 %v652_v16 }
  0x17   : > { %683 = vmatpush3.bf16.msra.mxu1 %v682_v12  ;;  %v686_v25 = vpack.c.bf16 %v284_v22, %v283_v20  ;;  %v656_v26 = vpack.c.bf16 %v270_v24, %v269_v23  ;;  %v253_v27 = vld [vmem:[%s804_s19 + $0x20] sm:$0xff]  ;;  %v254_v28 = vld [vmem:[%s804_s19 + $0x28] sm:$0xff]  ;;  %v271_v35 = vld [vmem:[%s804_s19 + $0xb0] sm:$0xff] }
  0x18   : > { %v301_v29 = vld [vmem:[%s804_s19 + $0x1a0] sm:$0xff]  ;;  %685 = vmatprep.subr.bf16.mxu1 %v684_v21  ;;  %v302_v30 = vld [vmem:[%s804_s19 + $0x1a8] sm:$0xff]  ;;  %v658_v33 = vpack.c.bf16 %v254_v28, %v253_v27  ;;  %v272_v36 = vld [vmem:[%s804_s19 + $0xb8] sm:$0xff] }
  0x19   : > { %v285_v31 = vld [vmem:[%s804_s19 + $0x120] sm:$0xff]  ;;  %v286_v32 = vld [vmem:[%s804_s19 + $0x128] sm:$0xff]  ;;  %655 = vmatpush3.bf16.msra.mxu0 %v654_v17  ;;  %v688_v34 = vpack.c.bf16 %v302_v30, %v301_v29  ;;  %v255_v37 = vld [vmem:[%s804_s19 + $0x30] sm:$0xff]  ;;  %v660_v39 = vpack.c.bf16 %v272_v36, %v271_v35 }
  0x1a   : > { %657 = vmatprep.subr.bf16.mxu0 %v656_v26  ;;  %v690_v38 = vpack.c.bf16 %v286_v32, %v285_v31  ;;  %v256_v40 = vld [vmem:[%s804_s19 + $0x38] sm:$0xff]  ;;  %v303_v41 = vld [vmem:[%s804_s19 + $0x1b0] sm:$0xff]  ;;  %v273_v46 = vld [vmem:[%s804_s19 + $0xc0] sm:$0xff] }
  0x1b   : > { %687 = vmatpush3.bf16.msra.mxu1 %v686_v25  ;;  %v304_v42 = vld [vmem:[%s804_s19 + $0x1b8] sm:$0xff]  ;;  %v287_v44 = vld [vmem:[%s804_s19 + $0x130] sm:$0xff]  ;;  %v274_v47 = vld [vmem:[%s804_s19 + $0xc8] sm:$0xff]  ;;  %v662_v48 = vpack.c.bf16 %v256_v40, %v255_v37 }
  0x1c   : > { %689 = vmatprep.subr.bf16.mxu1 %v688_v34  ;;  %v692_v43 = vpack.c.bf16 %v304_v42, %v303_v41  ;;  %v288_v45 = vld [vmem:[%s804_s19 + $0x138] sm:$0xff]  ;;  %v305_v49 = vld [vmem:[%s804_s19 + $0x1c0] sm:$0xff]  ;;  %v306_v50 = vld [vmem:[%s804_s19 + $0x1c8] sm:$0xff]  ;;  %v664_v52 = vpack.c.bf16 %v274_v47, %v273_v46 }
  0x1d   : > { %659 = vmatpush3.bf16.msra.mxu0 %v658_v33  ;;  %v694_v51 = vpack.c.bf16 %v288_v45, %v287_v44  ;;  %v257_v53 = vld [vmem:[%s804_s19 + $0x40] sm:$0xff]  ;;  %v258_v54 = vld [vmem:[%s804_s19 + $0x48] sm:$0xff]  ;;  %v696_v56 = vpack.c.bf16 %v306_v50, %v305_v49  ;;  %v275_v58 = vld [vmem:[%s804_s19 + $0xd0] sm:$0xff] }
  0x1e   : > { %661 = vmatprep.subr.bf16.mxu0 %v660_v39  ;;  %v289_v55 = vld [vmem:[%s804_s19 + $0x140] sm:$0xff]  ;;  %v290_v57 = vld [vmem:[%s804_s19 + $0x148] sm:$0xff]  ;;  %v276_v59 = vld [vmem:[%s804_s19 + $0xd8] sm:$0xff]  ;;  %v666_v62 = vpack.c.bf16 %v258_v54, %v257_v53 }
  0x1f   : > { %691 = vmatpush3.bf16.msra.mxu1 %v690_v38  ;;  %v307_v60 = vld [vmem:[%s804_s19 + $0x1d0] sm:$0xff]  ;;  %v308_v61 = vld [vmem:[%s804_s19 + $0x1d8] sm:$0xff]  ;;  %v698_v63 = vpack.c.bf16 %v290_v57, %v289_v55  ;;  %v668_v0 = vpack.c.bf16 %v276_v59, %v275_v58  ;;  %v277_v6 = vld [vmem:[%s804_s19 + $0xe0] sm:$0xff] }
  0x20   : > { %693 = vmatprep.subr.bf16.mxu1 %v692_v43  ;;  %v259_v1 = vld [vmem:[%s804_s19 + $0x50] sm:$0xff]  ;;  %v260_v2 = vld [vmem:[%s804_s19 + $0x58] sm:$0xff]  ;;  %v700_v4 = vpack.c.bf16 %v308_v61, %v307_v60  ;;  %v278_v7 = vld [vmem:[%s804_s19 + $0xe8] sm:$0xff] }
  0x21   : > { %663 = vmatpush3.bf16.msra.mxu0 %v662_v48  ;;  %v291_v3 = vld [vmem:[%s804_s19 + $0x150] sm:$0xff]  ;;  %v292_v5 = vld [vmem:[%s804_s19 + $0x158] sm:$0xff]  ;;  %v309_v8 = vld [vmem:[%s804_s19 + $0x1e0] sm:$0xff]  ;;  %v670_v10 = vpack.c.bf16 %v260_v2, %v259_v1  ;;  %v672_v14 = vpack.c.bf16 %v278_v7, %v277_v6 }
  0x22   : > { %665 = vmatprep.subr.bf16.mxu0 %v664_v52  ;;  %v310_v9 = vld [vmem:[%s804_s19 + $0x1e8] sm:$0xff]  ;;  %v261_v11 = vld [vmem:[%s804_s19 + $0x60] sm:$0xff]  ;;  %v702_v13 = vpack.c.bf16 %v292_v5, %v291_v3  ;;  %v279_v19 = vld [vmem:[%s804_s19 + $0xf0] sm:$0xff] }
  0x23   : > { %695 = vmatpush3.bf16.msra.mxu1 %v694_v51  ;;  %v262_v12 = vld [vmem:[%s804_s19 + $0x68] sm:$0xff]  ;;  %v293_v15 = vld [vmem:[%s804_s19 + $0x160] sm:$0xff]  ;;  %v704_v18 = vpack.c.bf16 %v310_v9, %v309_v8  ;;  %v280_v20 = vld [vmem:[%s804_s19 + $0xf8] sm:$0xff] }
  0x24   : > { %697 = vmatprep.subr.bf16.mxu1 %v696_v56  ;;  %v294_v16 = vld [vmem:[%s804_s19 + $0x168] sm:$0xff]  ;;  %v240_v22 = vld [vmem:[%s860_s23 + $0x18] sm:$0xff]  ;;  %v311_v23 = vld [vmem:[%s804_s19 + $0x1f0] sm:$0xff]  ;;  %v674_v26 = vpack.c.bf16 %v262_v12, %v261_v11  ;;  %v676_v30 = vpack.c.bf16 %v280_v20, %v279_v19 }
  0x25   : > { %667 = vmatpush3.bf16.msra.mxu0 %v666_v62  ;;  %v238_v17 = vld [vmem:[%s860_s23 + $0x8] sm:$0xff]  ;;  %v312_v24 = vld [vmem:[%s804_s19 + $0x1f8] sm:$0xff]  ;;  %v244_v25 = vmul.f32 0.2, %v240_v22  ;;  %v237_v28 = vld [vmem:[%s860_s23] sm:$0xff]  ;;  %v706_v29 = vpack.c.bf16 %v294_v16, %v293_v15 }
  0x26   : > { %669 = vmatprep.subr.bf16.mxu0 %v668_v0  ;;  %v242_v21 = vmul.f32 0.2, %v238_v17  ;;  %v263_v31 = vld [vmem:[%s804_s19 + $0x70] sm:$0xff]  ;;  %v264_v32 = vld [vmem:[%s804_s19 + $0x78] sm:$0xff]  ;;  %v708_v35 = vpack.c.bf16 %v312_v24, %v311_v23  ;;  %v241_v38 = vmul.f32 0.2, %v237_v28 }
  0x27   : > { %699 = vmatpush3.bf16.msra.mxu1 %v698_v63  ;;  %v248_v33 = vmax.f32 %v240_v22, %v244_v25  ;;  %v239_v34 = vld [vmem:[%s860_s23 + $0x10] sm:$0xff]  ;;  %v296_v37 = vld [vmem:[%s804_s19 + $0x178] sm:$0xff]  ;;  %v678_v39 = vpack.c.bf16 %v264_v32, %v263_v31  ;;  %v573_v45 = vld [vmem:[%s229_s26] ss:$0 sm:$0xff] }
  0x28   : > { %701 = vmatprep.subr.bf16.mxu1 %v700_v4  ;;  %v246_v27 = vmax.f32 %v238_v17, %v242_v21  ;;  %v295_v36 = vld [vmem:[%s804_s19 + $0x170] sm:$0xff]  ;;  %v243_v40 = vmul.f32 0.2, %v239_v34  ;;  %v245_v42 = vmax.f32 %v237_v28, %v241_v38 }
  0x29   : > { %671 = vmatpush3.bf16.msra.mxu0 %v670_v10  ;;  %454 = vmatprep.mubr.f32.mxu1 %v248_v33  ;;  %v710_v41 = vpack.c.bf16 %v296_v37, %v295_v36 }
  0x2a   : > { %673 = vmatprep.subr.bf16.mxu0 %v672_v14  ;;  %384 = vmatprep.mubr.f32.mxu0 %v246_v27  ;;  %v247_v43 = vmax.f32 %v239_v34, %v243_v40 }
  0x2b   : > { %703 = vmatpush3.bf16.msra.mxu1 %v702_v13 }
  0x2c   : > { %705 = vmatprep.subr.bf16.mxu1 %v704_v18 }
  0x2d   : > { %675 = vmatpush3.bf16.msra.mxu0 %v674_v26 }
  0x2e   : > { %677 = vmatprep.subr.bf16.mxu0 %v676_v30 }
  0x2f   : > { %707 = vmatpush3.bf16.msra.mxu1 %v706_v29 }
  0x30   : > { %709 = vmatprep.subr.bf16.mxu1 %v708_v35 }
  0x31   : > { %679 = vmatpush3.bf16.msra.mxu0 %v678_v39 }
  0x33   : > { %711 = vmatpush3.bf16.msra.mxu1 %v710_v41 }
  0x34   : > { %385 = vmatmul.mubr.f32.vlgmr.msra.gmra.mrb[0].mxu0 %v245_v42 }
  0x36   : > { %455 = vmatmul.mubr.f32.vlgmr.msra.gmra.mrb[0].mxu1 %v247_v43 }
 0x107   : > { %v610_v44 = vpop.f32.mrb[0].mxu0 }
 0x108   : > { %v611_v46 = vpop.f32.mrb[1].mxu0 }
 0x109   : > { %v645_v47 = vpop.f32.mrb[0].mxu1  ;;  %v612_v48 = vadd.f32 %v611_v46, %v610_v44 }
 0x10a   : > { %v646_v49 = vpop.f32.mrb[1].mxu1 }
 0x10b   : > { %v647_v50 = vadd.f32 %v646_v49, %v645_v47  ;;  %v387_v51 = vadd.f32 %v612_v48, %v573_v45 }
 0x10d   : > { %v457_v52 = vadd.f32 %v647_v50, %v387_v51 }
 0x10f   : > { %461 = vst.msk [vmem:[%s236_s30] sm:$0xff] %vm460_vm0, %v457_v52 }
 0x110 PF: > { %s13_s14 = sadd.s32 1, %s758_s14   ;;  %s901_s12 = smov %s754_s13 }
 0x111   : > { %p10_p5 = scmp.ge.s32.totalorder %s13_s14, 8   ;;  %s902_s13 = smov %s904_s15 }
 0x113   :  { %12 = sbr.rel (!%p10_p5) target bundleno = 2 (0x2), region = 68 }

// kernel: encoder_forward.11
= control target key start
LH: loop header
LB: loop body
LE: loop exit
PB: predicated region body
PF: predicated region fallthrough
CT: control target
= control target key end

     0   :  { %12 = vsyncpa [#allocation3], 0  ;;  %s865_s21 = smov 0   ;;  %s980_s0 = inlined_call_operand.vmem [shape: f32[6,2,256], index: 0, kind: input, shape index: {}]   ;;  %s981_s1 = inlined_call_operand.vmem [shape: f32[6,256,64], index: 1, kind: input, shape index: {}]   ;;  %s982_s2 = inlined_call_operand.vmem [shape: f32[6,1,64], index: 2, kind: input, shape index: {}]   ;;  %s983_s3 = inlined_call_operand.vmem [shape: f32[6,64,64], index: 3, kind: input, shape index: {}]   ;;  %s984_s4 = inlined_call_operand.vmem [shape: f32[1,64], index: 4, kind: input, shape index: {}]   ;;  %s985_s5 = inlined_call_operand.vmem [shape: f32[6,2,64], index: 5, kind: output, shape index: {0}]   ;;  %s986_s6 = inlined_call_operand.hbm [shape: f32[2,64], index: 6, kind: output, shape index: {1}]  }
   0x1 LB: > { %s871_s22 = sadd.s32 4294967295, %s823_s21   ;;  %p642_p0 = scmp.ge.s32.totalorder %s823_s21, 1  ;;  %s823_s21 = sphi %s865_s21, %s18_s21  }
   0x2   : > { %p239_p1 = scmp.lt.s32.totalorder %s823_s21, 7 }
   0x4   : > { %p240_p2 = pnand %p642_p0, %p239_p1 }
   0x5   : > { %p281_p3 = scmp.lt.s32.totalorder (!%p240_p2), %s871_s22, 5  ;;  %v825_v0 = vmov (!%p240_p2), 0.0|0.0   ;;  %v826_v14 = vmov (!%p240_p2), 1983009808   ;;  %v349_v16 = vlaneseq (!%p240_p2)  ;;  %vm827_vm0 = vmmov (!%p240_p2), 0   ;;  %p652_p4 = scmp.ne.s32.totalorder (!%p240_p2), %s871_s22, 0 }
   0x6   : > { %243 = sbr.rel (%p240_p2) target bundleno = 511 (0x1ff), region = 40  ;;  %756 = vmatprep.subr.bf16.mxu1 (!%p240_p2), %v825_v0  ;;  %v347_v15 = vunpack.c.l.s4 (!%p240_p2), %v826_v14  ;;  %vm426_vm1 = vcmask (!%p240_p2), 517120   ;;  %vm438_vm2 = vcmask (!%p240_p2), 523264  }
   0x7   : > { %v350_v24 = vshrl.u32 (!%p240_p2), %v349_v16, 7 }
   0x8   : > { %v348_v23 = vunpack.c.0.s8 (!%p240_p2), %v347_v15 }
   0xa   : > { %v351_v33 = vsub.s32 (!%p240_p2), %v348_v23, %v350_v24 }
   0xd   : > { %s878_s23 = scalar_select %p281_p3, %s871_s22, 5 }
   0xf   : > { %s659_s24 = sshll.u32 %s878_s23, 8  ;;  %s658_s28 = sshll.u32 %s878_s23, 2 }
  0x10   : > { %s884_s27 = scalar_lea.vmem %s981_s1, %s659_s24  ;;  %s660_s29 = sshll.u32 %s878_s23, 6 }
  0x11   : > { %v322_v1 = vld [vmem:[%s884_s27 + $0x80] sm:$0xff]  ;;  %v323_v2 = vld [vmem:[%s884_s27 + $0x88] sm:$0xff]  ;;  %v324_v6 = vld [vmem:[%s884_s27 + $0x90] sm:$0xff]  ;;  %s285_s8 = scalar_lea.vmem %s980_s0, %s658_s28  ;;  %s908_s11 = scalar_lea.vmem %s983_s3, %s660_s29 }
  0x12   : > { %v306_v3 = vld [vmem:[%s884_s27] sm:$0xff]  ;;  %v724_v4 = vpack.c.bf16 %v323_v2, %v322_v1  ;;  %v307_v5 = vld [vmem:[%s884_s27 + $0x8] sm:$0xff]  ;;  %v325_v7 = vld [vmem:[%s884_s27 + $0x98] sm:$0xff]  ;;  %s293_s14 = scalar_lea.vmem %s982_s2, %s878_s23  ;;  %s649_s15 = sshll.u32 %s878_s23, 1 }
  0x13   : > { %v726_v8 = vpack.c.bf16 %v307_v5, %v306_v3  ;;  %v728_v9 = vpack.c.bf16 %v325_v7, %v324_v6  ;;  %v308_v10 = vld [vmem:[%s884_s27 + $0x10] sm:$0xff]  ;;  %v309_v11 = vld [vmem:[%s884_s27 + $0x18] sm:$0xff]  ;;  %v326_v12 = vld [vmem:[%s884_s27 + $0xa0] sm:$0xff]  ;;  %s302_s18 = scalar_lea.vmem %s985_s5, %s649_s15 }
  0x14   : > { %725 = vmatprep.subr.bf16.mxu0 %v724_v4  ;;  %v327_v13 = vld [vmem:[%s884_s27 + $0xa8] sm:$0xff]  ;;  %v730_v17 = vpack.c.bf16 %v309_v11, %v308_v10  ;;  %v310_v19 = vld [vmem:[%s884_s27 + $0x20] sm:$0xff]  ;;  %v328_v21 = vld [vmem:[%s884_s27 + $0xb0] sm:$0xff] }
  0x15   : > { %727 = vmatpush3.bf16.msra.mxu0 %v726_v8  ;;  %v732_v18 = vpack.c.bf16 %v327_v13, %v326_v12  ;;  %v311_v20 = vld [vmem:[%s884_s27 + $0x28] sm:$0xff]  ;;  %v329_v22 = vld [vmem:[%s884_s27 + $0xb8] sm:$0xff]  ;;  %v312_v27 = vld [vmem:[%s884_s27 + $0x30] sm:$0xff] }
  0x16   : > { %729 = vmatprep.subr.bf16.mxu0 %v728_v9  ;;  %v734_v25 = vpack.c.bf16 %v311_v20, %v310_v19  ;;  %v736_v26 = vpack.c.bf16 %v329_v22, %v328_v21  ;;  %v313_v28 = vld [vmem:[%s884_s27 + $0x38] sm:$0xff]  ;;  %v330_v29 = vld [vmem:[%s884_s27 + $0xc0] sm:$0xff]  ;;  %v331_v30 = vld [vmem:[%s884_s27 + $0xc8] sm:$0xff]  ;;  %v828_v9 = vmov 0.0  }
  0x17   : > { %v303_v31 = vld [vmem:[%s285_s8] sm:$0xf]  ;;  %v431_v35 = vld [vmem:[%s908_s11 + $0x8] sm:$0xff]  ;;  %v432_v36 = vld [vmem:[%s908_s11 + $0x10] sm:$0xff]  ;;  %v738_v37 = vpack.c.bf16 %v313_v28, %v312_v27  ;;  %v740_v40 = vpack.c.bf16 %v331_v30, %v330_v29  ;;  %721 = vmatprep.mubr.msk.f32.mxu1 %vm827_vm0, %v828_v9 }
  0x18   : > { %v304_v32 = vmul.f32 0.2, %v303_v31  ;;  %v430_v34 = vld [vmem:[%s908_s11] sm:$0xff]  ;;  %v433_v39 = vld [vmem:[%s908_s11 + $0x18] sm:$0xff]  ;;  %v315_v42 = vld [vmem:[%s884_s27 + $0x48] sm:$0xff] }
  0x19   : > { %731 = vmatpush3.bf16.msra.mxu0 %v730_v17  ;;  %v757_v38 = vpack.c.bf16 %v431_v35, %v430_v34  ;;  %v314_v41 = vld [vmem:[%s884_s27 + $0x40] sm:$0xff]  ;;  %v332_v44 = vld [vmem:[%s884_s27 + $0xd0] sm:$0xff]  ;;  %v333_v45 = vld [vmem:[%s884_s27 + $0xd8] sm:$0xff]  ;;  %v760_v46 = vpack.c.bf16 %v433_v39, %v432_v36 }
  0x1a   : > { %733 = vmatprep.subr.bf16.mxu0 %v732_v18  ;;  %v305_v43 = vmax.f32 %v303_v31, %v304_v32  ;;  %v742_v48 = vpack.c.bf16 %v315_v42, %v314_v41  ;;  %v744_v49 = vpack.c.bf16 %v333_v45, %v332_v44  ;;  %v316_v50 = vld [vmem:[%s884_s27 + $0x50] sm:$0xff]  ;;  %v317_v51 = vld [vmem:[%s884_s27 + $0x58] sm:$0xff]  ;;  %v334_v53 = vld [vmem:[%s884_s27 + $0xe0] sm:$0xff] }
  0x1b   : > { %758 = vmatpush3.bf16.msra.mxu1 %v757_v38  ;;  %v335_v54 = vld [vmem:[%s884_s27 + $0xe8] sm:$0xff]  ;;  %v746_v55 = vpack.c.bf16 %v317_v51, %v316_v50  ;;  %v318_v57 = vld [vmem:[%s884_s27 + $0x60] sm:$0xff]  ;;  %v336_v59 = vld [vmem:[%s884_s27 + $0xf0] sm:$0xff] }
  0x1c   : > { %v352_v47 = vrot.slane %v305_v43, %v351_v33  ;;  %759 = vmatprep.subr.bf16.mxu1 %v825_v0  ;;  %v748_v56 = vpack.c.bf16 %v335_v54, %v334_v53  ;;  %v319_v58 = vld [vmem:[%s884_s27 + $0x68] sm:$0xff]  ;;  %v337_v60 = vld [vmem:[%s884_s27 + $0xf8] sm:$0xff]  ;;  %v320_v63 = vld [vmem:[%s884_s27 + $0x70] sm:$0xff] }
  0x1d   : > { %735 = vmatpush3.bf16.msra.mxu0 %v734_v25  ;;  %v750_v61 = vpack.c.bf16 %v319_v58, %v318_v57  ;;  %v752_v62 = vpack.c.bf16 %v337_v60, %v336_v59  ;;  %v321_v1 = vld [vmem:[%s884_s27 + $0x78] sm:$0xff]  ;;  %v434_v3 = vld [vmem:[%s908_s11 + $0x20] sm:$0xff]  ;;  %v435_v4 = vld [vmem:[%s908_s11 + $0x28] sm:$0xff] }
  0x1e   : > { %737 = vmatprep.subr.bf16.mxu0 %v736_v26  ;;  %v353_v52 = vcombine.high %v352_v47, %v352_v47  ;;  %v754_v2 = vpack.c.bf16 %v321_v1, %v320_v63  ;;  %v763_v5 = vpack.c.bf16 %v435_v4, %v434_v3  ;;  %v436_v6 = vld [vmem:[%s908_s11 + $0x30] sm:$0xff]  ;;  %v437_v7 = vld [vmem:[%s908_s11 + $0x38] sm:$0xff]  ;;  %v650_v11 = vld [vmem:[%s293_s14] ss:$0 sm:$0xff] }
  0x1f   : > { %761 = vmatpush3.bf16.msra.mxu1 %v760_v46  ;;  %v766_v8 = vpack.c.bf16 %v437_v7, %v436_v6  ;;  %v653_v18 = vld [vmem:[%s984_s4] ss:$0 sm:$0xff] (!%p652_p4) }
  0x20   : > { %420 = vmatprep.mubr.f32.mxu0 %v353_v52  ;;  %762 = vmatprep.subr.bf16.mxu1 %v825_v0  ;;  %524 = vst.msk [vmem:[#allocation2] sm:$0x3] (!%p652_p4), %vm426_vm1, %v653_v18 }
  0x21   : > { %739 = vmatpush3.bf16.msra.mxu0 %v738_v37 }
  0x22   : > { %741 = vmatprep.subr.bf16.mxu0 %v740_v40 }
  0x23   : > { %764 = vmatpush3.bf16.msra.mxu1 %v763_v5 }
  0x24   : > { %765 = vmatprep.subr.bf16.mxu1 %v825_v0 }
  0x25   : > { %743 = vmatpush3.bf16.msra.mxu0 %v742_v48 }
  0x26   : > { %745 = vmatprep.subr.bf16.mxu0 %v744_v49 }
  0x27   : > { %767 = vmatpush3.bf16.msra.mxu1 %v766_v8 }
  0x29   : > { %747 = vmatpush3.bf16.msra.mxu0 %v746_v55 }
  0x2a   : > { %749 = vmatprep.subr.bf16.mxu0 %v748_v56 }
  0x2d   : > { %751 = vmatpush3.bf16.msra.mxu0 %v750_v61 }
  0x2e   : > { %753 = vmatprep.subr.bf16.mxu0 %v752_v62 }
  0x31   : > { %755 = vmatpush3.bf16.msra.mxu0 %v754_v2 }
  0x34   : > { %421 = vmatmul.mubr.f32.vlgmr.msra.gmra.mrb[0].mxu0 %v352_v47 }
 0x107   : > { %v693_v10 = vpop.f32.mrb[0].mxu0 }
 0x108   : > { %v694_v12 = vpop.f32.mrb[1].mxu0 }
 0x109   : > { %v695_v13 = vadd.f32 %v694_v12, %v693_v10 }
 0x10b   : > { %v423_v0 = vadd.f32 %v695_v13, %v650_v11 }
 0x10d   : > { %427 = vst.msk [vmem:[%s302_s18] sm:$0x3] %vm426_vm1, %v423_v0  ;;  %v428_v14 = vmul.f32 0.2, %v423_v0 }
 0x10f   : > { %v429_v15 = vmax.f32 %v423_v0, %v428_v14 }
 0x111   : > { %722 = vmatmul.mubr.msk.f32.vlgmr.msra.gmra.mrb[0].mxu1 %vm438_vm2, %v429_v15 }
 0x1df   : > { %515 = sbr.rel (%p652_p4) target bundleno = 486 (0x1e6), region = 44 }
 0x1e4   : > { %v508_v16 = vpop.f32.mrb[0].mxu1 }
 0x1e5   : > { %v723_v17 = vpop.f32.mrb[1].mxu1 }
 0x1e6 PF: > { %v525_v19 = vld [vmem:[#allocation2] sm:$0x3]  ;;  %p772_p5 = scmp.eq.s32.totalorder %s871_s22, 5  ;;  %s829_s23 = smov [#allocation2]  }
 0x1e7   : > { %v526_v20 = vadd.f32 %v525_v19, %v508_v16  ;;  %s542_s24 = sshll.u32 %s829_s23, 4  ;;  %s543_s24 = int_to_ptr.vmem [resolvable:$true] %s542_s24 }
 0x1e8   : > { %s787_s25 = scalar_lea.vmem %s543_s24, 32  ;;  %p794_p9 = scmp.lt.s32.totalorder %s543_s24, %s543_s24 }
 0x1e9   : > { %527 = vst.msk [vmem:[#allocation2] sm:$0x3] %vm426_vm1, %v526_v20  ;;  %p788_p6 = scmp.ne.s32.totalorder %s543_s24, %s787_s25  ;;  %p795_p10 = scmp.lt.s32.totalorder %s787_s25, %s787_s25 }
 0x1eb   : > { %p789_p7 = pnand %p788_p6, %p772_p5  ;;  %p796_p11 = por %p795_p10, %p794_p9 }
 0x1ed   : > { %p790_p8 = pneg %p789_p7 }
 0x1ef   : > { %p797_p12 = pnand %p796_p11, %p790_p8 }
 0x1f1   : > { %800 = shalt.err (!%p797_p12)
}
 0x1f2   : > { %s801_s28 = scalar_lea.hbm %s986_s6, 32 }
 0x1f3   : > { %p802_p13 = scmp.ne.s32.totalorder %s986_s6, %s801_s28  ;;  %p807_p2 = scmp.lt.u32.totalorder %s801_s28, %s986_s6 }
 0x1f5   : > { %p803_p0 = pnand %p802_p13, %p772_p5 }
 0x1f7   : > { %p804_p1 = pneg %p803_p0 }
 0x1f9   : > { %p809_p3 = pnand %p807_p2, %p804_p1 }
 0x1fb   : > { %812 = shalt.err (!%p809_p3)
}
 0x1fc   : > { %769 = dma.vmem_to_hbm [thread:$0]  (%p772_p5), %s543_s24, 32, %s986_s6, [#allocation3]  }
 0x1fd   : > { %818 = dma.done.wait (%p772_p5), [#allocation3], 32  }
 0x1fe   : > { %820 = vsyncadd (%p772_p5), [#allocation3], 4294967264 }
 0x1ff PF: > { %s18_s21 = sadd.s32 1, %s823_s21  }
 0x200   : > { %p15_p4 = scmp.ge.s32.totalorder %s18_s21, 8  }
 0x202   :  { %17 = sbr.rel (!%p15_p4) target bundleno = 1 (0x1), region = 92 }
 0x209   :  { %562 = vsyncpa [#allocation3], 1 }
 0x20a   :  { %564 = vsyncpa [#allocation3 + $0x1], 1 }

</bundles_post_ra>
